<compile_context>
chip_gen: v7x
topology: tpu7x:2x2x1
jax: 0.10.0
libtpu: 0.0.40
codegen_flags: <defaults>
</compile_context>

<pallas_src>
import math
import functools

import jax
import jax.numpy as jnp
from jax.experimental import pallas as pl
from jax.experimental.pallas import tpu as pltpu


def _dot_nn(a, b):
    # a @ b on the MXU, f32 accumulation
    return jax.lax.dot_general(a, b, (((1,), (0,)), ((), ())),
                               preferred_element_type=jnp.float32)


def _dot_nt(a, b):
    # a @ b.T on the MXU, f32 accumulation
    return jax.lax.dot_general(a, b, (((1,), (1,)), ((), ())),
                               preferred_element_type=jnp.float32)


def _fused_decoder_kernel(
        q_ref, mem_ref,
        sa_wqkv, sa_bqkv, sa_ow, sa_ob,
        ca_wq, ca_bq, ca_wkv, ca_bkv, ca_ow, ca_ob,
        l1_w, l1_b, l2_w, l2_b,
        n1, n2, n3, nf,
        out_ref, attn_ref,
        ctx_scr,
        *, nhead, bb, seq_q, seq_kv, q_valid, kv_valid,
        num_layers, eps, has_final_norm):
    D = q_ref.shape[-1]
    hd = D // nhead
    layer = pl.program_id(1)
    scale = 1.0 / math.sqrt(hd)

    # Layer 0: initialize the VMEM-resident output / attention accumulators.
    @pl.when(layer == 0)
    def _init():
        out_ref[...] = q_ref[...]
        attn_ref[...] = jnp.zeros_like(attn_ref)

    tgt = out_ref[...]          # (bb*seq_q, D) f32, evolving target (resident)
    mem_bf = mem_ref[...]       # (bb*seq_kv, D) bf16, resident across layers

    def layer_norm(x, gb_ref):
        gb = gb_ref[...]
        mu = jnp.mean(x, axis=-1, keepdims=True)
        var = jnp.mean(jnp.square(x - mu), axis=-1, keepdims=True)
        return (x - mu) * jax.lax.rsqrt(var + eps) * gb[0, :] + gb[1, :]

    def attention(q_all, k_all, v_all, kv_len, kv_valid_len, accumulate_attn):
        # q_all: (bb*seq_q, D) f32; k_all/v_all: (bb*kv_len, D) f32.
        # Writes lane-concatenated head contexts into ctx_scr (bf16) and,
        # if requested, accumulates head-summed attention into attn_ref.
        if kv_valid_len < kv_len:                       # static padding mask
            col = jax.lax.broadcasted_iota(jnp.int32, (1, kv_len), 1)
            key_bias = jnp.where(col < kv_valid_len, 0.0, -1e30).astype(jnp.float32)
        else:
            key_bias = None
        for b in range(bb):                             # batch-outer (static)
            q_b = q_all[b * seq_q:(b + 1) * seq_q, :]
            k_b = k_all[b * kv_len:(b + 1) * kv_len, :]
            v_b = v_all[b * kv_len:(b + 1) * kv_len, :]
            ctx_heads = []
            attn_acc = None
            for h in range(nhead):                      # head-inner (static)
                qh = q_b[:, h * hd:(h + 1) * hd].astype(jnp.bfloat16)
                kh = k_b[:, h * hd:(h + 1) * hd].astype(jnp.bfloat16)
                vh = v_b[:, h * hd:(h + 1) * hd].astype(jnp.bfloat16)
                s = _dot_nt(qh, kh) * scale             # (seq_q, kv_len) f32
                if key_bias is not None:
                    s = s + key_bias
                s = s - jnp.max(s, axis=-1, keepdims=True)
                e = jnp.exp(s)
                p = e / jnp.sum(e, axis=-1, keepdims=True)   # exact softmax
                ctx_heads.append(_dot_nn(p.astype(jnp.bfloat16), vh))
                if accumulate_attn:
                    attn_acc = p if attn_acc is None else attn_acc + p
            ctx_b = ctx_heads[0] if nhead == 1 else jnp.concatenate(ctx_heads, axis=-1)
            ctx_scr[pl.ds(b * seq_q, seq_q), :] = ctx_b.astype(jnp.bfloat16)
            if accumulate_attn:
                rows = pl.ds(b * seq_q, seq_q)
                attn_ref[rows, :] = attn_ref[rows, :] + attn_acc
        return ctx_scr[...]

    # ---------------- self-attention (one fused QKV projection) ----------------
    tgt_bf = tgt.astype(jnp.bfloat16)
    qkv = _dot_nn(tgt_bf, sa_wqkv[...]) + sa_bqkv[...]          # (rows, 3D) f32
    ctx = attention(qkv[:, 0 * D:1 * D], qkv[:, 1 * D:2 * D], qkv[:, 2 * D:3 * D],
                    seq_q, q_valid, False)
    sa_out = _dot_nn(ctx, sa_ow[...]) + sa_ob[...]              # single out-proj
    tgt = layer_norm(tgt + sa_out, n1)

    # --------- cross-attention (Q from target, fused KV from bf16 memory) -------
    tgt_bf = tgt.astype(jnp.bfloat16)
    q_c = _dot_nn(tgt_bf, ca_wq[...]) + ca_bq[...]              # (rows, D)  f32
    kv_c = _dot_nn(mem_bf, ca_wkv[...]) + ca_bkv[...]           # (rows, 2D) f32
    ctx = attention(q_c, kv_c[:, 0 * D:1 * D], kv_c[:, 1 * D:2 * D],
                    seq_kv, kv_valid, True)
    ca_out = _dot_nn(ctx, ca_ow[...]) + ca_ob[...]
    tgt = layer_norm(tgt + ca_out, n2)

    # ------------------------------ feed-forward --------------------------------
    hid = jnp.maximum(_dot_nn(tgt.astype(jnp.bfloat16), l1_w[...]) + l1_b[...], 0.0)
    ff = _dot_nn(hid.astype(jnp.bfloat16), l2_w[...]) + l2_b[...]
    tgt = layer_norm(tgt + ff, n3)

    out_ref[...] = tgt

    # Last-layer epilogue: fold in the 1/(nhead*num_layers) attention mean and
    # the optional final LayerNorm (single extra VMEM write on the last layer).
    @pl.when(layer == num_layers - 1)
    def _epilogue():
        attn_ref[...] = attn_ref[...] * (1.0 / (nhead * num_layers))
        if has_final_norm:
            out_ref[...] = layer_norm(tgt, nf)


def pack_params(params):
    """Stack per-layer weights with a leading layer axis, pre-transpose so all
    kernel matmuls are plain A @ B, fuse QKV / KV, cast weights to bf16."""
    layers = params['layers']
    D = layers[0]['sa_w'].shape[1]

    def stack(fn, dtype=None):
        a = jnp.stack([fn(lp) for lp in layers])
        return a.astype(dtype) if dtype is not None else a.astype(jnp.float32)

    p = {}
    # self-attention: fused QKV projection (D, 3D), fused bias (1, 3D)
    p['sa_wqkv'] = stack(lambda lp: lp['sa_w'].T, jnp.bfloat16)
    p['sa_bqkv'] = stack(lambda lp: lp['sa_b'].reshape(1, 3 * D))
    p['sa_ow'] = stack(lambda lp: lp['sa_ow'].T, jnp.bfloat16)      # (D, D)
    p['sa_ob'] = stack(lambda lp: lp['sa_ob'].reshape(1, D))
    # cross-attention: Q projection (D, D), fused KV projection (D, 2D)
    p['ca_wq'] = stack(lambda lp: lp['ca_w'][:D].T, jnp.bfloat16)
    p['ca_bq'] = stack(lambda lp: lp['ca_b'][0].reshape(1, D))
    p['ca_wkv'] = stack(lambda lp: lp['ca_w'][D:].T, jnp.bfloat16)
    p['ca_bkv'] = stack(lambda lp: lp['ca_b'][1:].reshape(1, 2 * D))
    p['ca_ow'] = stack(lambda lp: lp['ca_ow'].T, jnp.bfloat16)
    p['ca_ob'] = stack(lambda lp: lp['ca_ob'].reshape(1, D))
    # FFN
    p['l1_w'] = stack(lambda lp: lp['l1_w'].T, jnp.bfloat16)        # (D, F)
    p['l1_b'] = stack(lambda lp: lp['l1_b'].reshape(1, -1))
    p['l2_w'] = stack(lambda lp: lp['l2_w'].T, jnp.bfloat16)        # (F, D)
    p['l2_b'] = stack(lambda lp: lp['l2_b'].reshape(1, D))
    p['n1'] = stack(lambda lp: lp['n1'])
    p['n2'] = stack(lambda lp: lp['n2'])
    p['n3'] = stack(lambda lp: lp['n3'])
    return p


def _round_up(x, m):
    return (x + m - 1) // m * m


def transformer_decoder(queries, memory, params, nhead, batch_block=None):
    """Mirrors TransformerDecoderWithAttentionCR.forward (single fused kernel).

    batch_block=None -> one batch block (nb=1): best for single-TC chips
    (v5e/v6e, no weight re-streaming).  On v7x pass batch_block=B//2 so the
    'parallel' batch axis shards across both TensorCores.
    """
    B, L, D = queries.shape
    S = memory.shape[1]
    NL = len(params['layers'])
    F_ = params['layers'][0]['l1_w'].shape[0]
    assert D % nhead == 0

    # sublane-align query length; lane-densify the attention (key) length.
    L_pad = _round_up(L, 8)
    S_pad = _round_up(S, 128)

    bb = B if batch_block is None else batch_block
    assert B % bb == 0
    nb = B // bb

    packed = pack_params(params)
    has_final_norm = params['norm'] is not None
    if has_final_norm:
        nf = jnp.stack(params['norm']).astype(jnp.float32)
    else:
        nf = jnp.stack([jnp.ones((D,), jnp.float32), jnp.zeros((D,), jnp.float32)])

    # Fold batch into the matmul M dimension; memory goes in as bf16 (the only
    # way it is consumed is as an MXU operand), queries stay f32.
    q_p = jnp.pad(queries.astype(jnp.float32), ((0, 0), (0, L_pad - L), (0, 0)))
    m_p = jnp.pad(memory.astype(jnp.float32), ((0, 0), (0, S_pad - S), (0, 0)))
    q2 = q_p.reshape(B * L_pad, D)
    m2 = m_p.reshape(B * S_pad, D).astype(jnp.bfloat16)

    def act_spec(rows, cols):
        return pl.BlockSpec((rows, cols), lambda b, l: (b, 0))

    def wspec(shape):      # per-layer stacked weight, streamed over the layer axis
        nd = len(shape)
        return pl.BlockSpec((None,) + shape, lambda b, l, nd=nd: (l,) + (0,) * nd)

    def cspec(shape):      # layer-independent constant (resident)
        nd = len(shape)
        return pl.BlockSpec(shape, lambda b, l, nd=nd: (0,) * nd)

    in_specs = [
        act_spec(bb * L_pad, D),                                           # queries
        act_spec(bb * S_pad, D),                                           # memory (bf16)
        wspec((D, 3 * D)), wspec((1, 3 * D)), wspec((D, D)), wspec((1, D)),      # self-attn
        wspec((D, D)), wspec((1, D)), wspec((D, 2 * D)), wspec((1, 2 * D)),      # cross-attn
        wspec((D, D)), wspec((1, D)),
        wspec((D, F_)), wspec((1, F_)), wspec((F_, D)), wspec((1, D)),           # FFN
        wspec((2, D)), wspec((2, D)), wspec((2, D)),                             # norms
        cspec((2, D)),                                                           # final norm
    ]

    args = (q2, m2,
            packed['sa_wqkv'], packed['sa_bqkv'], packed['sa_ow'], packed['sa_ob'],
            packed['ca_wq'], packed['ca_bq'], packed['ca_wkv'], packed['ca_bkv'],
            packed['ca_ow'], packed['ca_ob'],
            packed['l1_w'], packed['l1_b'], packed['l2_w'], packed['l2_b'],
            packed['n1'], packed['n2'], packed['n3'], nf)

    # ---- explicit VMEM budget: 2x streamed per-layer weights + resident blocks ----
    def nbytes(shape, itemsize):
        n = 1
        for d in shape:
            n *= d
        return n * itemsize

    w_layer = (nbytes((D, 3 * D), 2) + nbytes((1, 3 * D), 4)
               + 3 * nbytes((D, D), 2) + 4 * nbytes((1, D), 4)
               + nbytes((D, 2 * D), 2) + nbytes((1, 2 * D), 4)
               + nbytes((D, F_), 2) + nbytes((1, F_), 4) + nbytes((F_, D), 2)
               + 3 * nbytes((2, D), 4))
    act_b = (2 * nbytes((bb * L_pad, D), 4)          # queries block + out block
             + nbytes((bb * S_pad, D), 2)            # memory block (bf16)
             + nbytes((bb * L_pad, S_pad), 4))       # attention block
    est = 2 * w_layer + 2 * act_b + nbytes((bb * L_pad, D), 2) + nbytes((2, D), 4)
    vmem_limit = max(32 << 20, int(1.5 * est) + (2 << 20))
    try:
        cap = int(pltpu.get_tpu_info().vmem_capacity_bytes)
    except Exception:
        cap = 64 << 20                               # conservative (v7x per-TC)
    vmem_limit = min(vmem_limit, cap - (2 << 20))

    kernel = functools.partial(
        _fused_decoder_kernel, nhead=nhead, bb=bb, seq_q=L_pad, seq_kv=S_pad,
        q_valid=L, kv_valid=S, num_layers=NL, eps=1e-5,
        has_final_norm=has_final_norm)

    out2, attn2 = pl.pallas_call(
        kernel,
        out_shape=(jax.ShapeDtypeStruct((B * L_pad, D), jnp.float32),
                   jax.ShapeDtypeStruct((B * L_pad, S_pad), jnp.float32)),
        grid=(nb, NL),
        in_specs=in_specs,
        out_specs=(act_spec(bb * L_pad, D), act_spec(bb * L_pad, S_pad)),
        scratch_shapes=[pltpu.VMEM((bb * L_pad, D), jnp.bfloat16)],   # head-concat ctx
        compiler_params=pltpu.CompilerParams(
            dimension_semantics=("parallel", "arbitrary"),
            vmem_limit_bytes=vmem_limit),
    )(*args)

    out = out2.reshape(B, L_pad, D)[:, :L, :]
    attn = attn2.reshape(B, L_pad, S_pad)[:, :L, :S]
    return out, attn


def init_params(key, num_layers, D, F_, with_final_norm=True):
    params = {'layers': []}
    s = 0.1
    for _ in range(num_layers):
        key, *ks = jax.random.split(key, 19)
        lp = {
            'sa_w': jax.random.normal(ks[0], (3 * D, D), jnp.float32) * s,
            'sa_b': jax.random.normal(ks[1], (3, D), jnp.float32) * s,
            'sa_ow': jax.random.normal(ks[2], (D, D), jnp.float32) * s,
            'sa_ob': jax.random.normal(ks[3], (1, D), jnp.float32) * s,
            'ca_w': jax.random.normal(ks[4], (3 * D, D), jnp.float32) * s,
            'ca_b': jax.random.normal(ks[5], (3, D), jnp.float32) * s,
            'ca_ow': jax.random.normal(ks[6], (D, D), jnp.float32) * s,
            'ca_ob': jax.random.normal(ks[7], (1, D), jnp.float32) * s,
            'l1_w': jax.random.normal(ks[8], (F_, D), jnp.float32) * s,
            'l1_b': jax.random.normal(ks[9], (1, F_), jnp.float32) * s,
            'l2_w': jax.random.normal(ks[10], (D, F_), jnp.float32) * s,
            'l2_b': jax.random.normal(ks[11], (1, D), jnp.float32) * s,
            'n1': jnp.stack([1.0 + s * jax.random.normal(ks[12], (D,)),
                             s * jax.random.normal(ks[13], (D,))]),
            'n2': jnp.stack([1.0 + s * jax.random.normal(ks[14], (D,)),
                             s * jax.random.normal(ks[15], (D,))]),
            'n3': jnp.stack([1.0 + s * jax.random.normal(ks[16], (D,)),
                             s * jax.random.normal(ks[17], (D,))]),
        }
        params['layers'].append(lp)
    if with_final_norm:
        key, k1, k2 = jax.random.split(key, 3)
        params['norm'] = (1.0 + s * jax.random.normal(k1, (D,)),
                          s * jax.random.normal(k2, (D,)))
    else:
        params['norm'] = None
    return params


# ------------------- pure-JAX reference (bf16-matmul matched) -------------------
def _ref_layer(tgt, mem, p, nhead):
    D = tgt.shape[-1]
    hd = D // nhead
    bf = lambda x: x.astype(jnp.bfloat16)

    def mm(a, w):   # a @ w.T with bf16 inputs, f32 accumulation (matches kernel)
        return jnp.einsum('...d,ed->...e', bf(a), bf(w),
                          preferred_element_type=jnp.float32)

    def ln(x, gb):
        mu = x.mean(-1, keepdims=True)
        var = ((x - mu) ** 2).mean(-1, keepdims=True)
        return (x - mu) / jnp.sqrt(var + 1e-5) * gb[0] + gb[1]

    def mha(xq, xkv, w, b, ow, ob):
        q = bf(mm(xq, w[:D]) + b[0])
        k = bf(mm(xkv, w[D:2 * D]) + b[1])
        v = bf(mm(xkv, w[2 * D:]) + b[2])
        B_, L_, _ = q.shape
        S_ = k.shape[1]
        q = q.reshape(B_, L_, nhead, hd).transpose(0, 2, 1, 3)
        k = k.reshape(B_, S_, nhead, hd).transpose(0, 2, 1, 3)
        v = v.reshape(B_, S_, nhead, hd).transpose(0, 2, 1, 3)
        sc = jnp.einsum('bhld,bhsd->bhls', q, k,
                        preferred_element_type=jnp.float32) / math.sqrt(hd)
        pw = jax.nn.softmax(sc, axis=-1)
        ctx = jnp.einsum('bhls,bhsd->bhld', bf(pw), v,
                         preferred_element_type=jnp.float32)
        ctx = ctx.transpose(0, 2, 1, 3).reshape(B_, L_, D)
        return mm(ctx, ow) + ob[0], pw.mean(axis=1)

    sa, _ = mha(tgt, tgt, p['sa_w'], p['sa_b'], p['sa_ow'], p['sa_ob'])
    tgt = ln(tgt + sa, p['n1'])
    ca, attn = mha(tgt, mem, p['ca_w'], p['ca_b'], p['ca_ow'], p['ca_ob'])
    tgt = ln(tgt + ca, p['n2'])
    ff = mm(jnp.maximum(mm(tgt, p['l1_w']) + p['l1_b'][0], 0.0),
            p['l2_w']) + p['l2_b'][0]
    tgt = ln(tgt + ff, p['n3'])
    return tgt, attn


def _ref_decoder(queries, memory, params, nhead):
    out = queries
    attns = []
    for lp in params['layers']:
        out, a = _ref_layer(out, memory, lp, nhead)
        attns.append(a)
    if params['norm'] is not None:
        g, b = params['norm']
        mu = out.mean(-1, keepdims=True)
        var = ((out - mu) ** 2).mean(-1, keepdims=True)
        out = (out - mu) / jnp.sqrt(var + 1e-5) * g + b
    return out, jnp.mean(jnp.stack(attns), axis=0)


if __name__ == "__main__":
    B, L, S, D, NHEAD, FF, NUM_LAYERS = 4, 8, 16, 32, 4, 64, 2
    key = jax.random.PRNGKey(0)
    kq, km, kp = jax.random.split(key, 3)
    queries = jax.random.normal(kq, (B, L, D), jnp.float32)
    memory = jax.random.normal(km, (B, S, D), jnp.float32)
    params = init_params(kp, NUM_LAYERS, D, FF)

    ref_out, ref_attn = _ref_decoder(queries, memory, params, NHEAD)

    # Default: one batch block (nb=1) -> no weight re-streaming (v5e/v6e sweet spot).
    out, avg_attn = transformer_decoder(queries, memory, params, NHEAD)
    jax.block_until_ready((out, avg_attn))

    assert out.shape == (B, L, D) and avg_attn.shape == (B, L, S)
    assert jnp.allclose(out, ref_out, atol=1e-2, rtol=1e-2), \
        float(jnp.max(jnp.abs(out - ref_out)))
    assert jnp.allclose(avg_attn, ref_attn, atol=5e-3, rtol=5e-3), \
        float(jnp.max(jnp.abs(avg_attn - ref_attn)))
    assert jnp.allclose(avg_attn.sum(-1), 1.0, atol=1e-3)

    # Megacore-style path (two batch blocks, as recommended for v7x): same result.
    out2, avg_attn2 = transformer_decoder(queries, memory, params, NHEAD,
                                          batch_block=B // 2)
    jax.block_until_ready((out2, avg_attn2))
    assert jnp.allclose(out2, ref_out, atol=1e-2, rtol=1e-2)
    assert jnp.allclose(avg_attn2, ref_attn, atol=5e-3, rtol=5e-3)

    print("KERNEL_OK")
</pallas_src>

<mosaic_0001>
module attributes {stable_mosaic.version = 11 : i64} {
  func.func @_fused_decoder_kernel(%arg0: i32, %arg1: i32, %arg2: memref<32x32xf32, #tpu.memory_space<vmem>>, %arg3: memref<512x32xbf16, #tpu.memory_space<vmem>>, %arg4: memref<1x32x96xbf16, #tpu.memory_space<vmem>>, %arg5: memref<1x1x96xf32, #tpu.memory_space<vmem>>, %arg6: memref<1x32x32xbf16, #tpu.memory_space<vmem>>, %arg7: memref<1x1x32xf32, #tpu.memory_space<vmem>>, %arg8: memref<1x32x32xbf16, #tpu.memory_space<vmem>>, %arg9: memref<1x1x32xf32, #tpu.memory_space<vmem>>, %arg10: memref<1x32x64xbf16, #tpu.memory_space<vmem>>, %arg11: memref<1x1x64xf32, #tpu.memory_space<vmem>>, %arg12: memref<1x32x32xbf16, #tpu.memory_space<vmem>>, %arg13: memref<1x1x32xf32, #tpu.memory_space<vmem>>, %arg14: memref<1x32x64xbf16, #tpu.memory_space<vmem>>, %arg15: memref<1x1x64xf32, #tpu.memory_space<vmem>>, %arg16: memref<1x64x32xbf16, #tpu.memory_space<vmem>>, %arg17: memref<1x1x32xf32, #tpu.memory_space<vmem>>, %arg18: memref<1x2x32xf32, #tpu.memory_space<vmem>>, %arg19: memref<1x2x32xf32, #tpu.memory_space<vmem>>, %arg20: memref<1x2x32xf32, #tpu.memory_space<vmem>>, %arg21: memref<2x32xf32, #tpu.memory_space<vmem>>, %arg22: memref<32x32xf32, #tpu.memory_space<vmem>>, %arg23: memref<32x128xf32, #tpu.memory_space<vmem>>, %arg24: memref<32x32xbf16, #tpu.memory_space<vmem>>) attributes {dimension_semantics = [#tpu.dimension_semantics<parallel>, #tpu.dimension_semantics<arbitrary>], iteration_bounds = array<i64: 1, 2>, scalar_prefetch = 0 : i64, scratch_operands = 1 : i64, tpu.core_type = #tpu.core_type<tc>, window_params = [{transform_indices = @transform_0, window_bounds = array<i64: 32, 32>}, {transform_indices = @transform_1, window_bounds = array<i64: 512, 32>}, {transform_indices = @transform_2, window_bounds = array<i64: 1, 32, 96>}, {transform_indices = @transform_3, window_bounds = array<i64: 1, 1, 96>}, {transform_indices = @transform_4, window_bounds = array<i64: 1, 32, 32>}, {transform_indices = @transform_5, window_bounds = array<i64: 1, 1, 32>}, {transform_indices = @transform_6, window_bounds = array<i64: 1, 32, 32>}, {transform_indices = @transform_7, window_bounds = array<i64: 1, 1, 32>}, {transform_indices = @transform_8, window_bounds = array<i64: 1, 32, 64>}, {transform_indices = @transform_9, window_bounds = array<i64: 1, 1, 64>}, {transform_indices = @transform_10, window_bounds = array<i64: 1, 32, 32>}, {transform_indices = @transform_11, window_bounds = array<i64: 1, 1, 32>}, {transform_indices = @transform_12, window_bounds = array<i64: 1, 32, 64>}, {transform_indices = @transform_13, window_bounds = array<i64: 1, 1, 64>}, {transform_indices = @transform_14, window_bounds = array<i64: 1, 64, 32>}, {transform_indices = @transform_15, window_bounds = array<i64: 1, 1, 32>}, {transform_indices = @transform_16, window_bounds = array<i64: 1, 2, 32>}, {transform_indices = @transform_17, window_bounds = array<i64: 1, 2, 32>}, {transform_indices = @transform_18, window_bounds = array<i64: 1, 2, 32>}, {pipeline_mode = #tpu.pipeline_mode<synchronous>, transform_indices = @transform_19, window_bounds = array<i64: 2, 32>}, {transform_indices = @transform_20, window_bounds = array<i64: 32, 32>}, {transform_indices = @transform_21, window_bounds = array<i64: 32, 128>}]} {
    %c0_i32 = arith.constant 0 : i32
    %0 = arith.cmpi eq, %arg1, %c0_i32 : i32
    %1 = arith.extui %0 : i1 to i32
    %c0_i32_0 = arith.constant 0 : i32
    %2 = arith.cmpi ne, %1, %c0_i32_0 : i32
    scf.if %2 {
      %c0_275 = arith.constant 0 : index
      %c0_276 = arith.constant 0 : index
      %914 = vector.load %arg2[%c0_275, %c0_276] : memref<32x32xf32, #tpu.memory_space<vmem>>, vector<32x32xf32>
      %c0_277 = arith.constant 0 : index
      %c0_278 = arith.constant 0 : index
      %915 = vector.load %arg22[%c0_277, %c0_278] : memref<32x32xf32, #tpu.memory_space<vmem>>, vector<32x32xf32>
      tpu.vector_store %arg22[%c0_277, %c0_278], %914 {strides = array<i32>} : memref<32x32xf32, #tpu.memory_space<vmem>>, vector<32x32xf32>,
      %cst_279 = arith.constant 0.000000e+00 : f32
      %916 = vector.broadcast %cst_279 : f32 to vector<32x128xf32>
      %c0_280 = arith.constant 0 : index
      %c0_281 = arith.constant 0 : index
      %917 = vector.load %arg23[%c0_280, %c0_281] : memref<32x128xf32, #tpu.memory_space<vmem>>, vector<32x128xf32>
      tpu.vector_store %arg23[%c0_280, %c0_281], %916 {strides = array<i32>} : memref<32x128xf32, #tpu.memory_space<vmem>>, vector<32x128xf32>,
    } else {
    }
    %c0 = arith.constant 0 : index
    %c0_1 = arith.constant 0 : index
    %3 = vector.load %arg22[%c0, %c0_1] : memref<32x32xf32, #tpu.memory_space<vmem>>, vector<32x32xf32>
    %c0_2 = arith.constant 0 : index
    %c0_3 = arith.constant 0 : index
    %4 = vector.load %arg3[%c0_2, %c0_3] : memref<512x32xbf16, #tpu.memory_space<vmem>>, vector<512x32xbf16>
    %5 = arith.truncf %3 : vector<32x32xf32> to vector<32x32xbf16>
    %c0_4 = arith.constant 0 : index
    %c0_5 = arith.constant 0 : index
    %c0_6 = arith.constant 0 : index
    %6 = vector.load %arg4[%c0_4, %c0_5, %c0_6] : memref<1x32x96xbf16, #tpu.memory_space<vmem>>, vector<1x32x96xbf16>
    %7 = vector.shape_cast %6 : vector<1x32x96xbf16> to vector<32x96xbf16>
    %cst = arith.constant dense<0.000000e+00> : vector<32x96xf32>
    %8 = tpu.matmul %5, %7, %cst {dimension_numbers = #tpu.dot_dimension_numbers<[1], [0], [0], [1], [0, 0, 1, 1], [], []>} : vector<32x32xbf16>, vector<32x96xbf16>, vector<32x96xf32> -> vector<32x96xf32>
    %c0_7 = arith.constant 0 : index
    %c0_8 = arith.constant 0 : index
    %c0_9 = arith.constant 0 : index
    %9 = vector.load %arg5[%c0_7, %c0_8, %c0_9] : memref<1x1x96xf32, #tpu.memory_space<vmem>>, vector<1x1x96xf32>
    %10 = vector.shape_cast %9 : vector<1x1x96xf32> to vector<1x96xf32>
    %11 = vector.broadcast %10 : vector<1x96xf32> to vector<32x96xf32>
    %12 = arith.addf %8, %11 : vector<32x96xf32>
    %13 = vector.extract_strided_slice %12 {offsets = [0, 0], sizes = [32, 32], strides = [1, 1]} : vector<32x96xf32> to vector<32x32xf32>
    %14 = vector.extract_strided_slice %12 {offsets = [0, 32], sizes = [32, 32], strides = [1, 1]} : vector<32x96xf32> to vector<32x32xf32>
    %15 = vector.extract_strided_slice %12 {offsets = [0, 64], sizes = [32, 32], strides = [1, 1]} : vector<32x96xf32> to vector<32x32xf32>
    %16 = vector.extract_strided_slice %13 {offsets = [0, 0], sizes = [8, 32], strides = [1, 1]} : vector<32x32xf32> to vector<8x32xf32>
    %17 = vector.extract_strided_slice %14 {offsets = [0, 0], sizes = [8, 32], strides = [1, 1]} : vector<32x32xf32> to vector<8x32xf32>
    %18 = vector.extract_strided_slice %15 {offsets = [0, 0], sizes = [8, 32], strides = [1, 1]} : vector<32x32xf32> to vector<8x32xf32>
    %19 = vector.extract_strided_slice %16 {offsets = [0, 0], sizes = [8, 8], strides = [1, 1]} : vector<8x32xf32> to vector<8x8xf32>
    %20 = arith.truncf %19 : vector<8x8xf32> to vector<8x8xbf16>
    %21 = vector.extract_strided_slice %17 {offsets = [0, 0], sizes = [8, 8], strides = [1, 1]} : vector<8x32xf32> to vector<8x8xf32>
    %22 = arith.truncf %21 : vector<8x8xf32> to vector<8x8xbf16>
    %23 = vector.extract_strided_slice %18 {offsets = [0, 0], sizes = [8, 8], strides = [1, 1]} : vector<8x32xf32> to vector<8x8xf32>
    %24 = arith.truncf %23 : vector<8x8xf32> to vector<8x8xbf16>
    %cst_10 = arith.constant dense<0.000000e+00> : vector<8x8xf32>
    %25 = tpu.matmul %20, %22, %cst_10 {dimension_numbers = #tpu.dot_dimension_numbers<[1], [1], [0], [0], [0, 0, 1, 0], [], []>} : vector<8x8xbf16>, vector<8x8xbf16>, vector<8x8xf32> -> vector<8x8xf32>
    %cst_11 = arith.constant 0.353553385 : f32
    %26 = vector.broadcast %cst_11 : f32 to vector<8x8xf32>
    %27 = arith.mulf %25, %26 : vector<8x8xf32>
    %cst_12 = arith.constant dense<0xFF800000> : vector<8xf32>
    %28 = vector.multi_reduction <maximumf>, %27, %cst_12 [1] : vector<8x8xf32> to vector<8xf32>
    %29 = vector.shape_cast %28 : vector<8xf32> to vector<8x1xf32>
    %30 = vector.broadcast %29 : vector<8x1xf32> to vector<8x8xf32>
    %31 = arith.subf %27, %30 : vector<8x8xf32>
    %32 = math.exp %31 : vector<8x8xf32>
    %cst_13 = arith.constant dense<0.000000e+00> : vector<8xf32>
    %33 = vector.multi_reduction <add>, %32, %cst_13 [1] : vector<8x8xf32> to vector<8xf32>
    %34 = vector.shape_cast %33 : vector<8xf32> to vector<8x1xf32>
    %35 = vector.broadcast %34 : vector<8x1xf32> to vector<8x8xf32>
    %36 = arith.divf %32, %35 : vector<8x8xf32>
    %37 = arith.truncf %36 : vector<8x8xf32> to vector<8x8xbf16>
    %cst_14 = arith.constant dense<0.000000e+00> : vector<8x8xf32>
    %38 = tpu.matmul %37, %24, %cst_14 {dimension_numbers = #tpu.dot_dimension_numbers<[1], [0], [0], [1], [0, 0, 1, 1], [], []>} : vector<8x8xbf16>, vector<8x8xbf16>, vector<8x8xf32> -> vector<8x8xf32>
    %39 = vector.extract_strided_slice %16 {offsets = [0, 8], sizes = [8, 8], strides = [1, 1]} : vector<8x32xf32> to vector<8x8xf32>
    %40 = arith.truncf %39 : vector<8x8xf32> to vector<8x8xbf16>
    %41 = vector.extract_strided_slice %17 {offsets = [0, 8], sizes = [8, 8], strides = [1, 1]} : vector<8x32xf32> to vector<8x8xf32>
    %42 = arith.truncf %41 : vector<8x8xf32> to vector<8x8xbf16>
    %43 = vector.extract_strided_slice %18 {offsets = [0, 8], sizes = [8, 8], strides = [1, 1]} : vector<8x32xf32> to vector<8x8xf32>
    %44 = arith.truncf %43 : vector<8x8xf32> to vector<8x8xbf16>
    %cst_15 = arith.constant dense<0.000000e+00> : vector<8x8xf32>
    %45 = tpu.matmul %40, %42, %cst_15 {dimension_numbers = #tpu.dot_dimension_numbers<[1], [1], [0], [0], [0, 0, 1, 0], [], []>} : vector<8x8xbf16>, vector<8x8xbf16>, vector<8x8xf32> -> vector<8x8xf32>
    %cst_16 = arith.constant 0.353553385 : f32
    %46 = vector.broadcast %cst_16 : f32 to vector<8x8xf32>
    %47 = arith.mulf %45, %46 : vector<8x8xf32>
    %cst_17 = arith.constant dense<0xFF800000> : vector<8xf32>
    %48 = vector.multi_reduction <maximumf>, %47, %cst_17 [1] : vector<8x8xf32> to vector<8xf32>
    %49 = vector.shape_cast %48 : vector<8xf32> to vector<8x1xf32>
    %50 = vector.broadcast %49 : vector<8x1xf32> to vector<8x8xf32>
    %51 = arith.subf %47, %50 : vector<8x8xf32>
    %52 = math.exp %51 : vector<8x8xf32>
    %cst_18 = arith.constant dense<0.000000e+00> : vector<8xf32>
    %53 = vector.multi_reduction <add>, %52, %cst_18 [1] : vector<8x8xf32> to vector<8xf32>
    %54 = vector.shape_cast %53 : vector<8xf32> to vector<8x1xf32>
    %55 = vector.broadcast %54 : vector<8x1xf32> to vector<8x8xf32>
    %56 = arith.divf %52, %55 : vector<8x8xf32>
    %57 = arith.truncf %56 : vector<8x8xf32> to vector<8x8xbf16>
    %cst_19 = arith.constant dense<0.000000e+00> : vector<8x8xf32>
    %58 = tpu.matmul %57, %44, %cst_19 {dimension_numbers = #tpu.dot_dimension_numbers<[1], [0], [0], [1], [0, 0, 1, 1], [], []>} : vector<8x8xbf16>, vector<8x8xbf16>, vector<8x8xf32> -> vector<8x8xf32>
    %59 = vector.extract_strided_slice %16 {offsets = [0, 16], sizes = [8, 8], strides = [1, 1]} : vector<8x32xf32> to vector<8x8xf32>
    %60 = arith.truncf %59 : vector<8x8xf32> to vector<8x8xbf16>
    %61 = vector.extract_strided_slice %17 {offsets = [0, 16], sizes = [8, 8], strides = [1, 1]} : vector<8x32xf32> to vector<8x8xf32>
    %62 = arith.truncf %61 : vector<8x8xf32> to vector<8x8xbf16>
    %63 = vector.extract_strided_slice %18 {offsets = [0, 16], sizes = [8, 8], strides = [1, 1]} : vector<8x32xf32> to vector<8x8xf32>
    %64 = arith.truncf %63 : vector<8x8xf32> to vector<8x8xbf16>
    %cst_20 = arith.constant dense<0.000000e+00> : vector<8x8xf32>
    %65 = tpu.matmul %60, %62, %cst_20 {dimension_numbers = #tpu.dot_dimension_numbers<[1], [1], [0], [0], [0, 0, 1, 0], [], []>} : vector<8x8xbf16>, vector<8x8xbf16>, vector<8x8xf32> -> vector<8x8xf32>
    %cst_21 = arith.constant 0.353553385 : f32
    %66 = vector.broadcast %cst_21 : f32 to vector<8x8xf32>
    %67 = arith.mulf %65, %66 : vector<8x8xf32>
    %cst_22 = arith.constant dense<0xFF800000> : vector<8xf32>
    %68 = vector.multi_reduction <maximumf>, %67, %cst_22 [1] : vector<8x8xf32> to vector<8xf32>
    %69 = vector.shape_cast %68 : vector<8xf32> to vector<8x1xf32>
    %70 = vector.broadcast %69 : vector<8x1xf32> to vector<8x8xf32>
    %71 = arith.subf %67, %70 : vector<8x8xf32>
    %72 = math.exp %71 : vector<8x8xf32>
    %cst_23 = arith.constant dense<0.000000e+00> : vector<8xf32>
    %73 = vector.multi_reduction <add>, %72, %cst_23 [1] : vector<8x8xf32> to vector<8xf32>
    %74 = vector.shape_cast %73 : vector<8xf32> to vector<8x1xf32>
    %75 = vector.broadcast %74 : vector<8x1xf32> to vector<8x8xf32>
    %76 = arith.divf %72, %75 : vector<8x8xf32>
    %77 = arith.truncf %76 : vector<8x8xf32> to vector<8x8xbf16>
    %cst_24 = arith.constant dense<0.000000e+00> : vector<8x8xf32>
    %78 = tpu.matmul %77, %64, %cst_24 {dimension_numbers = #tpu.dot_dimension_numbers<[1], [0], [0], [1], [0, 0, 1, 1], [], []>} : vector<8x8xbf16>, vector<8x8xbf16>, vector<8x8xf32> -> vector<8x8xf32>
    %79 = vector.extract_strided_slice %16 {offsets = [0, 24], sizes = [8, 8], strides = [1, 1]} : vector<8x32xf32> to vector<8x8xf32>
    %80 = arith.truncf %79 : vector<8x8xf32> to vector<8x8xbf16>
    %81 = vector.extract_strided_slice %17 {offsets = [0, 24], sizes = [8, 8], strides = [1, 1]} : vector<8x32xf32> to vector<8x8xf32>
    %82 = arith.truncf %81 : vector<8x8xf32> to vector<8x8xbf16>
    %83 = vector.extract_strided_slice %18 {offsets = [0, 24], sizes = [8, 8], strides = [1, 1]} : vector<8x32xf32> to vector<8x8xf32>
    %84 = arith.truncf %83 : vector<8x8xf32> to vector<8x8xbf16>
    %cst_25 = arith.constant dense<0.000000e+00> : vector<8x8xf32>
    %85 = tpu.matmul %80, %82, %cst_25 {dimension_numbers = #tpu.dot_dimension_numbers<[1], [1], [0], [0], [0, 0, 1, 0], [], []>} : vector<8x8xbf16>, vector<8x8xbf16>, vector<8x8xf32> -> vector<8x8xf32>
    %cst_26 = arith.constant 0.353553385 : f32
    %86 = vector.broadcast %cst_26 : f32 to vector<8x8xf32>
    %87 = arith.mulf %85, %86 : vector<8x8xf32>
    %cst_27 = arith.constant dense<0xFF800000> : vector<8xf32>
    %88 = vector.multi_reduction <maximumf>, %87, %cst_27 [1] : vector<8x8xf32> to vector<8xf32>
    %89 = vector.shape_cast %88 : vector<8xf32> to vector<8x1xf32>
    %90 = vector.broadcast %89 : vector<8x1xf32> to vector<8x8xf32>
    %91 = arith.subf %87, %90 : vector<8x8xf32>
    %92 = math.exp %91 : vector<8x8xf32>
    %cst_28 = arith.constant dense<0.000000e+00> : vector<8xf32>
    %93 = vector.multi_reduction <add>, %92, %cst_28 [1] : vector<8x8xf32> to vector<8xf32>
    %94 = vector.shape_cast %93 : vector<8xf32> to vector<8x1xf32>
    %95 = vector.broadcast %94 : vector<8x1xf32> to vector<8x8xf32>
    %96 = arith.divf %92, %95 : vector<8x8xf32>
    %97 = arith.truncf %96 : vector<8x8xf32> to vector<8x8xbf16>
    %cst_29 = arith.constant dense<0.000000e+00> : vector<8x8xf32>
    %98 = tpu.matmul %97, %84, %cst_29 {dimension_numbers = #tpu.dot_dimension_numbers<[1], [0], [0], [1], [0, 0, 1, 1], [], []>} : vector<8x8xbf16>, vector<8x8xbf16>, vector<8x8xf32> -> vector<8x8xf32>
    %99 = tpu.concatenate %38, %58, %78, %98 in 1 : vector<8x8xf32>, vector<8x8xf32>, vector<8x8xf32>, vector<8x8xf32> -> vector<8x32xf32>
    %100 = arith.truncf %99 : vector<8x32xf32> to vector<8x32xbf16>
    %c0_30 = arith.constant 0 : index
    %c0_31 = arith.constant 0 : index
    %101 = vector.load %arg24[%c0_30, %c0_31] : memref<32x32xbf16, #tpu.memory_space<vmem>>, vector<8x32xbf16>
    tpu.vector_store %arg24[%c0_30, %c0_31], %100 {strides = array<i32>} : memref<32x32xbf16, #tpu.memory_space<vmem>>, vector<8x32xbf16>,
    %102 = vector.extract_strided_slice %13 {offsets = [8, 0], sizes = [8, 32], strides = [1, 1]} : vector<32x32xf32> to vector<8x32xf32>
    %103 = vector.extract_strided_slice %14 {offsets = [8, 0], sizes = [8, 32], strides = [1, 1]} : vector<32x32xf32> to vector<8x32xf32>
    %104 = vector.extract_strided_slice %15 {offsets = [8, 0], sizes = [8, 32], strides = [1, 1]} : vector<32x32xf32> to vector<8x32xf32>
    %105 = vector.extract_strided_slice %102 {offsets = [0, 0], sizes = [8, 8], strides = [1, 1]} : vector<8x32xf32> to vector<8x8xf32>
    %106 = arith.truncf %105 : vector<8x8xf32> to vector<8x8xbf16>
    %107 = vector.extract_strided_slice %103 {offsets = [0, 0], sizes = [8, 8], strides = [1, 1]} : vector<8x32xf32> to vector<8x8xf32>
    %108 = arith.truncf %107 : vector<8x8xf32> to vector<8x8xbf16>
    %109 = vector.extract_strided_slice %104 {offsets = [0, 0], sizes = [8, 8], strides = [1, 1]} : vector<8x32xf32> to vector<8x8xf32>
    %110 = arith.truncf %109 : vector<8x8xf32> to vector<8x8xbf16>
    %cst_32 = arith.constant dense<0.000000e+00> : vector<8x8xf32>
    %111 = tpu.matmul %106, %108, %cst_32 {dimension_numbers = #tpu.dot_dimension_numbers<[1], [1], [0], [0], [0, 0, 1, 0], [], []>} : vector<8x8xbf16>, vector<8x8xbf16>, vector<8x8xf32> -> vector<8x8xf32>
    %cst_33 = arith.constant 0.353553385 : f32
    %112 = vector.broadcast %cst_33 : f32 to vector<8x8xf32>
    %113 = arith.mulf %111, %112 : vector<8x8xf32>
    %cst_34 = arith.constant dense<0xFF800000> : vector<8xf32>
    %114 = vector.multi_reduction <maximumf>, %113, %cst_34 [1] : vector<8x8xf32> to vector<8xf32>
    %115 = vector.shape_cast %114 : vector<8xf32> to vector<8x1xf32>
    %116 = vector.broadcast %115 : vector<8x1xf32> to vector<8x8xf32>
    %117 = arith.subf %113, %116 : vector<8x8xf32>
    %118 = math.exp %117 : vector<8x8xf32>
    %cst_35 = arith.constant dense<0.000000e+00> : vector<8xf32>
    %119 = vector.multi_reduction <add>, %118, %cst_35 [1] : vector<8x8xf32> to vector<8xf32>
    %120 = vector.shape_cast %119 : vector<8xf32> to vector<8x1xf32>
    %121 = vector.broadcast %120 : vector<8x1xf32> to vector<8x8xf32>
    %122 = arith.divf %118, %121 : vector<8x8xf32>
    %123 = arith.truncf %122 : vector<8x8xf32> to vector<8x8xbf16>
    %cst_36 = arith.constant dense<0.000000e+00> : vector<8x8xf32>
    %124 = tpu.matmul %123, %110, %cst_36 {dimension_numbers = #tpu.dot_dimension_numbers<[1], [0], [0], [1], [0, 0, 1, 1], [], []>} : vector<8x8xbf16>, vector<8x8xbf16>, vector<8x8xf32> -> vector<8x8xf32>
    %125 = vector.extract_strided_slice %102 {offsets = [0, 8], sizes = [8, 8], strides = [1, 1]} : vector<8x32xf32> to vector<8x8xf32>
    %126 = arith.truncf %125 : vector<8x8xf32> to vector<8x8xbf16>
    %127 = vector.extract_strided_slice %103 {offsets = [0, 8], sizes = [8, 8], strides = [1, 1]} : vector<8x32xf32> to vector<8x8xf32>
    %128 = arith.truncf %127 : vector<8x8xf32> to vector<8x8xbf16>
    %129 = vector.extract_strided_slice %104 {offsets = [0, 8], sizes = [8, 8], strides = [1, 1]} : vector<8x32xf32> to vector<8x8xf32>
    %130 = arith.truncf %129 : vector<8x8xf32> to vector<8x8xbf16>
    %cst_37 = arith.constant dense<0.000000e+00> : vector<8x8xf32>
    %131 = tpu.matmul %126, %128, %cst_37 {dimension_numbers = #tpu.dot_dimension_numbers<[1], [1], [0], [0], [0, 0, 1, 0], [], []>} : vector<8x8xbf16>, vector<8x8xbf16>, vector<8x8xf32> -> vector<8x8xf32>
    %cst_38 = arith.constant 0.353553385 : f32
    %132 = vector.broadcast %cst_38 : f32 to vector<8x8xf32>
    %133 = arith.mulf %131, %132 : vector<8x8xf32>
    %cst_39 = arith.constant dense<0xFF800000> : vector<8xf32>
    %134 = vector.multi_reduction <maximumf>, %133, %cst_39 [1] : vector<8x8xf32> to vector<8xf32>
    %135 = vector.shape_cast %134 : vector<8xf32> to vector<8x1xf32>
    %136 = vector.broadcast %135 : vector<8x1xf32> to vector<8x8xf32>
    %137 = arith.subf %133, %136 : vector<8x8xf32>
    %138 = math.exp %137 : vector<8x8xf32>
    %cst_40 = arith.constant dense<0.000000e+00> : vector<8xf32>
    %139 = vector.multi_reduction <add>, %138, %cst_40 [1] : vector<8x8xf32> to vector<8xf32>
    %140 = vector.shape_cast %139 : vector<8xf32> to vector<8x1xf32>
    %141 = vector.broadcast %140 : vector<8x1xf32> to vector<8x8xf32>
    %142 = arith.divf %138, %141 : vector<8x8xf32>
    %143 = arith.truncf %142 : vector<8x8xf32> to vector<8x8xbf16>
    %cst_41 = arith.constant dense<0.000000e+00> : vector<8x8xf32>
    %144 = tpu.matmul %143, %130, %cst_41 {dimension_numbers = #tpu.dot_dimension_numbers<[1], [0], [0], [1], [0, 0, 1, 1], [], []>} : vector<8x8xbf16>, vector<8x8xbf16>, vector<8x8xf32> -> vector<8x8xf32>
    %145 = vector.extract_strided_slice %102 {offsets = [0, 16], sizes = [8, 8], strides = [1, 1]} : vector<8x32xf32> to vector<8x8xf32>
    %146 = arith.truncf %145 : vector<8x8xf32> to vector<8x8xbf16>
    %147 = vector.extract_strided_slice %103 {offsets = [0, 16], sizes = [8, 8], strides = [1, 1]} : vector<8x32xf32> to vector<8x8xf32>
    %148 = arith.truncf %147 : vector<8x8xf32> to vector<8x8xbf16>
    %149 = vector.extract_strided_slice %104 {offsets = [0, 16], sizes = [8, 8], strides = [1, 1]} : vector<8x32xf32> to vector<8x8xf32>
    %150 = arith.truncf %149 : vector<8x8xf32> to vector<8x8xbf16>
    %cst_42 = arith.constant dense<0.000000e+00> : vector<8x8xf32>
    %151 = tpu.matmul %146, %148, %cst_42 {dimension_numbers = #tpu.dot_dimension_numbers<[1], [1], [0], [0], [0, 0, 1, 0], [], []>} : vector<8x8xbf16>, vector<8x8xbf16>, vector<8x8xf32> -> vector<8x8xf32>
    %cst_43 = arith.constant 0.353553385 : f32
    %152 = vector.broadcast %cst_43 : f32 to vector<8x8xf32>
    %153 = arith.mulf %151, %152 : vector<8x8xf32>
    %cst_44 = arith.constant dense<0xFF800000> : vector<8xf32>
    %154 = vector.multi_reduction <maximumf>, %153, %cst_44 [1] : vector<8x8xf32> to vector<8xf32>
    %155 = vector.shape_cast %154 : vector<8xf32> to vector<8x1xf32>
    %156 = vector.broadcast %155 : vector<8x1xf32> to vector<8x8xf32>
    %157 = arith.subf %153, %156 : vector<8x8xf32>
    %158 = math.exp %157 : vector<8x8xf32>
    %cst_45 = arith.constant dense<0.000000e+00> : vector<8xf32>
    %159 = vector.multi_reduction <add>, %158, %cst_45 [1] : vector<8x8xf32> to vector<8xf32>
    %160 = vector.shape_cast %159 : vector<8xf32> to vector<8x1xf32>
    %161 = vector.broadcast %160 : vector<8x1xf32> to vector<8x8xf32>
    %162 = arith.divf %158, %161 : vector<8x8xf32>
    %163 = arith.truncf %162 : vector<8x8xf32> to vector<8x8xbf16>
    %cst_46 = arith.constant dense<0.000000e+00> : vector<8x8xf32>
    %164 = tpu.matmul %163, %150, %cst_46 {dimension_numbers = #tpu.dot_dimension_numbers<[1], [0], [0], [1], [0, 0, 1, 1], [], []>} : vector<8x8xbf16>, vector<8x8xbf16>, vector<8x8xf32> -> vector<8x8xf32>
    %165 = vector.extract_strided_slice %102 {offsets = [0, 24], sizes = [8, 8], strides = [1, 1]} : vector<8x32xf32> to vector<8x8xf32>
    %166 = arith.truncf %165 : vector<8x8xf32> to vector<8x8xbf16>
    %167 = vector.extract_strided_slice %103 {offsets = [0, 24], sizes = [8, 8], strides = [1, 1]} : vector<8x32xf32> to vector<8x8xf32>
    %168 = arith.truncf %167 : vector<8x8xf32> to vector<8x8xbf16>
    %169 = vector.extract_strided_slice %104 {offsets = [0, 24], sizes = [8, 8], strides = [1, 1]} : vector<8x32xf32> to vector<8x8xf32>
    %170 = arith.truncf %169 : vector<8x8xf32> to vector<8x8xbf16>
    %cst_47 = arith.constant dense<0.000000e+00> : vector<8x8xf32>
    %171 = tpu.matmul %166, %168, %cst_47 {dimension_numbers = #tpu.dot_dimension_numbers<[1], [1], [0], [0], [0, 0, 1, 0], [], []>} : vector<8x8xbf16>, vector<8x8xbf16>, vector<8x8xf32> -> vector<8x8xf32>
    %cst_48 = arith.constant 0.353553385 : f32
    %172 = vector.broadcast %cst_48 : f32 to vector<8x8xf32>
    %173 = arith.mulf %171, %172 : vector<8x8xf32>
    %cst_49 = arith.constant dense<0xFF800000> : vector<8xf32>
    %174 = vector.multi_reduction <maximumf>, %173, %cst_49 [1] : vector<8x8xf32> to vector<8xf32>
    %175 = vector.shape_cast %174 : vector<8xf32> to vector<8x1xf32>
    %176 = vector.broadcast %175 : vector<8x1xf32> to vector<8x8xf32>
    %177 = arith.subf %173, %176 : vector<8x8xf32>
    %178 = math.exp %177 : vector<8x8xf32>
    %cst_50 = arith.constant dense<0.000000e+00> : vector<8xf32>
    %179 = vector.multi_reduction <add>, %178, %cst_50 [1] : vector<8x8xf32> to vector<8xf32>
    %180 = vector.shape_cast %179 : vector<8xf32> to vector<8x1xf32>
    %181 = vector.broadcast %180 : vector<8x1xf32> to vector<8x8xf32>
    %182 = arith.divf %178, %181 : vector<8x8xf32>
    %183 = arith.truncf %182 : vector<8x8xf32> to vector<8x8xbf16>
    %cst_51 = arith.constant dense<0.000000e+00> : vector<8x8xf32>
    %184 = tpu.matmul %183, %170, %cst_51 {dimension_numbers = #tpu.dot_dimension_numbers<[1], [0], [0], [1], [0, 0, 1, 1], [], []>} : vector<8x8xbf16>, vector<8x8xbf16>, vector<8x8xf32> -> vector<8x8xf32>
    %185 = tpu.concatenate %124, %144, %164, %184 in 1 : vector<8x8xf32>, vector<8x8xf32>, vector<8x8xf32>, vector<8x8xf32> -> vector<8x32xf32>
    %186 = arith.truncf %185 : vector<8x32xf32> to vector<8x32xbf16>
    %c8 = arith.constant 8 : index
    %c0_52 = arith.constant 0 : index
    %187 = vector.load %arg24[%c8, %c0_52] : memref<32x32xbf16, #tpu.memory_space<vmem>>, vector<8x32xbf16>
    tpu.vector_store %arg24[%c8, %c0_52], %186 {strides = array<i32>} : memref<32x32xbf16, #tpu.memory_space<vmem>>, vector<8x32xbf16>,
    %188 = vector.extract_strided_slice %13 {offsets = [16, 0], sizes = [8, 32], strides = [1, 1]} : vector<32x32xf32> to vector<8x32xf32>
    %189 = vector.extract_strided_slice %14 {offsets = [16, 0], sizes = [8, 32], strides = [1, 1]} : vector<32x32xf32> to vector<8x32xf32>
    %190 = vector.extract_strided_slice %15 {offsets = [16, 0], sizes = [8, 32], strides = [1, 1]} : vector<32x32xf32> to vector<8x32xf32>
    %191 = vector.extract_strided_slice %188 {offsets = [0, 0], sizes = [8, 8], strides = [1, 1]} : vector<8x32xf32> to vector<8x8xf32>
    %192 = arith.truncf %191 : vector<8x8xf32> to vector<8x8xbf16>
    %193 = vector.extract_strided_slice %189 {offsets = [0, 0], sizes = [8, 8], strides = [1, 1]} : vector<8x32xf32> to vector<8x8xf32>
    %194 = arith.truncf %193 : vector<8x8xf32> to vector<8x8xbf16>
    %195 = vector.extract_strided_slice %190 {offsets = [0, 0], sizes = [8, 8], strides = [1, 1]} : vector<8x32xf32> to vector<8x8xf32>
    %196 = arith.truncf %195 : vector<8x8xf32> to vector<8x8xbf16>
    %cst_53 = arith.constant dense<0.000000e+00> : vector<8x8xf32>
    %197 = tpu.matmul %192, %194, %cst_53 {dimension_numbers = #tpu.dot_dimension_numbers<[1], [1], [0], [0], [0, 0, 1, 0], [], []>} : vector<8x8xbf16>, vector<8x8xbf16>, vector<8x8xf32> -> vector<8x8xf32>
    %cst_54 = arith.constant 0.353553385 : f32
    %198 = vector.broadcast %cst_54 : f32 to vector<8x8xf32>
    %199 = arith.mulf %197, %198 : vector<8x8xf32>
    %cst_55 = arith.constant dense<0xFF800000> : vector<8xf32>
    %200 = vector.multi_reduction <maximumf>, %199, %cst_55 [1] : vector<8x8xf32> to vector<8xf32>
    %201 = vector.shape_cast %200 : vector<8xf32> to vector<8x1xf32>
    %202 = vector.broadcast %201 : vector<8x1xf32> to vector<8x8xf32>
    %203 = arith.subf %199, %202 : vector<8x8xf32>
    %204 = math.exp %203 : vector<8x8xf32>
    %cst_56 = arith.constant dense<0.000000e+00> : vector<8xf32>
    %205 = vector.multi_reduction <add>, %204, %cst_56 [1] : vector<8x8xf32> to vector<8xf32>
    %206 = vector.shape_cast %205 : vector<8xf32> to vector<8x1xf32>
    %207 = vector.broadcast %206 : vector<8x1xf32> to vector<8x8xf32>
    %208 = arith.divf %204, %207 : vector<8x8xf32>
    %209 = arith.truncf %208 : vector<8x8xf32> to vector<8x8xbf16>
    %cst_57 = arith.constant dense<0.000000e+00> : vector<8x8xf32>
    %210 = tpu.matmul %209, %196, %cst_57 {dimension_numbers = #tpu.dot_dimension_numbers<[1], [0], [0], [1], [0, 0, 1, 1], [], []>} : vector<8x8xbf16>, vector<8x8xbf16>, vector<8x8xf32> -> vector<8x8xf32>
    %211 = vector.extract_strided_slice %188 {offsets = [0, 8], sizes = [8, 8], strides = [1, 1]} : vector<8x32xf32> to vector<8x8xf32>
    %212 = arith.truncf %211 : vector<8x8xf32> to vector<8x8xbf16>
    %213 = vector.extract_strided_slice %189 {offsets = [0, 8], sizes = [8, 8], strides = [1, 1]} : vector<8x32xf32> to vector<8x8xf32>
    %214 = arith.truncf %213 : vector<8x8xf32> to vector<8x8xbf16>
    %215 = vector.extract_strided_slice %190 {offsets = [0, 8], sizes = [8, 8], strides = [1, 1]} : vector<8x32xf32> to vector<8x8xf32>
    %216 = arith.truncf %215 : vector<8x8xf32> to vector<8x8xbf16>
    %cst_58 = arith.constant dense<0.000000e+00> : vector<8x8xf32>
    %217 = tpu.matmul %212, %214, %cst_58 {dimension_numbers = #tpu.dot_dimension_numbers<[1], [1], [0], [0], [0, 0, 1, 0], [], []>} : vector<8x8xbf16>, vector<8x8xbf16>, vector<8x8xf32> -> vector<8x8xf32>
    %cst_59 = arith.constant 0.353553385 : f32
    %218 = vector.broadcast %cst_59 : f32 to vector<8x8xf32>
    %219 = arith.mulf %217, %218 : vector<8x8xf32>
    %cst_60 = arith.constant dense<0xFF800000> : vector<8xf32>
    %220 = vector.multi_reduction <maximumf>, %219, %cst_60 [1] : vector<8x8xf32> to vector<8xf32>
    %221 = vector.shape_cast %220 : vector<8xf32> to vector<8x1xf32>
    %222 = vector.broadcast %221 : vector<8x1xf32> to vector<8x8xf32>
    %223 = arith.subf %219, %222 : vector<8x8xf32>
    %224 = math.exp %223 : vector<8x8xf32>
    %cst_61 = arith.constant dense<0.000000e+00> : vector<8xf32>
    %225 = vector.multi_reduction <add>, %224, %cst_61 [1] : vector<8x8xf32> to vector<8xf32>
    %226 = vector.shape_cast %225 : vector<8xf32> to vector<8x1xf32>
    %227 = vector.broadcast %226 : vector<8x1xf32> to vector<8x8xf32>
    %228 = arith.divf %224, %227 : vector<8x8xf32>
    %229 = arith.truncf %228 : vector<8x8xf32> to vector<8x8xbf16>
    %cst_62 = arith.constant dense<0.000000e+00> : vector<8x8xf32>
    %230 = tpu.matmul %229, %216, %cst_62 {dimension_numbers = #tpu.dot_dimension_numbers<[1], [0], [0], [1], [0, 0, 1, 1], [], []>} : vector<8x8xbf16>, vector<8x8xbf16>, vector<8x8xf32> -> vector<8x8xf32>
    %231 = vector.extract_strided_slice %188 {offsets = [0, 16], sizes = [8, 8], strides = [1, 1]} : vector<8x32xf32> to vector<8x8xf32>
    %232 = arith.truncf %231 : vector<8x8xf32> to vector<8x8xbf16>
    %233 = vector.extract_strided_slice %189 {offsets = [0, 16], sizes = [8, 8], strides = [1, 1]} : vector<8x32xf32> to vector<8x8xf32>
    %234 = arith.truncf %233 : vector<8x8xf32> to vector<8x8xbf16>
    %235 = vector.extract_strided_slice %190 {offsets = [0, 16], sizes = [8, 8], strides = [1, 1]} : vector<8x32xf32> to vector<8x8xf32>
    %236 = arith.truncf %235 : vector<8x8xf32> to vector<8x8xbf16>
    %cst_63 = arith.constant dense<0.000000e+00> : vector<8x8xf32>
    %237 = tpu.matmul %232, %234, %cst_63 {dimension_numbers = #tpu.dot_dimension_numbers<[1], [1], [0], [0], [0, 0, 1, 0], [], []>} : vector<8x8xbf16>, vector<8x8xbf16>, vector<8x8xf32> -> vector<8x8xf32>
    %cst_64 = arith.constant 0.353553385 : f32
    %238 = vector.broadcast %cst_64 : f32 to vector<8x8xf32>
    %239 = arith.mulf %237, %238 : vector<8x8xf32>
    %cst_65 = arith.constant dense<0xFF800000> : vector<8xf32>
    %240 = vector.multi_reduction <maximumf>, %239, %cst_65 [1] : vector<8x8xf32> to vector<8xf32>
    %241 = vector.shape_cast %240 : vector<8xf32> to vector<8x1xf32>
    %242 = vector.broadcast %241 : vector<8x1xf32> to vector<8x8xf32>
    %243 = arith.subf %239, %242 : vector<8x8xf32>
    %244 = math.exp %243 : vector<8x8xf32>
    %cst_66 = arith.constant dense<0.000000e+00> : vector<8xf32>
    %245 = vector.multi_reduction <add>, %244, %cst_66 [1] : vector<8x8xf32> to vector<8xf32>
    %246 = vector.shape_cast %245 : vector<8xf32> to vector<8x1xf32>
    %247 = vector.broadcast %246 : vector<8x1xf32> to vector<8x8xf32>
    %248 = arith.divf %244, %247 : vector<8x8xf32>
    %249 = arith.truncf %248 : vector<8x8xf32> to vector<8x8xbf16>
    %cst_67 = arith.constant dense<0.000000e+00> : vector<8x8xf32>
    %250 = tpu.matmul %249, %236, %cst_67 {dimension_numbers = #tpu.dot_dimension_numbers<[1], [0], [0], [1], [0, 0, 1, 1], [], []>} : vector<8x8xbf16>, vector<8x8xbf16>, vector<8x8xf32> -> vector<8x8xf32>
    %251 = vector.extract_strided_slice %188 {offsets = [0, 24], sizes = [8, 8], strides = [1, 1]} : vector<8x32xf32> to vector<8x8xf32>
    %252 = arith.truncf %251 : vector<8x8xf32> to vector<8x8xbf16>
    %253 = vector.extract_strided_slice %189 {offsets = [0, 24], sizes = [8, 8], strides = [1, 1]} : vector<8x32xf32> to vector<8x8xf32>
    %254 = arith.truncf %253 : vector<8x8xf32> to vector<8x8xbf16>
    %255 = vector.extract_strided_slice %190 {offsets = [0, 24], sizes = [8, 8], strides = [1, 1]} : vector<8x32xf32> to vector<8x8xf32>
    %256 = arith.truncf %255 : vector<8x8xf32> to vector<8x8xbf16>
    %cst_68 = arith.constant dense<0.000000e+00> : vector<8x8xf32>
    %257 = tpu.matmul %252, %254, %cst_68 {dimension_numbers = #tpu.dot_dimension_numbers<[1], [1], [0], [0], [0, 0, 1, 0], [], []>} : vector<8x8xbf16>, vector<8x8xbf16>, vector<8x8xf32> -> vector<8x8xf32>
    %cst_69 = arith.constant 0.353553385 : f32
    %258 = vector.broadcast %cst_69 : f32 to vector<8x8xf32>
    %259 = arith.mulf %257, %258 : vector<8x8xf32>
    %cst_70 = arith.constant dense<0xFF800000> : vector<8xf32>
    %260 = vector.multi_reduction <maximumf>, %259, %cst_70 [1] : vector<8x8xf32> to vector<8xf32>
    %261 = vector.shape_cast %260 : vector<8xf32> to vector<8x1xf32>
    %262 = vector.broadcast %261 : vector<8x1xf32> to vector<8x8xf32>
    %263 = arith.subf %259, %262 : vector<8x8xf32>
    %264 = math.exp %263 : vector<8x8xf32>
    %cst_71 = arith.constant dense<0.000000e+00> : vector<8xf32>
    %265 = vector.multi_reduction <add>, %264, %cst_71 [1] : vector<8x8xf32> to vector<8xf32>
    %266 = vector.shape_cast %265 : vector<8xf32> to vector<8x1xf32>
    %267 = vector.broadcast %266 : vector<8x1xf32> to vector<8x8xf32>
    %268 = arith.divf %264, %267 : vector<8x8xf32>
    %269 = arith.truncf %268 : vector<8x8xf32> to vector<8x8xbf16>
    %cst_72 = arith.constant dense<0.000000e+00> : vector<8x8xf32>
    %270 = tpu.matmul %269, %256, %cst_72 {dimension_numbers = #tpu.dot_dimension_numbers<[1], [0], [0], [1], [0, 0, 1, 1], [], []>} : vector<8x8xbf16>, vector<8x8xbf16>, vector<8x8xf32> -> vector<8x8xf32>
    %271 = tpu.concatenate %210, %230, %250, %270 in 1 : vector<8x8xf32>, vector<8x8xf32>, vector<8x8xf32>, vector<8x8xf32> -> vector<8x32xf32>
    %272 = arith.truncf %271 : vector<8x32xf32> to vector<8x32xbf16>
    %c16 = arith.constant 16 : index
    %c0_73 = arith.constant 0 : index
    %273 = vector.load %arg24[%c16, %c0_73] : memref<32x32xbf16, #tpu.memory_space<vmem>>, vector<8x32xbf16>
    tpu.vector_store %arg24[%c16, %c0_73], %272 {strides = array<i32>} : memref<32x32xbf16, #tpu.memory_space<vmem>>, vector<8x32xbf16>,
    %274 = vector.extract_strided_slice %13 {offsets = [24, 0], sizes = [8, 32], strides = [1, 1]} : vector<32x32xf32> to vector<8x32xf32>
    %275 = vector.extract_strided_slice %14 {offsets = [24, 0], sizes = [8, 32], strides = [1, 1]} : vector<32x32xf32> to vector<8x32xf32>
    %276 = vector.extract_strided_slice %15 {offsets = [24, 0], sizes = [8, 32], strides = [1, 1]} : vector<32x32xf32> to vector<8x32xf32>
    %277 = vector.extract_strided_slice %274 {offsets = [0, 0], sizes = [8, 8], strides = [1, 1]} : vector<8x32xf32> to vector<8x8xf32>
    %278 = arith.truncf %277 : vector<8x8xf32> to vector<8x8xbf16>
    %279 = vector.extract_strided_slice %275 {offsets = [0, 0], sizes = [8, 8], strides = [1, 1]} : vector<8x32xf32> to vector<8x8xf32>
    %280 = arith.truncf %279 : vector<8x8xf32> to vector<8x8xbf16>
    %281 = vector.extract_strided_slice %276 {offsets = [0, 0], sizes = [8, 8], strides = [1, 1]} : vector<8x32xf32> to vector<8x8xf32>
    %282 = arith.truncf %281 : vector<8x8xf32> to vector<8x8xbf16>
    %cst_74 = arith.constant dense<0.000000e+00> : vector<8x8xf32>
    %283 = tpu.matmul %278, %280, %cst_74 {dimension_numbers = #tpu.dot_dimension_numbers<[1], [1], [0], [0], [0, 0, 1, 0], [], []>} : vector<8x8xbf16>, vector<8x8xbf16>, vector<8x8xf32> -> vector<8x8xf32>
    %cst_75 = arith.constant 0.353553385 : f32
    %284 = vector.broadcast %cst_75 : f32 to vector<8x8xf32>
    %285 = arith.mulf %283, %284 : vector<8x8xf32>
    %cst_76 = arith.constant dense<0xFF800000> : vector<8xf32>
    %286 = vector.multi_reduction <maximumf>, %285, %cst_76 [1] : vector<8x8xf32> to vector<8xf32>
    %287 = vector.shape_cast %286 : vector<8xf32> to vector<8x1xf32>
    %288 = vector.broadcast %287 : vector<8x1xf32> to vector<8x8xf32>
    %289 = arith.subf %285, %288 : vector<8x8xf32>
    %290 = math.exp %289 : vector<8x8xf32>
    %cst_77 = arith.constant dense<0.000000e+00> : vector<8xf32>
    %291 = vector.multi_reduction <add>, %290, %cst_77 [1] : vector<8x8xf32> to vector<8xf32>
    %292 = vector.shape_cast %291 : vector<8xf32> to vector<8x1xf32>
    %293 = vector.broadcast %292 : vector<8x1xf32> to vector<8x8xf32>
    %294 = arith.divf %290, %293 : vector<8x8xf32>
    %295 = arith.truncf %294 : vector<8x8xf32> to vector<8x8xbf16>
    %cst_78 = arith.constant dense<0.000000e+00> : vector<8x8xf32>
    %296 = tpu.matmul %295, %282, %cst_78 {dimension_numbers = #tpu.dot_dimension_numbers<[1], [0], [0], [1], [0, 0, 1, 1], [], []>} : vector<8x8xbf16>, vector<8x8xbf16>, vector<8x8xf32> -> vector<8x8xf32>
    %297 = vector.extract_strided_slice %274 {offsets = [0, 8], sizes = [8, 8], strides = [1, 1]} : vector<8x32xf32> to vector<8x8xf32>
    %298 = arith.truncf %297 : vector<8x8xf32> to vector<8x8xbf16>
    %299 = vector.extract_strided_slice %275 {offsets = [0, 8], sizes = [8, 8], strides = [1, 1]} : vector<8x32xf32> to vector<8x8xf32>
    %300 = arith.truncf %299 : vector<8x8xf32> to vector<8x8xbf16>
    %301 = vector.extract_strided_slice %276 {offsets = [0, 8], sizes = [8, 8], strides = [1, 1]} : vector<8x32xf32> to vector<8x8xf32>
    %302 = arith.truncf %301 : vector<8x8xf32> to vector<8x8xbf16>
    %cst_79 = arith.constant dense<0.000000e+00> : vector<8x8xf32>
    %303 = tpu.matmul %298, %300, %cst_79 {dimension_numbers = #tpu.dot_dimension_numbers<[1], [1], [0], [0], [0, 0, 1, 0], [], []>} : vector<8x8xbf16>, vector<8x8xbf16>, vector<8x8xf32> -> vector<8x8xf32>
    %cst_80 = arith.constant 0.353553385 : f32
    %304 = vector.broadcast %cst_80 : f32 to vector<8x8xf32>
    %305 = arith.mulf %303, %304 : vector<8x8xf32>
    %cst_81 = arith.constant dense<0xFF800000> : vector<8xf32>
    %306 = vector.multi_reduction <maximumf>, %305, %cst_81 [1] : vector<8x8xf32> to vector<8xf32>
    %307 = vector.shape_cast %306 : vector<8xf32> to vector<8x1xf32>
    %308 = vector.broadcast %307 : vector<8x1xf32> to vector<8x8xf32>
    %309 = arith.subf %305, %308 : vector<8x8xf32>
    %310 = math.exp %309 : vector<8x8xf32>
    %cst_82 = arith.constant dense<0.000000e+00> : vector<8xf32>
    %311 = vector.multi_reduction <add>, %310, %cst_82 [1] : vector<8x8xf32> to vector<8xf32>
    %312 = vector.shape_cast %311 : vector<8xf32> to vector<8x1xf32>
    %313 = vector.broadcast %312 : vector<8x1xf32> to vector<8x8xf32>
    %314 = arith.divf %310, %313 : vector<8x8xf32>
    %315 = arith.truncf %314 : vector<8x8xf32> to vector<8x8xbf16>
    %cst_83 = arith.constant dense<0.000000e+00> : vector<8x8xf32>
    %316 = tpu.matmul %315, %302, %cst_83 {dimension_numbers = #tpu.dot_dimension_numbers<[1], [0], [0], [1], [0, 0, 1, 1], [], []>} : vector<8x8xbf16>, vector<8x8xbf16>, vector<8x8xf32> -> vector<8x8xf32>
    %317 = vector.extract_strided_slice %274 {offsets = [0, 16], sizes = [8, 8], strides = [1, 1]} : vector<8x32xf32> to vector<8x8xf32>
    %318 = arith.truncf %317 : vector<8x8xf32> to vector<8x8xbf16>
    %319 = vector.extract_strided_slice %275 {offsets = [0, 16], sizes = [8, 8], strides = [1, 1]} : vector<8x32xf32> to vector<8x8xf32>
    %320 = arith.truncf %319 : vector<8x8xf32> to vector<8x8xbf16>
    %321 = vector.extract_strided_slice %276 {offsets = [0, 16], sizes = [8, 8], strides = [1, 1]} : vector<8x32xf32> to vector<8x8xf32>
    %322 = arith.truncf %321 : vector<8x8xf32> to vector<8x8xbf16>
    %cst_84 = arith.constant dense<0.000000e+00> : vector<8x8xf32>
    %323 = tpu.matmul %318, %320, %cst_84 {dimension_numbers = #tpu.dot_dimension_numbers<[1], [1], [0], [0], [0, 0, 1, 0], [], []>} : vector<8x8xbf16>, vector<8x8xbf16>, vector<8x8xf32> -> vector<8x8xf32>
    %cst_85 = arith.constant 0.353553385 : f32
    %324 = vector.broadcast %cst_85 : f32 to vector<8x8xf32>
    %325 = arith.mulf %323, %324 : vector<8x8xf32>
    %cst_86 = arith.constant dense<0xFF800000> : vector<8xf32>
    %326 = vector.multi_reduction <maximumf>, %325, %cst_86 [1] : vector<8x8xf32> to vector<8xf32>
    %327 = vector.shape_cast %326 : vector<8xf32> to vector<8x1xf32>
    %328 = vector.broadcast %327 : vector<8x1xf32> to vector<8x8xf32>
    %329 = arith.subf %325, %328 : vector<8x8xf32>
    %330 = math.exp %329 : vector<8x8xf32>
    %cst_87 = arith.constant dense<0.000000e+00> : vector<8xf32>
    %331 = vector.multi_reduction <add>, %330, %cst_87 [1] : vector<8x8xf32> to vector<8xf32>
    %332 = vector.shape_cast %331 : vector<8xf32> to vector<8x1xf32>
    %333 = vector.broadcast %332 : vector<8x1xf32> to vector<8x8xf32>
    %334 = arith.divf %330, %333 : vector<8x8xf32>
    %335 = arith.truncf %334 : vector<8x8xf32> to vector<8x8xbf16>
    %cst_88 = arith.constant dense<0.000000e+00> : vector<8x8xf32>
    %336 = tpu.matmul %335, %322, %cst_88 {dimension_numbers = #tpu.dot_dimension_numbers<[1], [0], [0], [1], [0, 0, 1, 1], [], []>} : vector<8x8xbf16>, vector<8x8xbf16>, vector<8x8xf32> -> vector<8x8xf32>
    %337 = vector.extract_strided_slice %274 {offsets = [0, 24], sizes = [8, 8], strides = [1, 1]} : vector<8x32xf32> to vector<8x8xf32>
    %338 = arith.truncf %337 : vector<8x8xf32> to vector<8x8xbf16>
    %339 = vector.extract_strided_slice %275 {offsets = [0, 24], sizes = [8, 8], strides = [1, 1]} : vector<8x32xf32> to vector<8x8xf32>
    %340 = arith.truncf %339 : vector<8x8xf32> to vector<8x8xbf16>
    %341 = vector.extract_strided_slice %276 {offsets = [0, 24], sizes = [8, 8], strides = [1, 1]} : vector<8x32xf32> to vector<8x8xf32>
    %342 = arith.truncf %341 : vector<8x8xf32> to vector<8x8xbf16>
    %cst_89 = arith.constant dense<0.000000e+00> : vector<8x8xf32>
    %343 = tpu.matmul %338, %340, %cst_89 {dimension_numbers = #tpu.dot_dimension_numbers<[1], [1], [0], [0], [0, 0, 1, 0], [], []>} : vector<8x8xbf16>, vector<8x8xbf16>, vector<8x8xf32> -> vector<8x8xf32>
    %cst_90 = arith.constant 0.353553385 : f32
    %344 = vector.broadcast %cst_90 : f32 to vector<8x8xf32>
    %345 = arith.mulf %343, %344 : vector<8x8xf32>
    %cst_91 = arith.constant dense<0xFF800000> : vector<8xf32>
    %346 = vector.multi_reduction <maximumf>, %345, %cst_91 [1] : vector<8x8xf32> to vector<8xf32>
    %347 = vector.shape_cast %346 : vector<8xf32> to vector<8x1xf32>
    %348 = vector.broadcast %347 : vector<8x1xf32> to vector<8x8xf32>
    %349 = arith.subf %345, %348 : vector<8x8xf32>
    %350 = math.exp %349 : vector<8x8xf32>
    %cst_92 = arith.constant dense<0.000000e+00> : vector<8xf32>
    %351 = vector.multi_reduction <add>, %350, %cst_92 [1] : vector<8x8xf32> to vector<8xf32>
    %352 = vector.shape_cast %351 : vector<8xf32> to vector<8x1xf32>
    %353 = vector.broadcast %352 : vector<8x1xf32> to vector<8x8xf32>
    %354 = arith.divf %350, %353 : vector<8x8xf32>
    %355 = arith.truncf %354 : vector<8x8xf32> to vector<8x8xbf16>
    %cst_93 = arith.constant dense<0.000000e+00> : vector<8x8xf32>
    %356 = tpu.matmul %355, %342, %cst_93 {dimension_numbers = #tpu.dot_dimension_numbers<[1], [0], [0], [1], [0, 0, 1, 1], [], []>} : vector<8x8xbf16>, vector<8x8xbf16>, vector<8x8xf32> -> vector<8x8xf32>
    %357 = tpu.concatenate %296, %316, %336, %356 in 1 : vector<8x8xf32>, vector<8x8xf32>, vector<8x8xf32>, vector<8x8xf32> -> vector<8x32xf32>
    %358 = arith.truncf %357 : vector<8x32xf32> to vector<8x32xbf16>
    %c24 = arith.constant 24 : index
    %c0_94 = arith.constant 0 : index
    %359 = vector.load %arg24[%c24, %c0_94] : memref<32x32xbf16, #tpu.memory_space<vmem>>, vector<8x32xbf16>
    tpu.vector_store %arg24[%c24, %c0_94], %358 {strides = array<i32>} : memref<32x32xbf16, #tpu.memory_space<vmem>>, vector<8x32xbf16>,
    %c0_95 = arith.constant 0 : index
    %c0_96 = arith.constant 0 : index
    %360 = vector.load %arg24[%c0_95, %c0_96] : memref<32x32xbf16, #tpu.memory_space<vmem>>, vector<32x32xbf16>
    %c0_97 = arith.constant 0 : index
    %c0_98 = arith.constant 0 : index
    %c0_99 = arith.constant 0 : index
    %361 = vector.load %arg6[%c0_97, %c0_98, %c0_99] : memref<1x32x32xbf16, #tpu.memory_space<vmem>>, vector<1x32x32xbf16>
    %362 = vector.shape_cast %361 : vector<1x32x32xbf16> to vector<32x32xbf16>
    %cst_100 = arith.constant dense<0.000000e+00> : vector<32x32xf32>
    %363 = tpu.matmul %360, %362, %cst_100 {dimension_numbers = #tpu.dot_dimension_numbers<[1], [0], [0], [1], [0, 0, 1, 1], [], []>} : vector<32x32xbf16>, vector<32x32xbf16>, vector<32x32xf32> -> vector<32x32xf32>
    %c0_101 = arith.constant 0 : index
    %c0_102 = arith.constant 0 : index
    %c0_103 = arith.constant 0 : index
    %364 = vector.load %arg7[%c0_101, %c0_102, %c0_103] : memref<1x1x32xf32, #tpu.memory_space<vmem>>, vector<1x1x32xf32>
    %365 = vector.shape_cast %364 : vector<1x1x32xf32> to vector<1x32xf32>
    %366 = vector.broadcast %365 : vector<1x32xf32> to vector<32x32xf32>
    %367 = arith.addf %363, %366 : vector<32x32xf32>
    %368 = arith.addf %3, %367 : vector<32x32xf32>
    %c0_104 = arith.constant 0 : index
    %c0_105 = arith.constant 0 : index
    %c0_106 = arith.constant 0 : index
    %369 = vector.load %arg18[%c0_104, %c0_105, %c0_106] : memref<1x2x32xf32, #tpu.memory_space<vmem>>, vector<1x2x32xf32>
    %370 = vector.shape_cast %369 : vector<1x2x32xf32> to vector<2x32xf32>
    %cst_107 = arith.constant dense<0.000000e+00> : vector<32xf32>
    %371 = vector.multi_reduction <add>, %368, %cst_107 [1] : vector<32x32xf32> to vector<32xf32>
    %372 = vector.shape_cast %371 : vector<32xf32> to vector<32x1xf32>
    %cst_108 = arith.constant 3.200000e+01 : f32
    %373 = vector.broadcast %cst_108 : f32 to vector<32x1xf32>
    %374 = arith.divf %372, %373 : vector<32x1xf32>
    %375 = vector.broadcast %374 : vector<32x1xf32> to vector<32x32xf32>
    %376 = arith.subf %368, %375 : vector<32x32xf32>
    %377 = arith.mulf %376, %376 : vector<32x32xf32>
    %cst_109 = arith.constant dense<0.000000e+00> : vector<32xf32>
    %378 = vector.multi_reduction <add>, %377, %cst_109 [1] : vector<32x32xf32> to vector<32xf32>
    %379 = vector.shape_cast %378 : vector<32xf32> to vector<32x1xf32>
    %cst_110 = arith.constant 3.200000e+01 : f32
    %380 = vector.broadcast %cst_110 : f32 to vector<32x1xf32>
    %381 = arith.divf %379, %380 : vector<32x1xf32>
    %382 = vector.broadcast %374 : vector<32x1xf32> to vector<32x32xf32>
    %383 = arith.subf %368, %382 : vector<32x32xf32>
    %cst_111 = arith.constant 9.99999974E-6 : f32
    %384 = vector.broadcast %cst_111 : f32 to vector<32x1xf32>
    %385 = arith.addf %381, %384 : vector<32x1xf32>
    %386 = math.rsqrt %385 : vector<32x1xf32>
    %387 = vector.broadcast %386 : vector<32x1xf32> to vector<32x32xf32>
    %388 = arith.mulf %383, %387 : vector<32x32xf32>
    %389 = vector.extract_strided_slice %370 {offsets = [0, 0], sizes = [1, 32], strides = [1, 1]} : vector<2x32xf32> to vector<1x32xf32>
    %390 = vector.shape_cast %389 : vector<1x32xf32> to vector<32xf32>
    %391 = vector.shape_cast %390 : vector<32xf32> to vector<1x32xf32>
    %392 = vector.broadcast %391 : vector<1x32xf32> to vector<32x32xf32>
    %393 = arith.mulf %388, %392 : vector<32x32xf32>
    %394 = vector.extract_strided_slice %370 {offsets = [1, 0], sizes = [1, 32], strides = [1, 1]} : vector<2x32xf32> to vector<1x32xf32>
    %395 = vector.shape_cast %394 : vector<1x32xf32> to vector<32xf32>
    %396 = vector.shape_cast %395 : vector<32xf32> to vector<1x32xf32>
    %397 = vector.broadcast %396 : vector<1x32xf32> to vector<32x32xf32>
    %398 = arith.addf %393, %397 : vector<32x32xf32>
    %399 = arith.truncf %398 : vector<32x32xf32> to vector<32x32xbf16>
    %c0_112 = arith.constant 0 : index
    %c0_113 = arith.constant 0 : index
    %c0_114 = arith.constant 0 : index
    %400 = vector.load %arg8[%c0_112, %c0_113, %c0_114] : memref<1x32x32xbf16, #tpu.memory_space<vmem>>, vector<1x32x32xbf16>
    %401 = vector.shape_cast %400 : vector<1x32x32xbf16> to vector<32x32xbf16>
    %cst_115 = arith.constant dense<0.000000e+00> : vector<32x32xf32>
    %402 = tpu.matmul %399, %401, %cst_115 {dimension_numbers = #tpu.dot_dimension_numbers<[1], [0], [0], [1], [0, 0, 1, 1], [], []>} : vector<32x32xbf16>, vector<32x32xbf16>, vector<32x32xf32> -> vector<32x32xf32>
    %c0_116 = arith.constant 0 : index
    %c0_117 = arith.constant 0 : index
    %c0_118 = arith.constant 0 : index
    %403 = vector.load %arg9[%c0_116, %c0_117, %c0_118] : memref<1x1x32xf32, #tpu.memory_space<vmem>>, vector<1x1x32xf32>
    %404 = vector.shape_cast %403 : vector<1x1x32xf32> to vector<1x32xf32>
    %405 = vector.broadcast %404 : vector<1x32xf32> to vector<32x32xf32>
    %406 = arith.addf %402, %405 : vector<32x32xf32>
    %c0_119 = arith.constant 0 : index
    %c0_120 = arith.constant 0 : index
    %c0_121 = arith.constant 0 : index
    %407 = vector.load %arg10[%c0_119, %c0_120, %c0_121] : memref<1x32x64xbf16, #tpu.memory_space<vmem>>, vector<1x32x64xbf16>
    %408 = vector.shape_cast %407 : vector<1x32x64xbf16> to vector<32x64xbf16>
    %cst_122 = arith.constant dense<0.000000e+00> : vector<512x64xf32>
    %409 = tpu.matmul %4, %408, %cst_122 {dimension_numbers = #tpu.dot_dimension_numbers<[1], [0], [0], [1], [0, 0, 1, 1], [], []>} : vector<512x32xbf16>, vector<32x64xbf16>, vector<512x64xf32> -> vector<512x64xf32>
    %c0_123 = arith.constant 0 : index
    %c0_124 = arith.constant 0 : index
    %c0_125 = arith.constant 0 : index
    %410 = vector.load %arg11[%c0_123, %c0_124, %c0_125] : memref<1x1x64xf32, #tpu.memory_space<vmem>>, vector<1x1x64xf32>
    %411 = vector.shape_cast %410 : vector<1x1x64xf32> to vector<1x64xf32>
    %412 = vector.broadcast %411 : vector<1x64xf32> to vector<512x64xf32>
    %413 = arith.addf %409, %412 : vector<512x64xf32>
    %414 = vector.extract_strided_slice %413 {offsets = [0, 0], sizes = [512, 32], strides = [1, 1]} : vector<512x64xf32> to vector<512x32xf32>
    %415 = vector.extract_strided_slice %413 {offsets = [0, 32], sizes = [512, 32], strides = [1, 1]} : vector<512x64xf32> to vector<512x32xf32>
    %416 = tpu.iota {dimensions = array<i32: 1>} : vector<1x128xi32>
    %c16_i32 = arith.constant 16 : i32
    %417 = vector.broadcast %c16_i32 : i32 to vector<1x128xi32>
    %418 = arith.cmpi slt, %416, %417 : vector<1x128xi32>
    %cst_126 = arith.constant 0.000000e+00 : f32
    %cst_127 = arith.constant -1.000000e+30 : f32
    %419 = vector.broadcast %cst_126 : f32 to vector<1x128xf32>
    %420 = vector.broadcast %cst_127 : f32 to vector<1x128xf32>
    %421 = arith.select %418, %419, %420 : vector<1x128xi1>, vector<1x128xf32>
    %422 = vector.extract_strided_slice %406 {offsets = [0, 0], sizes = [8, 32], strides = [1, 1]} : vector<32x32xf32> to vector<8x32xf32>
    %423 = vector.extract_strided_slice %414 {offsets = [0, 0], sizes = [128, 32], strides = [1, 1]} : vector<512x32xf32> to vector<128x32xf32>
    %424 = vector.extract_strided_slice %415 {offsets = [0, 0], sizes = [128, 32], strides = [1, 1]} : vector<512x32xf32> to vector<128x32xf32>
    %425 = vector.extract_strided_slice %422 {offsets = [0, 0], sizes = [8, 8], strides = [1, 1]} : vector<8x32xf32> to vector<8x8xf32>
    %426 = arith.truncf %425 : vector<8x8xf32> to vector<8x8xbf16>
    %427 = vector.extract_strided_slice %423 {offsets = [0, 0], sizes = [128, 8], strides = [1, 1]} : vector<128x32xf32> to vector<128x8xf32>
    %428 = arith.truncf %427 : vector<128x8xf32> to vector<128x8xbf16>
    %429 = vector.extract_strided_slice %424 {offsets = [0, 0], sizes = [128, 8], strides = [1, 1]} : vector<128x32xf32> to vector<128x8xf32>
    %430 = arith.truncf %429 : vector<128x8xf32> to vector<128x8xbf16>
    %cst_128 = arith.constant dense<0.000000e+00> : vector<8x128xf32>
    %431 = tpu.matmul %426, %428, %cst_128 {dimension_numbers = #tpu.dot_dimension_numbers<[1], [1], [0], [0], [0, 0, 1, 0], [], []>} : vector<8x8xbf16>, vector<128x8xbf16>, vector<8x128xf32> -> vector<8x128xf32>
    %cst_129 = arith.constant 0.353553385 : f32
    %432 = vector.broadcast %cst_129 : f32 to vector<8x128xf32>
    %433 = arith.mulf %431, %432 : vector<8x128xf32>
    %434 = vector.broadcast %421 : vector<1x128xf32> to vector<8x128xf32>
    %435 = arith.addf %433, %434 : vector<8x128xf32>
    %cst_130 = arith.constant dense<0xFF800000> : vector<8xf32>
    %436 = vector.multi_reduction <maximumf>, %435, %cst_130 [1] : vector<8x128xf32> to vector<8xf32>
    %437 = vector.shape_cast %436 : vector<8xf32> to vector<8x1xf32>
    %438 = vector.broadcast %437 : vector<8x1xf32> to vector<8x128xf32>
    %439 = arith.subf %435, %438 : vector<8x128xf32>
    %440 = math.exp %439 : vector<8x128xf32>
    %cst_131 = arith.constant dense<0.000000e+00> : vector<8xf32>
    %441 = vector.multi_reduction <add>, %440, %cst_131 [1] : vector<8x128xf32> to vector<8xf32>
    %442 = vector.shape_cast %441 : vector<8xf32> to vector<8x1xf32>
    %443 = vector.broadcast %442 : vector<8x1xf32> to vector<8x128xf32>
    %444 = arith.divf %440, %443 : vector<8x128xf32>
    %445 = arith.truncf %444 : vector<8x128xf32> to vector<8x128xbf16>
    %cst_132 = arith.constant dense<0.000000e+00> : vector<8x8xf32>
    %446 = tpu.matmul %445, %430, %cst_132 {dimension_numbers = #tpu.dot_dimension_numbers<[1], [0], [0], [1], [0, 0, 1, 1], [], []>} : vector<8x128xbf16>, vector<128x8xbf16>, vector<8x8xf32> -> vector<8x8xf32>
    %447 = vector.extract_strided_slice %422 {offsets = [0, 8], sizes = [8, 8], strides = [1, 1]} : vector<8x32xf32> to vector<8x8xf32>
    %448 = arith.truncf %447 : vector<8x8xf32> to vector<8x8xbf16>
    %449 = vector.extract_strided_slice %423 {offsets = [0, 8], sizes = [128, 8], strides = [1, 1]} : vector<128x32xf32> to vector<128x8xf32>
    %450 = arith.truncf %449 : vector<128x8xf32> to vector<128x8xbf16>
    %451 = vector.extract_strided_slice %424 {offsets = [0, 8], sizes = [128, 8], strides = [1, 1]} : vector<128x32xf32> to vector<128x8xf32>
    %452 = arith.truncf %451 : vector<128x8xf32> to vector<128x8xbf16>
    %cst_133 = arith.constant dense<0.000000e+00> : vector<8x128xf32>
    %453 = tpu.matmul %448, %450, %cst_133 {dimension_numbers = #tpu.dot_dimension_numbers<[1], [1], [0], [0], [0, 0, 1, 0], [], []>} : vector<8x8xbf16>, vector<128x8xbf16>, vector<8x128xf32> -> vector<8x128xf32>
    %cst_134 = arith.constant 0.353553385 : f32
    %454 = vector.broadcast %cst_134 : f32 to vector<8x128xf32>
    %455 = arith.mulf %453, %454 : vector<8x128xf32>
    %456 = vector.broadcast %421 : vector<1x128xf32> to vector<8x128xf32>
    %457 = arith.addf %455, %456 : vector<8x128xf32>
    %cst_135 = arith.constant dense<0xFF800000> : vector<8xf32>
    %458 = vector.multi_reduction <maximumf>, %457, %cst_135 [1] : vector<8x128xf32> to vector<8xf32>
    %459 = vector.shape_cast %458 : vector<8xf32> to vector<8x1xf32>
    %460 = vector.broadcast %459 : vector<8x1xf32> to vector<8x128xf32>
    %461 = arith.subf %457, %460 : vector<8x128xf32>
    %462 = math.exp %461 : vector<8x128xf32>
    %cst_136 = arith.constant dense<0.000000e+00> : vector<8xf32>
    %463 = vector.multi_reduction <add>, %462, %cst_136 [1] : vector<8x128xf32> to vector<8xf32>
    %464 = vector.shape_cast %463 : vector<8xf32> to vector<8x1xf32>
    %465 = vector.broadcast %464 : vector<8x1xf32> to vector<8x128xf32>
    %466 = arith.divf %462, %465 : vector<8x128xf32>
    %467 = arith.truncf %466 : vector<8x128xf32> to vector<8x128xbf16>
    %cst_137 = arith.constant dense<0.000000e+00> : vector<8x8xf32>
    %468 = tpu.matmul %467, %452, %cst_137 {dimension_numbers = #tpu.dot_dimension_numbers<[1], [0], [0], [1], [0, 0, 1, 1], [], []>} : vector<8x128xbf16>, vector<128x8xbf16>, vector<8x8xf32> -> vector<8x8xf32>
    %469 = arith.addf %444, %466 : vector<8x128xf32>
    %470 = vector.extract_strided_slice %422 {offsets = [0, 16], sizes = [8, 8], strides = [1, 1]} : vector<8x32xf32> to vector<8x8xf32>
    %471 = arith.truncf %470 : vector<8x8xf32> to vector<8x8xbf16>
    %472 = vector.extract_strided_slice %423 {offsets = [0, 16], sizes = [128, 8], strides = [1, 1]} : vector<128x32xf32> to vector<128x8xf32>
    %473 = arith.truncf %472 : vector<128x8xf32> to vector<128x8xbf16>
    %474 = vector.extract_strided_slice %424 {offsets = [0, 16], sizes = [128, 8], strides = [1, 1]} : vector<128x32xf32> to vector<128x8xf32>
    %475 = arith.truncf %474 : vector<128x8xf32> to vector<128x8xbf16>
    %cst_138 = arith.constant dense<0.000000e+00> : vector<8x128xf32>
    %476 = tpu.matmul %471, %473, %cst_138 {dimension_numbers = #tpu.dot_dimension_numbers<[1], [1], [0], [0], [0, 0, 1, 0], [], []>} : vector<8x8xbf16>, vector<128x8xbf16>, vector<8x128xf32> -> vector<8x128xf32>
    %cst_139 = arith.constant 0.353553385 : f32
    %477 = vector.broadcast %cst_139 : f32 to vector<8x128xf32>
    %478 = arith.mulf %476, %477 : vector<8x128xf32>
    %479 = vector.broadcast %421 : vector<1x128xf32> to vector<8x128xf32>
    %480 = arith.addf %478, %479 : vector<8x128xf32>
    %cst_140 = arith.constant dense<0xFF800000> : vector<8xf32>
    %481 = vector.multi_reduction <maximumf>, %480, %cst_140 [1] : vector<8x128xf32> to vector<8xf32>
    %482 = vector.shape_cast %481 : vector<8xf32> to vector<8x1xf32>
    %483 = vector.broadcast %482 : vector<8x1xf32> to vector<8x128xf32>
    %484 = arith.subf %480, %483 : vector<8x128xf32>
    %485 = math.exp %484 : vector<8x128xf32>
    %cst_141 = arith.constant dense<0.000000e+00> : vector<8xf32>
    %486 = vector.multi_reduction <add>, %485, %cst_141 [1] : vector<8x128xf32> to vector<8xf32>
    %487 = vector.shape_cast %486 : vector<8xf32> to vector<8x1xf32>
    %488 = vector.broadcast %487 : vector<8x1xf32> to vector<8x128xf32>
    %489 = arith.divf %485, %488 : vector<8x128xf32>
    %490 = arith.truncf %489 : vector<8x128xf32> to vector<8x128xbf16>
    %cst_142 = arith.constant dense<0.000000e+00> : vector<8x8xf32>
    %491 = tpu.matmul %490, %475, %cst_142 {dimension_numbers = #tpu.dot_dimension_numbers<[1], [0], [0], [1], [0, 0, 1, 1], [], []>} : vector<8x128xbf16>, vector<128x8xbf16>, vector<8x8xf32> -> vector<8x8xf32>
    %492 = arith.addf %469, %489 : vector<8x128xf32>
    %493 = vector.extract_strided_slice %422 {offsets = [0, 24], sizes = [8, 8], strides = [1, 1]} : vector<8x32xf32> to vector<8x8xf32>
    %494 = arith.truncf %493 : vector<8x8xf32> to vector<8x8xbf16>
    %495 = vector.extract_strided_slice %423 {offsets = [0, 24], sizes = [128, 8], strides = [1, 1]} : vector<128x32xf32> to vector<128x8xf32>
    %496 = arith.truncf %495 : vector<128x8xf32> to vector<128x8xbf16>
    %497 = vector.extract_strided_slice %424 {offsets = [0, 24], sizes = [128, 8], strides = [1, 1]} : vector<128x32xf32> to vector<128x8xf32>
    %498 = arith.truncf %497 : vector<128x8xf32> to vector<128x8xbf16>
    %cst_143 = arith.constant dense<0.000000e+00> : vector<8x128xf32>
    %499 = tpu.matmul %494, %496, %cst_143 {dimension_numbers = #tpu.dot_dimension_numbers<[1], [1], [0], [0], [0, 0, 1, 0], [], []>} : vector<8x8xbf16>, vector<128x8xbf16>, vector<8x128xf32> -> vector<8x128xf32>
    %cst_144 = arith.constant 0.353553385 : f32
    %500 = vector.broadcast %cst_144 : f32 to vector<8x128xf32>
    %501 = arith.mulf %499, %500 : vector<8x128xf32>
    %502 = vector.broadcast %421 : vector<1x128xf32> to vector<8x128xf32>
    %503 = arith.addf %501, %502 : vector<8x128xf32>
    %cst_145 = arith.constant dense<0xFF800000> : vector<8xf32>
    %504 = vector.multi_reduction <maximumf>, %503, %cst_145 [1] : vector<8x128xf32> to vector<8xf32>
    %505 = vector.shape_cast %504 : vector<8xf32> to vector<8x1xf32>
    %506 = vector.broadcast %505 : vector<8x1xf32> to vector<8x128xf32>
    %507 = arith.subf %503, %506 : vector<8x128xf32>
    %508 = math.exp %507 : vector<8x128xf32>
    %cst_146 = arith.constant dense<0.000000e+00> : vector<8xf32>
    %509 = vector.multi_reduction <add>, %508, %cst_146 [1] : vector<8x128xf32> to vector<8xf32>
    %510 = vector.shape_cast %509 : vector<8xf32> to vector<8x1xf32>
    %511 = vector.broadcast %510 : vector<8x1xf32> to vector<8x128xf32>
    %512 = arith.divf %508, %511 : vector<8x128xf32>
    %513 = arith.truncf %512 : vector<8x128xf32> to vector<8x128xbf16>
    %cst_147 = arith.constant dense<0.000000e+00> : vector<8x8xf32>
    %514 = tpu.matmul %513, %498, %cst_147 {dimension_numbers = #tpu.dot_dimension_numbers<[1], [0], [0], [1], [0, 0, 1, 1], [], []>} : vector<8x128xbf16>, vector<128x8xbf16>, vector<8x8xf32> -> vector<8x8xf32>
    %515 = arith.addf %492, %512 : vector<8x128xf32>
    %516 = tpu.concatenate %446, %468, %491, %514 in 1 : vector<8x8xf32>, vector<8x8xf32>, vector<8x8xf32>, vector<8x8xf32> -> vector<8x32xf32>
    %517 = arith.truncf %516 : vector<8x32xf32> to vector<8x32xbf16>
    %c0_148 = arith.constant 0 : index
    %c0_149 = arith.constant 0 : index
    %518 = vector.load %arg24[%c0_148, %c0_149] : memref<32x32xbf16, #tpu.memory_space<vmem>>, vector<8x32xbf16>
    tpu.vector_store %arg24[%c0_148, %c0_149], %517 {strides = array<i32>} : memref<32x32xbf16, #tpu.memory_space<vmem>>, vector<8x32xbf16>,
    %c0_150 = arith.constant 0 : index
    %c0_151 = arith.constant 0 : index
    %519 = vector.load %arg23[%c0_150, %c0_151] : memref<32x128xf32, #tpu.memory_space<vmem>>, vector<8x128xf32>
    %520 = arith.addf %519, %515 : vector<8x128xf32>
    %c0_152 = arith.constant 0 : index
    %c0_153 = arith.constant 0 : index
    %521 = vector.load %arg23[%c0_152, %c0_153] : memref<32x128xf32, #tpu.memory_space<vmem>>, vector<8x128xf32>
    tpu.vector_store %arg23[%c0_152, %c0_153], %520 {strides = array<i32>} : memref<32x128xf32, #tpu.memory_space<vmem>>, vector<8x128xf32>,
    %522 = vector.extract_strided_slice %406 {offsets = [8, 0], sizes = [8, 32], strides = [1, 1]} : vector<32x32xf32> to vector<8x32xf32>
    %523 = vector.extract_strided_slice %414 {offsets = [128, 0], sizes = [128, 32], strides = [1, 1]} : vector<512x32xf32> to vector<128x32xf32>
    %524 = vector.extract_strided_slice %415 {offsets = [128, 0], sizes = [128, 32], strides = [1, 1]} : vector<512x32xf32> to vector<128x32xf32>
    %525 = vector.extract_strided_slice %522 {offsets = [0, 0], sizes = [8, 8], strides = [1, 1]} : vector<8x32xf32> to vector<8x8xf32>
    %526 = arith.truncf %525 : vector<8x8xf32> to vector<8x8xbf16>
    %527 = vector.extract_strided_slice %523 {offsets = [0, 0], sizes = [128, 8], strides = [1, 1]} : vector<128x32xf32> to vector<128x8xf32>
    %528 = arith.truncf %527 : vector<128x8xf32> to vector<128x8xbf16>
    %529 = vector.extract_strided_slice %524 {offsets = [0, 0], sizes = [128, 8], strides = [1, 1]} : vector<128x32xf32> to vector<128x8xf32>
    %530 = arith.truncf %529 : vector<128x8xf32> to vector<128x8xbf16>
    %cst_154 = arith.constant dense<0.000000e+00> : vector<8x128xf32>
    %531 = tpu.matmul %526, %528, %cst_154 {dimension_numbers = #tpu.dot_dimension_numbers<[1], [1], [0], [0], [0, 0, 1, 0], [], []>} : vector<8x8xbf16>, vector<128x8xbf16>, vector<8x128xf32> -> vector<8x128xf32>
    %cst_155 = arith.constant 0.353553385 : f32
    %532 = vector.broadcast %cst_155 : f32 to vector<8x128xf32>
    %533 = arith.mulf %531, %532 : vector<8x128xf32>
    %534 = vector.broadcast %421 : vector<1x128xf32> to vector<8x128xf32>
    %535 = arith.addf %533, %534 : vector<8x128xf32>
    %cst_156 = arith.constant dense<0xFF800000> : vector<8xf32>
    %536 = vector.multi_reduction <maximumf>, %535, %cst_156 [1] : vector<8x128xf32> to vector<8xf32>
    %537 = vector.shape_cast %536 : vector<8xf32> to vector<8x1xf32>
    %538 = vector.broadcast %537 : vector<8x1xf32> to vector<8x128xf32>
    %539 = arith.subf %535, %538 : vector<8x128xf32>
    %540 = math.exp %539 : vector<8x128xf32>
    %cst_157 = arith.constant dense<0.000000e+00> : vector<8xf32>
    %541 = vector.multi_reduction <add>, %540, %cst_157 [1] : vector<8x128xf32> to vector<8xf32>
    %542 = vector.shape_cast %541 : vector<8xf32> to vector<8x1xf32>
    %543 = vector.broadcast %542 : vector<8x1xf32> to vector<8x128xf32>
    %544 = arith.divf %540, %543 : vector<8x128xf32>
    %545 = arith.truncf %544 : vector<8x128xf32> to vector<8x128xbf16>
    %cst_158 = arith.constant dense<0.000000e+00> : vector<8x8xf32>
    %546 = tpu.matmul %545, %530, %cst_158 {dimension_numbers = #tpu.dot_dimension_numbers<[1], [0], [0], [1], [0, 0, 1, 1], [], []>} : vector<8x128xbf16>, vector<128x8xbf16>, vector<8x8xf32> -> vector<8x8xf32>
    %547 = vector.extract_strided_slice %522 {offsets = [0, 8], sizes = [8, 8], strides = [1, 1]} : vector<8x32xf32> to vector<8x8xf32>
    %548 = arith.truncf %547 : vector<8x8xf32> to vector<8x8xbf16>
    %549 = vector.extract_strided_slice %523 {offsets = [0, 8], sizes = [128, 8], strides = [1, 1]} : vector<128x32xf32> to vector<128x8xf32>
    %550 = arith.truncf %549 : vector<128x8xf32> to vector<128x8xbf16>
    %551 = vector.extract_strided_slice %524 {offsets = [0, 8], sizes = [128, 8], strides = [1, 1]} : vector<128x32xf32> to vector<128x8xf32>
    %552 = arith.truncf %551 : vector<128x8xf32> to vector<128x8xbf16>
    %cst_159 = arith.constant dense<0.000000e+00> : vector<8x128xf32>
    %553 = tpu.matmul %548, %550, %cst_159 {dimension_numbers = #tpu.dot_dimension_numbers<[1], [1], [0], [0], [0, 0, 1, 0], [], []>} : vector<8x8xbf16>, vector<128x8xbf16>, vector<8x128xf32> -> vector<8x128xf32>
    %cst_160 = arith.constant 0.353553385 : f32
    %554 = vector.broadcast %cst_160 : f32 to vector<8x128xf32>
    %555 = arith.mulf %553, %554 : vector<8x128xf32>
    %556 = vector.broadcast %421 : vector<1x128xf32> to vector<8x128xf32>
    %557 = arith.addf %555, %556 : vector<8x128xf32>
    %cst_161 = arith.constant dense<0xFF800000> : vector<8xf32>
    %558 = vector.multi_reduction <maximumf>, %557, %cst_161 [1] : vector<8x128xf32> to vector<8xf32>
    %559 = vector.shape_cast %558 : vector<8xf32> to vector<8x1xf32>
    %560 = vector.broadcast %559 : vector<8x1xf32> to vector<8x128xf32>
    %561 = arith.subf %557, %560 : vector<8x128xf32>
    %562 = math.exp %561 : vector<8x128xf32>
    %cst_162 = arith.constant dense<0.000000e+00> : vector<8xf32>
    %563 = vector.multi_reduction <add>, %562, %cst_162 [1] : vector<8x128xf32> to vector<8xf32>
    %564 = vector.shape_cast %563 : vector<8xf32> to vector<8x1xf32>
    %565 = vector.broadcast %564 : vector<8x1xf32> to vector<8x128xf32>
    %566 = arith.divf %562, %565 : vector<8x128xf32>
    %567 = arith.truncf %566 : vector<8x128xf32> to vector<8x128xbf16>
    %cst_163 = arith.constant dense<0.000000e+00> : vector<8x8xf32>
    %568 = tpu.matmul %567, %552, %cst_163 {dimension_numbers = #tpu.dot_dimension_numbers<[1], [0], [0], [1], [0, 0, 1, 1], [], []>} : vector<8x128xbf16>, vector<128x8xbf16>, vector<8x8xf32> -> vector<8x8xf32>
    %569 = arith.addf %544, %566 : vector<8x128xf32>
    %570 = vector.extract_strided_slice %522 {offsets = [0, 16], sizes = [8, 8], strides = [1, 1]} : vector<8x32xf32> to vector<8x8xf32>
    %571 = arith.truncf %570 : vector<8x8xf32> to vector<8x8xbf16>
    %572 = vector.extract_strided_slice %523 {offsets = [0, 16], sizes = [128, 8], strides = [1, 1]} : vector<128x32xf32> to vector<128x8xf32>
    %573 = arith.truncf %572 : vector<128x8xf32> to vector<128x8xbf16>
    %574 = vector.extract_strided_slice %524 {offsets = [0, 16], sizes = [128, 8], strides = [1, 1]} : vector<128x32xf32> to vector<128x8xf32>
    %575 = arith.truncf %574 : vector<128x8xf32> to vector<128x8xbf16>
    %cst_164 = arith.constant dense<0.000000e+00> : vector<8x128xf32>
    %576 = tpu.matmul %571, %573, %cst_164 {dimension_numbers = #tpu.dot_dimension_numbers<[1], [1], [0], [0], [0, 0, 1, 0], [], []>} : vector<8x8xbf16>, vector<128x8xbf16>, vector<8x128xf32> -> vector<8x128xf32>
    %cst_165 = arith.constant 0.353553385 : f32
    %577 = vector.broadcast %cst_165 : f32 to vector<8x128xf32>
    %578 = arith.mulf %576, %577 : vector<8x128xf32>
    %579 = vector.broadcast %421 : vector<1x128xf32> to vector<8x128xf32>
    %580 = arith.addf %578, %579 : vector<8x128xf32>
    %cst_166 = arith.constant dense<0xFF800000> : vector<8xf32>
    %581 = vector.multi_reduction <maximumf>, %580, %cst_166 [1] : vector<8x128xf32> to vector<8xf32>
    %582 = vector.shape_cast %581 : vector<8xf32> to vector<8x1xf32>
    %583 = vector.broadcast %582 : vector<8x1xf32> to vector<8x128xf32>
    %584 = arith.subf %580, %583 : vector<8x128xf32>
    %585 = math.exp %584 : vector<8x128xf32>
    %cst_167 = arith.constant dense<0.000000e+00> : vector<8xf32>
    %586 = vector.multi_reduction <add>, %585, %cst_167 [1] : vector<8x128xf32> to vector<8xf32>
    %587 = vector.shape_cast %586 : vector<8xf32> to vector<8x1xf32>
    %588 = vector.broadcast %587 : vector<8x1xf32> to vector<8x128xf32>
    %589 = arith.divf %585, %588 : vector<8x128xf32>
    %590 = arith.truncf %589 : vector<8x128xf32> to vector<8x128xbf16>
    %cst_168 = arith.constant dense<0.000000e+00> : vector<8x8xf32>
    %591 = tpu.matmul %590, %575, %cst_168 {dimension_numbers = #tpu.dot_dimension_numbers<[1], [0], [0], [1], [0, 0, 1, 1], [], []>} : vector<8x128xbf16>, vector<128x8xbf16>, vector<8x8xf32> -> vector<8x8xf32>
    %592 = arith.addf %569, %589 : vector<8x128xf32>
    %593 = vector.extract_strided_slice %522 {offsets = [0, 24], sizes = [8, 8], strides = [1, 1]} : vector<8x32xf32> to vector<8x8xf32>
    %594 = arith.truncf %593 : vector<8x8xf32> to vector<8x8xbf16>
    %595 = vector.extract_strided_slice %523 {offsets = [0, 24], sizes = [128, 8], strides = [1, 1]} : vector<128x32xf32> to vector<128x8xf32>
    %596 = arith.truncf %595 : vector<128x8xf32> to vector<128x8xbf16>
    %597 = vector.extract_strided_slice %524 {offsets = [0, 24], sizes = [128, 8], strides = [1, 1]} : vector<128x32xf32> to vector<128x8xf32>
    %598 = arith.truncf %597 : vector<128x8xf32> to vector<128x8xbf16>
    %cst_169 = arith.constant dense<0.000000e+00> : vector<8x128xf32>
    %599 = tpu.matmul %594, %596, %cst_169 {dimension_numbers = #tpu.dot_dimension_numbers<[1], [1], [0], [0], [0, 0, 1, 0], [], []>} : vector<8x8xbf16>, vector<128x8xbf16>, vector<8x128xf32> -> vector<8x128xf32>
    %cst_170 = arith.constant 0.353553385 : f32
    %600 = vector.broadcast %cst_170 : f32 to vector<8x128xf32>
    %601 = arith.mulf %599, %600 : vector<8x128xf32>
    %602 = vector.broadcast %421 : vector<1x128xf32> to vector<8x128xf32>
    %603 = arith.addf %601, %602 : vector<8x128xf32>
    %cst_171 = arith.constant dense<0xFF800000> : vector<8xf32>
    %604 = vector.multi_reduction <maximumf>, %603, %cst_171 [1] : vector<8x128xf32> to vector<8xf32>
    %605 = vector.shape_cast %604 : vector<8xf32> to vector<8x1xf32>
    %606 = vector.broadcast %605 : vector<8x1xf32> to vector<8x128xf32>
    %607 = arith.subf %603, %606 : vector<8x128xf32>
    %608 = math.exp %607 : vector<8x128xf32>
    %cst_172 = arith.constant dense<0.000000e+00> : vector<8xf32>
    %609 = vector.multi_reduction <add>, %608, %cst_172 [1] : vector<8x128xf32> to vector<8xf32>
    %610 = vector.shape_cast %609 : vector<8xf32> to vector<8x1xf32>
    %611 = vector.broadcast %610 : vector<8x1xf32> to vector<8x128xf32>
    %612 = arith.divf %608, %611 : vector<8x128xf32>
    %613 = arith.truncf %612 : vector<8x128xf32> to vector<8x128xbf16>
    %cst_173 = arith.constant dense<0.000000e+00> : vector<8x8xf32>
    %614 = tpu.matmul %613, %598, %cst_173 {dimension_numbers = #tpu.dot_dimension_numbers<[1], [0], [0], [1], [0, 0, 1, 1], [], []>} : vector<8x128xbf16>, vector<128x8xbf16>, vector<8x8xf32> -> vector<8x8xf32>
    %615 = arith.addf %592, %612 : vector<8x128xf32>
    %616 = tpu.concatenate %546, %568, %591, %614 in 1 : vector<8x8xf32>, vector<8x8xf32>, vector<8x8xf32>, vector<8x8xf32> -> vector<8x32xf32>
    %617 = arith.truncf %616 : vector<8x32xf32> to vector<8x32xbf16>
    %c8_174 = arith.constant 8 : index
    %c0_175 = arith.constant 0 : index
    %618 = vector.load %arg24[%c8_174, %c0_175] : memref<32x32xbf16, #tpu.memory_space<vmem>>, vector<8x32xbf16>
    tpu.vector_store %arg24[%c8_174, %c0_175], %617 {strides = array<i32>} : memref<32x32xbf16, #tpu.memory_space<vmem>>, vector<8x32xbf16>,
    %c8_176 = arith.constant 8 : index
    %c0_177 = arith.constant 0 : index
    %619 = vector.load %arg23[%c8_176, %c0_177] : memref<32x128xf32, #tpu.memory_space<vmem>>, vector<8x128xf32>
    %620 = arith.addf %619, %615 : vector<8x128xf32>
    %c8_178 = arith.constant 8 : index
    %c0_179 = arith.constant 0 : index
    %621 = vector.load %arg23[%c8_178, %c0_179] : memref<32x128xf32, #tpu.memory_space<vmem>>, vector<8x128xf32>
    tpu.vector_store %arg23[%c8_178, %c0_179], %620 {strides = array<i32>} : memref<32x128xf32, #tpu.memory_space<vmem>>, vector<8x128xf32>,
    %622 = vector.extract_strided_slice %406 {offsets = [16, 0], sizes = [8, 32], strides = [1, 1]} : vector<32x32xf32> to vector<8x32xf32>
    %623 = vector.extract_strided_slice %414 {offsets = [256, 0], sizes = [128, 32], strides = [1, 1]} : vector<512x32xf32> to vector<128x32xf32>
    %624 = vector.extract_strided_slice %415 {offsets = [256, 0], sizes = [128, 32], strides = [1, 1]} : vector<512x32xf32> to vector<128x32xf32>
    %625 = vector.extract_strided_slice %622 {offsets = [0, 0], sizes = [8, 8], strides = [1, 1]} : vector<8x32xf32> to vector<8x8xf32>
    %626 = arith.truncf %625 : vector<8x8xf32> to vector<8x8xbf16>
    %627 = vector.extract_strided_slice %623 {offsets = [0, 0], sizes = [128, 8], strides = [1, 1]} : vector<128x32xf32> to vector<128x8xf32>
    %628 = arith.truncf %627 : vector<128x8xf32> to vector<128x8xbf16>
    %629 = vector.extract_strided_slice %624 {offsets = [0, 0], sizes = [128, 8], strides = [1, 1]} : vector<128x32xf32> to vector<128x8xf32>
    %630 = arith.truncf %629 : vector<128x8xf32> to vector<128x8xbf16>
    %cst_180 = arith.constant dense<0.000000e+00> : vector<8x128xf32>
    %631 = tpu.matmul %626, %628, %cst_180 {dimension_numbers = #tpu.dot_dimension_numbers<[1], [1], [0], [0], [0, 0, 1, 0], [], []>} : vector<8x8xbf16>, vector<128x8xbf16>, vector<8x128xf32> -> vector<8x128xf32>
    %cst_181 = arith.constant 0.353553385 : f32
    %632 = vector.broadcast %cst_181 : f32 to vector<8x128xf32>
    %633 = arith.mulf %631, %632 : vector<8x128xf32>
    %634 = vector.broadcast %421 : vector<1x128xf32> to vector<8x128xf32>
    %635 = arith.addf %633, %634 : vector<8x128xf32>
    %cst_182 = arith.constant dense<0xFF800000> : vector<8xf32>
    %636 = vector.multi_reduction <maximumf>, %635, %cst_182 [1] : vector<8x128xf32> to vector<8xf32>
    %637 = vector.shape_cast %636 : vector<8xf32> to vector<8x1xf32>
    %638 = vector.broadcast %637 : vector<8x1xf32> to vector<8x128xf32>
    %639 = arith.subf %635, %638 : vector<8x128xf32>
    %640 = math.exp %639 : vector<8x128xf32>
    %cst_183 = arith.constant dense<0.000000e+00> : vector<8xf32>
    %641 = vector.multi_reduction <add>, %640, %cst_183 [1] : vector<8x128xf32> to vector<8xf32>
    %642 = vector.shape_cast %641 : vector<8xf32> to vector<8x1xf32>
    %643 = vector.broadcast %642 : vector<8x1xf32> to vector<8x128xf32>
    %644 = arith.divf %640, %643 : vector<8x128xf32>
    %645 = arith.truncf %644 : vector<8x128xf32> to vector<8x128xbf16>
    %cst_184 = arith.constant dense<0.000000e+00> : vector<8x8xf32>
    %646 = tpu.matmul %645, %630, %cst_184 {dimension_numbers = #tpu.dot_dimension_numbers<[1], [0], [0], [1], [0, 0, 1, 1], [], []>} : vector<8x128xbf16>, vector<128x8xbf16>, vector<8x8xf32> -> vector<8x8xf32>
    %647 = vector.extract_strided_slice %622 {offsets = [0, 8], sizes = [8, 8], strides = [1, 1]} : vector<8x32xf32> to vector<8x8xf32>
    %648 = arith.truncf %647 : vector<8x8xf32> to vector<8x8xbf16>
    %649 = vector.extract_strided_slice %623 {offsets = [0, 8], sizes = [128, 8], strides = [1, 1]} : vector<128x32xf32> to vector<128x8xf32>
    %650 = arith.truncf %649 : vector<128x8xf32> to vector<128x8xbf16>
    %651 = vector.extract_strided_slice %624 {offsets = [0, 8], sizes = [128, 8], strides = [1, 1]} : vector<128x32xf32> to vector<128x8xf32>
    %652 = arith.truncf %651 : vector<128x8xf32> to vector<128x8xbf16>
    %cst_185 = arith.constant dense<0.000000e+00> : vector<8x128xf32>
    %653 = tpu.matmul %648, %650, %cst_185 {dimension_numbers = #tpu.dot_dimension_numbers<[1], [1], [0], [0], [0, 0, 1, 0], [], []>} : vector<8x8xbf16>, vector<128x8xbf16>, vector<8x128xf32> -> vector<8x128xf32>
    %cst_186 = arith.constant 0.353553385 : f32
    %654 = vector.broadcast %cst_186 : f32 to vector<8x128xf32>
    %655 = arith.mulf %653, %654 : vector<8x128xf32>
    %656 = vector.broadcast %421 : vector<1x128xf32> to vector<8x128xf32>
    %657 = arith.addf %655, %656 : vector<8x128xf32>
    %cst_187 = arith.constant dense<0xFF800000> : vector<8xf32>
    %658 = vector.multi_reduction <maximumf>, %657, %cst_187 [1] : vector<8x128xf32> to vector<8xf32>
    %659 = vector.shape_cast %658 : vector<8xf32> to vector<8x1xf32>
    %660 = vector.broadcast %659 : vector<8x1xf32> to vector<8x128xf32>
    %661 = arith.subf %657, %660 : vector<8x128xf32>
    %662 = math.exp %661 : vector<8x128xf32>
    %cst_188 = arith.constant dense<0.000000e+00> : vector<8xf32>
    %663 = vector.multi_reduction <add>, %662, %cst_188 [1] : vector<8x128xf32> to vector<8xf32>
    %664 = vector.shape_cast %663 : vector<8xf32> to vector<8x1xf32>
    %665 = vector.broadcast %664 : vector<8x1xf32> to vector<8x128xf32>
    %666 = arith.divf %662, %665 : vector<8x128xf32>
    %667 = arith.truncf %666 : vector<8x128xf32> to vector<8x128xbf16>
    %cst_189 = arith.constant dense<0.000000e+00> : vector<8x8xf32>
    %668 = tpu.matmul %667, %652, %cst_189 {dimension_numbers = #tpu.dot_dimension_numbers<[1], [0], [0], [1], [0, 0, 1, 1], [], []>} : vector<8x128xbf16>, vector<128x8xbf16>, vector<8x8xf32> -> vector<8x8xf32>
    %669 = arith.addf %644, %666 : vector<8x128xf32>
    %670 = vector.extract_strided_slice %622 {offsets = [0, 16], sizes = [8, 8], strides = [1, 1]} : vector<8x32xf32> to vector<8x8xf32>
    %671 = arith.truncf %670 : vector<8x8xf32> to vector<8x8xbf16>
    %672 = vector.extract_strided_slice %623 {offsets = [0, 16], sizes = [128, 8], strides = [1, 1]} : vector<128x32xf32> to vector<128x8xf32>
    %673 = arith.truncf %672 : vector<128x8xf32> to vector<128x8xbf16>
    %674 = vector.extract_strided_slice %624 {offsets = [0, 16], sizes = [128, 8], strides = [1, 1]} : vector<128x32xf32> to vector<128x8xf32>
    %675 = arith.truncf %674 : vector<128x8xf32> to vector<128x8xbf16>
    %cst_190 = arith.constant dense<0.000000e+00> : vector<8x128xf32>
    %676 = tpu.matmul %671, %673, %cst_190 {dimension_numbers = #tpu.dot_dimension_numbers<[1], [1], [0], [0], [0, 0, 1, 0], [], []>} : vector<8x8xbf16>, vector<128x8xbf16>, vector<8x128xf32> -> vector<8x128xf32>
    %cst_191 = arith.constant 0.353553385 : f32
    %677 = vector.broadcast %cst_191 : f32 to vector<8x128xf32>
    %678 = arith.mulf %676, %677 : vector<8x128xf32>
    %679 = vector.broadcast %421 : vector<1x128xf32> to vector<8x128xf32>
    %680 = arith.addf %678, %679 : vector<8x128xf32>
    %cst_192 = arith.constant dense<0xFF800000> : vector<8xf32>
    %681 = vector.multi_reduction <maximumf>, %680, %cst_192 [1] : vector<8x128xf32> to vector<8xf32>
    %682 = vector.shape_cast %681 : vector<8xf32> to vector<8x1xf32>
    %683 = vector.broadcast %682 : vector<8x1xf32> to vector<8x128xf32>
    %684 = arith.subf %680, %683 : vector<8x128xf32>
    %685 = math.exp %684 : vector<8x128xf32>
    %cst_193 = arith.constant dense<0.000000e+00> : vector<8xf32>
    %686 = vector.multi_reduction <add>, %685, %cst_193 [1] : vector<8x128xf32> to vector<8xf32>
    %687 = vector.shape_cast %686 : vector<8xf32> to vector<8x1xf32>
    %688 = vector.broadcast %687 : vector<8x1xf32> to vector<8x128xf32>
    %689 = arith.divf %685, %688 : vector<8x128xf32>
    %690 = arith.truncf %689 : vector<8x128xf32> to vector<8x128xbf16>
    %cst_194 = arith.constant dense<0.000000e+00> : vector<8x8xf32>
    %691 = tpu.matmul %690, %675, %cst_194 {dimension_numbers = #tpu.dot_dimension_numbers<[1], [0], [0], [1], [0, 0, 1, 1], [], []>} : vector<8x128xbf16>, vector<128x8xbf16>, vector<8x8xf32> -> vector<8x8xf32>
    %692 = arith.addf %669, %689 : vector<8x128xf32>
    %693 = vector.extract_strided_slice %622 {offsets = [0, 24], sizes = [8, 8], strides = [1, 1]} : vector<8x32xf32> to vector<8x8xf32>
    %694 = arith.truncf %693 : vector<8x8xf32> to vector<8x8xbf16>
    %695 = vector.extract_strided_slice %623 {offsets = [0, 24], sizes = [128, 8], strides = [1, 1]} : vector<128x32xf32> to vector<128x8xf32>
    %696 = arith.truncf %695 : vector<128x8xf32> to vector<128x8xbf16>
    %697 = vector.extract_strided_slice %624 {offsets = [0, 24], sizes = [128, 8], strides = [1, 1]} : vector<128x32xf32> to vector<128x8xf32>
    %698 = arith.truncf %697 : vector<128x8xf32> to vector<128x8xbf16>
    %cst_195 = arith.constant dense<0.000000e+00> : vector<8x128xf32>
    %699 = tpu.matmul %694, %696, %cst_195 {dimension_numbers = #tpu.dot_dimension_numbers<[1], [1], [0], [0], [0, 0, 1, 0], [], []>} : vector<8x8xbf16>, vector<128x8xbf16>, vector<8x128xf32> -> vector<8x128xf32>
    %cst_196 = arith.constant 0.353553385 : f32
    %700 = vector.broadcast %cst_196 : f32 to vector<8x128xf32>
    %701 = arith.mulf %699, %700 : vector<8x128xf32>
    %702 = vector.broadcast %421 : vector<1x128xf32> to vector<8x128xf32>
    %703 = arith.addf %701, %702 : vector<8x128xf32>
    %cst_197 = arith.constant dense<0xFF800000> : vector<8xf32>
    %704 = vector.multi_reduction <maximumf>, %703, %cst_197 [1] : vector<8x128xf32> to vector<8xf32>
    %705 = vector.shape_cast %704 : vector<8xf32> to vector<8x1xf32>
    %706 = vector.broadcast %705 : vector<8x1xf32> to vector<8x128xf32>
    %707 = arith.subf %703, %706 : vector<8x128xf32>
    %708 = math.exp %707 : vector<8x128xf32>
    %cst_198 = arith.constant dense<0.000000e+00> : vector<8xf32>
    %709 = vector.multi_reduction <add>, %708, %cst_198 [1] : vector<8x128xf32> to vector<8xf32>
    %710 = vector.shape_cast %709 : vector<8xf32> to vector<8x1xf32>
    %711 = vector.broadcast %710 : vector<8x1xf32> to vector<8x128xf32>
    %712 = arith.divf %708, %711 : vector<8x128xf32>
    %713 = arith.truncf %712 : vector<8x128xf32> to vector<8x128xbf16>
    %cst_199 = arith.constant dense<0.000000e+00> : vector<8x8xf32>
    %714 = tpu.matmul %713, %698, %cst_199 {dimension_numbers = #tpu.dot_dimension_numbers<[1], [0], [0], [1], [0, 0, 1, 1], [], []>} : vector<8x128xbf16>, vector<128x8xbf16>, vector<8x8xf32> -> vector<8x8xf32>
    %715 = arith.addf %692, %712 : vector<8x128xf32>
    %716 = tpu.concatenate %646, %668, %691, %714 in 1 : vector<8x8xf32>, vector<8x8xf32>, vector<8x8xf32>, vector<8x8xf32> -> vector<8x32xf32>
    %717 = arith.truncf %716 : vector<8x32xf32> to vector<8x32xbf16>
    %c16_200 = arith.constant 16 : index
    %c0_201 = arith.constant 0 : index
    %718 = vector.load %arg24[%c16_200, %c0_201] : memref<32x32xbf16, #tpu.memory_space<vmem>>, vector<8x32xbf16>
    tpu.vector_store %arg24[%c16_200, %c0_201], %717 {strides = array<i32>} : memref<32x32xbf16, #tpu.memory_space<vmem>>, vector<8x32xbf16>,
    %c16_202 = arith.constant 16 : index
    %c0_203 = arith.constant 0 : index
    %719 = vector.load %arg23[%c16_202, %c0_203] : memref<32x128xf32, #tpu.memory_space<vmem>>, vector<8x128xf32>
    %720 = arith.addf %719, %715 : vector<8x128xf32>
    %c16_204 = arith.constant 16 : index
    %c0_205 = arith.constant 0 : index
    %721 = vector.load %arg23[%c16_204, %c0_205] : memref<32x128xf32, #tpu.memory_space<vmem>>, vector<8x128xf32>
    tpu.vector_store %arg23[%c16_204, %c0_205], %720 {strides = array<i32>} : memref<32x128xf32, #tpu.memory_space<vmem>>, vector<8x128xf32>,
    %722 = vector.extract_strided_slice %406 {offsets = [24, 0], sizes = [8, 32], strides = [1, 1]} : vector<32x32xf32> to vector<8x32xf32>
    %723 = vector.extract_strided_slice %414 {offsets = [384, 0], sizes = [128, 32], strides = [1, 1]} : vector<512x32xf32> to vector<128x32xf32>
    %724 = vector.extract_strided_slice %415 {offsets = [384, 0], sizes = [128, 32], strides = [1, 1]} : vector<512x32xf32> to vector<128x32xf32>
    %725 = vector.extract_strided_slice %722 {offsets = [0, 0], sizes = [8, 8], strides = [1, 1]} : vector<8x32xf32> to vector<8x8xf32>
    %726 = arith.truncf %725 : vector<8x8xf32> to vector<8x8xbf16>
    %727 = vector.extract_strided_slice %723 {offsets = [0, 0], sizes = [128, 8], strides = [1, 1]} : vector<128x32xf32> to vector<128x8xf32>
    %728 = arith.truncf %727 : vector<128x8xf32> to vector<128x8xbf16>
    %729 = vector.extract_strided_slice %724 {offsets = [0, 0], sizes = [128, 8], strides = [1, 1]} : vector<128x32xf32> to vector<128x8xf32>
    %730 = arith.truncf %729 : vector<128x8xf32> to vector<128x8xbf16>
    %cst_206 = arith.constant dense<0.000000e+00> : vector<8x128xf32>
    %731 = tpu.matmul %726, %728, %cst_206 {dimension_numbers = #tpu.dot_dimension_numbers<[1], [1], [0], [0], [0, 0, 1, 0], [], []>} : vector<8x8xbf16>, vector<128x8xbf16>, vector<8x128xf32> -> vector<8x128xf32>
    %cst_207 = arith.constant 0.353553385 : f32
    %732 = vector.broadcast %cst_207 : f32 to vector<8x128xf32>
    %733 = arith.mulf %731, %732 : vector<8x128xf32>
    %734 = vector.broadcast %421 : vector<1x128xf32> to vector<8x128xf32>
    %735 = arith.addf %733, %734 : vector<8x128xf32>
    %cst_208 = arith.constant dense<0xFF800000> : vector<8xf32>
    %736 = vector.multi_reduction <maximumf>, %735, %cst_208 [1] : vector<8x128xf32> to vector<8xf32>
    %737 = vector.shape_cast %736 : vector<8xf32> to vector<8x1xf32>
    %738 = vector.broadcast %737 : vector<8x1xf32> to vector<8x128xf32>
    %739 = arith.subf %735, %738 : vector<8x128xf32>
    %740 = math.exp %739 : vector<8x128xf32>
    %cst_209 = arith.constant dense<0.000000e+00> : vector<8xf32>
    %741 = vector.multi_reduction <add>, %740, %cst_209 [1] : vector<8x128xf32> to vector<8xf32>
    %742 = vector.shape_cast %741 : vector<8xf32> to vector<8x1xf32>
    %743 = vector.broadcast %742 : vector<8x1xf32> to vector<8x128xf32>
    %744 = arith.divf %740, %743 : vector<8x128xf32>
    %745 = arith.truncf %744 : vector<8x128xf32> to vector<8x128xbf16>
    %cst_210 = arith.constant dense<0.000000e+00> : vector<8x8xf32>
    %746 = tpu.matmul %745, %730, %cst_210 {dimension_numbers = #tpu.dot_dimension_numbers<[1], [0], [0], [1], [0, 0, 1, 1], [], []>} : vector<8x128xbf16>, vector<128x8xbf16>, vector<8x8xf32> -> vector<8x8xf32>
    %747 = vector.extract_strided_slice %722 {offsets = [0, 8], sizes = [8, 8], strides = [1, 1]} : vector<8x32xf32> to vector<8x8xf32>
    %748 = arith.truncf %747 : vector<8x8xf32> to vector<8x8xbf16>
    %749 = vector.extract_strided_slice %723 {offsets = [0, 8], sizes = [128, 8], strides = [1, 1]} : vector<128x32xf32> to vector<128x8xf32>
    %750 = arith.truncf %749 : vector<128x8xf32> to vector<128x8xbf16>
    %751 = vector.extract_strided_slice %724 {offsets = [0, 8], sizes = [128, 8], strides = [1, 1]} : vector<128x32xf32> to vector<128x8xf32>
    %752 = arith.truncf %751 : vector<128x8xf32> to vector<128x8xbf16>
    %cst_211 = arith.constant dense<0.000000e+00> : vector<8x128xf32>
    %753 = tpu.matmul %748, %750, %cst_211 {dimension_numbers = #tpu.dot_dimension_numbers<[1], [1], [0], [0], [0, 0, 1, 0], [], []>} : vector<8x8xbf16>, vector<128x8xbf16>, vector<8x128xf32> -> vector<8x128xf32>
    %cst_212 = arith.constant 0.353553385 : f32
    %754 = vector.broadcast %cst_212 : f32 to vector<8x128xf32>
    %755 = arith.mulf %753, %754 : vector<8x128xf32>
    %756 = vector.broadcast %421 : vector<1x128xf32> to vector<8x128xf32>
    %757 = arith.addf %755, %756 : vector<8x128xf32>
    %cst_213 = arith.constant dense<0xFF800000> : vector<8xf32>
    %758 = vector.multi_reduction <maximumf>, %757, %cst_213 [1] : vector<8x128xf32> to vector<8xf32>
    %759 = vector.shape_cast %758 : vector<8xf32> to vector<8x1xf32>
    %760 = vector.broadcast %759 : vector<8x1xf32> to vector<8x128xf32>
    %761 = arith.subf %757, %760 : vector<8x128xf32>
    %762 = math.exp %761 : vector<8x128xf32>
    %cst_214 = arith.constant dense<0.000000e+00> : vector<8xf32>
    %763 = vector.multi_reduction <add>, %762, %cst_214 [1] : vector<8x128xf32> to vector<8xf32>
    %764 = vector.shape_cast %763 : vector<8xf32> to vector<8x1xf32>
    %765 = vector.broadcast %764 : vector<8x1xf32> to vector<8x128xf32>
    %766 = arith.divf %762, %765 : vector<8x128xf32>
    %767 = arith.truncf %766 : vector<8x128xf32> to vector<8x128xbf16>
    %cst_215 = arith.constant dense<0.000000e+00> : vector<8x8xf32>
    %768 = tpu.matmul %767, %752, %cst_215 {dimension_numbers = #tpu.dot_dimension_numbers<[1], [0], [0], [1], [0, 0, 1, 1], [], []>} : vector<8x128xbf16>, vector<128x8xbf16>, vector<8x8xf32> -> vector<8x8xf32>
    %769 = arith.addf %744, %766 : vector<8x128xf32>
    %770 = vector.extract_strided_slice %722 {offsets = [0, 16], sizes = [8, 8], strides = [1, 1]} : vector<8x32xf32> to vector<8x8xf32>
    %771 = arith.truncf %770 : vector<8x8xf32> to vector<8x8xbf16>
    %772 = vector.extract_strided_slice %723 {offsets = [0, 16], sizes = [128, 8], strides = [1, 1]} : vector<128x32xf32> to vector<128x8xf32>
    %773 = arith.truncf %772 : vector<128x8xf32> to vector<128x8xbf16>
    %774 = vector.extract_strided_slice %724 {offsets = [0, 16], sizes = [128, 8], strides = [1, 1]} : vector<128x32xf32> to vector<128x8xf32>
    %775 = arith.truncf %774 : vector<128x8xf32> to vector<128x8xbf16>
    %cst_216 = arith.constant dense<0.000000e+00> : vector<8x128xf32>
    %776 = tpu.matmul %771, %773, %cst_216 {dimension_numbers = #tpu.dot_dimension_numbers<[1], [1], [0], [0], [0, 0, 1, 0], [], []>} : vector<8x8xbf16>, vector<128x8xbf16>, vector<8x128xf32> -> vector<8x128xf32>
    %cst_217 = arith.constant 0.353553385 : f32
    %777 = vector.broadcast %cst_217 : f32 to vector<8x128xf32>
    %778 = arith.mulf %776, %777 : vector<8x128xf32>
    %779 = vector.broadcast %421 : vector<1x128xf32> to vector<8x128xf32>
    %780 = arith.addf %778, %779 : vector<8x128xf32>
    %cst_218 = arith.constant dense<0xFF800000> : vector<8xf32>
    %781 = vector.multi_reduction <maximumf>, %780, %cst_218 [1] : vector<8x128xf32> to vector<8xf32>
    %782 = vector.shape_cast %781 : vector<8xf32> to vector<8x1xf32>
    %783 = vector.broadcast %782 : vector<8x1xf32> to vector<8x128xf32>
    %784 = arith.subf %780, %783 : vector<8x128xf32>
    %785 = math.exp %784 : vector<8x128xf32>
    %cst_219 = arith.constant dense<0.000000e+00> : vector<8xf32>
    %786 = vector.multi_reduction <add>, %785, %cst_219 [1] : vector<8x128xf32> to vector<8xf32>
    %787 = vector.shape_cast %786 : vector<8xf32> to vector<8x1xf32>
    %788 = vector.broadcast %787 : vector<8x1xf32> to vector<8x128xf32>
    %789 = arith.divf %785, %788 : vector<8x128xf32>
    %790 = arith.truncf %789 : vector<8x128xf32> to vector<8x128xbf16>
    %cst_220 = arith.constant dense<0.000000e+00> : vector<8x8xf32>
    %791 = tpu.matmul %790, %775, %cst_220 {dimension_numbers = #tpu.dot_dimension_numbers<[1], [0], [0], [1], [0, 0, 1, 1], [], []>} : vector<8x128xbf16>, vector<128x8xbf16>, vector<8x8xf32> -> vector<8x8xf32>
    %792 = arith.addf %769, %789 : vector<8x128xf32>
    %793 = vector.extract_strided_slice %722 {offsets = [0, 24], sizes = [8, 8], strides = [1, 1]} : vector<8x32xf32> to vector<8x8xf32>
    %794 = arith.truncf %793 : vector<8x8xf32> to vector<8x8xbf16>
    %795 = vector.extract_strided_slice %723 {offsets = [0, 24], sizes = [128, 8], strides = [1, 1]} : vector<128x32xf32> to vector<128x8xf32>
    %796 = arith.truncf %795 : vector<128x8xf32> to vector<128x8xbf16>
    %797 = vector.extract_strided_slice %724 {offsets = [0, 24], sizes = [128, 8], strides = [1, 1]} : vector<128x32xf32> to vector<128x8xf32>
    %798 = arith.truncf %797 : vector<128x8xf32> to vector<128x8xbf16>
    %cst_221 = arith.constant dense<0.000000e+00> : vector<8x128xf32>
    %799 = tpu.matmul %794, %796, %cst_221 {dimension_numbers = #tpu.dot_dimension_numbers<[1], [1], [0], [0], [0, 0, 1, 0], [], []>} : vector<8x8xbf16>, vector<128x8xbf16>, vector<8x128xf32> -> vector<8x128xf32>
    %cst_222 = arith.constant 0.353553385 : f32
    %800 = vector.broadcast %cst_222 : f32 to vector<8x128xf32>
    %801 = arith.mulf %799, %800 : vector<8x128xf32>
    %802 = vector.broadcast %421 : vector<1x128xf32> to vector<8x128xf32>
    %803 = arith.addf %801, %802 : vector<8x128xf32>
    %cst_223 = arith.constant dense<0xFF800000> : vector<8xf32>
    %804 = vector.multi_reduction <maximumf>, %803, %cst_223 [1] : vector<8x128xf32> to vector<8xf32>
    %805 = vector.shape_cast %804 : vector<8xf32> to vector<8x1xf32>
    %806 = vector.broadcast %805 : vector<8x1xf32> to vector<8x128xf32>
    %807 = arith.subf %803, %806 : vector<8x128xf32>
    %808 = math.exp %807 : vector<8x128xf32>
    %cst_224 = arith.constant dense<0.000000e+00> : vector<8xf32>
    %809 = vector.multi_reduction <add>, %808, %cst_224 [1] : vector<8x128xf32> to vector<8xf32>
    %810 = vector.shape_cast %809 : vector<8xf32> to vector<8x1xf32>
    %811 = vector.broadcast %810 : vector<8x1xf32> to vector<8x128xf32>
    %812 = arith.divf %808, %811 : vector<8x128xf32>
    %813 = arith.truncf %812 : vector<8x128xf32> to vector<8x128xbf16>
    %cst_225 = arith.constant dense<0.000000e+00> : vector<8x8xf32>
    %814 = tpu.matmul %813, %798, %cst_225 {dimension_numbers = #tpu.dot_dimension_numbers<[1], [0], [0], [1], [0, 0, 1, 1], [], []>} : vector<8x128xbf16>, vector<128x8xbf16>, vector<8x8xf32> -> vector<8x8xf32>
    %815 = arith.addf %792, %812 : vector<8x128xf32>
    %816 = tpu.concatenate %746, %768, %791, %814 in 1 : vector<8x8xf32>, vector<8x8xf32>, vector<8x8xf32>, vector<8x8xf32> -> vector<8x32xf32>
    %817 = arith.truncf %816 : vector<8x32xf32> to vector<8x32xbf16>
    %c24_226 = arith.constant 24 : index
    %c0_227 = arith.constant 0 : index
    %818 = vector.load %arg24[%c24_226, %c0_227] : memref<32x32xbf16, #tpu.memory_space<vmem>>, vector<8x32xbf16>
    tpu.vector_store %arg24[%c24_226, %c0_227], %817 {strides = array<i32>} : memref<32x32xbf16, #tpu.memory_space<vmem>>, vector<8x32xbf16>,
    %c24_228 = arith.constant 24 : index
    %c0_229 = arith.constant 0 : index
    %819 = vector.load %arg23[%c24_228, %c0_229] : memref<32x128xf32, #tpu.memory_space<vmem>>, vector<8x128xf32>
    %820 = arith.addf %819, %815 : vector<8x128xf32>
    %c24_230 = arith.constant 24 : index
    %c0_231 = arith.constant 0 : index
    %821 = vector.load %arg23[%c24_230, %c0_231] : memref<32x128xf32, #tpu.memory_space<vmem>>, vector<8x128xf32>
    tpu.vector_store %arg23[%c24_230, %c0_231], %820 {strides = array<i32>} : memref<32x128xf32, #tpu.memory_space<vmem>>, vector<8x128xf32>,
    %c0_232 = arith.constant 0 : index
    %c0_233 = arith.constant 0 : index
    %822 = vector.load %arg24[%c0_232, %c0_233] : memref<32x32xbf16, #tpu.memory_space<vmem>>, vector<32x32xbf16>
    %c0_234 = arith.constant 0 : index
    %c0_235 = arith.constant 0 : index
    %c0_236 = arith.constant 0 : index
    %823 = vector.load %arg12[%c0_234, %c0_235, %c0_236] : memref<1x32x32xbf16, #tpu.memory_space<vmem>>, vector<1x32x32xbf16>
    %824 = vector.shape_cast %823 : vector<1x32x32xbf16> to vector<32x32xbf16>
    %cst_237 = arith.constant dense<0.000000e+00> : vector<32x32xf32>
    %825 = tpu.matmul %822, %824, %cst_237 {dimension_numbers = #tpu.dot_dimension_numbers<[1], [0], [0], [1], [0, 0, 1, 1], [], []>} : vector<32x32xbf16>, vector<32x32xbf16>, vector<32x32xf32> -> vector<32x32xf32>
    %c0_238 = arith.constant 0 : index
    %c0_239 = arith.constant 0 : index
    %c0_240 = arith.constant 0 : index
    %826 = vector.load %arg13[%c0_238, %c0_239, %c0_240] : memref<1x1x32xf32, #tpu.memory_space<vmem>>, vector<1x1x32xf32>
    %827 = vector.shape_cast %826 : vector<1x1x32xf32> to vector<1x32xf32>
    %828 = vector.broadcast %827 : vector<1x32xf32> to vector<32x32xf32>
    %829 = arith.addf %825, %828 : vector<32x32xf32>
    %830 = arith.addf %398, %829 : vector<32x32xf32>
    %c0_241 = arith.constant 0 : index
    %c0_242 = arith.constant 0 : index
    %c0_243 = arith.constant 0 : index
    %831 = vector.load %arg19[%c0_241, %c0_242, %c0_243] : memref<1x2x32xf32, #tpu.memory_space<vmem>>, vector<1x2x32xf32>
    %832 = vector.shape_cast %831 : vector<1x2x32xf32> to vector<2x32xf32>
    %cst_244 = arith.constant dense<0.000000e+00> : vector<32xf32>
    %833 = vector.multi_reduction <add>, %830, %cst_244 [1] : vector<32x32xf32> to vector<32xf32>
    %834 = vector.shape_cast %833 : vector<32xf32> to vector<32x1xf32>
    %cst_245 = arith.constant 3.200000e+01 : f32
    %835 = vector.broadcast %cst_245 : f32 to vector<32x1xf32>
    %836 = arith.divf %834, %835 : vector<32x1xf32>
    %837 = vector.broadcast %836 : vector<32x1xf32> to vector<32x32xf32>
    %838 = arith.subf %830, %837 : vector<32x32xf32>
    %839 = arith.mulf %838, %838 : vector<32x32xf32>
    %cst_246 = arith.constant dense<0.000000e+00> : vector<32xf32>
    %840 = vector.multi_reduction <add>, %839, %cst_246 [1] : vector<32x32xf32> to vector<32xf32>
    %841 = vector.shape_cast %840 : vector<32xf32> to vector<32x1xf32>
    %cst_247 = arith.constant 3.200000e+01 : f32
    %842 = vector.broadcast %cst_247 : f32 to vector<32x1xf32>
    %843 = arith.divf %841, %842 : vector<32x1xf32>
    %844 = vector.broadcast %836 : vector<32x1xf32> to vector<32x32xf32>
    %845 = arith.subf %830, %844 : vector<32x32xf32>
    %cst_248 = arith.constant 9.99999974E-6 : f32
    %846 = vector.broadcast %cst_248 : f32 to vector<32x1xf32>
    %847 = arith.addf %843, %846 : vector<32x1xf32>
    %848 = math.rsqrt %847 : vector<32x1xf32>
    %849 = vector.broadcast %848 : vector<32x1xf32> to vector<32x32xf32>
    %850 = arith.mulf %845, %849 : vector<32x32xf32>
    %851 = vector.extract_strided_slice %832 {offsets = [0, 0], sizes = [1, 32], strides = [1, 1]} : vector<2x32xf32> to vector<1x32xf32>
    %852 = vector.shape_cast %851 : vector<1x32xf32> to vector<32xf32>
    %853 = vector.shape_cast %852 : vector<32xf32> to vector<1x32xf32>
    %854 = vector.broadcast %853 : vector<1x32xf32> to vector<32x32xf32>
    %855 = arith.mulf %850, %854 : vector<32x32xf32>
    %856 = vector.extract_strided_slice %832 {offsets = [1, 0], sizes = [1, 32], strides = [1, 1]} : vector<2x32xf32> to vector<1x32xf32>
    %857 = vector.shape_cast %856 : vector<1x32xf32> to vector<32xf32>
    %858 = vector.shape_cast %857 : vector<32xf32> to vector<1x32xf32>
    %859 = vector.broadcast %858 : vector<1x32xf32> to vector<32x32xf32>
    %860 = arith.addf %855, %859 : vector<32x32xf32>
    %861 = arith.truncf %860 : vector<32x32xf32> to vector<32x32xbf16>
    %c0_249 = arith.constant 0 : index
    %c0_250 = arith.constant 0 : index
    %c0_251 = arith.constant 0 : index
    %862 = vector.load %arg14[%c0_249, %c0_250, %c0_251] : memref<1x32x64xbf16, #tpu.memory_space<vmem>>, vector<1x32x64xbf16>
    %863 = vector.shape_cast %862 : vector<1x32x64xbf16> to vector<32x64xbf16>
    %cst_252 = arith.constant dense<0.000000e+00> : vector<32x64xf32>
    %864 = tpu.matmul %861, %863, %cst_252 {dimension_numbers = #tpu.dot_dimension_numbers<[1], [0], [0], [1], [0, 0, 1, 1], [], []>} : vector<32x32xbf16>, vector<32x64xbf16>, vector<32x64xf32> -> vector<32x64xf32>
    %c0_253 = arith.constant 0 : index
    %c0_254 = arith.constant 0 : index
    %c0_255 = arith.constant 0 : index
    %865 = vector.load %arg15[%c0_253, %c0_254, %c0_255] : memref<1x1x64xf32, #tpu.memory_space<vmem>>, vector<1x1x64xf32>
    %866 = vector.shape_cast %865 : vector<1x1x64xf32> to vector<1x64xf32>
    %867 = vector.broadcast %866 : vector<1x64xf32> to vector<32x64xf32>
    %868 = arith.addf %864, %867 : vector<32x64xf32>
    %cst_256 = arith.constant 0.000000e+00 : f32
    %869 = vector.broadcast %cst_256 : f32 to vector<32x64xf32>
    %870 = arith.maximumf %868, %869 : vector<32x64xf32>
    %871 = arith.truncf %870 : vector<32x64xf32> to vector<32x64xbf16>
    %c0_257 = arith.constant 0 : index
    %c0_258 = arith.constant 0 : index
    %c0_259 = arith.constant 0 : index
    %872 = vector.load %arg16[%c0_257, %c0_258, %c0_259] : memref<1x64x32xbf16, #tpu.memory_space<vmem>>, vector<1x64x32xbf16>
    %873 = vector.shape_cast %872 : vector<1x64x32xbf16> to vector<64x32xbf16>
    %cst_260 = arith.constant dense<0.000000e+00> : vector<32x32xf32>
    %874 = tpu.matmul %871, %873, %cst_260 {dimension_numbers = #tpu.dot_dimension_numbers<[1], [0], [0], [1], [0, 0, 1, 1], [], []>} : vector<32x64xbf16>, vector<64x32xbf16>, vector<32x32xf32> -> vector<32x32xf32>
    %c0_261 = arith.constant 0 : index
    %c0_262 = arith.constant 0 : index
    %c0_263 = arith.constant 0 : index
    %875 = vector.load %arg17[%c0_261, %c0_262, %c0_263] : memref<1x1x32xf32, #tpu.memory_space<vmem>>, vector<1x1x32xf32>
    %876 = vector.shape_cast %875 : vector<1x1x32xf32> to vector<1x32xf32>
    %877 = vector.broadcast %876 : vector<1x32xf32> to vector<32x32xf32>
    %878 = arith.addf %874, %877 : vector<32x32xf32>
    %879 = arith.addf %860, %878 : vector<32x32xf32>
    %c0_264 = arith.constant 0 : index
    %c0_265 = arith.constant 0 : index
    %c0_266 = arith.constant 0 : index
    %880 = vector.load %arg20[%c0_264, %c0_265, %c0_266] : memref<1x2x32xf32, #tpu.memory_space<vmem>>, vector<1x2x32xf32>
    %881 = vector.shape_cast %880 : vector<1x2x32xf32> to vector<2x32xf32>
    %cst_267 = arith.constant dense<0.000000e+00> : vector<32xf32>
    %882 = vector.multi_reduction <add>, %879, %cst_267 [1] : vector<32x32xf32> to vector<32xf32>
    %883 = vector.shape_cast %882 : vector<32xf32> to vector<32x1xf32>
    %cst_268 = arith.constant 3.200000e+01 : f32
    %884 = vector.broadcast %cst_268 : f32 to vector<32x1xf32>
    %885 = arith.divf %883, %884 : vector<32x1xf32>
    %886 = vector.broadcast %885 : vector<32x1xf32> to vector<32x32xf32>
    %887 = arith.subf %879, %886 : vector<32x32xf32>
    %888 = arith.mulf %887, %887 : vector<32x32xf32>
    %cst_269 = arith.constant dense<0.000000e+00> : vector<32xf32>
    %889 = vector.multi_reduction <add>, %888, %cst_269 [1] : vector<32x32xf32> to vector<32xf32>
    %890 = vector.shape_cast %889 : vector<32xf32> to vector<32x1xf32>
    %cst_270 = arith.constant 3.200000e+01 : f32
    %891 = vector.broadcast %cst_270 : f32 to vector<32x1xf32>
    %892 = arith.divf %890, %891 : vector<32x1xf32>
    %893 = vector.broadcast %885 : vector<32x1xf32> to vector<32x32xf32>
    %894 = arith.subf %879, %893 : vector<32x32xf32>
    %cst_271 = arith.constant 9.99999974E-6 : f32
    %895 = vector.broadcast %cst_271 : f32 to vector<32x1xf32>
    %896 = arith.addf %892, %895 : vector<32x1xf32>
    %897 = math.rsqrt %896 : vector<32x1xf32>
    %898 = vector.broadcast %897 : vector<32x1xf32> to vector<32x32xf32>
    %899 = arith.mulf %894, %898 : vector<32x32xf32>
    %900 = vector.extract_strided_slice %881 {offsets = [0, 0], sizes = [1, 32], strides = [1, 1]} : vector<2x32xf32> to vector<1x32xf32>
    %901 = vector.shape_cast %900 : vector<1x32xf32> to vector<32xf32>
    %902 = vector.shape_cast %901 : vector<32xf32> to vector<1x32xf32>
    %903 = vector.broadcast %902 : vector<1x32xf32> to vector<32x32xf32>
    %904 = arith.mulf %899, %903 : vector<32x32xf32>
    %905 = vector.extract_strided_slice %881 {offsets = [1, 0], sizes = [1, 32], strides = [1, 1]} : vector<2x32xf32> to vector<1x32xf32>
    %906 = vector.shape_cast %905 : vector<1x32xf32> to vector<32xf32>
    %907 = vector.shape_cast %906 : vector<32xf32> to vector<1x32xf32>
    %908 = vector.broadcast %907 : vector<1x32xf32> to vector<32x32xf32>
    %909 = arith.addf %904, %908 : vector<32x32xf32>
    %c0_272 = arith.constant 0 : index
    %c0_273 = arith.constant 0 : index
    %910 = vector.load %arg22[%c0_272, %c0_273] : memref<32x32xf32, #tpu.memory_space<vmem>>, vector<32x32xf32>
    tpu.vector_store %arg22[%c0_272, %c0_273], %909 {strides = array<i32>} : memref<32x32xf32, #tpu.memory_space<vmem>>, vector<32x32xf32>,
    %c1_i32 = arith.constant 1 : i32
    %911 = arith.cmpi eq, %arg1, %c1_i32 : i32
    %912 = arith.extui %911 : i1 to i32
    %c0_i32_274 = arith.constant 0 : i32
    %913 = arith.cmpi ne, %912, %c0_i32_274 : i32
    scf.if %913 {
      %c0_275 = arith.constant 0 : index
      %c0_276 = arith.constant 0 : index
      %914 = vector.load %arg23[%c0_275, %c0_276] : memref<32x128xf32, #tpu.memory_space<vmem>>, vector<32x128xf32>
      %cst_277 = arith.constant 1.250000e-01 : f32
      %915 = vector.broadcast %cst_277 : f32 to vector<32x128xf32>
      %916 = arith.mulf %914, %915 : vector<32x128xf32>
      %c0_278 = arith.constant 0 : index
      %c0_279 = arith.constant 0 : index
      %917 = vector.load %arg23[%c0_278, %c0_279] : memref<32x128xf32, #tpu.memory_space<vmem>>, vector<32x128xf32>
      tpu.vector_store %arg23[%c0_278, %c0_279], %916 {strides = array<i32>} : memref<32x128xf32, #tpu.memory_space<vmem>>, vector<32x128xf32>,
      %c0_280 = arith.constant 0 : index
      %c0_281 = arith.constant 0 : index
      %918 = vector.load %arg21[%c0_280, %c0_281] : memref<2x32xf32, #tpu.memory_space<vmem>>, vector<2x32xf32>
      %cst_282 = arith.constant dense<0.000000e+00> : vector<32xf32>
      %919 = vector.multi_reduction <add>, %909, %cst_282 [1] : vector<32x32xf32> to vector<32xf32>
      %920 = vector.shape_cast %919 : vector<32xf32> to vector<32x1xf32>
      %cst_283 = arith.constant 3.200000e+01 : f32
      %921 = vector.broadcast %cst_283 : f32 to vector<32x1xf32>
      %922 = arith.divf %920, %921 : vector<32x1xf32>
      %923 = vector.broadcast %922 : vector<32x1xf32> to vector<32x32xf32>
      %924 = arith.subf %909, %923 : vector<32x32xf32>
      %925 = arith.mulf %924, %924 : vector<32x32xf32>
      %cst_284 = arith.constant dense<0.000000e+00> : vector<32xf32>
      %926 = vector.multi_reduction <add>, %925, %cst_284 [1] : vector<32x32xf32> to vector<32xf32>
      %927 = vector.shape_cast %926 : vector<32xf32> to vector<32x1xf32>
      %cst_285 = arith.constant 3.200000e+01 : f32
      %928 = vector.broadcast %cst_285 : f32 to vector<32x1xf32>
      %929 = arith.divf %927, %928 : vector<32x1xf32>
      %930 = vector.broadcast %922 : vector<32x1xf32> to vector<32x32xf32>
      %931 = arith.subf %909, %930 : vector<32x32xf32>
      %cst_286 = arith.constant 9.99999974E-6 : f32
      %932 = vector.broadcast %cst_286 : f32 to vector<32x1xf32>
      %933 = arith.addf %929, %932 : vector<32x1xf32>
      %934 = math.rsqrt %933 : vector<32x1xf32>
      %935 = vector.broadcast %934 : vector<32x1xf32> to vector<32x32xf32>
      %936 = arith.mulf %931, %935 : vector<32x32xf32>
      %937 = vector.extract_strided_slice %918 {offsets = [0, 0], sizes = [1, 32], strides = [1, 1]} : vector<2x32xf32> to vector<1x32xf32>
      %938 = vector.shape_cast %937 : vector<1x32xf32> to vector<32xf32>
      %939 = vector.shape_cast %938 : vector<32xf32> to vector<1x32xf32>
      %940 = vector.broadcast %939 : vector<1x32xf32> to vector<32x32xf32>
      %941 = arith.mulf %936, %940 : vector<32x32xf32>
      %942 = vector.extract_strided_slice %918 {offsets = [1, 0], sizes = [1, 32], strides = [1, 1]} : vector<2x32xf32> to vector<1x32xf32>
      %943 = vector.shape_cast %942 : vector<1x32xf32> to vector<32xf32>
      %944 = vector.shape_cast %943 : vector<32xf32> to vector<1x32xf32>
      %945 = vector.broadcast %944 : vector<1x32xf32> to vector<32x32xf32>
      %946 = arith.addf %941, %945 : vector<32x32xf32>
      %c0_287 = arith.constant 0 : index
      %c0_288 = arith.constant 0 : index
      %947 = vector.load %arg22[%c0_287, %c0_288] : memref<32x32xf32, #tpu.memory_space<vmem>>, vector<32x32xf32>
      tpu.vector_store %arg22[%c0_287, %c0_288], %946 {strides = array<i32>} : memref<32x32xf32, #tpu.memory_space<vmem>>, vector<32x32xf32>,
    } else {
    }
    return
  }
  func.func @transform_0(%arg0: i32, %arg1: i32) -> (i32, i32) {
    %c0_i32 = arith.constant 0 : i32
    %c0_i32_0 = arith.constant 0 : i32
    return %arg0, %c0_i32 : i32, i32
  }
  func.func @transform_1(%arg0: i32, %arg1: i32) -> (i32, i32) {
    %c0_i32 = arith.constant 0 : i32
    %c0_i32_0 = arith.constant 0 : i32
    return %arg0, %c0_i32 : i32, i32
  }
  func.func @transform_2(%arg0: i32, %arg1: i32) -> (i32, i32, i32) {
    %c0_i32 = arith.constant 0 : i32
    %c0_i32_0 = arith.constant 0 : i32
    %c0_i32_1 = arith.constant 0 : i32
    return %arg1, %c0_i32, %c0_i32_0 : i32, i32, i32
  }
  func.func @transform_3(%arg0: i32, %arg1: i32) -> (i32, i32, i32) {
    %c0_i32 = arith.constant 0 : i32
    %c0_i32_0 = arith.constant 0 : i32
    %c0_i32_1 = arith.constant 0 : i32
    return %arg1, %c0_i32, %c0_i32_0 : i32, i32, i32
  }
  func.func @transform_4(%arg0: i32, %arg1: i32) -> (i32, i32, i32) {
    %c0_i32 = arith.constant 0 : i32
    %c0_i32_0 = arith.constant 0 : i32
    %c0_i32_1 = arith.constant 0 : i32
    return %arg1, %c0_i32, %c0_i32_0 : i32, i32, i32
  }
  func.func @transform_5(%arg0: i32, %arg1: i32) -> (i32, i32, i32) {
    %c0_i32 = arith.constant 0 : i32
    %c0_i32_0 = arith.constant 0 : i32
    %c0_i32_1 = arith.constant 0 : i32
    return %arg1, %c0_i32, %c0_i32_0 : i32, i32, i32
  }
  func.func @transform_6(%arg0: i32, %arg1: i32) -> (i32, i32, i32) {
    %c0_i32 = arith.constant 0 : i32
    %c0_i32_0 = arith.constant 0 : i32
    %c0_i32_1 = arith.constant 0 : i32
    return %arg1, %c0_i32, %c0_i32_0 : i32, i32, i32
  }
  func.func @transform_7(%arg0: i32, %arg1: i32) -> (i32, i32, i32) {
    %c0_i32 = arith.constant 0 : i32
    %c0_i32_0 = arith.constant 0 : i32
    %c0_i32_1 = arith.constant 0 : i32
    return %arg1, %c0_i32, %c0_i32_0 : i32, i32, i32
  }
  func.func @transform_8(%arg0: i32, %arg1: i32) -> (i32, i32, i32) {
    %c0_i32 = arith.constant 0 : i32
    %c0_i32_0 = arith.constant 0 : i32
    %c0_i32_1 = arith.constant 0 : i32
    return %arg1, %c0_i32, %c0_i32_0 : i32, i32, i32
  }
  func.func @transform_9(%arg0: i32, %arg1: i32) -> (i32, i32, i32) {
    %c0_i32 = arith.constant 0 : i32
    %c0_i32_0 = arith.constant 0 : i32
    %c0_i32_1 = arith.constant 0 : i32
    return %arg1, %c0_i32, %c0_i32_0 : i32, i32, i32
  }
  func.func @transform_10(%arg0: i32, %arg1: i32) -> (i32, i32, i32) {
    %c0_i32 = arith.constant 0 : i32
    %c0_i32_0 = arith.constant 0 : i32
    %c0_i32_1 = arith.constant 0 : i32
    return %arg1, %c0_i32, %c0_i32_0 : i32, i32, i32
  }
  func.func @transform_11(%arg0: i32, %arg1: i32) -> (i32, i32, i32) {
    %c0_i32 = arith.constant 0 : i32
    %c0_i32_0 = arith.constant 0 : i32
    %c0_i32_1 = arith.constant 0 : i32
    return %arg1, %c0_i32, %c0_i32_0 : i32, i32, i32
  }
  func.func @transform_12(%arg0: i32, %arg1: i32) -> (i32, i32, i32) {
    %c0_i32 = arith.constant 0 : i32
    %c0_i32_0 = arith.constant 0 : i32
    %c0_i32_1 = arith.constant 0 : i32
    return %arg1, %c0_i32, %c0_i32_0 : i32, i32, i32
  }
  func.func @transform_13(%arg0: i32, %arg1: i32) -> (i32, i32, i32) {
    %c0_i32 = arith.constant 0 : i32
    %c0_i32_0 = arith.constant 0 : i32
    %c0_i32_1 = arith.constant 0 : i32
    return %arg1, %c0_i32, %c0_i32_0 : i32, i32, i32
  }
  func.func @transform_14(%arg0: i32, %arg1: i32) -> (i32, i32, i32) {
    %c0_i32 = arith.constant 0 : i32
    %c0_i32_0 = arith.constant 0 : i32
    %c0_i32_1 = arith.constant 0 : i32
    return %arg1, %c0_i32, %c0_i32_0 : i32, i32, i32
  }
  func.func @transform_15(%arg0: i32, %arg1: i32) -> (i32, i32, i32) {
    %c0_i32 = arith.constant 0 : i32
    %c0_i32_0 = arith.constant 0 : i32
    %c0_i32_1 = arith.constant 0 : i32
    return %arg1, %c0_i32, %c0_i32_0 : i32, i32, i32
  }
  func.func @transform_16(%arg0: i32, %arg1: i32) -> (i32, i32, i32) {
    %c0_i32 = arith.constant 0 : i32
    %c0_i32_0 = arith.constant 0 : i32
    %c0_i32_1 = arith.constant 0 : i32
    return %arg1, %c0_i32, %c0_i32_0 : i32, i32, i32
  }
  func.func @transform_17(%arg0: i32, %arg1: i32) -> (i32, i32, i32) {
    %c0_i32 = arith.constant 0 : i32
    %c0_i32_0 = arith.constant 0 : i32
    %c0_i32_1 = arith.constant 0 : i32
    return %arg1, %c0_i32, %c0_i32_0 : i32, i32, i32
  }
  func.func @transform_18(%arg0: i32, %arg1: i32) -> (i32, i32, i32) {
    %c0_i32 = arith.constant 0 : i32
    %c0_i32_0 = arith.constant 0 : i32
    %c0_i32_1 = arith.constant 0 : i32
    return %arg1, %c0_i32, %c0_i32_0 : i32, i32, i32
  }
  func.func @transform_19(%arg0: i32, %arg1: i32) -> (i32, i32) {
    %c0_i32 = arith.constant 0 : i32
    %c0_i32_0 = arith.constant 0 : i32
    %c0_i32_1 = arith.constant 0 : i32
    return %c0_i32, %c0_i32_0 : i32, i32
  }
  func.func @transform_20(%arg0: i32, %arg1: i32) -> (i32, i32) {
    %c0_i32 = arith.constant 0 : i32
    %c0_i32_0 = arith.constant 0 : i32
    return %arg0, %c0_i32 : i32, i32
  }
  func.func @transform_21(%arg0: i32, %arg1: i32) -> (i32, i32) {
    %c0_i32 = arith.constant 0 : i32
    %c0_i32_0 = arith.constant 0 : i32
    return %arg0, %c0_i32 : i32, i32
  }
}

</mosaic_0001>

<bundles_post_ra>
// kernel: tpu_custom_call.1
= control target key start
LH: loop header
LB: loop body
LE: loop exit
PB: predicated region body
PF: predicated region fallthrough
CT: control target
= control target key end

     0   :  { %s11582_s0 = inlined_call_operand.vmem [shape: f32[32,32], index: 0, kind: input, shape index: {}]   ;;  %s11583_s1 = inlined_call_operand.vmem [shape: bf16[512,32], index: 1, kind: input, shape index: {}]   ;;  %s11584_s2 = inlined_call_operand.vmem [shape: bf16[2,32,96], index: 2, kind: input, shape index: {}]   ;;  %s11585_s3 = inlined_call_operand.vmem [shape: f32[2,1,96], index: 3, kind: input, shape index: {}]   ;;  %s11586_s4 = inlined_call_operand.vmem [shape: bf16[2,32,32], index: 4, kind: input, shape index: {}]   ;;  %s11587_s5 = inlined_call_operand.vmem [shape: f32[2,1,32], index: 5, kind: input, shape index: {}]   ;;  %s11588_s6 = inlined_call_operand.vmem [shape: bf16[2,32,32], index: 6, kind: input, shape index: {}]   ;;  %s11589_s7 = inlined_call_operand.vmem [shape: f32[2,1,32], index: 7, kind: input, shape index: {}]   ;;  %s11590_s8 = inlined_call_operand.vmem [shape: bf16[2,32,64], index: 8, kind: input, shape index: {}]   ;;  %s11591_s9 = inlined_call_operand.vmem [shape: f32[2,1,64], index: 9, kind: input, shape index: {}]   ;;  %s11592_s10 = inlined_call_operand.vmem [shape: bf16[2,32,32], index: 10, kind: input, shape index: {}]   ;;  %s11593_s11 = inlined_call_operand.vmem [shape: f32[2,1,32], index: 11, kind: input, shape index: {}]   ;;  %s11594_s12 = inlined_call_operand.vmem [shape: bf16[2,32,64], index: 12, kind: input, shape index: {}]   ;;  %s11595_s13 = inlined_call_operand.vmem [shape: f32[2,1,64], index: 13, kind: input, shape index: {}]   ;;  %s11596_s14 = inlined_call_operand.vmem [shape: bf16[2,64,32], index: 14, kind: input, shape index: {}]   ;;  %s11597_s15 = inlined_call_operand.vmem [shape: f32[2,1,32], index: 15, kind: input, shape index: {}]   ;;  %s11598_s16 = inlined_call_operand.vmem [shape: f32[2,2,32], index: 16, kind: input, shape index: {}]   ;;  %s11599_s17 = inlined_call_operand.vmem [shape: f32[2,2,32], index: 17, kind: input, shape index: {}]   ;;  %s11600_s18 = inlined_call_operand.vmem [shape: f32[2,2,32], index: 18, kind: input, shape index: {}]   ;;  %s11601_s19 = inlined_call_operand.vmem [shape: f32[2,32], index: 19, kind: input, shape index: {}]   ;;  %s11602_s20 = inlined_call_operand.hbm [shape: f32[32,32], index: 20, kind: output, shape index: {0}]   ;;  %s11603_s21 = inlined_call_operand.hbm [shape: f32[32,128], index: 21, kind: output, shape index: {1}]  }
   0x1   :  { %11613 = sst [smem:[#allocation13_spill]] %s11582_s0 }
   0x2   :  { %11614 = sst [smem:[#allocation14_spill]] %s11583_s1 }
   0x3   :  { %11615 = sst [smem:[#allocation15_spill]] %s11584_s2 }
   0x4   :  { %11616 = sst [smem:[#allocation16_spill]] %s11585_s3 }
   0x5   :  { %11617 = sst [smem:[#allocation17_spill]] %s11586_s4 }
   0x6   :  { %11618 = sst [smem:[#allocation18_spill]] %s11587_s5 }
   0x7   :  { %11619 = sst [smem:[#allocation19_spill]] %s11588_s6 }
   0x8   :  { %11620 = sst [smem:[#allocation20_spill]] %s11590_s8 }
   0x9   :  { %11621 = sst [smem:[#allocation21_spill]] %s11592_s10 }
   0xa   :  { %11622 = sst [smem:[#allocation22_spill]] %s11594_s12 }
   0xb   :  { %11623 = sst [smem:[#allocation23_spill]] %s11596_s14 }
   0xc   :  { %11624 = sst [smem:[#allocation24_spill]] %s11599_s17 }
   0xd   :  { %11625 = sst [smem:[#allocation25_spill]] %s11600_s18 }
   0xe   :  { %11626 = sst [smem:[#allocation26_spill]] %s11601_s19 }
   0xf   :  { %11627 = sst [smem:[#allocation27_spill]] %s11602_s20 }
  0x10   :  { %11628 = sst [smem:[#allocation28_spill]] %s11603_s21 }
  0x11   :  { %27 = vsyncpa [#allocation4], 0 }
  0x12   :  { %28 = vsyncpa [#allocation6], 0  ;;  %s9367_s2 = smov 0   ;;  %s9369_s25 = smov 0  }
  0x13   :  { %s9371_s26 = smov 0  }
  0x14 LB: > { %11629 = sst [smem:[#allocation9_spill]] %s9226_s2  ;;  %s43_s3 = sadd.s32 1, %s9230_s25  ;;  %s9234_s26 = sphi %s9371_s26, %s34_s26   ;;  %s9230_s25 = sphi %s9369_s25, %s11671_s25   ;;  %s9226_s2 = sphi %s9367_s2, %s11670_s2  }
  0x15   : > { %11630 = sst [smem:[#allocation10_spill]] %s9230_s25  ;;  %p44_p0 = scmp.ge.s32.totalorder %s43_s3, 2 }
  0x16   : > { %11631 = sst [smem:[#allocation11_spill]] %s9234_s26  ;;  %p7279_p1 = scmp.ge.s32.totalorder %s9234_s26, 1 }
  0x17   : > { %p769_p2 = scmp.lt.s32.totalorder %s9234_s26, 3  ;;  %s11673_s3 = smov (%p44_p0, %s43_s3), 0 }
  0x18   : > { %11632 = sst [smem:[#allocation12_spill]] %s11673_s3 }
  0x19   : > { %p770_p3 = pnand %p7279_p1, %p769_p2 }
  0x1a   : > { %p909_p4 = scmp.lt.s32.totalorder (!%p770_p3), %s9226_s2, 1  ;;  %s11634_s1 = sld [smem:[#allocation15_spill]] (!%p770_p3) }
  0x1b   : > { %773 = sbr.rel (%p770_p3) target bundleno = 13183 (0x337f), region = 100  ;;  %s11635_s25 = sld [smem:[#allocation17_spill]] (!%p770_p3) }
  0x1c   : > { %s11637_s6 = sld [smem:[#allocation19_spill]] (!%p770_p3)  ;;  %s11638_s8 = sld [smem:[#allocation20_spill]] (!%p770_p3) }
  0x1d   : > { %s11639_s10 = sld [smem:[#allocation21_spill]] (!%p770_p3)  ;;  %s11640_s12 = sld [smem:[#allocation22_spill]] (!%p770_p3) }
  0x1e   : > { %s11641_s14 = sld [smem:[#allocation23_spill]] (!%p770_p3) }
  0x22   : > { %s9390_s28 = scalar_select %p909_p4, %s9226_s2, 1 }
  0x24   : > { %s7452_s29 = sshll.u32 %s9390_s28, 4  ;;  %s9458_s18 = sshll.u32 %s9390_s28, 1 }
  0x25   : > { %s9400_s24 = scalar_lea.vmem %s11634_s1, %s7452_s29  ;;  %s9405_s21 = scalar_lea.vmem %s11635_s25, %s7452_s29 }
  0x26   : > { %s9414_s0 = scalar_lea.vmem %s11637_s6, %s7452_s29  ;;  %s9423_s5 = scalar_lea.vmem %s11638_s8, %s7452_s29 }
  0x27   : > { %s9432_s26 = scalar_lea.vmem %s11639_s10, %s7452_s29  ;;  %s9441_s22 = scalar_lea.vmem %s11640_s12, %s7452_s29 }
  0x28   : > { %s7458_s25 = sshll.u32 %s9390_s28, 5  ;;  %s11644_s12 = sld [smem:[#allocation9_spill]] }
  0x29   : > { %s9451_s20 = scalar_lea.vmem %s11641_s14, %s7458_s25 }
  0x2e   : > { %p7297_p5 = scmp.ne.s32.totalorder %s11644_s12, 0 }
  0x2f   : > { %s11645_s17 = sld [smem:[#allocation13_spill]] (!%p7297_p5)  ;;  %vm988_vm0 = vcmask (!%p7297_p5), 261120   ;;  %v9236_v4 = vmov (!%p7297_p5), 0.0  }
  0x30   : > { %983 = sbr.rel (%p7297_p5) target bundleno = 56 (0x38), region = 104  ;;  %993 = vst [vmem:[#allocation5] sm:$0xff] (!%p7297_p5), %v9236_v4  ;;  %994 = vst [vmem:[#allocation5 + $0x8] sm:$0xff] (!%p7297_p5), %v9236_v4 }
  0x31   : > { %995 = vst [vmem:[#allocation5 + $0x10] sm:$0xff] (!%p7297_p5), %v9236_v4  ;;  %996 = vst [vmem:[#allocation5 + $0x18] sm:$0xff] (!%p7297_p5), %v9236_v4 }
  0x35   : > { %v984_v0 = vld [vmem:[%s11645_s17] sm:$0xff] (!%p7297_p5)  ;;  %v985_v1 = vld [vmem:[%s11645_s17 + $0x8] sm:$0xff] (!%p7297_p5)  ;;  %v986_v2 = vld [vmem:[%s11645_s17 + $0x10] sm:$0xff] (!%p7297_p5) }
  0x36   : > { %989 = vst.msk [vmem:[#allocation3] sm:$0xff] (!%p7297_p5), %vm988_vm0, %v984_v0  ;;  %990 = vst.msk [vmem:[#allocation3 + $0x8] sm:$0xff] (!%p7297_p5), %vm988_vm0, %v985_v1  ;;  %v987_v3 = vld [vmem:[%s11645_s17 + $0x18] sm:$0xff] (!%p7297_p5) }
  0x37   : > { %991 = vst.msk [vmem:[#allocation3 + $0x10] sm:$0xff] %vm988_vm0, %v986_v2  ;;  %992 = vst.msk [vmem:[#allocation3 + $0x18] sm:$0xff] %vm988_vm0, %v987_v3 }
  0x38 PF: > { %v8940_v5 = vld [vmem:[%s9400_s24] sm:$0xff]   ;;  %v8941_v6 = vld [vmem:[%s9400_s24 + $0x8] sm:$0xff]   ;;  %vm1090_vm1 = vcmask 261120   ;;  %v9237_v13 = vmov 0.0   ;;  %vm9238_vm2 = vmmov 0   ;;  %s11646_s24 = sld [smem:[#allocation16_spill]]  ;;  %s11651_s10 = scalar_lea.vmem %s11591_s9, %s9390_s28 }
  0x39   : > { %7871 = vmatprep.subr.bf16.mxu1 %v8940_v5  ;;  %7885 = vmatprep.subr.bf16.mxu0 %v9237_v13  ;;  %s9239_s1 = smov 120   ;;  %s9240_s3 = smov 96   ;;  %vm1150_vm3 = vcmask 64512   ;;  %vm1215_vm4 = vcmask 1043456   ;;  %vm1605_vm5 = vcmask 130048   ;;  %vm1607_vm6 = vcmask 195584  }
  0x3a   : > { %7872 = vmatpush3.bf16.msra.mxu1 %v8940_v5  ;;  %7887 = vmatprep.mubr.msk.bf16.mxu0 %vm9238_vm2, %v9237_v13  ;;  %s9241_s25 = smov 80   ;;  %s9242_s27 = smov 88   ;;  %vm2075_vm7 = vcmask 261124   ;;  %vm1610_vm8 = vcmask 257024   ;;  %vm6760_vm10 = vcmask 523264  }
  0x3b   : > { %7873 = vmatprep.subr.bf16.mxu1 %v8941_v6  ;;  %s9243_s8 = smov 72   ;;  %s9244_s19 = smov 112  }
  0x3c   : > { %s9245_s4 = smov 104   ;;  %s9246_s29 = smov 56  }
  0x3d   : > { %s9247_s6 = smov 64   ;;  %s9248_s23 = smov 48  }
  0x3e   : > { %v997_v7 = vld [vmem:[#allocation3] sm:$0xff]  ;;  %v998_v8 = vld [vmem:[#allocation3 + $0x8] sm:$0xff]  ;;  %v999_v9 = vld [vmem:[#allocation3 + $0x10] sm:$0xff]  ;;  %7874 = vmatpush3.bf16.msra.mxu1 %v8941_v6  ;;  %s11647_s30 = scalar_lea.vmem %s11646_s24, %s9390_s28  ;;  %s9249_s12 = smov 40  }
  0x3f   : > { %v1065_v10 = vpack.c.bf16 %v998_v8, %v997_v7  ;;  %v1000_v11 = vld [vmem:[#allocation3 + $0x18] sm:$0xff]  ;;  %7879 = vmatprep.subr.bf16.mxu1 %v9237_v13  ;;  %v7298_v14 = vld [vmem:[%s11647_s30] ss:$0 sm:$0xff]  ;;  %s9250_s14 = smov 8   ;;  %s9251_s24 = smov 16  }
  0x40   : > { %v1066_v12 = vpack.c.bf16 %v1000_v11, %v999_v9  ;;  %s11611_s30 = smov 24  }
  0x41   : > { %7875 = vmatprep.mubr.msk.bf16.mxu1 %vm1090_vm1, %v1065_v10 }
  0x42   : > { %7876 = vmatmul.mubr.msk.bf16.vlgmr.msra.gmra.mrb[0].mxu1 %vm1090_vm1, %v1066_v12 }
  0x43   : > { %7881 = vmatprep.mubr.msk.bf16.mxu1 %vm9238_vm2, %v9237_v13 }
 0x115   : > { %v7877_v15 = vpop.f32.mrb[0].mxu1 }
 0x116   : > { %v1131_v16 = vpop.f32.mrb[1].mxu1  ;;  %v1140_v23 = vadd.f32 %v7877_v15, %v7298_v14 }
 0x117   : > { %v1132_v17 = vadd.f32 %v7298_v14, %v1131_v16  ;;  %v7878_v18 = vpop.f32.mrb[2].mxu1 }
 0x118   : > { %v1134_v19 = vpop.f32.mrb[3].mxu1  ;;  %v9532_v24 = vpack.c.bf16 %v1140_v23, %v1140_v23  ;;  %v1143_v25 = vadd.f32 %v7878_v18, %v7298_v14 }
 0x119   : > { %v9500_v20 = vpack.c.bf16 %v1132_v17, %v1132_v17  ;;  %v1135_v21 = vadd.f32 %v7298_v14, %v1134_v19 }
 0x11a   : > { %v9546_v26 = vpack.c.bf16 %v1143_v25, %v1143_v25 }
 0x11b   : > { %1259 = vrot.lane.b32.xlu1 %v9500_v20, %s9239_s1  ;;  %1148 = vrot.lane.b32.xlu0 %v9500_v20, %s9240_s3  ;;  %v9514_v22 = vpack.c.bf16 %v1135_v21, %v1135_v21 }
 0x11f   : > { %1372 = vrot.lane.b32.xlu1 %v9500_v20, %s9241_s25  ;;  %1261 = vrot.lane.b32.xlu0 %v9500_v20, %s9242_s27 }
 0x123   : > { %1483 = vrot.lane.b32.xlu1 %v9500_v20, %s9243_s8  ;;  %1370 = vrot.lane.b32.xlu0 %v9500_v20, %s9244_s19 }
 0x127   : > { %1614 = vrot.lane.b32.xlu1 %v9514_v22, %s9240_s3  ;;  %1481 = vrot.lane.b32.xlu0 %v9500_v20, %s9245_s4 }
 0x12b   : > { %1723 = vrot.lane.b32.xlu1 %v9514_v22, %s9239_s1  ;;  %1725 = vrot.lane.b32.xlu0 %v9514_v22, %s9242_s27 }
 0x12f   : > { %1834 = vrot.lane.b32.xlu1 %v9514_v22, %s9244_s19  ;;  %1836 = vrot.lane.b32.xlu0 %v9514_v22, %s9241_s25 }
 0x133   : > { %1945 = vrot.lane.b32.xlu1 %v9514_v22, %s9245_s4  ;;  %1947 = vrot.lane.b32.xlu0 %v9514_v22, %s9243_s8 }
 0x137   : > { %2190 = vrot.lane.b32.xlu1 %v9532_v24, %s9242_s27  ;;  %2079 = vrot.lane.b32.xlu0 %v9532_v24, %s9240_s3 }
 0x13b   : > { %2301 = vrot.lane.b32.xlu1 %v9532_v24, %s9241_s25  ;;  %2188 = vrot.lane.b32.xlu0 %v9532_v24, %s9239_s1 }
 0x13f   : > { %2412 = vrot.lane.b32.xlu1 %v9532_v24, %s9243_s8  ;;  %2299 = vrot.lane.b32.xlu0 %v9532_v24, %s9244_s19 }
 0x143   : > { %2540 = vrot.lane.b32.xlu1 %v9546_v26, %s9240_s3  ;;  %2410 = vrot.lane.b32.xlu0 %v9532_v24, %s9245_s4 }
 0x147   : > { %2649 = vrot.lane.b32.xlu1 %v9546_v26, %s9239_s1  ;;  %2651 = vrot.lane.b32.xlu0 %v9546_v26, %s9242_s27 }
 0x14b   : > { %2760 = vrot.lane.b32.xlu1 %v9546_v26, %s9244_s19  ;;  %2762 = vrot.lane.b32.xlu0 %v9546_v26, %s9241_s25 }
 0x14f   : > { %2871 = vrot.lane.b32.xlu1 %v9546_v26, %s9245_s4  ;;  %2873 = vrot.lane.b32.xlu0 %v9546_v26, %s9243_s8 }
 0x153   : > { %1322 = vrot.lane.b32.xlu1 %v9500_v20, %s9246_s29  ;;  %1210 = vrot.lane.b32.xlu0 %v9500_v20, %s9247_s6 }
 0x157   : > { %1433 = vrot.lane.b32.xlu1 %v9500_v20, %s9248_s23 }
 0x18d   : > { %v1149_v27 = vpop.permute.xlu0 %1148  ;;  %v1260_v30 = vpop.permute.xlu1 %1259 }
 0x18e   : > { %v1155_v28 = vsel %vm1150_vm3, %v1149_v27, 0 }
 0x18f   : > { %7880 = vmatpush3.bf16.xpose.msra.mxu1 %v1155_v28 }
 0x190   : > { %7891 = vmatprep.subr.bf16.mxu1 %v9237_v13 }
 0x191   : > { %v1262_v29 = vpop.permute.xlu0 %1261  ;;  %v1373_v34 = vpop.permute.xlu1 %1372 }
 0x192   : > { %v1267_v32 = vsel %vm1150_vm3, %v1262_v29, 0  ;;  %v1378_v36 = vsel %vm1150_vm3, %v1373_v34, 0 }
 0x195   : > { %v1371_v31 = vpop.permute.xlu0 %1370  ;;  %v1484_v38 = vpop.permute.xlu1 %1483 }
 0x196   : > { %7882 = vmatmul.mubr.msk.bf16.vlgmr.msra.gmra.mrb[4].mxu1 %vm1150_vm3, %v9500_v20  ;;  %v1489_v40 = vsel %vm1150_vm3, %v1484_v38, 0 }
 0x197   : > { %7892 = vmatpush3.bf16.xpose.msra.mxu1 %v1267_v32  ;;  %7893 = vmatprep.mubr.msk.bf16.mxu1 %vm9238_vm2, %v9237_v13 }
 0x198   : > { %7903 = vmatprep.subr.bf16.mxu1 %v9237_v13 }
 0x199   : > { %v1482_v33 = vpop.permute.xlu0 %1481  ;;  %v1615_v42 = vpop.permute.xlu1 %1614 }
 0x19a   : > { %v1620_v44 = vsel %vm1150_vm3, %v1615_v42, 0 }
 0x19d   : > { %v1726_v35 = vpop.permute.xlu0 %1725  ;;  %v1724_v49 = vpop.permute.xlu1 %1723 }
 0x19e   : > { %7894 = vmatmul.mubr.msk.bf16.vlgmr.msra.gmra.mrb[8].mxu1 %vm1150_vm3, %v1260_v30  ;;  %v1731_v47 = vsel %vm1150_vm3, %v1726_v35, 0 }
 0x19f   : > { %7904 = vmatpush3.bf16.xpose.msra.mxu1 %v1378_v36  ;;  %7905 = vmatprep.mubr.msk.bf16.mxu1 %vm9238_vm2, %v9237_v13 }
 0x1a0   : > { %7915 = vmatprep.subr.bf16.mxu1 %v9237_v13 }
 0x1a1   : > { %v1837_v37 = vpop.permute.xlu0 %1836  ;;  %v1835_v53 = vpop.permute.xlu1 %1834 }
 0x1a2   : > { %v1842_v51 = vsel %vm1150_vm3, %v1837_v37, 0 }
 0x1a5   : > { %v1948_v39 = vpop.permute.xlu0 %1947  ;;  %v1946_v57 = vpop.permute.xlu1 %1945 }
 0x1a6   : > { %7906 = vmatmul.mubr.msk.bf16.vlgmr.msra.gmra.mrb[12].mxu1 %vm1150_vm3, %v1371_v31  ;;  %v1953_v55 = vsel %vm1150_vm3, %v1948_v39, 0 }
 0x1a7   : > { %7916 = vmatpush3.bf16.xpose.msra.mxu1 %v1489_v40  ;;  %7917 = vmatprep.mubr.msk.bf16.mxu1 %vm9238_vm2, %v9237_v13 }
 0x1a8   : > { %7927 = vmatprep.subr.bf16.mxu1 %v9237_v13 }
 0x1a9   : > { %v2080_v41 = vpop.permute.xlu0 %2079  ;;  %v2191_v59 = vpop.permute.xlu1 %2190 }
 0x1aa   : > { %v2085_v58 = vsel %vm1150_vm3, %v2080_v41, 0  ;;  %v2196_v60 = vsel %vm1150_vm3, %v2191_v59, 0 }
 0x1ad   : > { %v2189_v43 = vpop.permute.xlu0 %2188  ;;  %v2302_v61 = vpop.permute.xlu1 %2301 }
 0x1ae   : > { %7918 = vmatmul.mubr.msk.bf16.vlgmr.msra.gmra.mrb[16].mxu1 %vm1150_vm3, %v1482_v33  ;;  %v2307_v62 = vsel %vm1150_vm3, %v2302_v61, 0 }
 0x1af   : > { %7928 = vmatpush3.bf16.xpose.msra.mxu1 %v1620_v44  ;;  %7929 = vmatprep.mubr.msk.bf16.mxu1 %vm9238_vm2, %v9237_v13 }
 0x1b0   : > { %7939 = vmatprep.subr.bf16.mxu1 %v9237_v13 }
 0x1b1   : > { %v2300_v45 = vpop.permute.xlu0 %2299  ;;  %v2413_v63 = vpop.permute.xlu1 %2412 }
 0x1b2   : > { %v2418_v0 = vsel %vm1150_vm3, %v2413_v63, 0 }
 0x1b5   : > { %v2411_v46 = vpop.permute.xlu0 %2410  ;;  %v2541_v1 = vpop.permute.xlu1 %2540 }
 0x1b6   : > { %7930 = vmatmul.mubr.msk.bf16.vlgmr.msra.gmra.mrb[20].mxu1 %vm1150_vm3, %v9514_v22  ;;  %v2546_v2 = vsel %vm1150_vm3, %v2541_v1, 0 }
 0x1b7   : > { %7940 = vmatpush3.bf16.xpose.msra.mxu1 %v1731_v47  ;;  %7941 = vmatprep.mubr.msk.bf16.mxu1 %vm9238_vm2, %v9237_v13 }
 0x1b8   : > { %7951 = vmatprep.subr.bf16.mxu1 %v9237_v13 }
 0x1b9   : > { %v2652_v48 = vpop.permute.xlu0 %2651  ;;  %v2650_v4 = vpop.permute.xlu1 %2649 }
 0x1ba   : > { %v2657_v3 = vsel %vm1150_vm3, %v2652_v48, 0 }
 0x1bd   : > { %v2763_v50 = vpop.permute.xlu0 %2762  ;;  %v2761_v6 = vpop.permute.xlu1 %2760 }
 0x1be   : > { %7942 = vmatmul.mubr.msk.bf16.vlgmr.msra.gmra.mrb[24].mxu1 %vm1150_vm3, %v1724_v49  ;;  %v2768_v5 = vsel %vm1150_vm3, %v2763_v50, 0 }
 0x1bf   : > { %7952 = vmatpush3.bf16.xpose.msra.mxu1 %v1842_v51  ;;  %7953 = vmatprep.mubr.msk.bf16.mxu1 %vm9238_vm2, %v9237_v13 }
 0x1c0   : > { %7963 = vmatprep.subr.bf16.mxu1 %v9237_v13 }
 0x1c1   : > { %v2874_v52 = vpop.permute.xlu0 %2873  ;;  %v2872_v8 = vpop.permute.xlu1 %2871 }
 0x1c2   : > { %v2879_v7 = vsel %vm1150_vm3, %v2874_v52, 0 }
 0x1c5   : > { %v1211_v54 = vpop.permute.xlu0 %1210 }
 0x1c6   : > { %7954 = vmatmul.mubr.msk.bf16.vlgmr.msra.gmra.mrb[28].mxu1 %vm1150_vm3, %v1835_v53  ;;  %v1217_v56 = vsel %vm1215_vm4, %v1211_v54, 0 }
 0x1c7   : > { %7886 = vmatpush3.bf16.msra.mxu0 %v1217_v56  ;;  %7964 = vmatpush3.bf16.xpose.msra.mxu1 %v1953_v55 }
 0x1c8   : > { %7965 = vmatprep.mubr.msk.bf16.mxu1 %vm9238_vm2, %v9237_v13  ;;  %7975 = vmatprep.subr.bf16.mxu1 %v9237_v13 }
 0x1c9   : > { %7897 = vmatprep.subr.bf16.mxu0 %v9237_v13 }
 0x1ce   : > { %7966 = vmatmul.mubr.msk.bf16.vlgmr.msra.gmra.mrb[32].mxu1 %vm1150_vm3, %v1946_v57 }
 0x1cf   : > { %7976 = vmatpush3.bf16.xpose.msra.mxu1 %v2085_v58  ;;  %7977 = vmatprep.mubr.msk.bf16.mxu1 %vm9238_vm2, %v9237_v13 }
 0x1d0   : > { %7987 = vmatprep.subr.bf16.mxu1 %v9237_v13 }
 0x1d6   : > { %7978 = vmatmul.mubr.msk.bf16.vlgmr.msra.gmra.mrb[36].mxu1 %vm1150_vm3, %v9532_v24 }
 0x1d7   : > { %7988 = vmatpush3.bf16.xpose.msra.mxu1 %v2196_v60  ;;  %7989 = vmatprep.mubr.msk.bf16.mxu1 %vm9238_vm2, %v9237_v13 }
 0x1d8   : > { %7999 = vmatprep.subr.bf16.mxu1 %v9237_v13 }
 0x1de   : > { %7990 = vmatmul.mubr.msk.bf16.vlgmr.msra.gmra.mrb[40].mxu1 %vm1150_vm3, %v2189_v43 }
 0x1df   : > { %8000 = vmatpush3.bf16.xpose.msra.mxu1 %v2307_v62  ;;  %8001 = vmatprep.mubr.msk.bf16.mxu1 %vm9238_vm2, %v9237_v13 }
 0x1e0   : > { %8011 = vmatprep.subr.bf16.mxu1 %v9237_v13 }
 0x1e6   : > { %8002 = vmatmul.mubr.msk.bf16.vlgmr.msra.gmra.mrb[44].mxu1 %vm1150_vm3, %v2300_v45 }
 0x1e7   : > { %8012 = vmatpush3.bf16.xpose.msra.mxu1 %v2418_v0  ;;  %8013 = vmatprep.mubr.msk.bf16.mxu1 %vm9238_vm2, %v9237_v13 }
 0x1e8   : > { %8023 = vmatprep.subr.bf16.mxu1 %v9237_v13 }
 0x1ee   : > { %8014 = vmatmul.mubr.msk.bf16.vlgmr.msra.gmra.mrb[48].mxu1 %vm1150_vm3, %v2411_v46 }
 0x1ef   : > { %8024 = vmatpush3.bf16.xpose.msra.mxu1 %v2546_v2  ;;  %8025 = vmatprep.mubr.msk.bf16.mxu1 %vm9238_vm2, %v9237_v13 }
 0x1f0   : > { %8035 = vmatprep.subr.bf16.mxu1 %v9237_v13 }
 0x1f6   : > { %8026 = vmatmul.mubr.msk.bf16.vlgmr.msra.gmra.mrb[52].mxu1 %vm1150_vm3, %v9546_v26 }
 0x1f7   : > { %8036 = vmatpush3.bf16.xpose.msra.mxu1 %v2657_v3  ;;  %8037 = vmatprep.mubr.msk.bf16.mxu1 %vm9238_vm2, %v9237_v13 }
 0x1f8   : > { %8047 = vmatprep.subr.bf16.mxu1 %v9237_v13 }
 0x1fe   : > { %8038 = vmatmul.mubr.msk.bf16.vlgmr.msra.gmra.mrb[56].mxu1 %vm1150_vm3, %v2650_v4 }
 0x1ff   : > { %8048 = vmatpush3.bf16.xpose.msra.mxu1 %v2768_v5  ;;  %8049 = vmatprep.mubr.msk.bf16.mxu1 %vm9238_vm2, %v9237_v13 }
 0x200   : > { %8059 = vmatprep.subr.bf16.mxu1 %v9237_v13 }
 0x206   : > { %8050 = vmatmul.mubr.msk.bf16.vlgmr.msra.gmra.mrb[60].mxu1 %vm1150_vm3, %v2761_v6 }
 0x207   : > { %8060 = vmatpush3.bf16.xpose.msra.mxu1 %v2879_v7  ;;  %8061 = vmatprep.mubr.msk.bf16.mxu1 %vm9238_vm2, %v9237_v13 }
 0x20e   : > { %8062 = vmatmul.mubr.msk.bf16.vlgmr.msra.gmra.mrb[64].mxu1 %vm1150_vm3, %v2872_v8 }
 0x269   : > { %v1191_v9 = vpop.f32.mrb[4].mxu1 }
 0x26a   : > { %v9653_v10 = vmul.f32 0.35355338, %v1191_v9  ;;  %v7883_v11 = vpop.f32.mrb[5].mxu1 }
 0x26b   : > { %v1194_v12 = vpop.f32.mrb[6].mxu1 }
 0x26c   : > { %v7884_v14 = vpop.f32.mrb[7].mxu1  ;;  %v1198_v15 = vsel %vm1150_vm3, %v9653_v10, -inf }
 0x26d   : > { %1199 = vmax.xlane.f32.xlu0 %v1198_v15 }
 0x271   : > { %v1303_v16 = vpop.f32.mrb[8].mxu1 }
 0x272   : > { %v9657_v17 = vmul.f32 0.35355338, %v1303_v16  ;;  %v7895_v18 = vpop.f32.mrb[9].mxu1 }
 0x273   : > { %v1306_v19 = vpop.f32.mrb[10].mxu1 }
 0x274   : > { %v7896_v21 = vpop.f32.mrb[11].mxu1  ;;  %v1310_v23 = vsel %vm1150_vm3, %v9657_v17, -inf }
 0x275   : > { %1311 = vmax.xlane.f32.xlu1 %v1310_v23 }
 0x279   : > { %v1414_v25 = vpop.f32.mrb[12].mxu1 }
 0x27a   : > { %v9661_v27 = vmul.f32 0.35355338, %v1414_v25  ;;  %v7907_v28 = vpop.f32.mrb[13].mxu1 }
 0x27b   : > { %v1417_v29 = vpop.f32.mrb[14].mxu1 }
 0x27c   : > { %v7908_v30 = vpop.f32.mrb[15].mxu1  ;;  %v1421_v31 = vsel %vm1150_vm3, %v9661_v27, -inf }
 0x27d   : > { %1422 = vmax.xlane.f32.xlu0 %v1421_v31 }
 0x281   : > { %v1525_v32 = vpop.f32.mrb[16].mxu1 }
 0x282   : > { %v9665_v33 = vmul.f32 0.35355338, %v1525_v32  ;;  %v7919_v34 = vpop.f32.mrb[17].mxu1 }
 0x283   : > { %v1528_v35 = vpop.f32.mrb[18].mxu1 }
 0x284   : > { %v7920_v36 = vpop.f32.mrb[19].mxu1  ;;  %v1532_v37 = vsel %vm1150_vm3, %v9665_v33, -inf }
 0x285   : > { %1533 = vmax.xlane.f32.xlu0 %v1532_v37 }
 0x289   : > { %v1656_v38 = vpop.f32.mrb[20].mxu1 }
 0x28a   : > { %v9669_v39 = vmul.f32 0.35355338, %v1656_v38  ;;  %v7931_v40 = vpop.f32.mrb[21].mxu1 }
 0x28b   : > { %v1659_v41 = vpop.f32.mrb[22].mxu1 }
 0x28c   : > { %v7932_v42 = vpop.f32.mrb[23].mxu1  ;;  %v1663_v43 = vsel %vm1150_vm3, %v9669_v39, -inf }
 0x28d   : > { %1664 = vmax.xlane.f32.xlu1 %v1663_v43 }
 0x291   : > { %v1767_v44 = vpop.f32.mrb[24].mxu1 }
 0x292   : > { %v9673_v45 = vmul.f32 0.35355338, %v1767_v44  ;;  %v7943_v46 = vpop.f32.mrb[25].mxu1 }
 0x293   : > { %v1770_v47 = vpop.f32.mrb[26].mxu1 }
 0x294   : > { %v7944_v48 = vpop.f32.mrb[27].mxu1  ;;  %v1774_v49 = vsel %vm1150_vm3, %v9673_v45, -inf }
 0x295   : > { %1775 = vmax.xlane.f32.xlu0 %v1774_v49 }
 0x299   : > { %v1878_v50 = vpop.f32.mrb[28].mxu1 }
 0x29a   : > { %v9677_v51 = vmul.f32 0.35355338, %v1878_v50  ;;  %v7955_v52 = vpop.f32.mrb[29].mxu1 }
 0x29b   : > { %v1881_v53 = vpop.f32.mrb[30].mxu1 }
 0x29c   : > { %v7956_v54 = vpop.f32.mrb[31].mxu1  ;;  %v1885_v55 = vsel %vm1150_vm3, %v9677_v51, -inf }
 0x29d   : > { %1886 = vmax.xlane.f32.xlu1 %v1885_v55 }
 0x2a1   : > { %v1989_v56 = vpop.f32.mrb[32].mxu1 }
 0x2a2   : > { %v9681_v57 = vmul.f32 0.35355338, %v1989_v56  ;;  %v7967_v58 = vpop.f32.mrb[33].mxu1 }
 0x2a3   : > { %v1992_v59 = vpop.f32.mrb[34].mxu1  ;;  %v9721_v58 = vpop.permute.xlu1 %1322 }
 0x2a4   : > { %v7968_v60 = vpop.f32.mrb[35].mxu1  ;;  %v1996_v61 = vsel %vm1150_vm3, %v9681_v57, -inf }
 0x2a5   : > { %1997 = vmax.xlane.f32.xlu0 %v1996_v61 }
 0x2a9   : > { %v2121_v62 = vpop.f32.mrb[36].mxu1 }
 0x2aa   : > { %v9685_v63 = vmul.f32 0.35355338, %v2121_v62  ;;  %v7979_v0 = vpop.f32.mrb[37].mxu1  ;;  %v9724_v62 = vpop.permute.xlu1 %1433 }
 0x2ab   : > { %v2124_v1 = vpop.f32.mrb[38].mxu1 }
 0x2ac   : > { %v7980_v2 = vpop.f32.mrb[39].mxu1  ;;  %v2128_v3 = vsel %vm1150_vm3, %v9685_v63, -inf }
 0x2ad   : > { %2129 = vmax.xlane.f32.xlu1 %v2128_v3 }
 0x2b1   : > { %v2232_v4 = vpop.f32.mrb[40].mxu1 }
 0x2b2   : > { %v7991_v5 = vpop.f32.mrb[41].mxu1  ;;  %v9693_v32 = vmul.f32 0.35355338, %v2232_v4 }
 0x2b3   : > { %v2235_v6 = vpop.f32.mrb[42].mxu1 }
 0x2b4   : > { %v7992_v7 = vpop.f32.mrb[43].mxu1  ;;  %v2239_v34 = vsel %vm1150_vm3, %v9693_v32, -inf }
 0x2b9   : > { %v2343_v8 = vpop.f32.mrb[44].mxu1 }
 0x2ba   : > { %v8003_v9 = vpop.f32.mrb[45].mxu1  ;;  %v9697_v38 = vmul.f32 0.35355338, %v2343_v8 }
 0x2bb   : > { %1544 = vrot.lane.b32.xlu0 %v9500_v20, %s9249_s12  ;;  %v2346_v11 = vpop.f32.mrb[46].mxu1 }
 0x2bc   : > { %v8004_v12 = vpop.f32.mrb[47].mxu1  ;;  %v2350_v42 = vsel %vm1150_vm3, %v9697_v38, -inf }
 0x2be   : > { %1675 = vrot.lane.b32.xlu1 %v9514_v22, %s9247_s6 }
 0x2c1   : > { %v2454_v14 = vpop.f32.mrb[48].mxu1 }
 0x2c2   : > { %v8015_v15 = vpop.f32.mrb[49].mxu1  ;;  %v9699_v40 = vmul.f32 0.35355338, %v2454_v14 }
 0x2c3   : > { %v2457_v16 = vpop.f32.mrb[50].mxu1 }
 0x2c4   : > { %v8016_v18 = vpop.f32.mrb[51].mxu1  ;;  %v2461_v48 = vsel %vm1150_vm3, %v9699_v40, -inf }
 0x2c9   : > { %v2582_v19 = vpop.f32.mrb[52].mxu1 }
 0x2ca   : > { %v8027_v21 = vpop.f32.mrb[53].mxu1  ;;  %v9703_v47 = vmul.f32 0.35355338, %v2582_v19 }
 0x2cb   : > { %v2585_v23 = vpop.f32.mrb[54].mxu1 }
 0x2cc   : > { %v8028_v25 = vpop.f32.mrb[55].mxu1  ;;  %v2589_v50 = vsel %vm1150_vm3, %v9703_v47, -inf }
 0x2d1   : > { %v2693_v28 = vpop.f32.mrb[56].mxu1 }
 0x2d2   : > { %v8039_v29 = vpop.f32.mrb[57].mxu1  ;;  %v9707_v49 = vmul.f32 0.35355338, %v2693_v28 }
 0x2d3   : > { %v2696_v30 = vpop.f32.mrb[58].mxu1 }
 0x2d4   : > { %v8040_v31 = vpop.f32.mrb[59].mxu1  ;;  %v2700_v53 = vsel %vm1150_vm3, %v9707_v49, -inf }
 0x2d9   : > { %v2804_v20 = vpop.f32.mrb[60].mxu1 }
 0x2da   : > { %2240 = vmax.xlane.f32.xlu0 %v2239_v34  ;;  %v8051_v35 = vpop.f32.mrb[61].mxu1  ;;  %v9711_v52 = vmul.f32 0.35355338, %v2804_v20 }
 0x2db   : > { %v2807_v36 = vpop.f32.mrb[62].mxu1 }
 0x2dc   : > { %v8052_v37 = vpop.f32.mrb[63].mxu1  ;;  %v2811_v55 = vsel %vm1150_vm3, %v9711_v52, -inf }
 0x2e1   : > { %v2915_v41 = vpop.f32.mrb[64].mxu1 }
 0x2e2   : > { %2351 = vmax.xlane.f32.xlu1 %v2350_v42  ;;  %v8063_v43 = vpop.f32.mrb[65].mxu1  ;;  %v9715_v54 = vmul.f32 0.35355338, %v2915_v41 }
 0x2e3   : > { %v2918_v44 = vpop.f32.mrb[66].mxu1 }
 0x2e4   : > { %v8064_v46 = vpop.f32.mrb[67].mxu1  ;;  %v2922_v56 = vsel %vm1150_vm3, %v9715_v54, -inf }
 0x2e6   : > { %2462 = vmax.xlane.f32.xlu1 %v2461_v48 }
 0x2ea   : > { %2590 = vmax.xlane.f32.xlu1 %v2589_v50 }
 0x2ee   : > { %2701 = vmax.xlane.f32.xlu1 %v2700_v53 }
 0x2f2   : > { %2812 = vmax.xlane.f32.xlu1 %v2811_v55 }
 0x2f6   : > { %2923 = vmax.xlane.f32.xlu1 %v2922_v56 }
 0x2fa   : > { %v1200_v59 = vpop.xlane.xlu0 %1199 }
 0x2fb   : > { %v1201_v60 = vsub.f32 %v9653_v10, %v1200_v59 }
 0x2fd   : > { %v1202_v61 = vmul.f32 1.442695, %v1201_v60 }
 0x2ff   : > { %8988 = vpow2.f32 %v1202_v61 }
 0x302   : > { %v1312_v0 = vpop.xlane.xlu1 %1311 }
 0x303   : > { %v1313_v1 = vsub.f32 %v9657_v17, %v1312_v0 }
 0x305   : > { %v1314_v2 = vmul.f32 1.442695, %v1313_v1 }
 0x307   : > { %8990 = vpow2.f32 %v1314_v2 }
 0x309   : > { %v9727_v3 = vpop.eup %8988 }
 0x30a   : > { %v1423_v4 = vpop.xlane.xlu0 %1422  ;;  %v1204_v5 = vsel %vm1150_vm3, %v9727_v3, 0.0 }
 0x30b   : > { %v1424_v6 = vsub.f32 %v9661_v27, %v1423_v4  ;;  %1205 = vadd.xlane.f32.xlu0 %v1204_v5 }
 0x30d   : > { %v1425_v7 = vmul.f32 1.442695, %v1424_v6 }
 0x30f   : > { %8992 = vpow2.f32 %v1425_v7 }
 0x311   : > { %v9732_v10 = vpop.eup %8990 }
 0x312   : > { %v1534_v8 = vpop.xlane.xlu0 %1533  ;;  %v1316_v9 = vsel %vm1150_vm3, %v9732_v10, 0.0 }
 0x313   : > { %v1535_v17 = vsub.f32 %v9665_v33, %v1534_v8  ;;  %1317 = vadd.xlane.f32.xlu0 %v1316_v9 }
 0x315   : > { %v1536_v11 = vmul.f32 1.442695, %v1535_v17 }
 0x317   : > { %8994 = vpow2.f32 %v1536_v11 }
 0x319   : > { %v9737_v12 = vpop.eup %8992 }
 0x31a   : > { %v1665_v14 = vpop.xlane.xlu1 %1664  ;;  %v1427_v27 = vsel %vm1150_vm3, %v9737_v12, 0.0 }
 0x31b   : > { %v1666_v15 = vsub.f32 %v9669_v39, %v1665_v14  ;;  %1428 = vadd.xlane.f32.xlu0 %v1427_v27 }
 0x31d   : > { %v1667_v16 = vmul.f32 1.442695, %v1666_v15 }
 0x31f   : > { %8996 = vpow2.f32 %v1667_v16 }
 0x321   : > { %v9742_v18 = vpop.eup %8994 }
 0x322   : > { %v1776_v19 = vpop.xlane.xlu0 %1775  ;;  %v1538_v33 = vsel %vm1150_vm3, %v9742_v18, 0.0 }
 0x323   : > { %v1777_v21 = vsub.f32 %v9673_v45, %v1776_v19  ;;  %1539 = vadd.xlane.f32.xlu0 %v1538_v33 }
 0x325   : > { %v1778_v23 = vmul.f32 1.442695, %v1777_v21 }
 0x327   : > { %8998 = vpow2.f32 %v1778_v23 }
 0x329   : > { %v9747_v25 = vpop.eup %8996 }
 0x32a   : > { %v1887_v28 = vpop.xlane.xlu1 %1886  ;;  %v1669_v39 = vsel %vm1150_vm3, %v9747_v25, 0.0 }
 0x32b   : > { %v1888_v29 = vsub.f32 %v9677_v51, %v1887_v28  ;;  %1670 = vadd.xlane.f32.xlu1 %v1669_v39 }
 0x32d   : > { %v1889_v30 = vmul.f32 1.442695, %v1888_v29 }
 0x32f   : > { %9000 = vpow2.f32 %v1889_v30 }
 0x331   : > { %v9752_v31 = vpop.eup %8998 }
 0x332   : > { %v1998_v20 = vpop.xlane.xlu0 %1997  ;;  %v1780_v45 = vsel %vm1150_vm3, %v9752_v31, 0.0 }
 0x333   : > { %v1999_v34 = vsub.f32 %v9681_v57, %v1998_v20  ;;  %1781 = vadd.xlane.f32.xlu0 %v1780_v45  ;;  %v1328_v45 = vsel %vm1215_vm4, %v9721_v58, 0 }
 0x335   : > { %v2000_v35 = vmul.f32 1.442695, %v1999_v34 }
 0x336   : > { %v9772_v44 = vpop.permute.xlu0 %1544 }
 0x337   : > { %9002 = vpow2.f32 %v2000_v35 }
 0x339   : > { %v9757_v36 = vpop.eup %9000 }
 0x33a   : > { %v1891_v37 = vsel %vm1150_vm3, %v9757_v36, 0.0  ;;  %v2130_v57 = vpop.xlane.xlu1 %2129 }
 0x33b   : > { %1892 = vadd.xlane.f32.xlu1 %v1891_v37  ;;  %v2131_v42 = vsub.f32 %v9685_v63, %v2130_v57 }
 0x33d   : > { %v2132_v43 = vmul.f32 1.442695, %v2131_v42 }
 0x33e   : > { %v9777_v55 = vpop.permute.xlu1 %1675 }
 0x33f   : > { %9004 = vpow2.f32 %v2132_v43 }
 0x341   : > { %v9761_v51 = vpop.eup %9002 }
 0x342   : > { %v2002_v41 = vsel %vm1150_vm3, %v9761_v51, 0.0 }
 0x343   : > { %2003 = vadd.xlane.f32.xlu1 %v2002_v41 }
 0x349   : > { %1897 = vrot.lane.b32.xlu0 %v9514_v22, %s9248_s23  ;;  %v9774_v48 = vpop.eup %9004 }
 0x34a   : > { %v2134_v56 = vsel %vm1150_vm3, %v9774_v48, 0.0 }
 0x34d   : > { %2008 = vrot.lane.b32.xlu0 %v9514_v22, %s9249_s12 }
 0x354   : > { %1786 = vrot.lane.b32.xlu1 %v9514_v22, %s9246_s29 }
 0x367   : > { %v2241_v46 = vpop.xlane.xlu0 %2240 }
 0x368   : > { %v2242_v50 = vsub.f32 %v9693_v32, %v2241_v46 }
 0x36a   : > { %v2243_v53 = vmul.f32 1.442695, %v2242_v50 }
 0x36c   : > { %9006 = vpow2.f32 %v2243_v53  ;;  %2135 = vadd.xlane.f32.xlu0 %v2134_v56 }
 0x36f   : > { %v2352_v22 = vpop.xlane.xlu1 %2351 }
 0x370   : > { %v2353_v63 = vsub.f32 %v9697_v38, %v2352_v22 }
 0x372   : > { %v2354_v59 = vmul.f32 1.442695, %v2353_v63 }
 0x373   : > { %v2463_v60 = vpop.xlane.xlu1 %2462 }
 0x374   : > { %9008 = vpow2.f32 %v2354_v59  ;;  %v2464_v61 = vsub.f32 %v9699_v40, %v2463_v60 }
 0x376   : > { %v9783_v0 = vpop.eup %9006  ;;  %v2465_v1 = vmul.f32 1.442695, %v2464_v61 }
 0x377   : > { %v2591_v32 = vpop.xlane.xlu1 %2590  ;;  %v2245_v2 = vsel %vm1150_vm3, %v9783_v0, 0.0 }
 0x378   : > { %9010 = vpow2.f32 %v2465_v1  ;;  %v2592_v4 = vsub.f32 %v9703_v47, %v2591_v32  ;;  %2246 = vadd.xlane.f32.xlu1 %v2245_v2 }
 0x37a   : > { %v2593_v5 = vmul.f32 1.442695, %v2592_v4 }
 0x37b   : > { %v2702_v6 = vpop.xlane.xlu1 %2701 }
 0x37c   : > { %9012 = vpow2.f32 %v2593_v5  ;;  %v2703_v38 = vsub.f32 %v9707_v49, %v2702_v6 }
 0x37e   : > { %v9789_v7 = vpop.eup %9008  ;;  %v2704_v8 = vmul.f32 1.442695, %v2703_v38 }
 0x37f   : > { %v2813_v40 = vpop.xlane.xlu1 %2812  ;;  %v2356_v9 = vsel %vm1150_vm3, %v9789_v7, 0.0 }
 0x380   : > { %9014 = vpow2.f32 %v2704_v8  ;;  %v2814_v17 = vsub.f32 %v9711_v52, %v2813_v40  ;;  %2357 = vadd.xlane.f32.xlu1 %v2356_v9 }
 0x382   : > { %v9794_v11 = vpop.eup %9010  ;;  %v2815_v47 = vmul.f32 1.442695, %v2814_v17  ;;  %2140 = vrot.lane.b32.xlu0 %v9532_v24, %s9247_s6 }
 0x383   : > { %v2924_v14 = vpop.xlane.xlu1 %2923  ;;  %v2467_v49 = vsel %vm1150_vm3, %v9794_v11, 0.0 }
 0x384   : > { %9016 = vpow2.f32 %v2815_v47  ;;  %v2925_v27 = vsub.f32 %v9715_v54, %v2924_v14  ;;  %2468 = vadd.xlane.f32.xlu1 %v2467_v49 }
 0x386   : > { %v9801_v15 = vpop.eup %9012  ;;  %v2926_v16 = vmul.f32 1.442695, %v2925_v27  ;;  %2251 = vrot.lane.b32.xlu0 %v9532_v24, %s9246_s29 }
 0x387   : > { %v2595_v52 = vsel %vm1150_vm3, %v9801_v15, 0.0 }
 0x388   : > { %9018 = vpow2.f32 %v2926_v16  ;;  %2596 = vadd.xlane.f32.xlu1 %v2595_v52 }
 0x38a   : > { %v9807_v19 = vpop.eup %9014  ;;  %2362 = vrot.lane.b32.xlu0 %v9532_v24, %s9248_s23 }
 0x38b   : > { %v2706_v54 = vsel %vm1150_vm3, %v9807_v19, 0.0 }
 0x38c   : > { %2707 = vadd.xlane.f32.xlu1 %v2706_v54 }
 0x38e   : > { %v9813_v33 = vpop.eup %9016  ;;  %2473 = vrot.lane.b32.xlu0 %v9532_v24, %s9249_s12 }
 0x38f   : > { %v2817_v21 = vsel %vm1150_vm3, %v9813_v33, 0.0 }
 0x390   : > { %2818 = vadd.xlane.f32.xlu1 %v2817_v21 }
 0x392   : > { %v9819_v23 = vpop.eup %9018  ;;  %2601 = vrot.lane.b32.xlu0 %v9546_v26, %s9247_s6  ;;  %s11648_s6 = sld [smem:[#allocation18_spill]] }
 0x393   : > { %v2928_v28 = vsel %vm1150_vm3, %v9819_v23, 0.0 }
 0x394   : > { %2929 = vadd.xlane.f32.xlu1 %v2928_v28 }
 0x396   : > { %2823 = vrot.lane.b32.xlu0 %v9546_v26, %s9248_s23 }
 0x398   : > { %v1206_v39 = vpop.xlane.xlu0 %1205  ;;  %s11649_s23 = scalar_lea.vmem %s11648_s6, %s9390_s28  ;;  %s11652_s6 = scalar_lea.vmem %s11598_s16, %s9458_s18 }
 0x399   : > { %9020 = vrcp.f32 %v1206_v39 }
 0x39a   : > { %2934 = vrot.lane.b32.xlu0 %v9546_v26, %s9249_s12 }
 0x3a0   : > { %v1318_v24 = vpop.xlane.xlu0 %1317 }
 0x3a1   : > { %9022 = vrcp.f32 %v1318_v24 }
 0x3a3   : > { %v9021_v29 = vpop.eup %9020 }
 0x3a4   : > { %v1208_v30 = vmul.f32 %v9021_v29, %v9727_v3 }
 0x3a5   : > { %2712 = vrot.lane.b32.xlu1 %v9546_v26, %s9246_s29  ;;  %v1439_v26 = vsel %vm1215_vm4, %v9724_v62, 0  ;;  %s11650_s29 = sld [smem:[#allocation14_spill]] }
 0x3a6   : > { %v1209_v20 = vpack.c.bf16 %v1208_v30, %v1208_v30 }
 0x3a8   : > { %7888 = vmatmul.mubr.msk.bf16.vlgmr.msra.gmra.mrb[0].mxu0 %vm1150_vm3, %v1209_v20  ;;  %v1429_v34 = vpop.xlane.xlu0 %1428 }
 0x3a9   : > { %7898 = vmatpush3.bf16.msra.mxu0 %v1328_v45  ;;  %9024 = vrcp.f32 %v1429_v34  ;;  %7899 = vmatprep.mubr.msk.bf16.mxu0 %vm9238_vm2, %v9237_v13 }
 0x3aa   : > { %7909 = vmatprep.subr.bf16.mxu0 %v9237_v13 }
 0x3ab   : > { %v9023_v35 = vpop.eup %9022 }
 0x3ac   : > { %v1320_v3 = vmul.f32 %v9023_v35, %v9732_v10  ;;  %v1550_v10 = vsel %vm1215_vm4, %v9772_v44, 0 }
 0x3ae   : > { %v1321_v37 = vpack.c.bf16 %v1320_v3, %v1320_v3 }
 0x3b0   : > { %7900 = vmatmul.mubr.msk.bf16.vlgmr.msra.gmra.mrb[4].mxu0 %vm1150_vm3, %v1321_v37  ;;  %v1540_v58 = vpop.xlane.xlu0 %1539 }
 0x3b1   : > { %7910 = vmatpush3.bf16.msra.mxu0 %v1439_v26  ;;  %9026 = vrcp.f32 %v1540_v58  ;;  %7911 = vmatprep.mubr.msk.bf16.mxu0 %vm9238_vm2, %v9237_v13 }
 0x3b2   : > { %7921 = vmatprep.subr.bf16.mxu0 %v9237_v13 }
 0x3b3   : > { %v9025_v41 = vpop.eup %9024 }
 0x3b4   : > { %v1431_v57 = vmul.f32 %v9025_v41, %v9737_v12  ;;  %v1681_v12 = vsel %vm1215_vm4, %v9777_v55, 0 }
 0x3b6   : > { %v1432_v42 = vpack.c.bf16 %v1431_v57, %v1431_v57 }
 0x3b8   : > { %v1671_v43 = vpop.xlane.xlu1 %1670  ;;  %7912 = vmatmul.mubr.msk.bf16.vlgmr.msra.gmra.mrb[8].mxu0 %vm1150_vm3, %v1432_v42 }
 0x3b9   : > { %9028 = vrcp.f32 %v1671_v43  ;;  %7922 = vmatpush3.bf16.msra.mxu0 %v1550_v10  ;;  %7923 = vmatprep.mubr.msk.bf16.mxu0 %vm9238_vm2, %v9237_v13 }
 0x3ba   : > { %7933 = vmatprep.subr.bf16.mxu0 %v9237_v13 }
 0x3bb   : > { %v9027_v62 = vpop.eup %9026 }
 0x3bc   : > { %v1542_v46 = vmul.f32 %v9027_v62, %v9742_v18 }
 0x3be   : > { %v1543_v50 = vpack.c.bf16 %v1542_v46, %v1542_v46 }
 0x3c0   : > { %7924 = vmatmul.mubr.msk.bf16.vlgmr.msra.gmra.mrb[12].mxu0 %vm1150_vm3, %v1543_v50  ;;  %v1782_v53 = vpop.xlane.xlu0 %1781 }
 0x3c1   : > { %7934 = vmatpush3.bf16.msra.mxu0 %v1681_v12  ;;  %7935 = vmatprep.mubr.msk.bf16.mxu0 %vm9238_vm2, %v9237_v13  ;;  %9030 = vrcp.f32 %v1782_v53 }
 0x3c2   : > { %7945 = vmatprep.subr.bf16.mxu0 %v9237_v13 }
 0x3c3   : > { %v9029_v44 = vpop.eup %9028 }
 0x3c4   : > { %v1673_v56 = vmul.f32 %v9029_v44, %v9747_v25  ;;  %v1898_v1 = vpop.permute.xlu0 %1897 }
 0x3c5   : > { %v1903_v2 = vsel %vm1215_vm4, %v1898_v1, 0 }
 0x3c6   : > { %v1674_v22 = vpack.c.bf16 %v1673_v56, %v1673_v56 }
 0x3c8   : > { %7936 = vmatmul.mubr.msk.bf16.vlgmr.msra.gmra.mrb[16].mxu0 %vm1150_vm3, %v1674_v22  ;;  %v1893_v18 = vpop.xlane.xlu1 %1892  ;;  %v2009_v4 = vpop.permute.xlu0 %2008 }
 0x3c9   : > { %7947 = vmatprep.mubr.msk.bf16.mxu0 %vm9238_vm2, %v9237_v13  ;;  %9032 = vrcp.f32 %v1893_v18  ;;  %v2014_v38 = vsel %vm1215_vm4, %v2009_v4, 0 }
 0x3cb   : > { %v9031_v55 = vpop.eup %9030 }
 0x3cc   : > { %v1784_v59 = vmul.f32 %v9031_v55, %v9752_v31 }
 0x3ce   : > { %v1785_v25 = vpack.c.bf16 %v1784_v59, %v1784_v59 }
 0x3d0   : > { %v2004_v63 = vpop.xlane.xlu1 %2003 }
 0x3d1   : > { %9034 = vrcp.f32 %v2004_v63 }
 0x3d3   : > { %v9033_v32 = vpop.eup %9032 }
 0x3d4   : > { %v1787_v60 = vpop.permute.xlu1 %1786  ;;  %v1895_v31 = vmul.f32 %v9033_v32, %v9757_v36 }
 0x3d5   : > { %v1792_v61 = vsel %vm1215_vm4, %v1787_v60, 0 }
 0x3d6   : > { %7946 = vmatpush3.bf16.msra.mxu0 %v1792_v61  ;;  %v1896_v5 = vpack.c.bf16 %v1895_v31, %v1895_v31 }
 0x3d7   : > { %7957 = vmatprep.subr.bf16.mxu0 %v9237_v13 }
 0x3d9   : > { %7948 = vmatmul.mubr.msk.bf16.vlgmr.msra.gmra.mrb[20].mxu0 %vm1150_vm3, %v1785_v25 }
 0x3da   : > { %7958 = vmatpush3.bf16.msra.mxu0 %v1903_v2  ;;  %7959 = vmatprep.mubr.msk.bf16.mxu0 %vm9238_vm2, %v9237_v13 }
 0x3db   : > { %7969 = vmatprep.subr.bf16.mxu0 %v9237_v13  ;;  %v9035_v6 = vpop.eup %9034 }
 0x3dc   : > { %v2006_v8 = vmul.f32 %v9035_v6, %v9761_v51 }
 0x3de   : > { %v2007_v40 = vpack.c.bf16 %v2006_v8, %v2006_v8 }
 0x3e1   : > { %7960 = vmatmul.mubr.msk.bf16.vlgmr.msra.gmra.mrb[24].mxu0 %vm1150_vm3, %v1896_v5 }
 0x3e2   : > { %7970 = vmatpush3.bf16.msra.mxu0 %v2014_v38  ;;  %7971 = vmatprep.mubr.msk.bf16.mxu0 %vm9238_vm2, %v9237_v13 }
 0x3e3   : > { %7981 = vmatprep.subr.bf16.mxu0 %v9237_v13 }
 0x3e9   : > { %7972 = vmatmul.mubr.msk.bf16.vlgmr.msra.gmra.mrb[28].mxu0 %vm1150_vm3, %v2007_v40 }
 0x3ea   : > { %7983 = vmatprep.mubr.msk.bf16.mxu0 %vm9238_vm2, %v9237_v13 }
 0x3f9   : > { %v2136_v36 = vpop.xlane.xlu0 %2135 }
 0x3fa   : > { %9036 = vrcp.f32 %v2136_v36 }
 0x3fd   : > { %v2141_v9 = vpop.permute.xlu0 %2140 }
 0x3fe   : > { %v2146_v17 = vsel %vm1215_vm4, %v2141_v9, 0 }
 0x3ff   : > { %7982 = vmatpush3.bf16.msra.mxu0 %v2146_v17 }
 0x400   : > { %7993 = vmatprep.subr.bf16.mxu0 %v9237_v13 }
 0x401   : > { %v2252_v49 = vpop.permute.xlu0 %2251 }
 0x402   : > { %v2257_v16 = vsel %vm1215_vm4, %v2252_v49, 0 }
 0x404   : > { %v9037_v47 = vpop.eup %9036 }
 0x405   : > { %v2247_v14 = vpop.xlane.xlu1 %2246  ;;  %v2138_v51 = vmul.f32 %v9037_v47, %v9774_v48  ;;  %v2363_v48 = vpop.permute.xlu0 %2362 }
 0x406   : > { %9038 = vrcp.f32 %v2247_v14  ;;  %v2368_v24 = vsel %vm1215_vm4, %v2363_v48, 0 }
 0x407   : > { %v2139_v27 = vpack.c.bf16 %v2138_v51, %v2138_v51 }
 0x409   : > { %7984 = vmatmul.mubr.msk.bf16.vlgmr.msra.gmra.mrb[32].mxu0 %vm1150_vm3, %v2139_v27  ;;  %v2474_v34 = vpop.permute.xlu0 %2473 }
 0x40a   : > { %7994 = vmatpush3.bf16.msra.mxu0 %v2257_v16  ;;  %7995 = vmatprep.mubr.msk.bf16.mxu0 %vm9238_vm2, %v9237_v13  ;;  %v2479_v3 = vsel %vm1215_vm4, %v2474_v34, 0 }
 0x40b   : > { %8005 = vmatprep.subr.bf16.mxu0 %v9237_v13 }
 0x40d   : > { %v2358_v52 = vpop.xlane.xlu1 %2357  ;;  %v2602_v58 = vpop.permute.xlu0 %2601 }
 0x40e   : > { %9040 = vrcp.f32 %v2358_v52  ;;  %v2607_v42 = vsel %vm1215_vm4, %v2602_v58, 0 }
 0x410   : > { %v9039_v54 = vpop.eup %9038 }
 0x411   : > { %v2469_v21 = vpop.xlane.xlu1 %2468  ;;  %v2249_v28 = vmul.f32 %v9039_v54, %v9783_v0  ;;  %v2824_v12 = vpop.permute.xlu0 %2823 }
 0x412   : > { %9042 = vrcp.f32 %v2469_v21  ;;  %v2829_v53 = vsel %vm1215_vm4, %v2824_v12, 0 }
 0x413   : > { %v2250_v39 = vpack.c.bf16 %v2249_v28, %v2249_v28 }
 0x415   : > { %v2597_v29 = vpop.xlane.xlu1 %2596  ;;  %7996 = vmatmul.mubr.msk.bf16.vlgmr.msra.gmra.mrb[36].mxu0 %vm1150_vm3, %v2250_v39  ;;  %v2935_v22 = vpop.permute.xlu0 %2934 }
 0x416   : > { %8006 = vmatpush3.bf16.msra.mxu0 %v2368_v24  ;;  %8007 = vmatprep.mubr.msk.bf16.mxu0 %vm9238_vm2, %v9237_v13  ;;  %9044 = vrcp.f32 %v2597_v29 }
 0x417   : > { %8017 = vmatprep.subr.bf16.mxu0 %v9237_v13 }
 0x418   : > { %v9041_v30 = vpop.eup %9040 }
 0x419   : > { %v2708_v20 = vpop.xlane.xlu1 %2707  ;;  %v2360_v45 = vmul.f32 %v9041_v30, %v9789_v7 }
 0x41a   : > { %9046 = vrcp.f32 %v2708_v20 }
 0x41b   : > { %v2361_v0 = vpack.c.bf16 %v2360_v45, %v2360_v45 }
 0x41c   : > { %v9043_v35 = vpop.eup %9042 }
 0x41d   : > { %8008 = vmatmul.mubr.msk.bf16.vlgmr.msra.gmra.mrb[40].mxu0 %vm1150_vm3, %v2361_v0  ;;  %v2819_v37 = vpop.xlane.xlu1 %2818  ;;  %v2471_v26 = vmul.f32 %v9043_v35, %v9794_v11 }
 0x41e   : > { %8018 = vmatpush3.bf16.msra.mxu0 %v2479_v3  ;;  %8019 = vmatprep.mubr.msk.bf16.mxu0 %vm9238_vm2, %v9237_v13  ;;  %9048 = vrcp.f32 %v2819_v37 }
 0x41f   : > { %8029 = vmatprep.subr.bf16.mxu0 %v9237_v13  ;;  %v2472_v7 = vpack.c.bf16 %v2471_v26, %v2471_v26 }
 0x420   : > { %v9045_v41 = vpop.eup %9044 }
 0x421   : > { %v2930_v57 = vpop.xlane.xlu1 %2929  ;;  %v2599_v10 = vmul.f32 %v9045_v41, %v9801_v15 }
 0x422   : > { %9050 = vrcp.f32 %v2930_v57 }
 0x423   : > { %v2600_v11 = vpack.c.bf16 %v2599_v10, %v2599_v10 }
 0x424   : > { %v9047_v62 = vpop.eup %9046 }
 0x425   : > { %8020 = vmatmul.mubr.msk.bf16.vlgmr.msra.gmra.mrb[44].mxu0 %vm1150_vm3, %v2472_v7  ;;  %v2713_v43 = vpop.permute.xlu1 %2712  ;;  %v2710_v50 = vmul.f32 %v9047_v62, %v9807_v19  ;;  %v2940_v19 = vsel %vm1215_vm4, %v2935_v22, 0 }
 0x426   : > { %8030 = vmatpush3.bf16.msra.mxu0 %v2607_v42  ;;  %8031 = vmatprep.mubr.msk.bf16.mxu0 %vm9238_vm2, %v9237_v13  ;;  %v2718_v46 = vsel %vm1215_vm4, %v2713_v43, 0 }
 0x427   : > { %8041 = vmatprep.subr.bf16.mxu0 %v9237_v13  ;;  %v2711_v44 = vpack.c.bf16 %v2710_v50, %v2710_v50 }
 0x428   : > { %v9049_v15 = vpop.eup %9048 }
 0x429   : > { %v2821_v56 = vmul.f32 %v9049_v15, %v9813_v33 }
 0x42b   : > { %v2822_v18 = vpack.c.bf16 %v2821_v56, %v2821_v56 }
 0x42c   : > { %v9051_v55 = vpop.eup %9050 }
 0x42d   : > { %8032 = vmatmul.mubr.msk.bf16.vlgmr.msra.gmra.mrb[48].mxu0 %vm1150_vm3, %v2600_v11  ;;  %v2932_v63 = vmul.f32 %v9051_v55, %v9819_v23 }
 0x42e   : > { %8042 = vmatpush3.bf16.msra.mxu0 %v2718_v46  ;;  %8043 = vmatprep.mubr.msk.bf16.mxu0 %vm9238_vm2, %v9237_v13 }
 0x42f   : > { %8053 = vmatprep.subr.bf16.mxu0 %v9237_v13  ;;  %v2933_v59 = vpack.c.bf16 %v2932_v63, %v2932_v63 }
 0x435   : > { %8044 = vmatmul.mubr.msk.bf16.vlgmr.msra.gmra.mrb[52].mxu0 %vm1150_vm3, %v2711_v44 }
 0x436   : > { %8054 = vmatpush3.bf16.msra.mxu0 %v2829_v53  ;;  %8055 = vmatprep.mubr.msk.bf16.mxu0 %vm9238_vm2, %v9237_v13 }
 0x437   : > { %8065 = vmatprep.subr.bf16.mxu0 %v9237_v13 }
 0x43d   : > { %8056 = vmatmul.mubr.msk.bf16.vlgmr.msra.gmra.mrb[56].mxu0 %vm1150_vm3, %v2822_v18 }
 0x43e   : > { %8066 = vmatpush3.bf16.msra.mxu0 %v2940_v19  ;;  %8067 = vmatprep.mubr.msk.bf16.mxu0 %vm9238_vm2, %v9237_v13 }
 0x445   : > { %8068 = vmatmul.mubr.msk.bf16.vlgmr.msra.gmra.mrb[60].mxu0 %vm1150_vm3, %v2933_v59 }
 0x47b   : > { %v9926_v60 = vpop.f32.mrb[0].mxu0 }
 0x47c   : > { %v7889_v61 = vpop.f32.mrb[1].mxu0 }
 0x47d   : > { %v1256_v33 = vpop.f32.mrb[2].mxu0 }
 0x47e   : > { %v7890_v1 = vpop.f32.mrb[3].mxu0 }
 0x47f   : > { %v8942_v1 = vld [vmem:[%s9405_s21] sm:$0xff]  }
 0x480   : > { %8071 = vmatprep.subr.bf16.mxu1 %v8942_v1 }
 0x481   : > { %8072 = vmatpush3.bf16.msra.mxu1 %v8942_v1  ;;  %v9143_v1 = vld [vmem:[#allocation3 + $0x18] sm:$0xff] }
 0x483   : > { %v1364_v25 = vpop.f32.mrb[4].mxu0 }
 0x484   : > { %v7901_v32 = vpop.f32.mrb[5].mxu0 }
 0x485   : > { %v1367_v2 = vpop.f32.mrb[6].mxu0 }
 0x486   : > { %v7902_v31 = vpop.f32.mrb[7].mxu0 }
 0x48b   : > { %v1475_v4 = vpop.f32.mrb[8].mxu0 }
 0x48c   : > { %v7913_v5 = vpop.f32.mrb[9].mxu0 }
 0x48d   : > { %v1478_v6 = vpop.f32.mrb[10].mxu0 }
 0x48e   : > { %v7914_v38 = vpop.f32.mrb[11].mxu0 }
 0x493   : > { %v9928_v8 = vpop.f32.mrb[12].mxu0 }
 0x494   : > { %v7925_v40 = vpop.f32.mrb[13].mxu0 }
 0x495   : > { %v1589_v23 = vpop.f32.mrb[14].mxu0 }
 0x496   : > { %v7926_v36 = vpop.f32.mrb[15].mxu0 }
 0x49b   : > { %v9930_v9 = vpop.f32.mrb[16].mxu0 }
 0x49c   : > { %v7937_v17 = vpop.f32.mrb[17].mxu0 }
 0x49d   : > { %v1720_v47 = vpop.f32.mrb[18].mxu0 }
 0x49e   : > { %v7938_v14 = vpop.f32.mrb[19].mxu0 }
 0x4ac   : > { %v1828_v51 = vpop.f32.mrb[20].mxu0 }
 0x4ad   : > { %v7949_v49 = vpop.f32.mrb[21].mxu0 }
 0x4ae   : > { %v1831_v27 = vpop.f32.mrb[22].mxu0 }
 0x4af   : > { %v7950_v16 = vpop.f32.mrb[23].mxu0 }
 0x4b4   : > { %v1939_v52 = vpop.f32.mrb[24].mxu0 }
 0x4b5   : > { %v7961_v54 = vpop.f32.mrb[25].mxu0 }
 0x4b6   : > { %v1942_v21 = vpop.f32.mrb[26].mxu0 }
 0x4b7   : > { %v7962_v28 = vpop.f32.mrb[27].mxu0 }
 0x4bc   : > { %v2050_v48 = vpop.f32.mrb[28].mxu0 }
 0x4bd   : > { %v7973_v39 = vpop.f32.mrb[29].mxu0 }
 0x4be   : > { %v2053_v24 = vpop.f32.mrb[30].mxu0 }
 0x4bf   : > { %v7974_v29 = vpop.f32.mrb[31].mxu0 }
 0x4dc   : > { %v9932_v30 = vpop.f32.mrb[32].mxu0 }
 0x4dd   : > { %v7985_v20 = vpop.f32.mrb[33].mxu0 }
 0x4de   : > { %v2185_v45 = vpop.f32.mrb[34].mxu0 }
 0x4df   : > { %v7986_v34 = vpop.f32.mrb[35].mxu0 }
 0x4e8   : > { %v2293_v0 = vpop.f32.mrb[36].mxu0 }
 0x4e9   : > { %v8880_v35 = vpack.i.bf16 %v2293_v0, %v1364_v25  ;;  %v7997_v3 = vpop.f32.mrb[37].mxu0  ;;  %v8943_v25 = vld [vmem:[%s9405_s21 + $0x8] sm:$0xff]  }
 0x4ea   : > { %v2296_v37 = vpop.f32.mrb[38].mxu0  ;;  %8073 = vmatprep.subr.bf16.mxu1 %v8943_v25 }
 0x4eb   : > { %8881 = vrot.lane.b32.xlu0 %v8880_v35, %s9250_s14  ;;  %v7998_v26 = vpop.f32.mrb[39].mxu0  ;;  %8074 = vmatpush3.bf16.msra.mxu1 %v8943_v25 }
 0x4f0   : > { %v2404_v58 = vpop.f32.mrb[40].mxu0 }
 0x4f1   : > { %v8895_v7 = vpack.i.bf16 %v2404_v58, %v1475_v4  ;;  %v8009_v41 = vpop.f32.mrb[41].mxu0 }
 0x4f2   : > { %v2407_v57 = vpop.f32.mrb[42].mxu0 }
 0x4f3   : > { %v8010_v42 = vpop.f32.mrb[43].mxu0 }
 0x4f8   : > { %v2515_v10 = vpop.f32.mrb[44].mxu0 }
 0x4f9   : > { %v8905_v43 = vpack.i.bf16 %v2515_v10, %v9928_v8  ;;  %v8021_v11 = vpop.f32.mrb[45].mxu0 }
 0x4fa   : > { %v2518_v62 = vpop.f32.mrb[46].mxu0 }
 0x4fb   : > { %v8022_v46 = vpop.f32.mrb[47].mxu0 }
 0x500   : > { %v2643_v50 = vpop.f32.mrb[48].mxu0 }
 0x501   : > { %v8033_v12 = vpop.f32.mrb[49].mxu0 }
 0x502   : > { %v2646_v44 = vpop.f32.mrb[50].mxu0 }
 0x503   : > { %v8034_v15 = vpop.f32.mrb[51].mxu0 }
 0x508   : > { %v2754_v53 = vpop.f32.mrb[52].mxu0 }
 0x509   : > { %v8885_v56 = vpack.i.bf16 %v2754_v53, %v1828_v51  ;;  %v8045_v22 = vpop.f32.mrb[53].mxu0  ;;  %v9140_v53 = vld [vmem:[#allocation3] sm:$0xff] }
 0x50a   : > { %v2757_v18 = vpop.f32.mrb[54].mxu0 }
 0x50b   : > { %8886 = vrot.lane.b32.xlu0 %v8885_v56, %s9250_s14  ;;  %v8046_v55 = vpop.f32.mrb[55].mxu0 }
 0x50c   : > { %v9141_v55 = vld [vmem:[#allocation3 + $0x8] sm:$0xff] }
 0x510   : > { %v2865_v19 = vpop.f32.mrb[56].mxu0 }
 0x511   : > { %v8890_v63 = vpack.i.bf16 %v2865_v19, %v1939_v52  ;;  %v8057_v59 = vpop.f32.mrb[57].mxu0 }
 0x512   : > { %v2868_v61 = vpop.f32.mrb[58].mxu0 }
 0x513   : > { %8891 = vrot.lane.b32.xlu0 %v8890_v63, %s9251_s24  ;;  %v8058_v33 = vpop.f32.mrb[59].mxu0  ;;  %v9142_v63 = vld [vmem:[#allocation3 + $0x10] sm:$0xff] }
 0x517   : > { %8896 = vrot.lane.b32.xlu0 %v8895_v7, %s9251_s24 }
 0x518   : > { %v2976_v32 = vpop.f32.mrb[60].mxu0 }
 0x519   : > { %v8900_v2 = vpack.i.bf16 %v2976_v32, %v2050_v48  ;;  %v8069_v31 = vpop.f32.mrb[61].mxu0 }
 0x51a   : > { %v2979_v4 = vpop.f32.mrb[62].mxu0  ;;  %v8945_v31 = vld [vmem:[%s9423_s5 + $0x8] sm:$0xff]  }
 0x51b   : > { %8901 = vrot.lane.b32.xlu1 %v8900_v2, %s11611_s30  ;;  %v8070_v5 = vpop.f32.mrb[63].mxu0  ;;  %v8944_v2 = vld [vmem:[%s9423_s5] sm:$0xff]   ;;  %s11660_s5 = sld [smem:[#allocation25_spill]] }
 0x51c   : > { %v8946_v4 = vld [vmem:[%s11650_s29] sm:$0xff]   ;;  %8087 = vmatprep.subr.bf16.mxu1 %v8944_v2  ;;  %v8947_v5 = vld [vmem:[%s11650_s29 + $0x8] sm:$0xff]  }
 0x51f   : > { %8906 = vrot.lane.b32.xlu1 %v8905_v43, %s11611_s30  ;;  %v7335_v43 = vld [vmem:[%s11649_s23] ss:$0 sm:$0xff] }
 0x521   : > { %s11661_s12 = scalar_lea.vmem %s11660_s5, %s9458_s18 }
 0x55d   : > { %v8882_v6 = vpop.permute.xlu0 %8881 }
 0x55e   : > { %v8884_v14 = vunpack.i.h.bf16 %v8882_v6  ;;  %v8883_v51 = vunpack.i.l.bf16 %v8882_v6  ;;  %v8948_v6 = vld [vmem:[%s11650_s29 + $0x10] sm:$0xff]  }
 0x560   : > { %v2533_v0 = vsel %vm1150_vm3, %v9932_v30, %v8884_v14 }
 0x57d   : > { %v8887_v38 = vpop.permute.xlu0 %8886 }
 0x57e   : > { %v8889_v40 = vunpack.i.h.bf16 %v8887_v38  ;;  %v8888_v23 = vunpack.i.l.bf16 %v8887_v38  ;;  %v8949_v38 = vld [vmem:[%s11650_s29 + $0x18] sm:$0xff]  }
 0x580   : > { %v2994_v27 = vsel %vm1150_vm3, %v2643_v50, %v8889_v40  ;;  %v2068_v16 = vsel %vm1150_vm3, %v9930_v9, %v8888_v23  ;;  %v1604_v9 = vsel %vm1150_vm3, %v9926_v60, %v8883_v51  ;;  %v8951_v40 = vld [vmem:[%s11650_s29 + $0x28] sm:$0xff]   ;;  %v8952_v23 = vld [vmem:[%s11650_s29 + $0x30] sm:$0xff]  }
 0x585   : > { %v8892_v8 = vpop.permute.xlu0 %8891 }
 0x586   : > { %v8894_v36 = vunpack.i.h.bf16 %v8892_v8  ;;  %v8893_v17 = vunpack.i.l.bf16 %v8892_v8  ;;  %v8950_v8 = vld [vmem:[%s11650_s29 + $0x20] sm:$0xff]  }
 0x588   : > { %v2069_v21 = vsel %vm1605_vm5, %v2068_v16, %v8893_v17  ;;  %v2995_v28 = vsel %vm1605_vm5, %v2994_v27, %v8894_v36  ;;  %v8953_v36 = vld [vmem:[%s11650_s29 + $0x38] sm:$0xff]  }
 0x589   : > { %v8897_v47 = vpop.permute.xlu0 %8896 }
 0x58a   : > { %v8899_v48 = vunpack.i.h.bf16 %v8897_v47  ;;  %v8898_v39 = vunpack.i.l.bf16 %v8897_v47 }
 0x58c   : > { %v1606_v37 = vsel %vm1605_vm5, %v1604_v9, %v8898_v39  ;;  %v2534_v26 = vsel %vm1605_vm5, %v2533_v0, %v8899_v48 }
 0x58d   : > { %v8902_v49 = vpop.permute.xlu1 %8901 }
 0x58e   : > { %v8904_v52 = vunpack.i.h.bf16 %v8902_v49  ;;  %v8903_v54 = vunpack.i.l.bf16 %v8902_v49 }
 0x590   : > { %v2070_v24 = vsel %vm1607_vm6, %v2069_v21, %v8903_v54  ;;  %v2996_v29 = vsel %vm1607_vm6, %v2995_v28, %v8904_v52 }
 0x591   : > { %v2071_v20 = vpack.c.bf16 %v2070_v24, %v2070_v24  ;;  %v2997_v45 = vpack.c.bf16 %v2996_v29, %v2996_v29  ;;  %v8907_v34 = vpop.permute.xlu1 %8906 }
 0x592   : > { %v8909_v35 = vunpack.i.h.bf16 %v8907_v34  ;;  %v8908_v3 = vunpack.i.l.bf16 %v8907_v34 }
 0x593   : > { %v2073_v58 = vrot.slane %v2071_v20, 4  ;;  %v2999_v7 = vrot.slane %v2997_v45, 4 }
 0x594   : > { %v1608_v41 = vsel %vm1607_vm6, %v1606_v37, %v8908_v3  ;;  %v2535_v57 = vsel %vm1607_vm6, %v2534_v26, %v8909_v35  ;;  %v8954_v35 = vld [vmem:[%s9414_s0] sm:$0xff]   ;;  %v8955_v3 = vld [vmem:[%s9414_s0 + $0x8] sm:$0xff]   ;;  %s11658_s0 = scalar_lea.vmem %s11595_s13, %s9390_s28 }
 0x595   : > { %2076 = vst.msk [vmem:[#allocation2] sm:$0xf0] %vm2075_vm7, %v2073_v58  ;;  %3001 = vst.msk [vmem:[#allocation2 + $0x8] sm:$0xf0] %vm2075_vm7, %v2999_v7  ;;  %v1609_v30 = vpack.c.bf16 %v1608_v41, %v1608_v41  ;;  %v2536_v60 = vpack.c.bf16 %v2535_v57, %v2535_v57  ;;  %8079 = vmatprep.subr.bf16.mxu0 %v8954_v35  ;;  %v10036_v37 = vld [vmem:[%s11651_s10] ss:$0 sm:$0xff]  ;;  %s11653_s10 = scalar_lea.vmem %s11589_s7, %s9390_s28 }
 0x596   : > { %8080 = vmatpush3.bf16.msra.mxu0 %v8954_v35 }
 0x597   : > { %1611 = vst.msk [vmem:[#allocation2] sm:$0xf] %vm1610_vm8, %v1609_v30  ;;  %2537 = vst.msk [vmem:[#allocation2 + $0x8] sm:$0xf] %vm1610_vm8, %v2536_v60  ;;  %8081 = vmatprep.subr.bf16.mxu0 %v8955_v3 }
 0x59a   : > { %8082 = vmatpush3.bf16.msra.mxu0 %v8955_v3 }
 0x59b   : > { %8155 = vmatprep.subr.bf16.mxu0 %v9237_v13 }
 0x59e   : > { %v3002_v42 = vld [vmem:[#allocation2] sm:$0xff]  ;;  %v3003_v10 = vld [vmem:[#allocation2 + $0x8] sm:$0xff] }
 0x59f   : > { %8075 = vmatprep.mubr.msk.bf16.mxu1 %vm1090_vm1, %v3002_v42 }
 0x5a0   : > { %8076 = vmatmul.mubr.msk.bf16.vlgmr.msra.gmra.mrb[68].mxu1 %vm1090_vm1, %v3003_v10 }
 0x5a1   : > { %8091 = vmatprep.mubr.msk.bf16.mxu1 %vm1090_vm1, %v8946_v4  ;;  %8088 = vmatpush3.bf16.msra.mxu1 %v8944_v2 }
 0x5a2   : > { %8089 = vmatprep.subr.bf16.mxu1 %v8945_v31 }
 0x5a5   : > { %8090 = vmatpush3.bf16.msra.mxu1 %v8945_v31 }
 0x5a6   : > { %8195 = vmatprep.subr.bf16.mxu1 %v9237_v13 }
 0x5a8   : > { %8092 = vmatmul.mubr.msk.bf16.vlgmr.msra.gmra.mrb[72].mxu1 %vm1090_vm1, %v8947_v5 }
 0x5a9   : > { %8095 = vmatprep.mubr.msk.bf16.mxu1 %vm1090_vm1, %v8948_v6 }
 0x5b0   : > { %8096 = vmatmul.mubr.msk.bf16.gmra.mrb[76].mxu1 %vm1090_vm1, %v8949_v38 }
 0x5b1   : > { %8099 = vmatprep.mubr.msk.bf16.mxu1 %vm1090_vm1, %v8950_v8 }
 0x5b8   : > { %8100 = vmatmul.mubr.msk.bf16.gmra.mrb[80].mxu1 %vm1090_vm1, %v8951_v40 }
 0x5b9   : > { %8103 = vmatprep.mubr.msk.bf16.mxu1 %vm1090_vm1, %v8952_v23 }
 0x5c0   : > { %8104 = vmatmul.mubr.msk.bf16.gmra.mrb[84].mxu1 %vm1090_vm1, %v8953_v36 }
 0x673   : > { %v8077_v11 = vpop.f32.mrb[68].mxu1 }
 0x674   : > { %v3067_v62 = vpop.f32.mrb[69].mxu1  ;;  %v3076_v46 = vadd.f32 %v8077_v11, %v7335_v43 }
 0x675   : > { %v3068_v50 = vadd.f32 %v7335_v43, %v3067_v62  ;;  %v8078_v12 = vpop.f32.mrb[70].mxu1 }
 0x676   : > { %v3070_v44 = vpop.f32.mrb[71].mxu1  ;;  %v3079_v22 = vadd.f32 %v8078_v12, %v7335_v43  ;;  %v3084_v59 = vadd.f32 %v9142_v63, %v3076_v46 }
 0x677   : > { %v3071_v15 = vadd.f32 %v7335_v43, %v3070_v44  ;;  %v3082_v56 = vadd.f32 %v9140_v53, %v3068_v50 }
 0x678   : > { %v3093_v33 = vsel %vm1090_vm1, %v3084_v59, 0.0  ;;  %v3085_v25 = vadd.f32 %v9143_v1, %v3079_v22 }
 0x679   : > { %v3087_v18 = vsel %vm1090_vm1, %v3082_v56, 0.0  ;;  %v3083_v19 = vadd.f32 %v9141_v55, %v3071_v15 }
 0x67a   : > { %3088 = vadd.xlane.f32.xlu0 %v3087_v18  ;;  %v3096_v32 = vsel %vm1090_vm1, %v3085_v25, 0.0 }
 0x67b   : > { %v3090_v61 = vsel %vm1090_vm1, %v3083_v19, 0.0  ;;  %v8093_v26 = vpop.f32.mrb[72].mxu1 }
 0x67c   : > { %3091 = vadd.xlane.f32.xlu1 %v3090_v61  ;;  %v3558_v58 = vadd.f32 %v8093_v26, %v10036_v37  ;;  %v3549_v7 = vpop.f32.mrb[73].mxu1 }
 0x67d   : > { %v3550_v41 = vadd.f32 %v10036_v37, %v3549_v7  ;;  %v8094_v57 = vpop.f32.mrb[74].mxu1 }
 0x67e   : > { %3094 = vadd.xlane.f32.xlu0 %v3093_v33  ;;  %v3561_v30 = vadd.f32 %v8094_v57, %v10036_v37  ;;  %v3552_v60 = vpop.f32.mrb[75].mxu1 }
 0x67f   : > { %v3553_v42 = vadd.f32 %v10036_v37, %v3552_v60 }
 0x680   : > { %v10042_v10 = vpack.c.bf16 %v3561_v30, %v3558_v58 }
 0x681   : > { %v10044_v43 = vpack.c.bf16 %v3553_v42, %v3550_v41 }
 0x682   : > { %3097 = vadd.xlane.f32.xlu0 %v3096_v32 }
 0x683   : > { %v8097_v11 = vpop.f32.mrb[76].mxu1 }
 0x684   : > { %v3574_v62 = vadd.f32 %v8097_v11, %v10036_v37  ;;  %v3565_v46 = vpop.f32.mrb[77].mxu1 }
 0x685   : > { %v3566_v50 = vadd.f32 %v10036_v37, %v3565_v46  ;;  %v8098_v12 = vpop.f32.mrb[78].mxu1 }
 0x686   : > { %v3577_v44 = vadd.f32 %v8098_v12, %v10036_v37  ;;  %v3568_v15 = vpop.f32.mrb[79].mxu1 }
 0x687   : > { %v3569_v53 = vadd.f32 %v10036_v37, %v3568_v15 }
 0x689   : > { %v10056_v22 = vpack.c.bf16 %v3569_v53, %v3566_v50 }
 0x68b   : > { %v8101_v18 = vpop.f32.mrb[80].mxu1 }
 0x68c   : > { %v3590_v55 = vadd.f32 %v8101_v18, %v10036_v37  ;;  %v3821_v18 = vsel %vm1150_vm3, %v10044_v43, 0 }
 0x707   : > { %v3089_v17 = vpop.xlane.xlu0 %3088 }
 0x708   : > { %v3100_v47 = vmul.f32 0.03125, %v3089_v17 }
 0x709   : > { %v3092_v14 = vpop.xlane.xlu1 %3091 }
 0x70a   : > { %v10008_v51 = vsub.f32 %v3082_v56, %v3100_v47  ;;  %v3101_v49 = vmul.f32 0.03125, %v3092_v14  ;;  %v10054_v56 = vpack.c.bf16 %v3577_v44, %v3574_v62 }
 0x70b   : > { %v3095_v27 = vpop.xlane.xlu0 %3094 }
 0x70c   : > { %v10010_v16 = vsub.f32 %v3083_v19, %v3101_v49  ;;  %v3102_v52 = vmul.f32 0.03125, %v3095_v27  ;;  %v3108_v54 = vmul.f32 %v10008_v51, %v10008_v51  ;;  %v3581_v19 = vpop.f32.mrb[81].mxu1  ;;  %v3140_v49 = vlaneseq }
 0x70d   : > { %v3582_v63 = vadd.f32 %v10036_v37, %v3581_v19  ;;  %v3830_v19 = vsel %vm1150_vm3, %v10054_v56, 0 }
 0x70e   : > { %v10014_v21 = vsub.f32 %v3084_v59, %v3102_v52  ;;  %v3112_v28 = vsel %vm1090_vm1, %v3108_v54, 0.0  ;;  %v3109_v48 = vmul.f32 %v10010_v16, %v10010_v16  ;;  %v8102_v59 = vpop.f32.mrb[82].mxu1 }
 0x70f   : > { %3113 = vadd.xlane.f32.xlu1 %v3112_v28  ;;  %v3098_v39 = vpop.xlane.xlu0 %3097  ;;  %v3593_v61 = vadd.f32 %v8102_v59, %v10036_v37  ;;  %v3584_v33 = vpop.f32.mrb[83].mxu1 }
 0x710   : > { %v3103_v24 = vmul.f32 0.03125, %v3098_v39  ;;  %v3115_v29 = vsel %vm1090_vm1, %v3109_v48, 0.0  ;;  %v3110_v20 = vmul.f32 %v10014_v21, %v10014_v21  ;;  %v3585_v1 = vadd.f32 %v10036_v37, %v3584_v33  ;;  %v8105_v2 = vpop.f32.mrb[84].mxu1 }
 0x711   : > { %3116 = vadd.xlane.f32.xlu0 %v3115_v29  ;;  %v3606_v31 = vadd.f32 %v8105_v2, %v10036_v37  ;;  %v3597_v4 = vpop.f32.mrb[85].mxu1  ;;  %v3141_v39 = vshrl.u32 %v3140_v49, 7 }
 0x712   : > { %v10022_v45 = vsub.f32 %v3085_v25, %v3103_v24  ;;  %v3118_v34 = vsel %vm1090_vm1, %v3110_v20, 0.0  ;;  %v10066_v25 = vpack.c.bf16 %v3593_v61, %v3590_v55  ;;  %v10068_v32 = vpack.c.bf16 %v3585_v1, %v3582_v63  ;;  %v8106_v6 = vpop.f32.mrb[86].mxu1 }
 0x713   : > { %3119 = vadd.xlane.f32.xlu1 %v3118_v34  ;;  %v3598_v5 = vadd.f32 %v10036_v37, %v3597_v4  ;;  %v3609_v38 = vadd.f32 %v8106_v6, %v10036_v37  ;;  %v3600_v8 = vpop.f32.mrb[87].mxu1  ;;  %v10087_v34 = vsub.s32 0, %v3141_v39  ;;  %v10095_v3 = vsub.s32 1, %v3141_v39  ;;  %v8956_v6 = vld [vmem:[%s11650_s29 + $0x40] sm:$0xff]  }
 0x714   : > { %v3111_v0 = vmul.f32 %v10022_v45, %v10022_v45  ;;  %v3601_v40 = vadd.f32 %v10036_v37, %v3600_v8  ;;  %v3827_v55 = vsel %vm1150_vm3, %v10056_v22, 0  ;;  %v3833_v63 = vsel %vm1150_vm3, %v10068_v32, 0  ;;  %v8958_v8 = vld [vmem:[%s11650_s29 + $0x50] sm:$0xff]   ;;  %8107 = vmatprep.mubr.msk.bf16.mxu1 %vm1090_vm1, %v8956_v6 }
 0x715   : > { %v10078_v23 = vpack.c.bf16 %v3609_v38, %v3606_v31  ;;  %v3836_v59 = vsel %vm1150_vm3, %v10066_v25, 0  ;;  %v8957_v38 = vld [vmem:[%s11650_s29 + $0x48] sm:$0xff]  }
 0x716   : > { %v3121_v9 = vsel %vm1090_vm1, %v3111_v0, 0.0  ;;  %v10080_v36 = vpack.c.bf16 %v3601_v40, %v3598_v5  ;;  %v3086_v0 = vld [vmem:[%s11652_s6] sm:$0x3]  ;;  %8108 = vmatmul.mubr.msk.bf16.gmra.mrb[88].mxu1 %vm1090_vm1, %v8957_v38  ;;  %s11659_s6 = scalar_lea.vmem %s11597_s15, %s9390_s28 }
 0x717   : > { %3122 = vadd.xlane.f32.xlu0 %v3121_v9  ;;  %v3143_v35 = vrot.slane %v3086_v0, %v10087_v34  ;;  %v3151_v30 = vrot.slane %v3086_v0, %v10095_v3  ;;  %v3842_v2 = vsel %vm1150_vm3, %v10078_v23, 0  ;;  %8111 = vmatprep.mubr.msk.bf16.mxu1 %vm1090_vm1, %v8958_v8 }
 0x718   : > { %v3839_v61 = vsel %vm1150_vm3, %v10080_v36, 0 }
 0x724   : > { %3971 = vrot.lane.b32.xlu1 %v10044_v43, %s9239_s1 }
 0x728   : > { %3975 = vrot.lane.b32.xlu1 %v10056_v22, %s9239_s1 }
 0x72c   : > { %3977 = vrot.lane.b32.xlu1 %v10054_v56, %s9239_s1 }
 0x72d   : > { %3973 = vrot.lane.b32.xlu0 %v10042_v10, %s9239_s1 }
 0x730   : > { %3981 = vrot.lane.b32.xlu1 %v10066_v25, %s9239_s1 }
 0x731   : > { %3979 = vrot.lane.b32.xlu0 %v10068_v32, %s9239_s1 }
 0x734   : > { %3985 = vrot.lane.b32.xlu1 %v10078_v23, %s9239_s1 }
 0x735   : > { %3983 = vrot.lane.b32.xlu0 %v10080_v36, %s9239_s1 }
 0x79c   : > { %v3114_v17 = vpop.xlane.xlu1 %3113 }
 0x79d   : > { %v3124_v47 = vmul.f32 0.03125, %v3114_v17 }
 0x79e   : > { %v3117_v14 = vpop.xlane.xlu0 %3116 }
 0x79f   : > { %v3128_v27 = vadd.f32 1e-05, %v3124_v47  ;;  %v3125_v52 = vmul.f32 0.03125, %v3117_v14  ;;  %v8959_v14 = vld [vmem:[%s11650_s29 + $0x58] sm:$0xff]  }
 0x7a0   : > { %v3120_v54 = vpop.xlane.xlu1 %3119  ;;  %8112 = vmatmul.mubr.msk.bf16.gmra.mrb[92].mxu1 %vm1090_vm1, %v8959_v14 }
 0x7a1   : > { %9052 = vrsqrt.f32 %v3128_v27  ;;  %v3129_v28 = vadd.f32 1e-05, %v3125_v52  ;;  %v3126_v48 = vmul.f32 0.03125, %v3120_v54  ;;  %v8960_v27 = vld [vmem:[%s11650_s29 + $0x60] sm:$0xff]   ;;  %v8961_v54 = vld [vmem:[%s11650_s29 + $0x68] sm:$0xff]  }
 0x7a2   : > { %8115 = vmatprep.mubr.msk.bf16.mxu1 %vm1090_vm1, %v8960_v27 }
 0x7a3   : > { %9054 = vrsqrt.f32 %v3129_v28  ;;  %v3130_v24 = vadd.f32 1e-05, %v3126_v48  ;;  %v8962_v48 = vld [vmem:[%s11650_s29 + $0x70] sm:$0xff]  }
 0x7a4   : > { %v3123_v29 = vpop.xlane.xlu0 %3122  ;;  %v3972_v33 = vpop.permute.xlu1 %3971 }
 0x7a5   : > { %9056 = vrsqrt.f32 %v3130_v24  ;;  %v3127_v20 = vmul.f32 0.03125, %v3123_v29  ;;  %v3991_v1 = vsel %vm1150_vm3, %v3972_v33, 0  ;;  %v8963_v24 = vld [vmem:[%s11650_s29 + $0x78] sm:$0xff]  }
 0x7a6   : > { %8196 = vmatpush3.bf16.xpose.msra.mxu1 %v3991_v1 }
 0x7a7   : > { %v3131_v9 = vadd.f32 1e-05, %v3127_v20  ;;  %8197 = vmatprep.subr.bf16.mxu1 %v9237_v13  ;;  %v8964_v20 = vld [vmem:[%s11650_s29 + $0x80] sm:$0xff]  }
 0x7a8   : > { %v3974_v31 = vpop.permute.xlu0 %3973  ;;  %v3976_v5 = vpop.permute.xlu1 %3975  ;;  %8116 = vmatmul.mubr.msk.bf16.gmra.mrb[96].mxu1 %vm1090_vm1, %v8961_v54 }
 0x7a9   : > { %9058 = vrsqrt.f32 %v3131_v9  ;;  %v3994_v4 = vsel %vm1150_vm3, %v3974_v31, 0  ;;  %v3997_v40 = vsel %vm1150_vm3, %v3976_v5, 0  ;;  %8119 = vmatprep.mubr.msk.bf16.mxu1 %vm1090_vm1, %v8962_v48  ;;  %v8965_v9 = vld [vmem:[%s11650_s29 + $0x88] sm:$0xff]  }
 0x7ab   : > { %v9053_v26 = vpop.eup %9052 }
 0x7ac   : > { %v3136_v58 = vmul.f32 %v9053_v26, %v10008_v51  ;;  %v3978_v17 = vpop.permute.xlu1 %3977  ;;  %v3980_v52 = vpop.permute.xlu0 %3979  ;;  %v8966_v26 = vld [vmem:[%s11650_s29 + $0x90] sm:$0xff]  }
 0x7ad   : > { %v9055_v7 = vpop.eup %9054  ;;  %v4000_v47 = vsel %vm1150_vm3, %v3978_v17, 0  ;;  %v4003_v28 = vsel %vm1150_vm3, %v3980_v52, 0 }
 0x7ae   : > { %v3137_v41 = vmul.f32 %v9055_v7, %v10010_v16  ;;  %v3144_v57 = vmul.f32 %v3143_v35, %v3136_v58  ;;  %8198 = vmatpush3.bf16.xpose.msra.mxu1 %v3994_v4  ;;  %v8967_v7 = vld [vmem:[%s11650_s29 + $0x98] sm:$0xff]  }
 0x7af   : > { %v9057_v60 = vpop.eup %9056  ;;  %8199 = vmatprep.subr.bf16.mxu1 %v9237_v13 }
 0x7b0   : > { %v3138_v42 = vmul.f32 %v9057_v60, %v10014_v21  ;;  %v3145_v11 = vmul.f32 %v3143_v35, %v3137_v41  ;;  %v10101_v62 = vadd.f32 %v3151_v30, %v3144_v57  ;;  %v3982_v39 = vpop.permute.xlu1 %3981  ;;  %8120 = vmatmul.mubr.msk.bf16.gmra.mrb[100].mxu1 %vm1090_vm1, %v8963_v24  ;;  %v3984_v0 = vpop.permute.xlu0 %3983  ;;  %v8968_v57 = vld [vmem:[%s11650_s29 + $0xa0] sm:$0xff]   ;;  %v8970_v60 = vld [vmem:[%s11650_s29 + $0xb0] sm:$0xff]  }
 0x7b1   : > { %v4006_v29 = vsel %vm1150_vm3, %v3982_v39, 0  ;;  %8123 = vmatprep.mubr.msk.bf16.mxu1 %vm1090_vm1, %v8964_v20 }
 0x7b2   : > { %v10103_v46 = vadd.f32 %v3151_v30, %v3145_v11  ;;  %v3146_v12 = vmul.f32 %v3143_v35, %v3138_v42  ;;  %v8971_v42 = vld [vmem:[%s11650_s29 + $0xb8] sm:$0xff]   ;;  %v8972_v11 = vld [vmem:[%s11650_s29 + $0xc0] sm:$0xff]  }
 0x7b3   : > { %v9059_v50 = vpop.eup %9058 }
 0x7b4   : > { %v3139_v44 = vmul.f32 %v9059_v50, %v10022_v45  ;;  %v3156_v51 = vpack.c.bf16 %v10103_v46, %v10101_v62  ;;  %v10109_v16 = vadd.f32 %v3151_v30, %v3146_v12  ;;  %v3824_v45 = vsel %vm1150_vm3, %v10042_v10, 0  ;;  %v3986_v58 = vpop.permute.xlu1 %3985  ;;  %v8973_v50 = vld [vmem:[%s11650_s29 + $0xc8] sm:$0xff]   ;;  %v8974_v12 = vld [vmem:[%s11650_s29 + $0xd0] sm:$0xff]  }
 0x7b5   : > { %v4012_v41 = vsel %vm1150_vm3, %v3986_v58, 0 }
 0x7b6   : > { %v3147_v15 = vmul.f32 %v3143_v35, %v3139_v44  ;;  %8083 = vmatprep.mubr.msk.bf16.mxu0 %vm1090_vm1, %v3156_v51  ;;  %8200 = vmatpush3.bf16.xpose.msra.mxu1 %v3997_v40  ;;  %v4009_v35 = vsel %vm1150_vm3, %v3984_v0, 0  ;;  %v8975_v44 = vld [vmem:[%s11650_s29 + $0xd8] sm:$0xff]   ;;  %v8976_v51 = vld [vmem:[%s11650_s29 + $0xe0] sm:$0xff]  }
 0x7b7   : > { %8201 = vmatprep.subr.bf16.mxu1 %v9237_v13 }
 0x7b8   : > { %v10111_v53 = vadd.f32 %v3151_v30, %v3147_v15  ;;  %8124 = vmatmul.mubr.msk.bf16.gmra.mrb[104].mxu1 %vm1090_vm1, %v8965_v9  ;;  %v8969_v30 = vld [vmem:[%s11650_s29 + $0xa8] sm:$0xff]  }
 0x7b9   : > { %8127 = vmatprep.mubr.msk.bf16.mxu1 %vm1090_vm1, %v8966_v26  ;;  %v8977_v15 = vld [vmem:[%s11650_s29 + $0xe8] sm:$0xff]  }
 0x7ba   : > { %v3157_v21 = vpack.c.bf16 %v10111_v53, %v10109_v16 }
 0x7bc   : > { %8084 = vmatmul.mubr.msk.bf16.vlgmr.msra.gmra.mrb[64].mxu0 %vm1090_vm1, %v3157_v21  ;;  %v8978_v21 = vld [vmem:[%s11650_s29 + $0xf0] sm:$0xff]  }
 0x7bd   : > { %8156 = vmatpush3.bf16.xpose.msra.mxu0 %v3821_v18  ;;  %8171 = vmatprep.mubr.msk.bf16.mxu0 %vm9238_vm2, %v9237_v13  ;;  %v8979_v18 = vld [vmem:[%s11650_s29 + $0xf8] sm:$0xff]  }
 0x7be   : > { %8157 = vmatprep.subr.bf16.mxu0 %v9237_v13  ;;  %8202 = vmatpush3.bf16.xpose.msra.mxu1 %v4000_v47 }
 0x7bf   : > { %8203 = vmatprep.subr.bf16.mxu1 %v9237_v13 }
 0x7c0   : > { %8128 = vmatmul.mubr.msk.bf16.gmra.mrb[108].mxu1 %vm1090_vm1, %v8967_v7 }
 0x7c1   : > { %8131 = vmatprep.mubr.msk.bf16.mxu1 %vm1090_vm1, %v8968_v57 }
 0x7c5   : > { %8158 = vmatpush3.bf16.xpose.msra.mxu0 %v3824_v45  ;;  %v7340_v45 = vld [vmem:[%s11653_s10] ss:$0 sm:$0xff] }
 0x7c6   : > { %8159 = vmatprep.subr.bf16.mxu0 %v9237_v13  ;;  %8204 = vmatpush3.bf16.xpose.msra.mxu1 %v4003_v28 }
 0x7c7   : > { %8205 = vmatprep.subr.bf16.mxu1 %v9237_v13 }
 0x7c8   : > { %8132 = vmatmul.mubr.msk.bf16.gmra.mrb[112].mxu1 %vm1090_vm1, %v8969_v30 }
 0x7c9   : > { %8135 = vmatprep.mubr.msk.bf16.mxu1 %vm1090_vm1, %v8970_v60 }
 0x7cd   : > { %8160 = vmatpush3.bf16.xpose.msra.mxu0 %v3827_v55 }
 0x7ce   : > { %8161 = vmatprep.subr.bf16.mxu0 %v9237_v13  ;;  %8206 = vmatpush3.bf16.xpose.msra.mxu1 %v4006_v29 }
 0x7cf   : > { %8207 = vmatprep.subr.bf16.mxu1 %v9237_v13 }
 0x7d0   : > { %8136 = vmatmul.mubr.msk.bf16.gmra.mrb[116].mxu1 %vm1090_vm1, %v8971_v42 }
 0x7d1   : > { %8139 = vmatprep.mubr.msk.bf16.mxu1 %vm1090_vm1, %v8972_v11 }
 0x7d5   : > { %8162 = vmatpush3.bf16.xpose.msra.mxu0 %v3830_v19 }
 0x7d6   : > { %8163 = vmatprep.subr.bf16.mxu0 %v9237_v13  ;;  %8208 = vmatpush3.bf16.xpose.msra.mxu1 %v4009_v35 }
 0x7d7   : > { %8209 = vmatprep.subr.bf16.mxu1 %v9237_v13 }
 0x7d8   : > { %8140 = vmatmul.mubr.msk.bf16.gmra.mrb[120].mxu1 %vm1090_vm1, %v8973_v50 }
 0x7d9   : > { %8143 = vmatprep.mubr.msk.bf16.mxu1 %vm1090_vm1, %v8974_v12 }
 0x7dd   : > { %8164 = vmatpush3.bf16.xpose.msra.mxu0 %v3833_v63 }
 0x7de   : > { %8165 = vmatprep.subr.bf16.mxu0 %v9237_v13  ;;  %8210 = vmatpush3.bf16.xpose.msra.mxu1 %v4012_v41 }
 0x7df   : > { %8255 = vmatprep.subr.bf16.mxu1 %v9237_v13 }
 0x7e0   : > { %8144 = vmatmul.mubr.msk.bf16.gmra.mrb[124].mxu1 %vm1090_vm1, %v8975_v44 }
 0x7e1   : > { %8147 = vmatprep.mubr.msk.bf16.mxu1 %vm1090_vm1, %v8976_v51 }
 0x7e5   : > { %8166 = vmatpush3.bf16.xpose.msra.mxu0 %v3836_v59 }
 0x7e6   : > { %8167 = vmatprep.subr.bf16.mxu0 %v9237_v13 }
 0x7e8   : > { %8148 = vmatmul.mubr.msk.bf16.gmra.mrb[128].mxu1 %vm1090_vm1, %v8977_v15 }
 0x7e9   : > { %8151 = vmatprep.mubr.msk.bf16.mxu1 %vm1090_vm1, %v8978_v21  ;;  %v8109_v4 = vpop.f32.mrb[88].mxu1 }
 0x7ea   : > { %v3622_v5 = vadd.f32 %v8109_v4, %v10036_v37  ;;  %v3613_v6 = vpop.f32.mrb[89].mxu1 }
 0x7eb   : > { %v3614_v38 = vadd.f32 %v10036_v37, %v3613_v6  ;;  %v8110_v8 = vpop.f32.mrb[90].mxu1 }
 0x7ec   : > { %v3625_v40 = vadd.f32 %v8110_v8, %v10036_v37  ;;  %v3616_v17 = vpop.f32.mrb[91].mxu1 }
 0x7ed   : > { %8168 = vmatpush3.bf16.xpose.msra.mxu0 %v3839_v61  ;;  %v3617_v47 = vadd.f32 %v10036_v37, %v3616_v17 }
 0x7ee   : > { %8169 = vmatprep.subr.bf16.mxu0 %v9237_v13  ;;  %v10279_v14 = vpack.c.bf16 %v3625_v40, %v3622_v5 }
 0x7ef   : > { %v10281_v27 = vpack.c.bf16 %v3617_v47, %v3614_v38 }
 0x7f0   : > { %8152 = vmatmul.mubr.msk.bf16.gmra.mrb[132].mxu1 %vm1090_vm1, %v8979_v18 }
 0x7f1   : > { %8211 = vmatprep.mubr.msk.bf16.mxu1 %vm9238_vm2, %v9237_v13 }
 0x7f5   : > { %8170 = vmatpush3.bf16.xpose.msra.mxu0 %v3842_v2 }
 0x7f6   : > { %8175 = vmatprep.subr.bf16.mxu0 %v9237_v13 }
 0x873   : > { %v8113_v52 = vpop.f32.mrb[92].mxu1 }
 0x874   : > { %v3629_v54 = vpop.f32.mrb[93].mxu1  ;;  %v3638_v28 = vadd.f32 %v8113_v52, %v10036_v37 }
 0x875   : > { %v3630_v48 = vadd.f32 %v10036_v37, %v3629_v54  ;;  %v8114_v39 = vpop.f32.mrb[94].mxu1 }
 0x876   : > { %v3641_v24 = vadd.f32 %v8114_v39, %v10036_v37  ;;  %v3632_v29 = vpop.f32.mrb[95].mxu1 }
 0x877   : > { %v3633_v20 = vadd.f32 %v10036_v37, %v3632_v29 }
 0x878   : > { %v10287_v0 = vpack.c.bf16 %v3641_v24, %v3638_v28 }
 0x879   : > { %v10289_v9 = vpack.c.bf16 %v3633_v20, %v3630_v48 }
 0x87b   : > { %v8117_v35 = vpop.f32.mrb[96].mxu1 }
 0x87c   : > { %v3645_v58 = vpop.f32.mrb[97].mxu1  ;;  %v3654_v7 = vadd.f32 %v8117_v35, %v10036_v37 }
 0x87d   : > { %v3646_v41 = vadd.f32 %v10036_v37, %v3645_v58  ;;  %v8118_v57 = vpop.f32.mrb[98].mxu1 }
 0x87e   : > { %v3657_v30 = vadd.f32 %v8118_v57, %v10036_v37  ;;  %v3648_v60 = vpop.f32.mrb[99].mxu1 }
 0x87f   : > { %v3649_v42 = vadd.f32 %v10036_v37, %v3648_v60 }
 0x880   : > { %v10298_v50 = vpack.c.bf16 %v3657_v30, %v3654_v7 }
 0x881   : > { %v10301_v51 = vpack.c.bf16 %v3649_v42, %v3646_v41 }
 0x883   : > { %v8121_v11 = vpop.f32.mrb[100].mxu1 }
 0x884   : > { %v3670_v12 = vadd.f32 %v8121_v11, %v10036_v37  ;;  %v3661_v44 = vpop.f32.mrb[101].mxu1 }
 0x885   : > { %v3662_v15 = vadd.f32 %v10036_v37, %v3661_v44  ;;  %v8122_v21 = vpop.f32.mrb[102].mxu1 }
 0x886   : > { %v3673_v18 = vadd.f32 %v8122_v21, %v10036_v37 }
 0x88f   : > { %v8085_v55 = vpop.f32.mrb[64].mxu0 }
 0x890   : > { %v10261_v19 = vadd.f32 %v8085_v55, %v7340_v45  ;;  %v3221_v63 = vpop.f32.mrb[65].mxu0 }
 0x891   : > { %v3222_v59 = vadd.f32 %v7340_v45, %v3221_v63  ;;  %v8086_v61 = vpop.f32.mrb[66].mxu0 }
 0x892   : > { %v10263_v33 = vadd.f32 %v8086_v61, %v7340_v45  ;;  %v3224_v1 = vpop.f32.mrb[67].mxu0 }
 0x893   : > { %v10265_v2 = vpack.c.bf16 %v3222_v59, %v3222_v59  ;;  %v10267_v31 = vadd.f32 %v7340_v45, %v3224_v1  ;;  %v3664_v45 = vpop.f32.mrb[103].mxu1  ;;  %v10306_v59 = vpack.c.bf16 %v3673_v18, %v3670_v12 }
 0x894   : > { %v3665_v55 = vadd.f32 %v10036_v37, %v3664_v45  ;;  %v8125_v63 = vpop.f32.mrb[104].mxu1 }
 0x895   : > { %3969 = vrot.lane.b32.xlu0 %v10265_v2, %s9239_s1  ;;  %8172 = vmatmul.mubr.msk.bf16.vlgmr.msra.gmra.mrb[68].mxu0 %vm1150_vm3, %v10265_v2  ;;  %v3686_v61 = vadd.f32 %v8125_v63, %v10036_v37  ;;  %v3677_v1 = vpop.f32.mrb[105].mxu1 }
 0x896   : > { %8191 = vmatprep.mubr.msk.bf16.mxu0 %vm9238_vm2, %v9237_v13  ;;  %v10309_v4 = vpack.c.bf16 %v3665_v55, %v3662_v15  ;;  %v3678_v5 = vadd.f32 %v10036_v37, %v3677_v1  ;;  %v8126_v6 = vpop.f32.mrb[106].mxu1 }
 0x897   : > { %v3689_v38 = vadd.f32 %v8126_v6, %v10036_v37  ;;  %v3680_v8 = vpop.f32.mrb[107].mxu1 }
 0x898   : > { %v3681_v40 = vadd.f32 %v10036_v37, %v3680_v8  ;;  %v8129_v17 = vpop.f32.mrb[108].mxu1 }
 0x899   : > { %v10314_v47 = vpack.c.bf16 %v3689_v38, %v3686_v61  ;;  %v3702_v52 = vadd.f32 %v8129_v17, %v10036_v37  ;;  %v3693_v54 = vpop.f32.mrb[109].mxu1 }
 0x89a   : > { %v10317_v28 = vpack.c.bf16 %v3681_v40, %v3678_v5  ;;  %v3694_v48 = vadd.f32 %v10036_v37, %v3693_v54  ;;  %v8130_v39 = vpop.f32.mrb[110].mxu1 }
 0x89b   : > { %v3705_v24 = vadd.f32 %v8130_v39, %v10036_v37  ;;  %v3696_v29 = vpop.f32.mrb[111].mxu1 }
 0x89c   : > { %v3697_v20 = vadd.f32 %v10036_v37, %v3696_v29  ;;  %v8133_v58 = vpop.f32.mrb[112].mxu1 }
 0x89d   : > { %v10322_v35 = vpack.c.bf16 %v3705_v24, %v3702_v52  ;;  %v3718_v7 = vadd.f32 %v8133_v58, %v10036_v37  ;;  %v3709_v41 = vpop.f32.mrb[113].mxu1 }
 0x89e   : > { %v3710_v57 = vadd.f32 %v10036_v37, %v3709_v41  ;;  %v8134_v30 = vpop.f32.mrb[114].mxu1 }
 0x89f   : > { %v3721_v60 = vadd.f32 %v8134_v30, %v10036_v37  ;;  %v3712_v42 = vpop.f32.mrb[115].mxu1 }
 0x8a0   : > { %v3713_v11 = vadd.f32 %v10036_v37, %v3712_v42 }
 0x8a1   : > { %v10330_v12 = vpack.c.bf16 %v3721_v60, %v3718_v7 }
 0x8a2   : > { %v10332_v44 = vpack.c.bf16 %v3713_v11, %v3710_v57 }
 0x8a3   : > { %v8137_v15 = vpop.f32.mrb[116].mxu1 }
 0x8a4   : > { %v3734_v21 = vadd.f32 %v8137_v15, %v10036_v37  ;;  %v3725_v18 = vpop.f32.mrb[117].mxu1 }
 0x8a5   : > { %v3726_v45 = vadd.f32 %v10036_v37, %v3725_v18  ;;  %v8138_v55 = vpop.f32.mrb[118].mxu1 }
 0x8a6   : > { %v3737_v63 = vadd.f32 %v8138_v55, %v10036_v37  ;;  %v3728_v61 = vpop.f32.mrb[119].mxu1 }
 0x8a7   : > { %v3729_v1 = vadd.f32 %v10036_v37, %v3728_v61 }
 0x8a8   : > { %v10338_v5 = vpack.c.bf16 %v3737_v63, %v3734_v21 }
 0x8a9   : > { %v10340_v6 = vpack.c.bf16 %v3729_v1, %v3726_v45 }
 0x8ab   : > { %v8141_v38 = vpop.f32.mrb[120].mxu1 }
 0x8ac   : > { %v3750_v8 = vadd.f32 %v8141_v38, %v10036_v37  ;;  %v3741_v40 = vpop.f32.mrb[121].mxu1 }
 0x8ad   : > { %v3742_v17 = vadd.f32 %v10036_v37, %v3741_v40  ;;  %v8142_v52 = vpop.f32.mrb[122].mxu1 }
 0x8ae   : > { %v3753_v54 = vadd.f32 %v8142_v52, %v10036_v37 }
 0x8b0   : > { %v10346_v24 = vpack.c.bf16 %v3753_v54, %v3750_v8 }
 0x907   : > { %v3970_v26 = vpop.permute.xlu0 %3969 }
 0x908   : > { %8212 = vmatmul.mubr.msk.bf16.vlgmr.msra.gmra.mrb[136].mxu1 %vm1150_vm3, %v3970_v26  ;;  %v10324_v26 = vpack.c.bf16 %v3697_v20, %v3694_v48  ;;  %v3744_v48 = vpop.f32.mrb[123].mxu1 }
 0x909   : > { %8271 = vmatprep.mubr.msk.bf16.mxu1 %vm9238_vm2, %v9237_v13  ;;  %v3745_v39 = vadd.f32 %v10036_v37, %v3744_v48  ;;  %v8145_v20 = vpop.f32.mrb[124].mxu1 }
 0x90a   : > { %v3766_v58 = vadd.f32 %v8145_v20, %v10036_v37  ;;  %v3757_v7 = vpop.f32.mrb[125].mxu1 }
 0x90b   : > { %v10348_v29 = vpack.c.bf16 %v3745_v39, %v3742_v17  ;;  %v3758_v41 = vadd.f32 %v10036_v37, %v3757_v7  ;;  %v8146_v57 = vpop.f32.mrb[126].mxu1 }
 0x90c   : > { %v3769_v30 = vadd.f32 %v8146_v57, %v10036_v37  ;;  %v3760_v60 = vpop.f32.mrb[127].mxu1 }
 0x90d   : > { %v3761_v42 = vadd.f32 %v10036_v37, %v3760_v60  ;;  %v8149_v21 = vpop.f32.mrb[128].mxu1  ;;  %v9253_v60 = vmov -1e+30  }
 0x90e   : > { %v10354_v11 = vpack.c.bf16 %v3769_v30, %v3766_v58  ;;  %v3782_v18 = vadd.f32 %v8149_v21, %v10036_v37  ;;  %v3773_v45 = vpop.f32.mrb[129].mxu1  ;;  %v3805_v30 = vand.u32 127, %v3140_v49 }
 0x90f   : > { %v10356_v15 = vpack.c.bf16 %v3761_v42, %v3758_v41  ;;  %v3774_v55 = vadd.f32 %v10036_v37, %v3773_v45  ;;  %v8150_v63 = vpop.f32.mrb[130].mxu1 }
 0x910   : > { %v3785_v61 = vadd.f32 %v8150_v63, %v10036_v37  ;;  %v3776_v1 = vpop.f32.mrb[131].mxu1  ;;  %vm3806_vm9 = vcmp.lt.s32.totalorder %v3805_v30, 16 }
 0x911   : > { %v3777_v38 = vadd.f32 %v10036_v37, %v3776_v1  ;;  %v8153_v17 = vpop.f32.mrb[132].mxu1  ;;  %v10375_v42 = vsel %vm3806_vm9, 0.0, %v9253_v60 }
 0x912   : > { %v10362_v8 = vpack.c.bf16 %v3785_v61, %v3782_v18  ;;  %v3798_v52 = vadd.f32 %v8153_v17, %v10036_v37  ;;  %v3789_v54 = vpop.f32.mrb[133].mxu1 }
 0x913   : > { %v10364_v40 = vpack.c.bf16 %v3777_v38, %v3774_v55  ;;  %v3790_v48 = vadd.f32 %v10036_v37, %v3789_v54  ;;  %v8154_v39 = vpop.f32.mrb[134].mxu1 }
 0x914   : > { %v3801_v20 = vadd.f32 %v8154_v39, %v10036_v37  ;;  %v3792_v58 = vpop.f32.mrb[135].mxu1 }
 0x915   : > { %v3793_v7 = vadd.f32 %v10036_v37, %v3792_v58 }
 0x916   : > { %v10370_v41 = vpack.c.bf16 %v3801_v20, %v3798_v52 }
 0x917   : > { %v10372_v57 = vpack.c.bf16 %v3793_v7, %v3790_v48 }
 0x968   : > { %v3878_v21 = vpop.f32.mrb[68].mxu0 }
 0x969   : > { %v3884_v18 = vmul.f32 0.35355338, %v3878_v21  ;;  %v8173_v45 = vpop.f32.mrb[69].mxu0 }
 0x96a   : > { %v3881_v55 = vpop.f32.mrb[70].mxu0 }
 0x96b   : > { %v3885_v63 = vadd.f32 %v3884_v18, %v10375_v42  ;;  %v8174_v61 = vpop.f32.mrb[71].mxu0 }
 0x96d   : > { %3886 = vmax.xlane.f32.xlu1 %v3885_v63 }
 0x97e   : > { %3906 = vrot.lane.b32.xlu1 %v10042_v10, %s9240_s3 }
 0x982   : > { %3910 = vrot.lane.b32.xlu1 %v10054_v56, %s9240_s3 }
 0x986   : > { %3914 = vrot.lane.b32.xlu1 %v10066_v25, %s9240_s3 }
 0x98a   : > { %3918 = vrot.lane.b32.xlu1 %v10078_v23, %s9240_s3 }
 0x9db   : > { %v4048_v37 = vpop.f32.mrb[136].mxu1 }
 0x9dc   : > { %v4054_v49 = vmul.f32 0.35355338, %v4048_v37  ;;  %v8213_v1 = vpop.f32.mrb[137].mxu1 }
 0x9dd   : > { %v4051_v38 = vpop.f32.mrb[138].mxu1 }
 0x9de   : > { %v4055_v17 = vadd.f32 %v4054_v49, %v10375_v42  ;;  %v8214_v52 = vpop.f32.mrb[139].mxu1 }
 0x9e0   : > { %4056 = vmax.xlane.f32.xlu0 %v4055_v17 }
 0x9f6   : > { %3904 = vrot.lane.b32.xlu0 %v10044_v43, %s9240_s3 }
 0x9fa   : > { %v3887_v54 = vpop.xlane.xlu1 %3886  ;;  %3908 = vrot.lane.b32.xlu0 %v10056_v22, %s9240_s3 }
 0x9fb   : > { %v3888_v48 = vsub.f32 %v3885_v63, %v3887_v54 }
 0x9fd   : > { %v3889_v39 = vmul.f32 1.442695, %v3888_v48 }
 0x9fe   : > { %3912 = vrot.lane.b32.xlu0 %v10068_v32, %s9240_s3  ;;  %v3907_v21 = vpop.permute.xlu1 %3906 }
 0x9ff   : > { %9060 = vpow2.f32 %v3889_v39 }
 0xa02   : > { %3916 = vrot.lane.b32.xlu0 %v10080_v36, %s9240_s3  ;;  %v3911_v55 = vpop.permute.xlu1 %3910 }
 0xa06   : > { %4066 = vrot.lane.b32.xlu0 %v10044_v43, %s9242_s27  ;;  %v3915_v61 = vpop.permute.xlu1 %3914 }
 0xa09   : > { %v9061_v20 = vpop.eup %9060 }
 0xa0a   : > { %3891 = vadd.xlane.f32.xlu1 %v9061_v20  ;;  %v3919_v49 = vpop.permute.xlu1 %3918 }
 0xa1b   : > { %4068 = vrot.lane.b32.xlu1 %v10042_v10, %s9242_s27 }
 0xa1f   : > { %4070 = vrot.lane.b32.xlu1 %v10056_v22, %s9242_s27 }
 0xa23   : > { %4072 = vrot.lane.b32.xlu1 %v10054_v56, %s9242_s27 }
 0xa27   : > { %4074 = vrot.lane.b32.xlu1 %v10068_v32, %s9242_s27 }
 0xa2b   : > { %4076 = vrot.lane.b32.xlu1 %v10066_v25, %s9242_s27 }
 0xa2f   : > { %4078 = vrot.lane.b32.xlu1 %v10080_v36, %s9242_s27 }
 0xa33   : > { %4080 = vrot.lane.b32.xlu1 %v10078_v23, %s9242_s27 }
 0xa37   : > { %4133 = vrot.lane.b32.xlu1 %v10044_v43, %s9244_s19 }
 0xa3b   : > { %4135 = vrot.lane.b32.xlu1 %v10042_v10, %s9244_s19 }
 0xa3f   : > { %4139 = vrot.lane.b32.xlu1 %v10054_v56, %s9244_s19 }
 0xa43   : > { %4141 = vrot.lane.b32.xlu1 %v10068_v32, %s9244_s19 }
 0xa47   : > { %4143 = vrot.lane.b32.xlu1 %v10066_v25, %s9244_s19 }
 0xa4b   : > { %4145 = vrot.lane.b32.xlu1 %v10080_v36, %s9244_s19 }
 0xa4f   : > { %4147 = vrot.lane.b32.xlu1 %v10078_v23, %s9244_s19 }
 0xa53   : > { %4131 = vrot.lane.b32.xlu1 %v10265_v2, %s9244_s19 }
 0xa57   : > { %4228 = vrot.lane.b32.xlu1 %v10044_v43, %s9241_s25 }
 0xa5b   : > { %4230 = vrot.lane.b32.xlu1 %v10042_v10, %s9241_s25 }
 0xa5f   : > { %4234 = vrot.lane.b32.xlu1 %v10054_v56, %s9241_s25 }
 0xa63   : > { %4242 = vrot.lane.b32.xlu1 %v10078_v23, %s9241_s25 }
 0xa6d   : > { %v4057_v58 = vpop.xlane.xlu0 %4056 }
 0xa6e   : > { %v4058_v7 = vsub.f32 %v4055_v17, %v4057_v58 }
 0xa70   : > { %v4059_v30 = vmul.f32 1.442695, %v4058_v7 }
 0xa71   : > { %v3905_v60 = vpop.permute.xlu0 %3904 }
 0xa72   : > { %9062 = vpow2.f32 %v4059_v30  ;;  %8176 = vmatpush3.bf16.msra.mxu0 %v3905_v60 }
 0xa73   : > { %8177 = vmatprep.subr.bf16.mxu0 %v9237_v13 }
 0xa75   : > { %v3909_v18 = vpop.permute.xlu0 %3908 }
 0xa76   : > { %8178 = vmatpush3.bf16.msra.mxu0 %v3907_v21 }
 0xa77   : > { %8179 = vmatprep.subr.bf16.mxu0 %v9237_v13 }
 0xa79   : > { %v3913_v63 = vpop.permute.xlu0 %3912 }
 0xa7a   : > { %8180 = vmatpush3.bf16.msra.mxu0 %v3909_v18 }
 0xa7b   : > { %8181 = vmatprep.subr.bf16.mxu0 %v9237_v13 }
 0xa7c   : > { %v10438_v45 = vpop.eup %9062 }
 0xa7d   : > { %4061 = vadd.xlane.f32.xlu0 %v10438_v45  ;;  %v3917_v37 = vpop.permute.xlu0 %3916 }
 0xa7e   : > { %8182 = vmatpush3.bf16.msra.mxu0 %v3911_v55 }
 0xa7f   : > { %8183 = vmatprep.subr.bf16.mxu0 %v9237_v13 }
 0xa81   : > { %v4067_v58 = vpop.permute.xlu0 %4066 }
 0xa82   : > { %8184 = vmatpush3.bf16.msra.mxu0 %v3913_v63 }
 0xa83   : > { %8185 = vmatprep.subr.bf16.mxu0 %v9237_v13 }
 0xa86   : > { %8186 = vmatpush3.bf16.msra.mxu0 %v3915_v61 }
 0xa87   : > { %8187 = vmatprep.subr.bf16.mxu0 %v9237_v13 }
 0xa8a   : > { %8188 = vmatpush3.bf16.msra.mxu0 %v3917_v37 }
 0xa8b   : > { %8189 = vmatprep.subr.bf16.mxu0 %v9237_v13 }
 0xa8e   : > { %8190 = vmatpush3.bf16.msra.mxu0 %v3919_v49 }
 0xa8f   : > { %8215 = vmatprep.subr.bf16.mxu0 %v9237_v13 }
 0xa93   : > { %4137 = vrot.lane.b32.xlu0 %v10056_v22, %s9244_s19 }
 0xa97   : > { %v3892_v1 = vpop.xlane.xlu1 %3891 }
 0xa98   : > { %9064 = vrcp.f32 %v3892_v1 }
 0xa9b   : > { %v4069_v38 = vpop.permute.xlu1 %4068 }
 0xa9f   : > { %v4071_v17 = vpop.permute.xlu1 %4070 }
 0xaa2   : > { %v9065_v52 = vpop.eup %9064 }
 0xaa3   : > { %v4073_v54 = vpop.permute.xlu1 %4072  ;;  %v10448_v48 = vmul.f32 %v9065_v52, %v9061_v20 }
 0xaa5   : > { %v3895_v39 = vpack.c.bf16 %v10448_v48, %v10448_v48 }
 0xaa7   : > { %v4075_v7 = vpop.permute.xlu1 %4074  ;;  %8192 = vmatmul.mubr.bf16.vlgmr.msra.gmra.mrb[72].mxu0 %v3895_v39 }
 0xaa8   : > { %8216 = vmatpush3.bf16.msra.mxu0 %v4067_v58  ;;  %8231 = vmatprep.mubr.msk.bf16.mxu0 %vm9238_vm2, %v9237_v13 }
 0xaa9   : > { %8217 = vmatprep.subr.bf16.mxu0 %v9237_v13 }
 0xaab   : > { %v4077_v30 = vpop.permute.xlu1 %4076 }
 0xaac   : > { %8218 = vmatpush3.bf16.msra.mxu0 %v4069_v38 }
 0xaad   : > { %8219 = vmatprep.subr.bf16.mxu0 %v9237_v13 }
 0xaaf   : > { %v4079_v60 = vpop.permute.xlu1 %4078 }
 0xab0   : > { %8220 = vmatpush3.bf16.msra.mxu0 %v4071_v17 }
 0xab1   : > { %8221 = vmatprep.subr.bf16.mxu0 %v9237_v13 }
 0xab3   : > { %v4081_v20 = vpop.permute.xlu1 %4080 }
 0xab4   : > { %8222 = vmatpush3.bf16.msra.mxu0 %v4073_v54 }
 0xab5   : > { %8223 = vmatprep.subr.bf16.mxu0 %v9237_v13 }
 0xab7   : > { %v4134_v21 = vpop.permute.xlu1 %4133 }
 0xab8   : > { %8224 = vmatpush3.bf16.msra.mxu0 %v4075_v7  ;;  %v4153_v7 = vsel %vm1150_vm3, %v4134_v21, 0 }
 0xab9   : > { %8225 = vmatprep.subr.bf16.mxu0 %v9237_v13 }
 0xabb   : > { %v4136_v18 = vpop.permute.xlu1 %4135 }
 0xabc   : > { %8226 = vmatpush3.bf16.msra.mxu0 %v4077_v30  ;;  %v4156_v30 = vsel %vm1150_vm3, %v4136_v18, 0 }
 0xabd   : > { %8227 = vmatprep.subr.bf16.mxu0 %v9237_v13 }
 0xabf   : > { %v4140_v55 = vpop.permute.xlu1 %4139 }
 0xac0   : > { %8228 = vmatpush3.bf16.msra.mxu0 %v4079_v60 }
 0xac1   : > { %8229 = vmatprep.subr.bf16.mxu0 %v9237_v13 }
 0xac3   : > { %v4142_v63 = vpop.permute.xlu1 %4141 }
 0xac4   : > { %8230 = vmatpush3.bf16.msra.mxu0 %v4081_v20  ;;  %v4162_v20 = vsel %vm1150_vm3, %v4140_v55, 0  ;;  %v4165_v21 = vsel %vm1150_vm3, %v4142_v63, 0 }
 0xac5   : > { %8235 = vmatprep.subr.bf16.mxu0 %v9237_v13 }
 0xac7   : > { %v4144_v61 = vpop.permute.xlu1 %4143 }
 0xac8   : > { %v4168_v18 = vsel %vm1150_vm3, %v4144_v61, 0 }
 0xacb   : > { %v4146_v37 = vpop.permute.xlu1 %4145 }
 0xacf   : > { %v4148_v49 = vpop.permute.xlu1 %4147 }
 0xad0   : > { %v4174_v55 = vsel %vm1150_vm3, %v4148_v49, 0 }
 0xad3   : > { %v4132_v1 = vpop.permute.xlu1 %4131 }
 0xad7   : > { %v4229_v38 = vpop.permute.xlu1 %4228 }
 0xad8   : > { %8256 = vmatpush3.bf16.msra.mxu1 %v4229_v38  ;;  %v4171_v38 = vsel %vm1150_vm3, %v4146_v37, 0 }
 0xad9   : > { %8257 = vmatprep.subr.bf16.mxu1 %v9237_v13 }
 0xadb   : > { %v4231_v17 = vpop.permute.xlu1 %4230 }
 0xadc   : > { %8258 = vmatpush3.bf16.msra.mxu1 %v4231_v17 }
 0xadd   : > { %8259 = vmatprep.subr.bf16.mxu1 %v9237_v13 }
 0xb0a   : > { %v4062_v52 = vpop.xlane.xlu0 %4061 }
 0xb0b   : > { %9066 = vrcp.f32 %v4062_v52 }
 0xb0e   : > { %v4138_v60 = vpop.permute.xlu0 %4137 }
 0xb15   : > { %v9067_v54 = vpop.eup %9066 }
 0xb16   : > { %v10465_v39 = vmul.f32 %v9067_v54, %v10438_v45  ;;  %v4159_v45 = vsel %vm1150_vm3, %v4138_v60, 0 }
 0xb18   : > { %v4065_v58 = vpack.c.bf16 %v10465_v39, %v10465_v39 }
 0xb1a   : > { %8232 = vmatmul.mubr.bf16.vlgmr.msra.gmra.mrb[76].mxu0 %v4065_v58 }
 0xb1b   : > { %8236 = vmatpush3.bf16.xpose.msra.mxu0 %v4153_v7  ;;  %8251 = vmatprep.mubr.msk.bf16.mxu0 %vm9238_vm2, %v9237_v13 }
 0xb1c   : > { %8237 = vmatprep.subr.bf16.mxu0 %v9237_v13 }
 0xb23   : > { %8238 = vmatpush3.bf16.xpose.msra.mxu0 %v4156_v30 }
 0xb24   : > { %8239 = vmatprep.subr.bf16.mxu0 %v9237_v13 }
 0xb2b   : > { %8240 = vmatpush3.bf16.xpose.msra.mxu0 %v4159_v45 }
 0xb2c   : > { %8241 = vmatprep.subr.bf16.mxu0 %v9237_v13 }
 0xb33   : > { %8242 = vmatpush3.bf16.xpose.msra.mxu0 %v4162_v20 }
 0xb34   : > { %8243 = vmatprep.subr.bf16.mxu0 %v9237_v13 }
 0xb3b   : > { %8244 = vmatpush3.bf16.xpose.msra.mxu0 %v4165_v21 }
 0xb3c   : > { %8245 = vmatprep.subr.bf16.mxu0 %v9237_v13 }
 0xb43   : > { %8246 = vmatpush3.bf16.xpose.msra.mxu0 %v4168_v18 }
 0xb44   : > { %8247 = vmatprep.subr.bf16.mxu0 %v9237_v13 }
 0xb4b   : > { %8248 = vmatpush3.bf16.xpose.msra.mxu0 %v4171_v38 }
 0xb4c   : > { %8249 = vmatprep.subr.bf16.mxu0 %v9237_v13 }
 0xb53   : > { %8250 = vmatpush3.bf16.xpose.msra.mxu0 %v4174_v55 }
 0xb54   : > { %8295 = vmatprep.subr.bf16.mxu0 %v9237_v13 }
 0xb5a   : > { %8252 = vmatmul.mubr.msk.bf16.vlgmr.msra.gmra.mrb[80].mxu0 %vm1150_vm3, %v4132_v1 }
 0xb5b   : > { %8311 = vmatprep.mubr.msk.bf16.mxu0 %vm9238_vm2, %v9237_v13 }
 0xb7a   : > { %v10490_v63 = vpop.f32.mrb[72].mxu0 }
 0xb7b   : > { %v8193_v61 = vpop.f32.mrb[73].mxu0 }
 0xb7c   : > { %v3965_v17 = vpop.f32.mrb[74].mxu0  ;;  %v4235_v61 = vpop.permute.xlu1 %4234 }
 0xb7d   : > { %v8194_v52 = vpop.f32.mrb[75].mxu0 }
 0xbed   : > { %v10492_v54 = vpop.f32.mrb[76].mxu0 }
 0xbee   : > { %v8233_v37 = vpop.f32.mrb[77].mxu0 }
 0xbef   : > { %v4127_v58 = vpop.f32.mrb[78].mxu0 }
 0xbf0   : > { %v8234_v7 = vpop.f32.mrb[79].mxu0  ;;  %v4243_v58 = vpop.permute.xlu1 %4242 }
 0xc2d   : > { %v4210_v30 = vpop.f32.mrb[80].mxu0 }
 0xc2e   : > { %v4216_v49 = vmul.f32 0.35355338, %v4210_v30  ;;  %v8253_v60 = vpop.f32.mrb[81].mxu0 }
 0xc2f   : > { %v4213_v45 = vpop.f32.mrb[82].mxu0 }
 0xc30   : > { %v4217_v20 = vadd.f32 %v4216_v49, %v10375_v42  ;;  %v8254_v1 = vpop.f32.mrb[83].mxu0 }
 0xc32   : > { %4218 = vmax.xlane.f32.xlu0 %v4217_v20 }
 0xc48   : > { %4232 = vrot.lane.b32.xlu0 %v10056_v22, %s9241_s25 }
 0xc4c   : > { %4236 = vrot.lane.b32.xlu0 %v10068_v32, %s9241_s25 }
 0xc50   : > { %4238 = vrot.lane.b32.xlu0 %v10066_v25, %s9241_s25 }
 0xc54   : > { %4240 = vrot.lane.b32.xlu0 %v10080_v36, %s9241_s25 }
 0xc58   : > { %4295 = vrot.lane.b32.xlu0 %v10044_v43, %s9245_s4 }
 0xc5c   : > { %4299 = vrot.lane.b32.xlu0 %v10056_v22, %s9245_s4 }
 0xc60   : > { %4303 = vrot.lane.b32.xlu0 %v10068_v32, %s9245_s4 }
 0xc64   : > { %4307 = vrot.lane.b32.xlu0 %v10080_v36, %s9245_s4 }
 0xc68   : > { %4293 = vrot.lane.b32.xlu0 %v10265_v2, %s9245_s4 }
 0xc6c   : > { %4390 = vrot.lane.b32.xlu0 %v10044_v43, %s9243_s8 }
 0xc70   : > { %4392 = vrot.lane.b32.xlu0 %v10042_v10, %s9243_s8 }
 0xc74   : > { %4396 = vrot.lane.b32.xlu0 %v10054_v56, %s9243_s8 }
 0xcbf   : > { %v4219_v21 = vpop.xlane.xlu0 %4218 }
 0xcc0   : > { %v4220_v18 = vsub.f32 %v4217_v20, %v4219_v21 }
 0xcc2   : > { %v4221_v38 = vmul.f32 1.442695, %v4220_v18 }
 0xcc3   : > { %v4233_v55 = vpop.permute.xlu0 %4232 }
 0xcc4   : > { %9068 = vpow2.f32 %v4221_v38  ;;  %8260 = vmatpush3.bf16.msra.mxu1 %v4233_v55 }
 0xcc5   : > { %8261 = vmatprep.subr.bf16.mxu1 %v9237_v13 }
 0xcc7   : > { %v4237_v17 = vpop.permute.xlu0 %4236 }
 0xcc8   : > { %8262 = vmatpush3.bf16.msra.mxu1 %v4235_v61 }
 0xcc9   : > { %8263 = vmatprep.subr.bf16.mxu1 %v9237_v13 }
 0xccb   : > { %v4239_v43 = vpop.permute.xlu0 %4238 }
 0xccc   : > { %8264 = vmatpush3.bf16.msra.mxu1 %v4237_v17 }
 0xccd   : > { %8265 = vmatprep.subr.bf16.mxu1 %v9237_v13 }
 0xcce   : > { %v9069_v2 = vpop.eup %9068 }
 0xccf   : > { %4223 = vadd.xlane.f32.xlu1 %v9069_v2  ;;  %v4241_v52 = vpop.permute.xlu0 %4240 }
 0xcd0   : > { %8266 = vmatpush3.bf16.msra.mxu1 %v4239_v43 }
 0xcd1   : > { %8267 = vmatprep.subr.bf16.mxu1 %v9237_v13 }
 0xcd3   : > { %v4296_v37 = vpop.permute.xlu0 %4295 }
 0xcd4   : > { %8268 = vmatpush3.bf16.msra.mxu1 %v4241_v52  ;;  %v4315_v55 = vsel %vm1150_vm3, %v4296_v37, 0 }
 0xcd5   : > { %8269 = vmatprep.subr.bf16.mxu1 %v9237_v13 }
 0xcd7   : > { %v4300_v7 = vpop.permute.xlu0 %4299 }
 0xcd8   : > { %8270 = vmatpush3.bf16.msra.mxu1 %v4243_v58 }
 0xcd9   : > { %8275 = vmatprep.subr.bf16.mxu1 %v9237_v13 }
 0xcdb   : > { %v4304_v30 = vpop.permute.xlu0 %4303 }
 0xcdf   : > { %v4308_v49 = vpop.permute.xlu0 %4307 }
 0xce0   : > { %4297 = vrot.lane.b32.xlu1 %v10042_v10, %s9245_s4  ;;  %v4333_v58 = vsel %vm1150_vm3, %v4308_v49, 0 }
 0xce3   : > { %v4294_v60 = vpop.permute.xlu0 %4293 }
 0xce4   : > { %4301 = vrot.lane.b32.xlu1 %v10054_v56, %s9245_s4  ;;  %v4130_v56 = vadd.f32 %v10465_v39, %v10448_v48  ;;  %v4321_v48 = vsel %vm1150_vm3, %v4300_v7, 0 }
 0xce7   : > { %v4391_v45 = vpop.permute.xlu0 %4390 }
 0xce8   : > { %4305 = vrot.lane.b32.xlu1 %v10066_v25, %s9245_s4  ;;  %8296 = vmatpush3.bf16.msra.mxu0 %v4391_v45 }
 0xce9   : > { %8297 = vmatprep.subr.bf16.mxu0 %v9237_v13 }
 0xceb   : > { %v4393_v20 = vpop.permute.xlu0 %4392 }
 0xcec   : > { %4309 = vrot.lane.b32.xlu1 %v10078_v23, %s9245_s4  ;;  %8298 = vmatpush3.bf16.msra.mxu0 %v4393_v20 }
 0xced   : > { %8299 = vmatprep.subr.bf16.mxu0 %v9237_v13 }
 0xd5c   : > { %v4224_v1 = vpop.xlane.xlu1 %4223 }
 0xd5d   : > { %9070 = vrcp.f32 %v4224_v1 }
 0xd60   : > { %v4298_v61 = vpop.permute.xlu1 %4297 }
 0xd61   : > { %v4318_v17 = vsel %vm1150_vm3, %v4298_v61, 0 }
 0xd64   : > { %v4302_v39 = vpop.permute.xlu1 %4301 }
 0xd65   : > { %v4324_v43 = vsel %vm1150_vm3, %v4302_v39, 0 }
 0xd67   : > { %v9071_v10 = vpop.eup %9070 }
 0xd68   : > { %v4226_v21 = vmul.f32 %v9071_v10, %v9069_v2  ;;  %v4327_v2 = vsel %vm1150_vm3, %v4304_v30, 0  ;;  %v4306_v52 = vpop.permute.xlu1 %4305 }
 0xd69   : > { %v4330_v37 = vsel %vm1150_vm3, %v4306_v52, 0 }
 0xd6a   : > { %v4227_v18 = vpack.c.bf16 %v4226_v21, %v4226_v21  ;;  %v10537_v38 = vadd.f32 %v4226_v21, %v4130_v56 }
 0xd6c   : > { %8272 = vmatmul.mubr.bf16.vlgmr.msra.gmra.mrb[140].mxu1 %v4227_v18  ;;  %v4310_v7 = vpop.permute.xlu1 %4309 }
 0xd6d   : > { %8276 = vmatpush3.bf16.xpose.msra.mxu1 %v4315_v55  ;;  %8291 = vmatprep.mubr.msk.bf16.mxu1 %vm9238_vm2, %v9237_v13  ;;  %v4336_v45 = vsel %vm1150_vm3, %v4310_v7, 0 }
 0xd6e   : > { %8277 = vmatprep.subr.bf16.mxu1 %v9237_v13 }
 0xd75   : > { %8278 = vmatpush3.bf16.xpose.msra.mxu1 %v4318_v17 }
 0xd76   : > { %8279 = vmatprep.subr.bf16.mxu1 %v9237_v13 }
 0xd7d   : > { %8280 = vmatpush3.bf16.xpose.msra.mxu1 %v4321_v48 }
 0xd7e   : > { %8281 = vmatprep.subr.bf16.mxu1 %v9237_v13 }
 0xd85   : > { %8282 = vmatpush3.bf16.xpose.msra.mxu1 %v4324_v43  ;;  %v4397_v43 = vpop.permute.xlu0 %4396 }
 0xd86   : > { %8283 = vmatprep.subr.bf16.mxu1 %v9237_v13 }
 0xd8d   : > { %8284 = vmatpush3.bf16.xpose.msra.mxu1 %v4327_v2 }
 0xd8e   : > { %8285 = vmatprep.subr.bf16.mxu1 %v9237_v13 }
 0xd95   : > { %8286 = vmatpush3.bf16.xpose.msra.mxu1 %v4330_v37 }
 0xd96   : > { %8287 = vmatprep.subr.bf16.mxu1 %v9237_v13 }
 0xd9d   : > { %8288 = vmatpush3.bf16.xpose.msra.mxu1 %v4333_v58 }
 0xd9e   : > { %8289 = vmatprep.subr.bf16.mxu1 %v9237_v13 }
 0xda5   : > { %8290 = vmatpush3.bf16.xpose.msra.mxu1 %v4336_v45  ;;  %v4472_v45 = vld [vmem:[#allocation5] sm:$0xff] }
 0xda6   : > { %8335 = vmatprep.subr.bf16.mxu1 %v9237_v13 }
 0xdac   : > { %8292 = vmatmul.mubr.msk.bf16.vlgmr.msra.gmra.mrb[144].mxu1 %vm1150_vm3, %v4294_v60 }
 0xdad   : > { %8351 = vmatprep.mubr.msk.bf16.mxu1 %vm9238_vm2, %v9237_v13 }
 0xe3f   : > { %v10560_v30 = vpop.f32.mrb[140].mxu1 }
 0xe40   : > { %v8273_v20 = vpop.f32.mrb[141].mxu1 }
 0xe41   : > { %v4289_v1 = vpop.f32.mrb[142].mxu1 }
 0xe42   : > { %v8274_v10 = vpop.f32.mrb[143].mxu1 }
 0xe7f   : > { %v4372_v49 = vpop.f32.mrb[144].mxu1 }
 0xe80   : > { %v4378_v56 = vmul.f32 0.35355338, %v4372_v49  ;;  %v8293_v21 = vpop.f32.mrb[145].mxu1  ;;  %v4488_v49 = vsel %vm1150_vm3, %v10281_v27, 0 }
 0xe81   : > { %v4375_v18 = vpop.f32.mrb[146].mxu1  ;;  %v4497_v21 = vsel %vm1150_vm3, %v10287_v0, 0 }
 0xe82   : > { %v4379_v55 = vadd.f32 %v4378_v56, %v10375_v42  ;;  %v8294_v61 = vpop.f32.mrb[147].mxu1  ;;  %v4491_v56 = vsel %vm1150_vm3, %v10279_v14, 0  ;;  %v4500_v18 = vsel %vm1150_vm3, %v10301_v51, 0 }
 0xe83   : > { %v4506_v61 = vsel %vm1150_vm3, %v10309_v4, 0 }
 0xe84   : > { %4380 = vmax.xlane.f32.xlu1 %v4379_v55 }
 0xe95   : > { %4394 = vrot.lane.b32.xlu1 %v10056_v22, %s9243_s8 }
 0xe99   : > { %4398 = vrot.lane.b32.xlu1 %v10068_v32, %s9243_s8 }
 0xe9d   : > { %4400 = vrot.lane.b32.xlu1 %v10066_v25, %s9243_s8 }
 0xea1   : > { %4402 = vrot.lane.b32.xlu1 %v10080_v36, %s9243_s8 }
 0xf11   : > { %v4381_v60 = vpop.xlane.xlu1 %4380 }
 0xf12   : > { %v4382_v17 = vsub.f32 %v4379_v55, %v4381_v60  ;;  %v4503_v55 = vsel %vm1150_vm3, %v10298_v50, 0  ;;  %v4509_v60 = vsel %vm1150_vm3, %v10306_v59, 0 }
 0xf14   : > { %v4383_v48 = vmul.f32 1.442695, %v4382_v17  ;;  %v10616_v17 = vpack.c.bf16 %v10267_v31, %v10267_v31 }
 0xf15   : > { %v4395_v39 = vpop.permute.xlu1 %4394 }
 0xf16   : > { %9072 = vpow2.f32 %v4383_v48  ;;  %8300 = vmatpush3.bf16.msra.mxu0 %v4395_v39 }
 0xf17   : > { %8301 = vmatprep.subr.bf16.mxu0 %v9237_v13 }
 0xf19   : > { %v4399_v2 = vpop.permute.xlu1 %4398 }
 0xf1a   : > { %8302 = vmatpush3.bf16.msra.mxu0 %v4397_v43 }
 0xf1b   : > { %8303 = vmatprep.subr.bf16.mxu0 %v9237_v13 }
 0xf1d   : > { %v4401_v22 = vpop.permute.xlu1 %4400 }
 0xf1e   : > { %8304 = vmatpush3.bf16.msra.mxu0 %v4399_v2 }
 0xf1f   : > { %8305 = vmatprep.subr.bf16.mxu0 %v9237_v13 }
 0xf20   : > { %v9073_v25 = vpop.eup %9072 }
 0xf21   : > { %4385 = vadd.xlane.f32.xlu0 %v9073_v25  ;;  %v4403_v32 = vpop.permute.xlu1 %4402 }
 0xf22   : > { %8306 = vmatpush3.bf16.msra.mxu0 %v4401_v22 }
 0xf23   : > { %8307 = vmatprep.subr.bf16.mxu0 %v9237_v13 }
 0xf26   : > { %8308 = vmatpush3.bf16.msra.mxu0 %v4403_v32 }
 0xf27   : > { %8309 = vmatprep.subr.bf16.mxu0 %v9237_v13 }
 0xf37   : > { %4404 = vrot.lane.b32.xlu0 %v10078_v23, %s9243_s8 }
 0xf3b   : > { %4571 = vrot.lane.b32.xlu0 %v10281_v27, %s9240_s3 }
 0xf3f   : > { %4573 = vrot.lane.b32.xlu0 %v10279_v14, %s9240_s3 }
 0xf43   : > { %4577 = vrot.lane.b32.xlu0 %v10287_v0, %s9240_s3 }
 0xfae   : > { %v4386_v36 = vpop.xlane.xlu0 %4385 }
 0xfaf   : > { %9074 = vrcp.f32 %v4386_v36 }
 0xfb2   : > { %v4405_v52 = vpop.permute.xlu0 %4404 }
 0xfb3   : > { %8310 = vmatpush3.bf16.msra.mxu0 %v4405_v52 }
 0xfb4   : > { %8315 = vmatprep.subr.bf16.mxu0 %v9237_v13 }
 0xfb6   : > { %v4572_v37 = vpop.permute.xlu0 %4571 }
 0xfb7   : > { %8336 = vmatpush3.bf16.msra.mxu1 %v4572_v37 }
 0xfb8   : > { %8337 = vmatprep.subr.bf16.mxu1 %v9237_v13 }
 0xfb9   : > { %v9075_v23 = vpop.eup %9074 }
 0xfba   : > { %v4574_v58 = vpop.permute.xlu0 %4573  ;;  %v4388_v7 = vmul.f32 %v9075_v23, %v9073_v25 }
 0xfbb   : > { %8338 = vmatpush3.bf16.msra.mxu1 %v4574_v58 }
 0xfbc   : > { %v4389_v20 = vpack.c.bf16 %v4388_v7, %v4388_v7  ;;  %v4454_v1 = vadd.f32 %v4388_v7, %v10537_v38  ;;  %8339 = vmatprep.subr.bf16.mxu1 %v9237_v13  ;;  %v4494_v38 = vsel %vm1150_vm3, %v10289_v9, 0 }
 0xfbe   : > { %8312 = vmatmul.mubr.bf16.vlgmr.msra.gmra.mrb[84].mxu0 %v4389_v20  ;;  %v4473_v10 = vadd.f32 %v4472_v45, %v4454_v1  ;;  %v4578_v45 = vpop.permute.xlu0 %4577 }
 0xfbf   : > { %8316 = vmatpush3.bf16.xpose.msra.mxu0 %v4488_v49  ;;  %8331 = vmatprep.mubr.msk.bf16.mxu0 %vm9238_vm2, %v9237_v13 }
 0xfc0   : > { %4474 = vst [vmem:[#allocation5] sm:$0xff] %v4473_v10  ;;  %8317 = vmatprep.subr.bf16.mxu0 %v9237_v13 }
 0xfc7   : > { %8318 = vmatpush3.bf16.xpose.msra.mxu0 %v4491_v56 }
 0xfc8   : > { %8319 = vmatprep.subr.bf16.mxu0 %v9237_v13 }
 0xfcf   : > { %8320 = vmatpush3.bf16.xpose.msra.mxu0 %v4494_v38 }
 0xfd0   : > { %8321 = vmatprep.subr.bf16.mxu0 %v9237_v13 }
 0xfd7   : > { %8322 = vmatpush3.bf16.xpose.msra.mxu0 %v4497_v21 }
 0xfd8   : > { %8323 = vmatprep.subr.bf16.mxu0 %v9237_v13 }
 0xfdf   : > { %8324 = vmatpush3.bf16.xpose.msra.mxu0 %v4500_v18 }
 0xfe0   : > { %8325 = vmatprep.subr.bf16.mxu0 %v9237_v13 }
 0xfe7   : > { %8326 = vmatpush3.bf16.xpose.msra.mxu0 %v4503_v55 }
 0xfe8   : > { %8327 = vmatprep.subr.bf16.mxu0 %v9237_v13 }
 0xfef   : > { %8328 = vmatpush3.bf16.xpose.msra.mxu0 %v4506_v61 }
 0xff0   : > { %8329 = vmatprep.subr.bf16.mxu0 %v9237_v13 }
 0xff7   : > { %8330 = vmatpush3.bf16.xpose.msra.mxu0 %v4509_v60 }
 0xff8   : > { %8375 = vmatprep.subr.bf16.mxu0 %v9237_v13 }
 0xffe   : > { %8332 = vmatmul.mubr.msk.bf16.vlgmr.msra.gmra.mrb[88].mxu0 %vm1150_vm3, %v10616_v17 }
 0xfff   : > { %8391 = vmatprep.mubr.msk.bf16.mxu0 %vm9238_vm2, %v9237_v13 }
0x1091   : > { %v10622_v48 = vpop.f32.mrb[84].mxu0 }
0x1092   : > { %v8313_v39 = vpop.f32.mrb[85].mxu0 }
0x1093   : > { %v4451_v43 = vpop.f32.mrb[86].mxu0 }
0x1094   : > { %v8314_v2 = vpop.f32.mrb[87].mxu0 }
0x10d1   : > { %v4545_v22 = vpop.f32.mrb[88].mxu0 }
0x10d2   : > { %v4551_v25 = vmul.f32 0.35355338, %v4545_v22  ;;  %v8333_v32 = vpop.f32.mrb[89].mxu0 }
0x10d3   : > { %v4548_v36 = vpop.f32.mrb[90].mxu0 }
0x10d4   : > { %v4552_v52 = vadd.f32 %v4551_v25, %v10375_v42  ;;  %v8334_v37 = vpop.f32.mrb[91].mxu0 }
0x10d6   : > { %4553 = vmax.xlane.f32.xlu1 %v4552_v52 }
0x10e7   : > { %4575 = vrot.lane.b32.xlu1 %v10289_v9, %s9240_s3 }
0x10eb   : > { %4579 = vrot.lane.b32.xlu1 %v10301_v51, %s9240_s3 }
0x10ef   : > { %4581 = vrot.lane.b32.xlu1 %v10298_v50, %s9240_s3 }
0x10f3   : > { %4583 = vrot.lane.b32.xlu1 %v10309_v4, %s9240_s3 }
0x10f7   : > { %4638 = vrot.lane.b32.xlu1 %v10281_v27, %s9239_s1 }
0x10fb   : > { %4642 = vrot.lane.b32.xlu1 %v10289_v9, %s9239_s1 }
0x10ff   : > { %4646 = vrot.lane.b32.xlu1 %v10301_v51, %s9239_s1 }
0x1103   : > { %4650 = vrot.lane.b32.xlu1 %v10309_v4, %s9239_s1 }
0x1107   : > { %4636 = vrot.lane.b32.xlu1 %v10616_v17, %s9239_s1 }
0x110b   : > { %4733 = vrot.lane.b32.xlu1 %v10281_v27, %s9242_s27 }
0x110f   : > { %4735 = vrot.lane.b32.xlu1 %v10279_v14, %s9242_s27 }
0x1113   : > { %4739 = vrot.lane.b32.xlu1 %v10287_v0, %s9242_s27 }
0x1117   : > { %4747 = vrot.lane.b32.xlu1 %v10306_v59, %s9242_s27 }
0x1163   : > { %v4554_v31 = vpop.xlane.xlu1 %4553 }
0x1164   : > { %v4555_v23 = vsub.f32 %v4552_v52, %v4554_v31 }
0x1166   : > { %v4556_v58 = vmul.f32 1.442695, %v4555_v23 }
0x1167   : > { %v4576_v7 = vpop.permute.xlu1 %4575 }
0x1168   : > { %9076 = vpow2.f32 %v4556_v58  ;;  %8340 = vmatpush3.bf16.msra.mxu1 %v4576_v7 }
0x1169   : > { %8341 = vmatprep.subr.bf16.mxu1 %v9237_v13 }
0x116b   : > { %v4580_v20 = vpop.permute.xlu1 %4579 }
0x116c   : > { %8342 = vmatpush3.bf16.msra.mxu1 %v4578_v45 }
0x116d   : > { %8343 = vmatprep.subr.bf16.mxu1 %v9237_v13 }
0x116f   : > { %v4582_v1 = vpop.permute.xlu1 %4581 }
0x1170   : > { %8344 = vmatpush3.bf16.msra.mxu1 %v4580_v20 }
0x1171   : > { %8345 = vmatprep.subr.bf16.mxu1 %v9237_v13 }
0x1172   : > { %v9077_v10 = vpop.eup %9076 }
0x1173   : > { %4558 = vadd.xlane.f32.xlu0 %v9077_v10  ;;  %v4584_v49 = vpop.permute.xlu1 %4583 }
0x1174   : > { %8346 = vmatpush3.bf16.msra.mxu1 %v4582_v1 }
0x1175   : > { %8347 = vmatprep.subr.bf16.mxu1 %v9237_v13 }
0x1177   : > { %v4639_v56 = vpop.permute.xlu1 %4638 }
0x1178   : > { %8348 = vmatpush3.bf16.msra.mxu1 %v4584_v49  ;;  %v4658_v32 = vsel %vm1150_vm3, %v4639_v56, 0 }
0x1179   : > { %8349 = vmatprep.subr.bf16.mxu1 %v9237_v13 }
0x117b   : > { %v4643_v38 = vpop.permute.xlu1 %4642 }
0x117c   : > { %v4664_v37 = vsel %vm1150_vm3, %v4643_v38, 0 }
0x117f   : > { %v4647_v21 = vpop.permute.xlu1 %4646 }
0x1180   : > { %v4670_v58 = vsel %vm1150_vm3, %v4647_v21, 0 }
0x1183   : > { %v4651_v18 = vpop.permute.xlu1 %4650 }
0x1184   : > { %v4676_v20 = vsel %vm1150_vm3, %v4651_v18, 0 }
0x1187   : > { %v4637_v55 = vpop.permute.xlu1 %4636 }
0x1189   : > { %4585 = vrot.lane.b32.xlu0 %v10306_v59, %s9240_s3 }
0x118b   : > { %v4734_v61 = vpop.permute.xlu1 %4733 }
0x118c   : > { %8376 = vmatpush3.bf16.msra.mxu0 %v4734_v61 }
0x118d   : > { %4640 = vrot.lane.b32.xlu0 %v10279_v14, %s9239_s1  ;;  %8377 = vmatprep.subr.bf16.mxu0 %v9237_v13 }
0x118f   : > { %v4736_v60 = vpop.permute.xlu1 %4735 }
0x1190   : > { %8378 = vmatpush3.bf16.msra.mxu0 %v4736_v60 }
0x1191   : > { %4644 = vrot.lane.b32.xlu0 %v10287_v0, %s9239_s1  ;;  %8379 = vmatprep.subr.bf16.mxu0 %v9237_v13 }
0x1195   : > { %4648 = vrot.lane.b32.xlu0 %v10298_v50, %s9239_s1 }
0x1199   : > { %4652 = vrot.lane.b32.xlu0 %v10306_v59, %s9239_s1 }
0x1200   : > { %v4559_v39 = vpop.xlane.xlu0 %4558 }
0x1201   : > { %9078 = vrcp.f32 %v4559_v39 }
0x1204   : > { %v4586_v43 = vpop.permute.xlu0 %4585 }
0x1205   : > { %8350 = vmatpush3.bf16.msra.mxu1 %v4586_v43 }
0x1206   : > { %8355 = vmatprep.subr.bf16.mxu1 %v9237_v13 }
0x1208   : > { %v4641_v36 = vpop.permute.xlu0 %4640 }
0x1209   : > { %v4661_v52 = vsel %vm1150_vm3, %v4641_v36, 0 }
0x120b   : > { %v9079_v2 = vpop.eup %9078 }
0x120c   : > { %v10669_v22 = vmul.f32 %v9079_v2, %v9077_v10  ;;  %v4645_v31 = vpop.permute.xlu0 %4644 }
0x120d   : > { %v4667_v23 = vsel %vm1150_vm3, %v4645_v31, 0 }
0x120e   : > { %v4562_v25 = vpack.c.bf16 %v10669_v22, %v10669_v22 }
0x1210   : > { %8352 = vmatmul.mubr.bf16.vlgmr.msra.gmra.mrb[148].mxu1 %v4562_v25  ;;  %v4649_v7 = vpop.permute.xlu0 %4648 }
0x1211   : > { %8356 = vmatpush3.bf16.xpose.msra.mxu1 %v4658_v32  ;;  %8371 = vmatprep.mubr.msk.bf16.mxu1 %vm9238_vm2, %v9237_v13  ;;  %v4673_v45 = vsel %vm1150_vm3, %v4649_v7, 0 }
0x1212   : > { %8357 = vmatprep.subr.bf16.mxu1 %v9237_v13 }
0x1214   : > { %v4653_v1 = vpop.permute.xlu0 %4652 }
0x1215   : > { %v4679_v10 = vsel %vm1150_vm3, %v4653_v1, 0 }
0x1219   : > { %8358 = vmatpush3.bf16.xpose.msra.mxu1 %v4661_v52  ;;  %v4740_v52 = vpop.permute.xlu1 %4739 }
0x121a   : > { %8359 = vmatprep.subr.bf16.mxu1 %v9237_v13 }
0x1221   : > { %8360 = vmatpush3.bf16.xpose.msra.mxu1 %v4664_v37 }
0x1222   : > { %8361 = vmatprep.subr.bf16.mxu1 %v9237_v13 }
0x1229   : > { %8362 = vmatpush3.bf16.xpose.msra.mxu1 %v4667_v23 }
0x122a   : > { %8363 = vmatprep.subr.bf16.mxu1 %v9237_v13 }
0x1231   : > { %8364 = vmatpush3.bf16.xpose.msra.mxu1 %v4670_v58 }
0x1232   : > { %8365 = vmatprep.subr.bf16.mxu1 %v9237_v13 }
0x1239   : > { %8366 = vmatpush3.bf16.xpose.msra.mxu1 %v4673_v45  ;;  %v4748_v45 = vpop.permute.xlu1 %4747 }
0x123a   : > { %8367 = vmatprep.subr.bf16.mxu1 %v9237_v13 }
0x1241   : > { %8368 = vmatpush3.bf16.xpose.msra.mxu1 %v4676_v20 }
0x1242   : > { %8369 = vmatprep.subr.bf16.mxu1 %v9237_v13 }
0x1249   : > { %8370 = vmatpush3.bf16.xpose.msra.mxu1 %v4679_v10 }
0x124a   : > { %8415 = vmatprep.subr.bf16.mxu1 %v9237_v13 }
0x1250   : > { %8372 = vmatmul.mubr.msk.bf16.vlgmr.msra.gmra.mrb[152].mxu1 %vm1150_vm3, %v4637_v55 }
0x1251   : > { %8431 = vmatprep.mubr.msk.bf16.mxu1 %vm9238_vm2, %v9237_v13 }
0x12e3   : > { %v10694_v49 = vpop.f32.mrb[148].mxu1 }
0x12e4   : > { %v8353_v56 = vpop.f32.mrb[149].mxu1 }
0x12e5   : > { %v4632_v38 = vpop.f32.mrb[150].mxu1 }
0x12e6   : > { %v8354_v21 = vpop.f32.mrb[151].mxu1 }
0x1323   : > { %v4715_v18 = vpop.f32.mrb[152].mxu1 }
0x1324   : > { %v4721_v61 = vmul.f32 0.35355338, %v4715_v18  ;;  %v8373_v60 = vpop.f32.mrb[153].mxu1 }
0x1325   : > { %v4718_v39 = vpop.f32.mrb[154].mxu1 }
0x1326   : > { %v4722_v43 = vadd.f32 %v4721_v61, %v10375_v42  ;;  %v8374_v2 = vpop.f32.mrb[155].mxu1 }
0x1328   : > { %4723 = vmax.xlane.f32.xlu0 %v4722_v43 }
0x133e   : > { %4737 = vrot.lane.b32.xlu0 %v10289_v9, %s9242_s27 }
0x1342   : > { %4741 = vrot.lane.b32.xlu0 %v10301_v51, %s9242_s27 }
0x1346   : > { %4743 = vrot.lane.b32.xlu0 %v10298_v50, %s9242_s27 }
0x134a   : > { %4745 = vrot.lane.b32.xlu0 %v10309_v4, %s9242_s27 }
0x134e   : > { %4800 = vrot.lane.b32.xlu0 %v10281_v27, %s9244_s19 }
0x1352   : > { %4804 = vrot.lane.b32.xlu0 %v10289_v9, %s9244_s19 }
0x1356   : > { %4808 = vrot.lane.b32.xlu0 %v10301_v51, %s9244_s19 }
0x135a   : > { %4812 = vrot.lane.b32.xlu0 %v10309_v4, %s9244_s19 }
0x135e   : > { %4798 = vrot.lane.b32.xlu0 %v10616_v17, %s9244_s19 }
0x1362   : > { %4895 = vrot.lane.b32.xlu0 %v10281_v27, %s9241_s25 }
0x1366   : > { %4897 = vrot.lane.b32.xlu0 %v10279_v14, %s9241_s25 }
0x136a   : > { %4901 = vrot.lane.b32.xlu0 %v10287_v0, %s9241_s25 }
0x13b5   : > { %v4724_v55 = vpop.xlane.xlu0 %4723 }
0x13b6   : > { %v4725_v25 = vsub.f32 %v4722_v43, %v4724_v55 }
0x13b8   : > { %v4726_v32 = vmul.f32 1.442695, %v4725_v25 }
0x13b9   : > { %v4738_v36 = vpop.permute.xlu0 %4737 }
0x13ba   : > { %9080 = vpow2.f32 %v4726_v32  ;;  %8380 = vmatpush3.bf16.msra.mxu0 %v4738_v36 }
0x13bb   : > { %8381 = vmatprep.subr.bf16.mxu0 %v9237_v13 }
0x13bd   : > { %v4742_v37 = vpop.permute.xlu0 %4741 }
0x13be   : > { %8382 = vmatpush3.bf16.msra.mxu0 %v4740_v52 }
0x13bf   : > { %8383 = vmatprep.subr.bf16.mxu0 %v9237_v13 }
0x13c1   : > { %v4744_v31 = vpop.permute.xlu0 %4743 }
0x13c2   : > { %8384 = vmatpush3.bf16.msra.mxu0 %v4742_v37 }
0x13c3   : > { %8385 = vmatprep.subr.bf16.mxu0 %v9237_v13 }
0x13c4   : > { %v9081_v23 = vpop.eup %9080 }
0x13c5   : > { %4728 = vadd.xlane.f32.xlu1 %v9081_v23  ;;  %v4746_v58 = vpop.permute.xlu0 %4745 }
0x13c6   : > { %8386 = vmatpush3.bf16.msra.mxu0 %v4744_v31 }
0x13c7   : > { %8387 = vmatprep.subr.bf16.mxu0 %v9237_v13 }
0x13c9   : > { %v4801_v7 = vpop.permute.xlu0 %4800 }
0x13ca   : > { %8388 = vmatpush3.bf16.msra.mxu0 %v4746_v58  ;;  %v4820_v43 = vsel %vm1150_vm3, %v4801_v7, 0 }
0x13cb   : > { %8389 = vmatprep.subr.bf16.mxu0 %v9237_v13 }
0x13cd   : > { %v4805_v20 = vpop.permute.xlu0 %4804 }
0x13ce   : > { %8390 = vmatpush3.bf16.msra.mxu0 %v4748_v45  ;;  %v4826_v25 = vsel %vm1150_vm3, %v4805_v20, 0 }
0x13cf   : > { %8395 = vmatprep.subr.bf16.mxu0 %v9237_v13 }
0x13d1   : > { %v4809_v1 = vpop.permute.xlu0 %4808 }
0x13d2   : > { %v4832_v52 = vsel %vm1150_vm3, %v4809_v1, 0 }
0x13d5   : > { %v4813_v10 = vpop.permute.xlu0 %4812 }
0x13d6   : > { %4802 = vrot.lane.b32.xlu1 %v10279_v14, %s9244_s19 }
0x13d9   : > { %v4799_v56 = vpop.permute.xlu0 %4798 }
0x13da   : > { %4806 = vrot.lane.b32.xlu1 %v10287_v0, %s9244_s19 }
0x13dd   : > { %v4896_v38 = vpop.permute.xlu0 %4895 }
0x13de   : > { %4810 = vrot.lane.b32.xlu1 %v10298_v50, %s9244_s19  ;;  %8416 = vmatpush3.bf16.msra.mxu1 %v4896_v38 }
0x13df   : > { %8417 = vmatprep.subr.bf16.mxu1 %v9237_v13 }
0x13e1   : > { %v4898_v21 = vpop.permute.xlu0 %4897 }
0x13e2   : > { %4814 = vrot.lane.b32.xlu1 %v10306_v59, %s9244_s19  ;;  %8418 = vmatpush3.bf16.msra.mxu1 %v4898_v21 }
0x13e3   : > { %8419 = vmatprep.subr.bf16.mxu1 %v9237_v13 }
0x1452   : > { %v4729_v18 = vpop.xlane.xlu1 %4728 }
0x1453   : > { %9082 = vrcp.f32 %v4729_v18 }
0x1456   : > { %v4803_v2 = vpop.permute.xlu1 %4802 }
0x1457   : > { %v4823_v55 = vsel %vm1150_vm3, %v4803_v2, 0 }
0x145a   : > { %v4807_v32 = vpop.permute.xlu1 %4806 }
0x145b   : > { %v4829_v36 = vsel %vm1150_vm3, %v4807_v32, 0  ;;  %v4902_v32 = vpop.permute.xlu0 %4901 }
0x145d   : > { %v9083_v61 = vpop.eup %9082 }
0x145e   : > { %v10737_v60 = vmul.f32 %v9083_v61, %v9081_v23  ;;  %v4811_v37 = vpop.permute.xlu1 %4810  ;;  %v4838_v23 = vsel %vm1150_vm3, %v4813_v10, 0 }
0x145f   : > { %v4835_v31 = vsel %vm1150_vm3, %v4811_v37, 0 }
0x1460   : > { %v4732_v39 = vpack.c.bf16 %v10737_v60, %v10737_v60 }
0x1462   : > { %8392 = vmatmul.mubr.bf16.vlgmr.msra.gmra.mrb[92].mxu0 %v4732_v39  ;;  %v4815_v58 = vpop.permute.xlu1 %4814 }
0x1463   : > { %8396 = vmatpush3.bf16.xpose.msra.mxu0 %v4820_v43  ;;  %8411 = vmatprep.mubr.msk.bf16.mxu0 %vm9238_vm2, %v9237_v13  ;;  %v4841_v7 = vsel %vm1150_vm3, %v4815_v58, 0 }
0x1464   : > { %8397 = vmatprep.subr.bf16.mxu0 %v9237_v13 }
0x146b   : > { %8398 = vmatpush3.bf16.xpose.msra.mxu0 %v4823_v55 }
0x146c   : > { %8399 = vmatprep.subr.bf16.mxu0 %v9237_v13 }
0x1473   : > { %8400 = vmatpush3.bf16.xpose.msra.mxu0 %v4826_v25 }
0x1474   : > { %8401 = vmatprep.subr.bf16.mxu0 %v9237_v13 }
0x147b   : > { %8402 = vmatpush3.bf16.xpose.msra.mxu0 %v4829_v36 }
0x147c   : > { %8403 = vmatprep.subr.bf16.mxu0 %v9237_v13 }
0x1483   : > { %8404 = vmatpush3.bf16.xpose.msra.mxu0 %v4832_v52 }
0x1484   : > { %8405 = vmatprep.subr.bf16.mxu0 %v9237_v13 }
0x148b   : > { %8406 = vmatpush3.bf16.xpose.msra.mxu0 %v4835_v31 }
0x148c   : > { %8407 = vmatprep.subr.bf16.mxu0 %v9237_v13 }
0x1493   : > { %8408 = vmatpush3.bf16.xpose.msra.mxu0 %v4838_v23 }
0x1494   : > { %8409 = vmatprep.subr.bf16.mxu0 %v9237_v13 }
0x149b   : > { %8410 = vmatpush3.bf16.xpose.msra.mxu0 %v4841_v7 }
0x149c   : > { %8455 = vmatprep.subr.bf16.mxu0 %v9237_v13 }
0x14a2   : > { %8412 = vmatmul.mubr.msk.bf16.vlgmr.msra.gmra.mrb[96].mxu0 %vm1150_vm3, %v4799_v56 }
0x14a3   : > { %8471 = vmatprep.mubr.msk.bf16.mxu0 %vm9238_vm2, %v9237_v13 }
0x1535   : > { %v10762_v45 = vpop.f32.mrb[92].mxu0 }
0x1536   : > { %v8393_v20 = vpop.f32.mrb[93].mxu0 }
0x1537   : > { %v4794_v1 = vpop.f32.mrb[94].mxu0 }
0x1538   : > { %v8394_v38 = vpop.f32.mrb[95].mxu0 }
0x1575   : > { %v4877_v10 = vpop.f32.mrb[96].mxu0 }
0x1576   : > { %v4883_v21 = vmul.f32 0.35355338, %v4877_v10  ;;  %v8413_v18 = vpop.f32.mrb[97].mxu0 }
0x1577   : > { %v4880_v61 = vpop.f32.mrb[98].mxu0 }
0x1578   : > { %v4884_v39 = vadd.f32 %v4883_v21, %v10375_v42  ;;  %v8414_v43 = vpop.f32.mrb[99].mxu0  ;;  %v4797_v21 = vadd.f32 %v10737_v60, %v10669_v22 }
0x157a   : > { %4885 = vmax.xlane.f32.xlu1 %v4884_v39 }
0x158b   : > { %4899 = vrot.lane.b32.xlu1 %v10289_v9, %s9241_s25 }
0x158f   : > { %4903 = vrot.lane.b32.xlu1 %v10301_v51, %s9241_s25 }
0x1593   : > { %4905 = vrot.lane.b32.xlu1 %v10298_v50, %s9241_s25 }
0x1597   : > { %4907 = vrot.lane.b32.xlu1 %v10309_v4, %s9241_s25 }
0x159b   : > { %4962 = vrot.lane.b32.xlu1 %v10281_v27, %s9245_s4 }
0x159f   : > { %4966 = vrot.lane.b32.xlu1 %v10289_v9, %s9245_s4 }
0x15a3   : > { %4970 = vrot.lane.b32.xlu1 %v10301_v51, %s9245_s4 }
0x15a7   : > { %4974 = vrot.lane.b32.xlu1 %v10309_v4, %s9245_s4 }
0x15ab   : > { %4960 = vrot.lane.b32.xlu1 %v10616_v17, %s9245_s4 }
0x15af   : > { %5057 = vrot.lane.b32.xlu1 %v10281_v27, %s9243_s8 }
0x15b3   : > { %5059 = vrot.lane.b32.xlu1 %v10279_v14, %s9243_s8 }
0x15b7   : > { %5063 = vrot.lane.b32.xlu1 %v10287_v0, %s9243_s8 }
0x1607   : > { %v4886_v56 = vpop.xlane.xlu1 %4885 }
0x1608   : > { %v4887_v2 = vsub.f32 %v4884_v39, %v4886_v56 }
0x160a   : > { %v4888_v55 = vmul.f32 1.442695, %v4887_v2 }
0x160b   : > { %v4900_v25 = vpop.permute.xlu1 %4899 }
0x160c   : > { %9084 = vpow2.f32 %v4888_v55  ;;  %8420 = vmatpush3.bf16.msra.mxu1 %v4900_v25 }
0x160d   : > { %8421 = vmatprep.subr.bf16.mxu1 %v9237_v13 }
0x160f   : > { %v4904_v36 = vpop.permute.xlu1 %4903 }
0x1610   : > { %8422 = vmatpush3.bf16.msra.mxu1 %v4902_v32 }
0x1611   : > { %8423 = vmatprep.subr.bf16.mxu1 %v9237_v13 }
0x1613   : > { %v4906_v27 = vpop.permute.xlu1 %4905 }
0x1614   : > { %8424 = vmatpush3.bf16.msra.mxu1 %v4904_v36 }
0x1615   : > { %8425 = vmatprep.subr.bf16.mxu1 %v9237_v13 }
0x1616   : > { %v9085_v17 = vpop.eup %9084 }
0x1617   : > { %4890 = vadd.xlane.f32.xlu0 %v9085_v17  ;;  %v4908_v52 = vpop.permute.xlu1 %4907 }
0x1618   : > { %8426 = vmatpush3.bf16.msra.mxu1 %v4906_v27 }
0x1619   : > { %8427 = vmatprep.subr.bf16.mxu1 %v9237_v13 }
0x161b   : > { %v4963_v37 = vpop.permute.xlu1 %4962 }
0x161c   : > { %8428 = vmatpush3.bf16.msra.mxu1 %v4908_v52  ;;  %v4982_v39 = vsel %vm1150_vm3, %v4963_v37, 0 }
0x161d   : > { %8429 = vmatprep.subr.bf16.mxu1 %v9237_v13 }
0x161f   : > { %v4967_v31 = vpop.permute.xlu1 %4966 }
0x1620   : > { %v4988_v22 = vsel %vm1150_vm3, %v4967_v31, 0 }
0x1623   : > { %v4971_v23 = vpop.permute.xlu1 %4970 }
0x1624   : > { %v4994_v55 = vsel %vm1150_vm3, %v4971_v23, 0 }
0x1627   : > { %v4975_v58 = vpop.permute.xlu1 %4974 }
0x1628   : > { %v5000_v36 = vsel %vm1150_vm3, %v4975_v58, 0 }
0x162b   : > { %v4961_v7 = vpop.permute.xlu1 %4960 }
0x162d   : > { %4909 = vrot.lane.b32.xlu0 %v10306_v59, %s9241_s25 }
0x162f   : > { %v5058_v20 = vpop.permute.xlu1 %5057 }
0x1630   : > { %8456 = vmatpush3.bf16.msra.mxu0 %v5058_v20 }
0x1631   : > { %4964 = vrot.lane.b32.xlu0 %v10279_v14, %s9245_s4  ;;  %8457 = vmatprep.subr.bf16.mxu0 %v9237_v13 }
0x1633   : > { %v5060_v1 = vpop.permute.xlu1 %5059 }
0x1634   : > { %8458 = vmatpush3.bf16.msra.mxu0 %v5060_v1 }
0x1635   : > { %4968 = vrot.lane.b32.xlu0 %v10287_v0, %s9245_s4  ;;  %8459 = vmatprep.subr.bf16.mxu0 %v9237_v13 }
0x1639   : > { %4972 = vrot.lane.b32.xlu0 %v10298_v50, %s9245_s4 }
0x163d   : > { %4976 = vrot.lane.b32.xlu0 %v10306_v59, %s9245_s4 }
0x16a4   : > { %v4891_v38 = vpop.xlane.xlu0 %4890 }
0x16a5   : > { %9086 = vrcp.f32 %v4891_v38 }
0x16a8   : > { %v4910_v10 = vpop.permute.xlu0 %4909 }
0x16a9   : > { %8430 = vmatpush3.bf16.msra.mxu1 %v4910_v10 }
0x16aa   : > { %8435 = vmatprep.subr.bf16.mxu1 %v9237_v13 }
0x16ac   : > { %v4965_v43 = vpop.permute.xlu0 %4964 }
0x16ad   : > { %v4985_v56 = vsel %vm1150_vm3, %v4965_v43, 0 }
0x16af   : > { %v9087_v14 = vpop.eup %9086 }
0x16b0   : > { %v4893_v18 = vmul.f32 %v9087_v14, %v9085_v17  ;;  %v4969_v60 = vpop.permute.xlu0 %4968 }
0x16b1   : > { %v4991_v2 = vsel %vm1150_vm3, %v4969_v60, 0 }
0x16b2   : > { %v4894_v0 = vpack.c.bf16 %v4893_v18, %v4893_v18  ;;  %v10809_v61 = vadd.f32 %v4893_v18, %v4797_v21 }
0x16b4   : > { %8432 = vmatmul.mubr.bf16.vlgmr.msra.gmra.mrb[156].mxu1 %v4894_v0  ;;  %v4973_v25 = vpop.permute.xlu0 %4972 }
0x16b5   : > { %8436 = vmatpush3.bf16.xpose.msra.mxu1 %v4982_v39  ;;  %8451 = vmatprep.mubr.msk.bf16.mxu1 %vm9238_vm2, %v9237_v13  ;;  %v4997_v32 = vsel %vm1150_vm3, %v4973_v25, 0  ;;  %v5064_v39 = vpop.permute.xlu1 %5063 }
0x16b6   : > { %8437 = vmatprep.subr.bf16.mxu1 %v9237_v13 }
0x16b8   : > { %v4977_v27 = vpop.permute.xlu0 %4976 }
0x16b9   : > { %v5003_v17 = vsel %vm1150_vm3, %v4977_v27, 0  ;;  %v5158_v27 = vsel %vm1150_vm3, %v10317_v28, 0 }
0x16bd   : > { %8438 = vmatpush3.bf16.xpose.msra.mxu1 %v4985_v56 }
0x16be   : > { %8439 = vmatprep.subr.bf16.mxu1 %v9237_v13 }
0x16c5   : > { %8440 = vmatpush3.bf16.xpose.msra.mxu1 %v4988_v22 }
0x16c6   : > { %8441 = vmatprep.subr.bf16.mxu1 %v9237_v13 }
0x16cd   : > { %8442 = vmatpush3.bf16.xpose.msra.mxu1 %v4991_v2 }
0x16ce   : > { %8443 = vmatprep.subr.bf16.mxu1 %v9237_v13 }
0x16d5   : > { %8444 = vmatpush3.bf16.xpose.msra.mxu1 %v4994_v55  ;;  %v5142_v55 = vld [vmem:[#allocation5 + $0x8] sm:$0xff] }
0x16d6   : > { %8445 = vmatprep.subr.bf16.mxu1 %v9237_v13 }
0x16dd   : > { %8446 = vmatpush3.bf16.xpose.msra.mxu1 %v4997_v32 }
0x16de   : > { %8447 = vmatprep.subr.bf16.mxu1 %v9237_v13 }
0x16e5   : > { %8448 = vmatpush3.bf16.xpose.msra.mxu1 %v5000_v36 }
0x16e6   : > { %8449 = vmatprep.subr.bf16.mxu1 %v9237_v13 }
0x16ed   : > { %8450 = vmatpush3.bf16.xpose.msra.mxu1 %v5003_v17  ;;  %v5161_v17 = vsel %vm1150_vm3, %v10314_v47, 0 }
0x16ee   : > { %8495 = vmatprep.subr.bf16.mxu1 %v9237_v13 }
0x16f4   : > { %8452 = vmatmul.mubr.msk.bf16.vlgmr.msra.gmra.mrb[160].mxu1 %vm1150_vm3, %v4961_v7 }
0x16f5   : > { %8511 = vmatprep.mubr.msk.bf16.mxu1 %vm9238_vm2, %v9237_v13 }
0x1787   : > { %v10832_v52 = vpop.f32.mrb[156].mxu1 }
0x1788   : > { %v8433_v37 = vpop.f32.mrb[157].mxu1 }
0x1789   : > { %v4956_v31 = vpop.f32.mrb[158].mxu1  ;;  %v5167_v37 = vsel %vm1150_vm3, %v10322_v35, 0 }
0x178a   : > { %v8434_v23 = vpop.f32.mrb[159].mxu1  ;;  %v5170_v31 = vsel %vm1150_vm3, %v10332_v44, 0 }
0x178b   : > { %v5173_v23 = vsel %vm1150_vm3, %v10330_v12, 0 }
0x17c7   : > { %v5039_v58 = vpop.f32.mrb[160].mxu1 }
0x17c8   : > { %v5045_v20 = vmul.f32 0.35355338, %v5039_v58  ;;  %v8453_v1 = vpop.f32.mrb[161].mxu1  ;;  %v5176_v58 = vsel %vm1150_vm3, %v10340_v6, 0 }
0x17c9   : > { %v5042_v38 = vpop.f32.mrb[162].mxu1  ;;  %v10890_v1 = vpack.c.bf16 %v10261_v19, %v10261_v19 }
0x17ca   : > { %v5046_v10 = vadd.f32 %v5045_v20, %v10375_v42  ;;  %v8454_v14 = vpop.f32.mrb[163].mxu1  ;;  %v5179_v20 = vsel %vm1150_vm3, %v10338_v5, 0 }
0x17cc   : > { %5047 = vmax.xlane.f32.xlu0 %v5046_v10 }
0x17e2   : > { %5061 = vrot.lane.b32.xlu0 %v10289_v9, %s9243_s8 }
0x17e6   : > { %5065 = vrot.lane.b32.xlu0 %v10301_v51, %s9243_s8 }
0x17ea   : > { %5067 = vrot.lane.b32.xlu0 %v10298_v50, %s9243_s8 }
0x17ee   : > { %5069 = vrot.lane.b32.xlu0 %v10309_v4, %s9243_s8 }
0x1859   : > { %v5048_v7 = vpop.xlane.xlu0 %5047 }
0x185a   : > { %v5049_v21 = vsub.f32 %v5046_v10, %v5048_v7 }
0x185c   : > { %v5050_v18 = vmul.f32 1.442695, %v5049_v21 }
0x185d   : > { %v5062_v0 = vpop.permute.xlu0 %5061 }
0x185e   : > { %9088 = vpow2.f32 %v5050_v18  ;;  %8460 = vmatpush3.bf16.msra.mxu0 %v5062_v0 }
0x185f   : > { %8461 = vmatprep.subr.bf16.mxu0 %v9237_v13 }
0x1861   : > { %v5066_v43 = vpop.permute.xlu0 %5065 }
0x1862   : > { %8462 = vmatpush3.bf16.msra.mxu0 %v5064_v39 }
0x1863   : > { %8463 = vmatprep.subr.bf16.mxu0 %v9237_v13 }
0x1865   : > { %v5068_v9 = vpop.permute.xlu0 %5067 }
0x1866   : > { %8464 = vmatpush3.bf16.msra.mxu0 %v5066_v43 }
0x1867   : > { %8465 = vmatprep.subr.bf16.mxu0 %v9237_v13 }
0x1868   : > { %v9089_v50 = vpop.eup %9088 }
0x1869   : > { %5052 = vadd.xlane.f32.xlu1 %v9089_v50  ;;  %v5070_v51 = vpop.permute.xlu0 %5069 }
0x186a   : > { %8466 = vmatpush3.bf16.msra.mxu0 %v5068_v9 }
0x186b   : > { %8467 = vmatprep.subr.bf16.mxu0 %v9237_v13 }
0x186e   : > { %8468 = vmatpush3.bf16.msra.mxu0 %v5070_v51 }
0x186f   : > { %8469 = vmatprep.subr.bf16.mxu0 %v9237_v13 }
0x187a   : > { %5071 = vrot.lane.b32.xlu1 %v10306_v59, %s9243_s8 }
0x187e   : > { %5241 = vrot.lane.b32.xlu1 %v10317_v28, %s9240_s3 }
0x1882   : > { %5243 = vrot.lane.b32.xlu1 %v10314_v47, %s9240_s3 }
0x1886   : > { %5247 = vrot.lane.b32.xlu1 %v10322_v35, %s9240_s3 }
0x188a   : > { %5255 = vrot.lane.b32.xlu1 %v10338_v5, %s9240_s3 }
0x18f6   : > { %v5053_v4 = vpop.xlane.xlu1 %5052 }
0x18f7   : > { %9090 = vrcp.f32 %v5053_v4 }
0x18fa   : > { %v5072_v56 = vpop.permute.xlu1 %5071 }
0x18fb   : > { %8470 = vmatpush3.bf16.msra.mxu0 %v5072_v56 }
0x18fc   : > { %8475 = vmatprep.subr.bf16.mxu0 %v9237_v13 }
0x18fe   : > { %v5242_v22 = vpop.permute.xlu1 %5241 }
0x18ff   : > { %8496 = vmatpush3.bf16.msra.mxu1 %v5242_v22 }
0x1900   : > { %8497 = vmatprep.subr.bf16.mxu1 %v9237_v13 }
0x1901   : > { %v9091_v59 = vpop.eup %9090 }
0x1902   : > { %v5244_v60 = vpop.permute.xlu1 %5243  ;;  %v5055_v2 = vmul.f32 %v9091_v59, %v9089_v50 }
0x1903   : > { %8498 = vmatpush3.bf16.msra.mxu1 %v5244_v60 }
0x1904   : > { %v5056_v25 = vpack.c.bf16 %v5055_v2, %v5055_v2  ;;  %v5121_v32 = vadd.f32 %v5055_v2, %v10809_v61  ;;  %8499 = vmatprep.subr.bf16.mxu1 %v9237_v13  ;;  %v5164_v61 = vsel %vm1150_vm3, %v10324_v26, 0 }
0x1906   : > { %8472 = vmatmul.mubr.bf16.vlgmr.msra.gmra.mrb[100].mxu0 %v5056_v25  ;;  %v5143_v36 = vadd.f32 %v5142_v55, %v5121_v32  ;;  %v5248_v56 = vpop.permute.xlu1 %5247 }
0x1907   : > { %8476 = vmatpush3.bf16.xpose.msra.mxu0 %v5158_v27  ;;  %8491 = vmatprep.mubr.msk.bf16.mxu0 %vm9238_vm2, %v9237_v13 }
0x1908   : > { %5144 = vst [vmem:[#allocation5 + $0x8] sm:$0xff] %v5143_v36  ;;  %8477 = vmatprep.subr.bf16.mxu0 %v9237_v13 }
0x190a   : > { %v5256_v25 = vpop.permute.xlu1 %5255 }
0x190f   : > { %8478 = vmatpush3.bf16.xpose.msra.mxu0 %v5161_v17 }
0x1910   : > { %8479 = vmatprep.subr.bf16.mxu0 %v9237_v13 }
0x1917   : > { %8480 = vmatpush3.bf16.xpose.msra.mxu0 %v5164_v61 }
0x1918   : > { %8481 = vmatprep.subr.bf16.mxu0 %v9237_v13 }
0x191f   : > { %8482 = vmatpush3.bf16.xpose.msra.mxu0 %v5167_v37 }
0x1920   : > { %8483 = vmatprep.subr.bf16.mxu0 %v9237_v13 }
0x1927   : > { %8484 = vmatpush3.bf16.xpose.msra.mxu0 %v5170_v31 }
0x1928   : > { %8485 = vmatprep.subr.bf16.mxu0 %v9237_v13 }
0x192f   : > { %8486 = vmatpush3.bf16.xpose.msra.mxu0 %v5173_v23 }
0x1930   : > { %8487 = vmatprep.subr.bf16.mxu0 %v9237_v13 }
0x1937   : > { %8488 = vmatpush3.bf16.xpose.msra.mxu0 %v5176_v58 }
0x1938   : > { %8489 = vmatprep.subr.bf16.mxu0 %v9237_v13 }
0x193f   : > { %8490 = vmatpush3.bf16.xpose.msra.mxu0 %v5179_v20 }
0x1940   : > { %8535 = vmatprep.subr.bf16.mxu0 %v9237_v13 }
0x1946   : > { %8492 = vmatmul.mubr.msk.bf16.vlgmr.msra.gmra.mrb[104].mxu0 %vm1150_vm3, %v10890_v1 }
0x1947   : > { %8551 = vmatprep.mubr.msk.bf16.mxu0 %vm9238_vm2, %v9237_v13 }
0x19d9   : > { %v10896_v38 = vpop.f32.mrb[100].mxu0 }
0x19da   : > { %v8473_v10 = vpop.f32.mrb[101].mxu0 }
0x19db   : > { %v5118_v14 = vpop.f32.mrb[102].mxu0 }
0x19dc   : > { %v8474_v7 = vpop.f32.mrb[103].mxu0 }
0x1a19   : > { %v5215_v21 = vpop.f32.mrb[104].mxu0 }
0x1a1a   : > { %v5221_v18 = vmul.f32 0.35355338, %v5215_v21  ;;  %v8493_v0 = vpop.f32.mrb[105].mxu0 }
0x1a1b   : > { %v5218_v39 = vpop.f32.mrb[106].mxu0 }
0x1a1c   : > { %v5222_v43 = vadd.f32 %v5221_v18, %v10375_v42  ;;  %v8494_v9 = vpop.f32.mrb[107].mxu0 }
0x1a1e   : > { %5223 = vmax.xlane.f32.xlu0 %v5222_v43 }
0x1a34   : > { %5245 = vrot.lane.b32.xlu0 %v10324_v26, %s9240_s3 }
0x1a38   : > { %5249 = vrot.lane.b32.xlu0 %v10332_v44, %s9240_s3 }
0x1a3c   : > { %5251 = vrot.lane.b32.xlu0 %v10330_v12, %s9240_s3 }
0x1a40   : > { %5253 = vrot.lane.b32.xlu0 %v10340_v6, %s9240_s3 }
0x1a44   : > { %5308 = vrot.lane.b32.xlu0 %v10317_v28, %s9239_s1 }
0x1a48   : > { %5312 = vrot.lane.b32.xlu0 %v10324_v26, %s9239_s1 }
0x1a4c   : > { %5316 = vrot.lane.b32.xlu0 %v10332_v44, %s9239_s1 }
0x1a50   : > { %5320 = vrot.lane.b32.xlu0 %v10340_v6, %s9239_s1 }
0x1a54   : > { %5306 = vrot.lane.b32.xlu0 %v10890_v1, %s9239_s1 }
0x1a58   : > { %5403 = vrot.lane.b32.xlu0 %v10317_v28, %s9242_s27 }
0x1a5c   : > { %5405 = vrot.lane.b32.xlu0 %v10314_v47, %s9242_s27 }
0x1a60   : > { %5409 = vrot.lane.b32.xlu0 %v10322_v35, %s9242_s27 }
0x1aab   : > { %v5224_v19 = vpop.xlane.xlu0 %5223 }
0x1aac   : > { %v5225_v50 = vsub.f32 %v5222_v43, %v5224_v19 }
0x1aae   : > { %v5226_v51 = vmul.f32 1.442695, %v5225_v50 }
0x1aaf   : > { %v5246_v4 = vpop.permute.xlu0 %5245 }
0x1ab0   : > { %9092 = vpow2.f32 %v5226_v51  ;;  %8500 = vmatpush3.bf16.msra.mxu1 %v5246_v4 }
0x1ab1   : > { %8501 = vmatprep.subr.bf16.mxu1 %v9237_v13 }
0x1ab3   : > { %v5250_v22 = vpop.permute.xlu0 %5249 }
0x1ab4   : > { %8502 = vmatpush3.bf16.msra.mxu1 %v5248_v56 }
0x1ab5   : > { %8503 = vmatprep.subr.bf16.mxu1 %v9237_v13 }
0x1ab7   : > { %v5252_v59 = vpop.permute.xlu0 %5251 }
0x1ab8   : > { %8504 = vmatpush3.bf16.msra.mxu1 %v5250_v22 }
0x1ab9   : > { %8505 = vmatprep.subr.bf16.mxu1 %v9237_v13 }
0x1aba   : > { %v9093_v60 = vpop.eup %9092 }
0x1abb   : > { %5228 = vadd.xlane.f32.xlu1 %v9093_v60  ;;  %v5254_v2 = vpop.permute.xlu0 %5253 }
0x1abc   : > { %8506 = vmatpush3.bf16.msra.mxu1 %v5252_v59 }
0x1abd   : > { %8507 = vmatprep.subr.bf16.mxu1 %v9237_v13 }
0x1abf   : > { %v5309_v55 = vpop.permute.xlu0 %5308 }
0x1ac0   : > { %8508 = vmatpush3.bf16.msra.mxu1 %v5254_v2  ;;  %v5328_v10 = vsel %vm1150_vm3, %v5309_v55, 0 }
0x1ac1   : > { %8509 = vmatprep.subr.bf16.mxu1 %v9237_v13 }
0x1ac3   : > { %v5313_v32 = vpop.permute.xlu0 %5312 }
0x1ac4   : > { %8510 = vmatpush3.bf16.msra.mxu1 %v5256_v25  ;;  %v5334_v21 = vsel %vm1150_vm3, %v5313_v32, 0 }
0x1ac5   : > { %8515 = vmatprep.subr.bf16.mxu1 %v9237_v13 }
0x1ac7   : > { %v5317_v36 = vpop.permute.xlu0 %5316 }
0x1ac8   : > { %v5340_v39 = vsel %vm1150_vm3, %v5317_v36, 0 }
0x1acb   : > { %v5321_v27 = vpop.permute.xlu0 %5320 }
0x1acc   : > { %5310 = vrot.lane.b32.xlu1 %v10314_v47, %s9239_s1  ;;  %v5346_v19 = vsel %vm1150_vm3, %v5321_v27, 0 }
0x1acf   : > { %v5307_v17 = vpop.permute.xlu0 %5306 }
0x1ad0   : > { %5314 = vrot.lane.b32.xlu1 %v10322_v35, %s9239_s1 }
0x1ad3   : > { %v5404_v61 = vpop.permute.xlu0 %5403 }
0x1ad4   : > { %5318 = vrot.lane.b32.xlu1 %v10330_v12, %s9239_s1  ;;  %8536 = vmatpush3.bf16.msra.mxu0 %v5404_v61 }
0x1ad5   : > { %8537 = vmatprep.subr.bf16.mxu0 %v9237_v13 }
0x1ad7   : > { %v5406_v37 = vpop.permute.xlu0 %5405 }
0x1ad8   : > { %5322 = vrot.lane.b32.xlu1 %v10338_v5, %s9239_s1  ;;  %8538 = vmatpush3.bf16.msra.mxu0 %v5406_v37 }
0x1ad9   : > { %8539 = vmatprep.subr.bf16.mxu0 %v9237_v13 }
0x1b48   : > { %v5229_v31 = vpop.xlane.xlu1 %5228 }
0x1b49   : > { %9094 = vrcp.f32 %v5229_v31  ;;  %v5410_v31 = vpop.permute.xlu0 %5409 }
0x1b4c   : > { %v5311_v14 = vpop.permute.xlu1 %5310 }
0x1b4d   : > { %v5331_v7 = vsel %vm1150_vm3, %v5311_v14, 0 }
0x1b50   : > { %v5315_v18 = vpop.permute.xlu1 %5314 }
0x1b51   : > { %v5337_v0 = vsel %vm1150_vm3, %v5315_v18, 0 }
0x1b53   : > { %v9095_v23 = vpop.eup %9094 }
0x1b54   : > { %v10939_v58 = vmul.f32 %v9095_v23, %v9093_v60  ;;  %v5319_v43 = vpop.permute.xlu1 %5318 }
0x1b55   : > { %v5343_v9 = vsel %vm1150_vm3, %v5319_v43, 0 }
0x1b56   : > { %v5232_v20 = vpack.c.bf16 %v10939_v58, %v10939_v58 }
0x1b58   : > { %8512 = vmatmul.mubr.bf16.vlgmr.msra.gmra.mrb[164].mxu1 %v5232_v20  ;;  %v5323_v50 = vpop.permute.xlu1 %5322 }
0x1b59   : > { %8516 = vmatpush3.bf16.xpose.msra.mxu1 %v5328_v10  ;;  %8531 = vmatprep.mubr.msk.bf16.mxu1 %vm9238_vm2, %v9237_v13  ;;  %v5349_v51 = vsel %vm1150_vm3, %v5323_v50, 0 }
0x1b5a   : > { %8517 = vmatprep.subr.bf16.mxu1 %v9237_v13 }
0x1b61   : > { %8518 = vmatpush3.bf16.xpose.msra.mxu1 %v5331_v7 }
0x1b62   : > { %8519 = vmatprep.subr.bf16.mxu1 %v9237_v13 }
0x1b69   : > { %8520 = vmatpush3.bf16.xpose.msra.mxu1 %v5334_v21 }
0x1b6a   : > { %8521 = vmatprep.subr.bf16.mxu1 %v9237_v13 }
0x1b71   : > { %8522 = vmatpush3.bf16.xpose.msra.mxu1 %v5337_v0 }
0x1b72   : > { %8523 = vmatprep.subr.bf16.mxu1 %v9237_v13 }
0x1b79   : > { %8524 = vmatpush3.bf16.xpose.msra.mxu1 %v5340_v39 }
0x1b7a   : > { %8525 = vmatprep.subr.bf16.mxu1 %v9237_v13 }
0x1b81   : > { %8526 = vmatpush3.bf16.xpose.msra.mxu1 %v5343_v9 }
0x1b82   : > { %8527 = vmatprep.subr.bf16.mxu1 %v9237_v13 }
0x1b89   : > { %8528 = vmatpush3.bf16.xpose.msra.mxu1 %v5346_v19 }
0x1b8a   : > { %8529 = vmatprep.subr.bf16.mxu1 %v9237_v13 }
0x1b91   : > { %8530 = vmatpush3.bf16.xpose.msra.mxu1 %v5349_v51 }
0x1b92   : > { %8575 = vmatprep.subr.bf16.mxu1 %v9237_v13 }
0x1b98   : > { %8532 = vmatmul.mubr.msk.bf16.vlgmr.msra.gmra.mrb[168].mxu1 %vm1150_vm3, %v5307_v17 }
0x1b99   : > { %8591 = vmatprep.mubr.msk.bf16.mxu1 %vm9238_vm2, %v9237_v13 }
0x1c2b   : > { %v10964_v4 = vpop.f32.mrb[164].mxu1 }
0x1c2c   : > { %v8513_v56 = vpop.f32.mrb[165].mxu1 }
0x1c2d   : > { %v5302_v22 = vpop.f32.mrb[166].mxu1 }
0x1c2e   : > { %v8514_v59 = vpop.f32.mrb[167].mxu1 }
0x1c6b   : > { %v5385_v60 = vpop.f32.mrb[168].mxu1 }
0x1c6c   : > { %v5391_v2 = vmul.f32 0.35355338, %v5385_v60  ;;  %v8533_v55 = vpop.f32.mrb[169].mxu1 }
0x1c6d   : > { %v5388_v25 = vpop.f32.mrb[170].mxu1 }
0x1c6e   : > { %v5392_v32 = vadd.f32 %v5391_v2, %v10375_v42  ;;  %v8534_v36 = vpop.f32.mrb[171].mxu1 }
0x1c70   : > { %5393 = vmax.xlane.f32.xlu1 %v5392_v32 }
0x1c81   : > { %5407 = vrot.lane.b32.xlu1 %v10324_v26, %s9242_s27 }
0x1c85   : > { %5411 = vrot.lane.b32.xlu1 %v10332_v44, %s9242_s27 }
0x1c89   : > { %5413 = vrot.lane.b32.xlu1 %v10330_v12, %s9242_s27 }
0x1c8d   : > { %5415 = vrot.lane.b32.xlu1 %v10340_v6, %s9242_s27 }
0x1c91   : > { %5470 = vrot.lane.b32.xlu1 %v10317_v28, %s9244_s19 }
0x1c95   : > { %5474 = vrot.lane.b32.xlu1 %v10324_v26, %s9244_s19 }
0x1c99   : > { %5478 = vrot.lane.b32.xlu1 %v10332_v44, %s9244_s19 }
0x1c9d   : > { %5482 = vrot.lane.b32.xlu1 %v10340_v6, %s9244_s19 }
0x1ca1   : > { %5468 = vrot.lane.b32.xlu1 %v10890_v1, %s9244_s19 }
0x1ca5   : > { %5565 = vrot.lane.b32.xlu1 %v10317_v28, %s9241_s25 }
0x1ca9   : > { %5567 = vrot.lane.b32.xlu1 %v10314_v47, %s9241_s25 }
0x1cad   : > { %5571 = vrot.lane.b32.xlu1 %v10322_v35, %s9241_s25 }
0x1cb1   : > { %5579 = vrot.lane.b32.xlu1 %v10338_v5, %s9241_s25 }
0x1cfd   : > { %v5394_v27 = vpop.xlane.xlu1 %5393 }
0x1cfe   : > { %v5395_v17 = vsub.f32 %v5392_v32, %v5394_v27 }
0x1d00   : > { %v5396_v61 = vmul.f32 1.442695, %v5395_v17 }
0x1d01   : > { %v5408_v37 = vpop.permute.xlu1 %5407 }
0x1d02   : > { %9096 = vpow2.f32 %v5396_v61  ;;  %8540 = vmatpush3.bf16.msra.mxu0 %v5408_v37 }
0x1d03   : > { %8541 = vmatprep.subr.bf16.mxu0 %v9237_v13 }
0x1d05   : > { %v5412_v23 = vpop.permute.xlu1 %5411 }
0x1d06   : > { %8542 = vmatpush3.bf16.msra.mxu0 %v5410_v31 }
0x1d07   : > { %8543 = vmatprep.subr.bf16.mxu0 %v9237_v13 }
0x1d09   : > { %v5414_v20 = vpop.permute.xlu1 %5413 }
0x1d0a   : > { %8544 = vmatpush3.bf16.msra.mxu0 %v5412_v23 }
0x1d0b   : > { %8545 = vmatprep.subr.bf16.mxu0 %v9237_v13 }
0x1d0c   : > { %v9097_v10 = vpop.eup %9096 }
0x1d0d   : > { %5398 = vadd.xlane.f32.xlu0 %v9097_v10  ;;  %v5416_v14 = vpop.permute.xlu1 %5415 }
0x1d0e   : > { %8546 = vmatpush3.bf16.msra.mxu0 %v5414_v20 }
0x1d0f   : > { %8547 = vmatprep.subr.bf16.mxu0 %v9237_v13 }
0x1d11   : > { %v5471_v7 = vpop.permute.xlu1 %5470 }
0x1d12   : > { %8548 = vmatpush3.bf16.msra.mxu0 %v5416_v14  ;;  %v5490_v59 = vsel %vm1150_vm3, %v5471_v7, 0 }
0x1d13   : > { %8549 = vmatprep.subr.bf16.mxu0 %v9237_v13 }
0x1d15   : > { %v5475_v21 = vpop.permute.xlu1 %5474 }
0x1d16   : > { %v5496_v55 = vsel %vm1150_vm3, %v5475_v21, 0 }
0x1d19   : > { %v5479_v18 = vpop.permute.xlu1 %5478 }
0x1d1a   : > { %v5502_v36 = vsel %vm1150_vm3, %v5479_v18, 0 }
0x1d1d   : > { %v5483_v0 = vpop.permute.xlu1 %5482 }
0x1d1e   : > { %v5508_v61 = vsel %vm1150_vm3, %v5483_v0, 0 }
0x1d21   : > { %v5469_v39 = vpop.permute.xlu1 %5468 }
0x1d23   : > { %5417 = vrot.lane.b32.xlu0 %v10338_v5, %s9242_s27 }
0x1d25   : > { %v5566_v43 = vpop.permute.xlu1 %5565 }
0x1d26   : > { %8576 = vmatpush3.bf16.msra.mxu1 %v5566_v43 }
0x1d27   : > { %5472 = vrot.lane.b32.xlu0 %v10314_v47, %s9244_s19  ;;  %8577 = vmatprep.subr.bf16.mxu1 %v9237_v13 }
0x1d29   : > { %v5568_v9 = vpop.permute.xlu1 %5567 }
0x1d2a   : > { %8578 = vmatpush3.bf16.msra.mxu1 %v5568_v9 }
0x1d2b   : > { %5476 = vrot.lane.b32.xlu0 %v10322_v35, %s9244_s19  ;;  %8579 = vmatprep.subr.bf16.mxu1 %v9237_v13 }
0x1d2f   : > { %5480 = vrot.lane.b32.xlu0 %v10330_v12, %s9244_s19 }
0x1d33   : > { %5484 = vrot.lane.b32.xlu0 %v10338_v5, %s9244_s19 }
0x1d9a   : > { %v5399_v19 = vpop.xlane.xlu0 %5398 }
0x1d9b   : > { %9098 = vrcp.f32 %v5399_v19 }
0x1d9e   : > { %v5418_v50 = vpop.permute.xlu0 %5417 }
0x1d9f   : > { %8550 = vmatpush3.bf16.msra.mxu0 %v5418_v50 }
0x1da0   : > { %8555 = vmatprep.subr.bf16.mxu0 %v9237_v13 }
0x1da2   : > { %v5473_v60 = vpop.permute.xlu0 %5472 }
0x1da3   : > { %v5493_v2 = vsel %vm1150_vm3, %v5473_v60, 0 }
0x1da5   : > { %v9099_v51 = vpop.eup %9098 }
0x1da6   : > { %v11011_v56 = vmul.f32 %v9099_v51, %v9097_v10  ;;  %v5477_v25 = vpop.permute.xlu0 %5476 }
0x1da7   : > { %v5499_v32 = vsel %vm1150_vm3, %v5477_v25, 0 }
0x1da8   : > { %v5402_v22 = vpack.c.bf16 %v11011_v56, %v11011_v56 }
0x1daa   : > { %8552 = vmatmul.mubr.bf16.vlgmr.msra.gmra.mrb[108].mxu0 %v5402_v22  ;;  %v5481_v27 = vpop.permute.xlu0 %5480 }
0x1dab   : > { %8556 = vmatpush3.bf16.xpose.msra.mxu0 %v5490_v59  ;;  %8571 = vmatprep.mubr.msk.bf16.mxu0 %vm9238_vm2, %v9237_v13  ;;  %v5505_v17 = vsel %vm1150_vm3, %v5481_v27, 0  ;;  %v5572_v59 = vpop.permute.xlu1 %5571 }
0x1dac   : > { %8557 = vmatprep.subr.bf16.mxu0 %v9237_v13 }
0x1dae   : > { %v5485_v37 = vpop.permute.xlu0 %5484 }
0x1daf   : > { %v5511_v31 = vsel %vm1150_vm3, %v5485_v37, 0  ;;  %v5580_v25 = vpop.permute.xlu1 %5579 }
0x1db3   : > { %8558 = vmatpush3.bf16.xpose.msra.mxu0 %v5493_v2 }
0x1db4   : > { %8559 = vmatprep.subr.bf16.mxu0 %v9237_v13 }
0x1dbb   : > { %8560 = vmatpush3.bf16.xpose.msra.mxu0 %v5496_v55 }
0x1dbc   : > { %8561 = vmatprep.subr.bf16.mxu0 %v9237_v13 }
0x1dc3   : > { %8562 = vmatpush3.bf16.xpose.msra.mxu0 %v5499_v32 }
0x1dc4   : > { %8563 = vmatprep.subr.bf16.mxu0 %v9237_v13 }
0x1dcb   : > { %8564 = vmatpush3.bf16.xpose.msra.mxu0 %v5502_v36 }
0x1dcc   : > { %8565 = vmatprep.subr.bf16.mxu0 %v9237_v13 }
0x1dd3   : > { %8566 = vmatpush3.bf16.xpose.msra.mxu0 %v5505_v17 }
0x1dd4   : > { %8567 = vmatprep.subr.bf16.mxu0 %v9237_v13 }
0x1ddb   : > { %8568 = vmatpush3.bf16.xpose.msra.mxu0 %v5508_v61 }
0x1ddc   : > { %8569 = vmatprep.subr.bf16.mxu0 %v9237_v13 }
0x1de3   : > { %8570 = vmatpush3.bf16.xpose.msra.mxu0 %v5511_v31 }
0x1de4   : > { %8615 = vmatprep.subr.bf16.mxu0 %v9237_v13 }
0x1dea   : > { %8572 = vmatmul.mubr.msk.bf16.vlgmr.msra.gmra.mrb[112].mxu0 %vm1150_vm3, %v5469_v39 }
0x1deb   : > { %8631 = vmatprep.mubr.msk.bf16.mxu0 %vm9238_vm2, %v9237_v13 }
0x1e7d   : > { %v11036_v23 = vpop.f32.mrb[108].mxu0 }
0x1e7e   : > { %v8920_v20 = vpack.i.bf16 %v11036_v23, %v10492_v54  ;;  %v8553_v10 = vpop.f32.mrb[109].mxu0 }
0x1e7f   : > { %v5464_v14 = vpop.f32.mrb[110].mxu0 }
0x1e80   : > { %v8554_v7 = vpop.f32.mrb[111].mxu0 }
0x1ebd   : > { %v5547_v21 = vpop.f32.mrb[112].mxu0 }
0x1ebe   : > { %v5553_v18 = vmul.f32 0.35355338, %v5547_v21  ;;  %v8573_v0 = vpop.f32.mrb[113].mxu0 }
0x1ebf   : > { %v5550_v43 = vpop.f32.mrb[114].mxu0 }
0x1ec0   : > { %v5554_v9 = vadd.f32 %v5553_v18, %v10375_v42  ;;  %v8574_v19 = vpop.f32.mrb[115].mxu0 }
0x1ec2   : > { %5555 = vmax.xlane.f32.xlu0 %v5554_v9 }
0x1ed8   : > { %5569 = vrot.lane.b32.xlu0 %v10324_v26, %s9241_s25 }
0x1edc   : > { %5573 = vrot.lane.b32.xlu0 %v10332_v44, %s9241_s25 }
0x1ee0   : > { %5575 = vrot.lane.b32.xlu0 %v10330_v12, %s9241_s25 }
0x1ee4   : > { %5577 = vrot.lane.b32.xlu0 %v10340_v6, %s9241_s25 }
0x1ee8   : > { %5632 = vrot.lane.b32.xlu0 %v10317_v28, %s9245_s4 }
0x1eec   : > { %5636 = vrot.lane.b32.xlu0 %v10324_v26, %s9245_s4 }
0x1ef0   : > { %5640 = vrot.lane.b32.xlu0 %v10332_v44, %s9245_s4 }
0x1ef4   : > { %5644 = vrot.lane.b32.xlu0 %v10340_v6, %s9245_s4 }
0x1ef8   : > { %5630 = vrot.lane.b32.xlu0 %v10890_v1, %s9245_s4 }
0x1efc   : > { %5727 = vrot.lane.b32.xlu0 %v10317_v28, %s9243_s8 }
0x1f00   : > { %5729 = vrot.lane.b32.xlu0 %v10314_v47, %s9243_s8 }
0x1f04   : > { %5733 = vrot.lane.b32.xlu0 %v10322_v35, %s9243_s8 }
0x1f4f   : > { %v5556_v39 = vpop.xlane.xlu0 %5555 }
0x1f50   : > { %v5557_v50 = vsub.f32 %v5554_v9, %v5556_v39 }
0x1f52   : > { %v5558_v51 = vmul.f32 1.442695, %v5557_v50 }
0x1f53   : > { %v5570_v22 = vpop.permute.xlu0 %5569 }
0x1f54   : > { %9100 = vpow2.f32 %v5558_v51  ;;  %8580 = vmatpush3.bf16.msra.mxu1 %v5570_v22 }
0x1f55   : > { %8581 = vmatprep.subr.bf16.mxu1 %v9237_v13 }
0x1f57   : > { %v5574_v60 = vpop.permute.xlu0 %5573 }
0x1f58   : > { %8582 = vmatpush3.bf16.msra.mxu1 %v5572_v59 }
0x1f59   : > { %8583 = vmatprep.subr.bf16.mxu1 %v9237_v13 }
0x1f5b   : > { %v5576_v28 = vpop.permute.xlu0 %5575 }
0x1f5c   : > { %8584 = vmatpush3.bf16.msra.mxu1 %v5574_v60 }
0x1f5d   : > { %8585 = vmatprep.subr.bf16.mxu1 %v9237_v13 }
0x1f5e   : > { %v9101_v1 = vpop.eup %9100 }
0x1f5f   : > { %5560 = vadd.xlane.f32.xlu1 %v9101_v1  ;;  %v5578_v2 = vpop.permute.xlu0 %5577 }
0x1f60   : > { %8586 = vmatpush3.bf16.msra.mxu1 %v5576_v28 }
0x1f61   : > { %8587 = vmatprep.subr.bf16.mxu1 %v9237_v13 }
0x1f63   : > { %v5633_v55 = vpop.permute.xlu0 %5632 }
0x1f64   : > { %8588 = vmatpush3.bf16.msra.mxu1 %v5578_v2  ;;  %v5652_v21 = vsel %vm1150_vm3, %v5633_v55, 0 }
0x1f65   : > { %8589 = vmatprep.subr.bf16.mxu1 %v9237_v13 }
0x1f67   : > { %v5637_v32 = vpop.permute.xlu0 %5636 }
0x1f68   : > { %8590 = vmatpush3.bf16.msra.mxu1 %v5580_v25 }
0x1f69   : > { %8595 = vmatprep.subr.bf16.mxu1 %v9237_v13 }
0x1f6b   : > { %v5641_v36 = vpop.permute.xlu0 %5640 }
0x1f6c   : > { %v5664_v9 = vsel %vm1150_vm3, %v5641_v36, 0 }
0x1f6f   : > { %v5645_v27 = vpop.permute.xlu0 %5644 }
0x1f70   : > { %5634 = vrot.lane.b32.xlu1 %v10314_v47, %s9245_s4  ;;  %v5670_v50 = vsel %vm1150_vm3, %v5645_v27, 0 }
0x1f73   : > { %v5631_v17 = vpop.permute.xlu0 %5630 }
0x1f74   : > { %5638 = vrot.lane.b32.xlu1 %v10322_v35, %s9245_s4  ;;  %v5467_v35 = vadd.f32 %v11011_v56, %v10939_v58  ;;  %v5658_v58 = vsel %vm1150_vm3, %v5637_v32, 0 }
0x1f77   : > { %v5728_v61 = vpop.permute.xlu0 %5727 }
0x1f78   : > { %5642 = vrot.lane.b32.xlu1 %v10330_v12, %s9245_s4  ;;  %8616 = vmatpush3.bf16.msra.mxu0 %v5728_v61 }
0x1f79   : > { %8617 = vmatprep.subr.bf16.mxu0 %v9237_v13 }
0x1f7b   : > { %v5730_v37 = vpop.permute.xlu0 %5729 }
0x1f7c   : > { %5646 = vrot.lane.b32.xlu1 %v10338_v5, %s9245_s4  ;;  %8618 = vmatpush3.bf16.msra.mxu0 %v5730_v37 }
0x1f7d   : > { %8619 = vmatprep.subr.bf16.mxu0 %v9237_v13 }
0x1fec   : > { %v5561_v31 = vpop.xlane.xlu1 %5560 }
0x1fed   : > { %9102 = vrcp.f32 %v5561_v31 }
0x1ff0   : > { %v5635_v18 = vpop.permute.xlu1 %5634 }
0x1ff1   : > { %v5655_v0 = vsel %vm1150_vm3, %v5635_v18, 0 }
0x1ff4   : > { %v5639_v56 = vpop.permute.xlu1 %5638 }
0x1ff5   : > { %v5661_v43 = vsel %vm1150_vm3, %v5639_v56, 0 }
0x1ff7   : > { %v9103_v47 = vpop.eup %9102 }
0x1ff8   : > { %v5563_v10 = vmul.f32 %v9103_v47, %v9101_v1  ;;  %v5643_v19 = vpop.permute.xlu1 %5642 }
0x1ff9   : > { %v5667_v39 = vsel %vm1150_vm3, %v5643_v19, 0  ;;  %v5825_v19 = vsel %vm1150_vm3, %v10348_v29, 0 }
0x1ffa   : > { %v5564_v14 = vpack.c.bf16 %v5563_v10, %v5563_v10  ;;  %v11083_v7 = vadd.f32 %v5563_v10, %v5467_v35  ;;  %v5734_v35 = vpop.permute.xlu0 %5733 }
0x1ffc   : > { %8592 = vmatmul.mubr.bf16.vlgmr.msra.gmra.mrb[172].mxu1 %v5564_v14  ;;  %v5647_v51 = vpop.permute.xlu1 %5646 }
0x1ffd   : > { %8596 = vmatpush3.bf16.xpose.msra.mxu1 %v5652_v21  ;;  %8611 = vmatprep.mubr.msk.bf16.mxu1 %vm9238_vm2, %v9237_v13  ;;  %v5673_v22 = vsel %vm1150_vm3, %v5647_v51, 0  ;;  %v5837_v51 = vsel %vm1150_vm3, %v10364_v40, 0 }
0x1ffe   : > { %8597 = vmatprep.subr.bf16.mxu1 %v9237_v13 }
0x2005   : > { %8598 = vmatpush3.bf16.xpose.msra.mxu1 %v5655_v0 }
0x2006   : > { %8599 = vmatprep.subr.bf16.mxu1 %v9237_v13 }
0x200d   : > { %8600 = vmatpush3.bf16.xpose.msra.mxu1 %v5658_v58  ;;  %v5809_v58 = vld [vmem:[#allocation5 + $0x10] sm:$0xff] }
0x200e   : > { %8601 = vmatprep.subr.bf16.mxu1 %v9237_v13 }
0x2015   : > { %8602 = vmatpush3.bf16.xpose.msra.mxu1 %v5661_v43 }
0x2016   : > { %8603 = vmatprep.subr.bf16.mxu1 %v9237_v13 }
0x201d   : > { %8604 = vmatpush3.bf16.xpose.msra.mxu1 %v5664_v9 }
0x201e   : > { %8605 = vmatprep.subr.bf16.mxu1 %v9237_v13 }
0x2025   : > { %8606 = vmatpush3.bf16.xpose.msra.mxu1 %v5667_v39  ;;  %v5828_v39 = vsel %vm1150_vm3, %v10346_v24, 0 }
0x2026   : > { %8607 = vmatprep.subr.bf16.mxu1 %v9237_v13 }
0x202d   : > { %8608 = vmatpush3.bf16.xpose.msra.mxu1 %v5670_v50  ;;  %v5834_v50 = vsel %vm1150_vm3, %v10354_v11, 0 }
0x202e   : > { %8609 = vmatprep.subr.bf16.mxu1 %v9237_v13 }
0x2035   : > { %8610 = vmatpush3.bf16.xpose.msra.mxu1 %v5673_v22  ;;  %v5840_v22 = vsel %vm1150_vm3, %v10362_v8, 0 }
0x2036   : > { %8655 = vmatprep.subr.bf16.mxu1 %v9237_v13 }
0x203c   : > { %8612 = vmatmul.mubr.msk.bf16.vlgmr.msra.gmra.mrb[176].mxu1 %vm1150_vm3, %v5631_v17 }
0x203d   : > { %8671 = vmatprep.mubr.msk.bf16.mxu1 %vm9238_vm2, %v9237_v13 }
0x20cf   : > { %v11106_v59 = vpop.f32.mrb[172].mxu1 }
0x20d0   : > { %v8925_v60 = vpack.i.bf16 %v11106_v59, %v10560_v30  ;;  %v8593_v28 = vpop.f32.mrb[173].mxu1 }
0x20d1   : > { %v5626_v1 = vpop.f32.mrb[174].mxu1  ;;  %v5843_v28 = vsel %vm1150_vm3, %v10372_v57, 0 }
0x20d2   : > { %v8594_v2 = vpop.f32.mrb[175].mxu1  ;;  %v5846_v1 = vsel %vm1150_vm3, %v10370_v41, 0 }
0x20d3   : > { %v11164_v2 = vpack.c.bf16 %v10263_v33, %v10263_v33 }
0x210f   : > { %v5709_v55 = vpop.f32.mrb[176].mxu1 }
0x2110   : > { %v5715_v25 = vmul.f32 0.35355338, %v5709_v55  ;;  %v8613_v32 = vpop.f32.mrb[177].mxu1 }
0x2111   : > { %v5712_v36 = vpop.f32.mrb[178].mxu1 }
0x2112   : > { %v5716_v27 = vadd.f32 %v5715_v25, %v10375_v42  ;;  %v8614_v61 = vpop.f32.mrb[179].mxu1 }
0x2114   : > { %5717 = vmax.xlane.f32.xlu1 %v5716_v27 }
0x2125   : > { %5731 = vrot.lane.b32.xlu1 %v10324_v26, %s9243_s8 }
0x2129   : > { %5735 = vrot.lane.b32.xlu1 %v10332_v44, %s9243_s8 }
0x212d   : > { %5737 = vrot.lane.b32.xlu1 %v10330_v12, %s9243_s8 }
0x2131   : > { %5739 = vrot.lane.b32.xlu1 %v10340_v6, %s9243_s8 }
0x21a1   : > { %v5718_v17 = vpop.xlane.xlu1 %5717 }
0x21a2   : > { %v5719_v37 = vsub.f32 %v5716_v27, %v5718_v17 }
0x21a4   : > { %v5720_v31 = vmul.f32 1.442695, %v5719_v37 }
0x21a5   : > { %v5732_v47 = vpop.permute.xlu1 %5731 }
0x21a6   : > { %9104 = vpow2.f32 %v5720_v31  ;;  %8620 = vmatpush3.bf16.msra.mxu0 %v5732_v47 }
0x21a7   : > { %8621 = vmatprep.subr.bf16.mxu0 %v9237_v13 }
0x21a9   : > { %v5736_v10 = vpop.permute.xlu1 %5735 }
0x21aa   : > { %8622 = vmatpush3.bf16.msra.mxu0 %v5734_v35 }
0x21ab   : > { %8623 = vmatprep.subr.bf16.mxu0 %v9237_v13 }
0x21ad   : > { %v5738_v26 = vpop.permute.xlu1 %5737 }
0x21ae   : > { %8624 = vmatpush3.bf16.msra.mxu0 %v5736_v10 }
0x21af   : > { %8625 = vmatprep.subr.bf16.mxu0 %v9237_v13 }
0x21b0   : > { %v9105_v12 = vpop.eup %9104 }
0x21b1   : > { %5722 = vadd.xlane.f32.xlu0 %v9105_v12  ;;  %v5740_v44 = vpop.permute.xlu1 %5739 }
0x21b2   : > { %8626 = vmatpush3.bf16.msra.mxu0 %v5738_v26 }
0x21b3   : > { %8627 = vmatprep.subr.bf16.mxu0 %v9237_v13 }
0x21b6   : > { %8628 = vmatpush3.bf16.msra.mxu0 %v5740_v44 }
0x21b7   : > { %8629 = vmatprep.subr.bf16.mxu0 %v9237_v13 }
0x21c7   : > { %5741 = vrot.lane.b32.xlu0 %v10338_v5, %s9243_s8 }
0x21cb   : > { %5908 = vrot.lane.b32.xlu0 %v10348_v29, %s9240_s3 }
0x21cf   : > { %5910 = vrot.lane.b32.xlu0 %v10346_v24, %s9240_s3 }
0x21d3   : > { %5914 = vrot.lane.b32.xlu0 %v10354_v11, %s9240_s3 }
0x223e   : > { %v5723_v6 = vpop.xlane.xlu0 %5722 }
0x223f   : > { %9106 = vrcp.f32 %v5723_v6 }
0x2242   : > { %v5742_v14 = vpop.permute.xlu0 %5741 }
0x2243   : > { %8630 = vmatpush3.bf16.msra.mxu0 %v5742_v14 }
0x2244   : > { %8635 = vmatprep.subr.bf16.mxu0 %v9237_v13 }
0x2246   : > { %v5909_v21 = vpop.permute.xlu0 %5908 }
0x2247   : > { %8656 = vmatpush3.bf16.msra.mxu1 %v5909_v21 }
0x2248   : > { %8657 = vmatprep.subr.bf16.mxu1 %v9237_v13 }
0x2249   : > { %v9107_v5 = vpop.eup %9106 }
0x224a   : > { %v5911_v18 = vpop.permute.xlu0 %5910  ;;  %v5725_v0 = vmul.f32 %v9107_v5, %v9105_v12 }
0x224b   : > { %8658 = vmatpush3.bf16.msra.mxu1 %v5911_v18 }
0x224c   : > { %v5726_v56 = vpack.c.bf16 %v5725_v0, %v5725_v0  ;;  %v5791_v43 = vadd.f32 %v5725_v0, %v11083_v7  ;;  %8659 = vmatprep.subr.bf16.mxu1 %v9237_v13  ;;  %v5831_v7 = vsel %vm1150_vm3, %v10356_v15, 0 }
0x224e   : > { %8632 = vmatmul.mubr.bf16.vlgmr.msra.gmra.mrb[116].mxu0 %v5726_v56  ;;  %v5810_v9 = vadd.f32 %v5809_v58, %v5791_v43  ;;  %v5915_v44 = vpop.permute.xlu0 %5914 }
0x224f   : > { %8636 = vmatpush3.bf16.xpose.msra.mxu0 %v5825_v19  ;;  %8651 = vmatprep.mubr.msk.bf16.mxu0 %vm9238_vm2, %v9237_v13 }
0x2250   : > { %5811 = vst [vmem:[#allocation5 + $0x10] sm:$0xff] %v5810_v9  ;;  %8637 = vmatprep.subr.bf16.mxu0 %v9237_v13 }
0x2257   : > { %8638 = vmatpush3.bf16.xpose.msra.mxu0 %v5828_v39 }
0x2258   : > { %8639 = vmatprep.subr.bf16.mxu0 %v9237_v13 }
0x225f   : > { %8640 = vmatpush3.bf16.xpose.msra.mxu0 %v5831_v7 }
0x2260   : > { %8641 = vmatprep.subr.bf16.mxu0 %v9237_v13 }
0x2267   : > { %8642 = vmatpush3.bf16.xpose.msra.mxu0 %v5834_v50 }
0x2268   : > { %8643 = vmatprep.subr.bf16.mxu0 %v9237_v13 }
0x226f   : > { %8644 = vmatpush3.bf16.xpose.msra.mxu0 %v5837_v51 }
0x2270   : > { %8645 = vmatprep.subr.bf16.mxu0 %v9237_v13 }
0x2277   : > { %8646 = vmatpush3.bf16.xpose.msra.mxu0 %v5840_v22 }
0x2278   : > { %8647 = vmatprep.subr.bf16.mxu0 %v9237_v13 }
0x227f   : > { %8648 = vmatpush3.bf16.xpose.msra.mxu0 %v5843_v28 }
0x2280   : > { %8649 = vmatprep.subr.bf16.mxu0 %v9237_v13 }
0x2287   : > { %8650 = vmatpush3.bf16.xpose.msra.mxu0 %v5846_v1 }
0x2288   : > { %8695 = vmatprep.subr.bf16.mxu0 %v9237_v13 }
0x228e   : > { %8652 = vmatmul.mubr.msk.bf16.vlgmr.msra.gmra.mrb[120].mxu0 %vm1150_vm3, %v11164_v2 }
0x228f   : > { %8711 = vmatprep.mubr.msk.bf16.mxu0 %vm9238_vm2, %v9237_v13 }
0x2321   : > { %v11170_v55 = vpop.f32.mrb[116].mxu0 }
0x2322   : > { %v8935_v25 = vpack.i.bf16 %v11170_v55, %v10622_v48  ;;  %v8633_v32 = vpop.f32.mrb[117].mxu0 }
0x2323   : > { %v5788_v36 = vpop.f32.mrb[118].mxu0 }
0x2324   : > { %v8634_v27 = vpop.f32.mrb[119].mxu0 }
0x2361   : > { %v5882_v61 = vpop.f32.mrb[120].mxu0 }
0x2362   : > { %v5888_v17 = vmul.f32 0.35355338, %v5882_v61  ;;  %v8653_v37 = vpop.f32.mrb[121].mxu0 }
0x2363   : > { %v5885_v31 = vpop.f32.mrb[122].mxu0 }
0x2364   : > { %v5889_v33 = vadd.f32 %v5888_v17, %v10375_v42  ;;  %v8654_v47 = vpop.f32.mrb[123].mxu0 }
0x2366   : > { %5890 = vmax.xlane.f32.xlu1 %v5889_v33 }
0x2377   : > { %5912 = vrot.lane.b32.xlu1 %v10356_v15, %s9240_s3 }
0x237b   : > { %5916 = vrot.lane.b32.xlu1 %v10364_v40, %s9240_s3 }
0x237f   : > { %5918 = vrot.lane.b32.xlu1 %v10362_v8, %s9240_s3 }
0x2383   : > { %5920 = vrot.lane.b32.xlu1 %v10372_v57, %s9240_s3 }
0x2387   : > { %5975 = vrot.lane.b32.xlu1 %v10348_v29, %s9239_s1 }
0x238b   : > { %5979 = vrot.lane.b32.xlu1 %v10356_v15, %s9239_s1 }
0x238f   : > { %5983 = vrot.lane.b32.xlu1 %v10364_v40, %s9239_s1 }
0x2393   : > { %5987 = vrot.lane.b32.xlu1 %v10372_v57, %s9239_s1 }
0x2397   : > { %5973 = vrot.lane.b32.xlu1 %v11164_v2, %s9239_s1 }
0x239b   : > { %6070 = vrot.lane.b32.xlu1 %v10348_v29, %s9242_s27 }
0x239f   : > { %6072 = vrot.lane.b32.xlu1 %v10346_v24, %s9242_s27 }
0x23a3   : > { %6076 = vrot.lane.b32.xlu1 %v10354_v11, %s9242_s27 }
0x23a7   : > { %6084 = vrot.lane.b32.xlu1 %v10370_v41, %s9242_s27 }
0x23f3   : > { %v5891_v35 = vpop.xlane.xlu1 %5890 }
0x23f4   : > { %v5892_v10 = vsub.f32 %v5889_v33, %v5891_v35 }
0x23f6   : > { %v5893_v26 = vmul.f32 1.442695, %v5892_v10 }
0x23f7   : > { %v5913_v12 = vpop.permute.xlu1 %5912 }
0x23f8   : > { %9108 = vpow2.f32 %v5893_v26  ;;  %8660 = vmatpush3.bf16.msra.mxu1 %v5913_v12 }
0x23f9   : > { %8661 = vmatprep.subr.bf16.mxu1 %v9237_v13 }
0x23fb   : > { %v5917_v6 = vpop.permute.xlu1 %5916 }
0x23fc   : > { %8662 = vmatpush3.bf16.msra.mxu1 %v5915_v44 }
0x23fd   : > { %8663 = vmatprep.subr.bf16.mxu1 %v9237_v13 }
0x23ff   : > { %v5919_v14 = vpop.permute.xlu1 %5918 }
0x2400   : > { %8664 = vmatpush3.bf16.msra.mxu1 %v5917_v6 }
0x2401   : > { %8665 = vmatprep.subr.bf16.mxu1 %v9237_v13 }
0x2402   : > { %v9109_v21 = vpop.eup %9108 }
0x2403   : > { %5895 = vadd.xlane.f32.xlu0 %v9109_v21  ;;  %v5921_v5 = vpop.permute.xlu1 %5920 }
0x2404   : > { %8666 = vmatpush3.bf16.msra.mxu1 %v5919_v14 }
0x2405   : > { %8667 = vmatprep.subr.bf16.mxu1 %v9237_v13 }
0x2407   : > { %v5976_v18 = vpop.permute.xlu1 %5975 }
0x2408   : > { %8668 = vmatpush3.bf16.msra.mxu1 %v5921_v5  ;;  %v5995_v28 = vsel %vm1150_vm3, %v5976_v18, 0 }
0x2409   : > { %8669 = vmatprep.subr.bf16.mxu1 %v9237_v13 }
0x240b   : > { %v5980_v0 = vpop.permute.xlu1 %5979 }
0x240c   : > { %v6001_v36 = vsel %vm1150_vm3, %v5980_v0, 0 }
0x240f   : > { %v5984_v58 = vpop.permute.xlu1 %5983 }
0x2410   : > { %v6007_v17 = vsel %vm1150_vm3, %v5984_v58, 0 }
0x2413   : > { %v5988_v56 = vpop.permute.xlu1 %5987 }
0x2414   : > { %v6013_v33 = vsel %vm1150_vm3, %v5988_v56, 0 }
0x2417   : > { %v5974_v43 = vpop.permute.xlu1 %5973 }
0x2419   : > { %5922 = vrot.lane.b32.xlu0 %v10370_v41, %s9240_s3 }
0x241b   : > { %v6071_v9 = vpop.permute.xlu1 %6070 }
0x241c   : > { %8696 = vmatpush3.bf16.msra.mxu0 %v6071_v9 }
0x241d   : > { %5977 = vrot.lane.b32.xlu0 %v10346_v24, %s9239_s1  ;;  %8697 = vmatprep.subr.bf16.mxu0 %v9237_v13 }
0x241f   : > { %v6073_v19 = vpop.permute.xlu1 %6072 }
0x2420   : > { %8698 = vmatpush3.bf16.msra.mxu0 %v6073_v19 }
0x2421   : > { %5981 = vrot.lane.b32.xlu0 %v10354_v11, %s9239_s1  ;;  %8699 = vmatprep.subr.bf16.mxu0 %v9237_v13 }
0x2423   : > { %v6077_v19 = vpop.permute.xlu1 %6076 }
0x2425   : > { %5985 = vrot.lane.b32.xlu0 %v10362_v8, %s9239_s1 }
0x2429   : > { %5989 = vrot.lane.b32.xlu0 %v10370_v41, %s9239_s1  ;;  %s11654_s1 = smov 24  }
0x2490   : > { %v5896_v39 = vpop.xlane.xlu0 %5895 }
0x2491   : > { %9110 = vrcp.f32 %v5896_v39 }
0x2494   : > { %v5923_v7 = vpop.permute.xlu0 %5922 }
0x2495   : > { %8670 = vmatpush3.bf16.msra.mxu1 %v5923_v7 }
0x2496   : > { %8675 = vmatprep.subr.bf16.mxu1 %v9237_v13 }
0x2498   : > { %v5978_v1 = vpop.permute.xlu0 %5977 }
0x2499   : > { %v5998_v32 = vsel %vm1150_vm3, %v5978_v1, 0  ;;  %v6085_v1 = vpop.permute.xlu1 %6084 }
0x249b   : > { %v9111_v50 = vpop.eup %9110 }
0x249c   : > { %v11219_v51 = vmul.f32 %v9111_v50, %v9109_v21  ;;  %v5982_v27 = vpop.permute.xlu0 %5981 }
0x249d   : > { %v6004_v61 = vsel %vm1150_vm3, %v5982_v27, 0 }
0x249e   : > { %v5899_v22 = vpack.c.bf16 %v11219_v51, %v11219_v51 }
0x24a0   : > { %8672 = vmatmul.mubr.bf16.vlgmr.msra.gmra.mrb[180].mxu1 %v5899_v22  ;;  %v5986_v37 = vpop.permute.xlu0 %5985 }
0x24a1   : > { %8676 = vmatpush3.bf16.xpose.msra.mxu1 %v5995_v28  ;;  %8691 = vmatprep.mubr.msk.bf16.mxu1 %vm9238_vm2, %v9237_v13  ;;  %v6010_v31 = vsel %vm1150_vm3, %v5986_v37, 0 }
0x24a2   : > { %8677 = vmatprep.subr.bf16.mxu1 %v9237_v13 }
0x24a4   : > { %v5990_v47 = vpop.permute.xlu0 %5989 }
0x24a5   : > { %v6016_v35 = vsel %vm1150_vm3, %v5990_v47, 0 }
0x24a9   : > { %8678 = vmatpush3.bf16.xpose.msra.mxu1 %v5998_v32 }
0x24aa   : > { %8679 = vmatprep.subr.bf16.mxu1 %v9237_v13 }
0x24b1   : > { %8680 = vmatpush3.bf16.xpose.msra.mxu1 %v6001_v36 }
0x24b2   : > { %8681 = vmatprep.subr.bf16.mxu1 %v9237_v13 }
0x24b9   : > { %8682 = vmatpush3.bf16.xpose.msra.mxu1 %v6004_v61 }
0x24ba   : > { %8683 = vmatprep.subr.bf16.mxu1 %v9237_v13 }
0x24c1   : > { %8684 = vmatpush3.bf16.xpose.msra.mxu1 %v6007_v17 }
0x24c2   : > { %8685 = vmatprep.subr.bf16.mxu1 %v9237_v13 }
0x24c9   : > { %8686 = vmatpush3.bf16.xpose.msra.mxu1 %v6010_v31 }
0x24ca   : > { %8687 = vmatprep.subr.bf16.mxu1 %v9237_v13 }
0x24d1   : > { %8688 = vmatpush3.bf16.xpose.msra.mxu1 %v6013_v33 }
0x24d2   : > { %8689 = vmatprep.subr.bf16.mxu1 %v9237_v13 }
0x24d9   : > { %8690 = vmatpush3.bf16.xpose.msra.mxu1 %v6016_v35 }
0x24da   : > { %8735 = vmatprep.subr.bf16.mxu1 %v9237_v13 }
0x24e0   : > { %8692 = vmatmul.mubr.msk.bf16.vlgmr.msra.gmra.mrb[184].mxu1 %vm1150_vm3, %v5974_v43 }
0x24e1   : > { %8751 = vmatprep.mubr.msk.bf16.mxu1 %vm9238_vm2, %v9237_v13 }
0x2573   : > { %v11244_v10 = vpop.f32.mrb[180].mxu1 }
0x2574   : > { %v8673_v26 = vpop.f32.mrb[181].mxu1 }
0x2575   : > { %v5969_v12 = vpop.f32.mrb[182].mxu1 }
0x2576   : > { %v8674_v44 = vpop.f32.mrb[183].mxu1 }
0x25b3   : > { %v6052_v6 = vpop.f32.mrb[184].mxu1 }
0x25b4   : > { %v6058_v14 = vmul.f32 0.35355338, %v6052_v6  ;;  %v8693_v21 = vpop.f32.mrb[185].mxu1 }
0x25b5   : > { %v6055_v5 = vpop.f32.mrb[186].mxu1 }
0x25b6   : > { %v6059_v18 = vadd.f32 %v6058_v14, %v10375_v42  ;;  %v8694_v0 = vpop.f32.mrb[187].mxu1 }
0x25b8   : > { %6060 = vmax.xlane.f32.xlu0 %v6059_v18 }
0x25ce   : > { %6074 = vrot.lane.b32.xlu0 %v10356_v15, %s9242_s27 }
0x25d2   : > { %6078 = vrot.lane.b32.xlu0 %v10364_v40, %s9242_s27 }
0x25d6   : > { %6080 = vrot.lane.b32.xlu0 %v10362_v8, %s9242_s27 }
0x25da   : > { %6082 = vrot.lane.b32.xlu0 %v10372_v57, %s9242_s27 }
0x25de   : > { %6137 = vrot.lane.b32.xlu0 %v10348_v29, %s9244_s19 }
0x25e2   : > { %6141 = vrot.lane.b32.xlu0 %v10356_v15, %s9244_s19 }
0x25e6   : > { %6145 = vrot.lane.b32.xlu0 %v10364_v40, %s9244_s19 }
0x25ea   : > { %6149 = vrot.lane.b32.xlu0 %v10372_v57, %s9244_s19 }
0x25ee   : > { %6135 = vrot.lane.b32.xlu0 %v11164_v2, %s9244_s19 }
0x25f2   : > { %6232 = vrot.lane.b32.xlu0 %v10348_v29, %s9241_s25 }
0x25f6   : > { %6234 = vrot.lane.b32.xlu0 %v10346_v24, %s9241_s25 }
0x25fa   : > { %6238 = vrot.lane.b32.xlu0 %v10354_v11, %s9241_s25 }
0x2645   : > { %v6061_v58 = vpop.xlane.xlu0 %6060 }
0x2646   : > { %v6062_v56 = vsub.f32 %v6059_v18, %v6061_v58 }
0x2648   : > { %v6063_v43 = vmul.f32 1.442695, %v6062_v56 }
0x2649   : > { %v6075_v9 = vpop.permute.xlu0 %6074 }
0x264a   : > { %9112 = vpow2.f32 %v6063_v43  ;;  %8700 = vmatpush3.bf16.msra.mxu0 %v6075_v9 }
0x264b   : > { %8701 = vmatprep.subr.bf16.mxu0 %v9237_v13 }
0x264d   : > { %v6079_v39 = vpop.permute.xlu0 %6078 }
0x264e   : > { %8702 = vmatpush3.bf16.msra.mxu0 %v6077_v19 }
0x264f   : > { %8703 = vmatprep.subr.bf16.mxu0 %v9237_v13 }
0x2651   : > { %v6081_v7 = vpop.permute.xlu0 %6080 }
0x2652   : > { %8704 = vmatpush3.bf16.msra.mxu0 %v6079_v39 }
0x2653   : > { %8705 = vmatprep.subr.bf16.mxu0 %v9237_v13 }
0x2654   : > { %v9113_v50 = vpop.eup %9112 }
0x2655   : > { %6065 = vadd.xlane.f32.xlu1 %v9113_v50  ;;  %v6083_v22 = vpop.permute.xlu0 %6082 }
0x2656   : > { %8706 = vmatpush3.bf16.msra.mxu0 %v6081_v7 }
0x2657   : > { %8707 = vmatprep.subr.bf16.mxu0 %v9237_v13 }
0x2659   : > { %v6138_v28 = vpop.permute.xlu0 %6137 }
0x265a   : > { %8708 = vmatpush3.bf16.msra.mxu0 %v6083_v22  ;;  %v6157_v26 = vsel %vm1150_vm3, %v6138_v28, 0 }
0x265b   : > { %8709 = vmatprep.subr.bf16.mxu0 %v9237_v13 }
0x265d   : > { %v6142_v32 = vpop.permute.xlu0 %6141 }
0x265e   : > { %8710 = vmatpush3.bf16.msra.mxu0 %v6085_v1  ;;  %v6163_v6 = vsel %vm1150_vm3, %v6142_v32, 0 }
0x265f   : > { %8715 = vmatprep.subr.bf16.mxu0 %v9237_v13 }
0x2661   : > { %v6146_v36 = vpop.permute.xlu0 %6145 }
0x2662   : > { %v6169_v5 = vsel %vm1150_vm3, %v6146_v36, 0 }
0x2665   : > { %v6150_v27 = vpop.permute.xlu0 %6149 }
0x2666   : > { %6139 = vrot.lane.b32.xlu1 %v10346_v24, %s9244_s19  ;;  %v6175_v58 = vsel %vm1150_vm3, %v6150_v27, 0 }
0x2669   : > { %v6136_v61 = vpop.permute.xlu0 %6135 }
0x266a   : > { %6143 = vrot.lane.b32.xlu1 %v10354_v11, %s9244_s19 }
0x266d   : > { %v6233_v17 = vpop.permute.xlu0 %6232 }
0x266e   : > { %6147 = vrot.lane.b32.xlu1 %v10362_v8, %s9244_s19  ;;  %8736 = vmatpush3.bf16.msra.mxu1 %v6233_v17 }
0x266f   : > { %8737 = vmatprep.subr.bf16.mxu1 %v9237_v13 }
0x2671   : > { %v6235_v37 = vpop.permute.xlu0 %6234 }
0x2672   : > { %6151 = vrot.lane.b32.xlu1 %v10370_v41, %s9244_s19  ;;  %8738 = vmatpush3.bf16.msra.mxu1 %v6235_v37 }
0x2673   : > { %8739 = vmatprep.subr.bf16.mxu1 %v9237_v13 }
0x26e2   : > { %v6066_v31 = vpop.xlane.xlu1 %6065 }
0x26e3   : > { %9114 = vrcp.f32 %v6066_v31 }
0x26e6   : > { %v6140_v12 = vpop.permute.xlu1 %6139 }
0x26e7   : > { %v6160_v44 = vsel %vm1150_vm3, %v6140_v12, 0 }
0x26ea   : > { %v6144_v14 = vpop.permute.xlu1 %6143 }
0x26eb   : > { %v6166_v21 = vsel %vm1150_vm3, %v6144_v14, 0 }
0x26ed   : > { %v9115_v33 = vpop.eup %9114 }
0x26ee   : > { %v11287_v47 = vmul.f32 %v9115_v33, %v9113_v50  ;;  %v6148_v18 = vpop.permute.xlu1 %6147  ;;  %v6239_v33 = vpop.permute.xlu0 %6238 }
0x26ef   : > { %v6172_v0 = vsel %vm1150_vm3, %v6148_v18, 0 }
0x26f0   : > { %v6069_v35 = vpack.c.bf16 %v11287_v47, %v11287_v47 }
0x26f2   : > { %8712 = vmatmul.mubr.bf16.vlgmr.msra.gmra.mrb[124].mxu0 %v6069_v35  ;;  %v6152_v56 = vpop.permute.xlu1 %6151 }
0x26f3   : > { %8716 = vmatpush3.bf16.xpose.msra.mxu0 %v6157_v26  ;;  %8731 = vmatprep.mubr.msk.bf16.mxu0 %vm9238_vm2, %v9237_v13  ;;  %v6178_v43 = vsel %vm1150_vm3, %v6152_v56, 0 }
0x26f4   : > { %8717 = vmatprep.subr.bf16.mxu0 %v9237_v13 }
0x26fb   : > { %8718 = vmatpush3.bf16.xpose.msra.mxu0 %v6160_v44 }
0x26fc   : > { %8719 = vmatprep.subr.bf16.mxu0 %v9237_v13 }
0x2703   : > { %8720 = vmatpush3.bf16.xpose.msra.mxu0 %v6163_v6 }
0x2704   : > { %8721 = vmatprep.subr.bf16.mxu0 %v9237_v13 }
0x270b   : > { %8722 = vmatpush3.bf16.xpose.msra.mxu0 %v6166_v21 }
0x270c   : > { %8723 = vmatprep.subr.bf16.mxu0 %v9237_v13 }
0x2713   : > { %8724 = vmatpush3.bf16.xpose.msra.mxu0 %v6169_v5 }
0x2714   : > { %8725 = vmatprep.subr.bf16.mxu0 %v9237_v13 }
0x271b   : > { %8726 = vmatpush3.bf16.xpose.msra.mxu0 %v6172_v0 }
0x271c   : > { %8727 = vmatprep.subr.bf16.mxu0 %v9237_v13 }
0x2723   : > { %8728 = vmatpush3.bf16.xpose.msra.mxu0 %v6175_v58  ;;  %v6134_v58 = vadd.f32 %v11287_v47, %v11219_v51 }
0x2724   : > { %8729 = vmatprep.subr.bf16.mxu0 %v9237_v13 }
0x272b   : > { %8730 = vmatpush3.bf16.xpose.msra.mxu0 %v6178_v43 }
0x272c   : > { %8775 = vmatprep.subr.bf16.mxu0 %v9237_v13 }
0x2732   : > { %8732 = vmatmul.mubr.msk.bf16.vlgmr.msra.gmra.mrb[128].mxu0 %vm1150_vm3, %v6136_v61 }
0x2733   : > { %8791 = vmatprep.mubr.msk.bf16.mxu0 %vm9238_vm2, %v9237_v13 }
0x27c5   : > { %v11312_v9 = vpop.f32.mrb[124].mxu0 }
0x27c6   : > { %v8910_v19 = vpack.i.bf16 %v11312_v9, %v10762_v45  ;;  %v8713_v39 = vpop.f32.mrb[125].mxu0 }
0x27c7   : > { %v6131_v7 = vpop.f32.mrb[126].mxu0 }
0x27c8   : > { %v8714_v50 = vpop.f32.mrb[127].mxu0 }
0x2805   : > { %v6214_v22 = vpop.f32.mrb[128].mxu0 }
0x2806   : > { %v6220_v28 = vmul.f32 0.35355338, %v6214_v22  ;;  %v8733_v1 = vpop.f32.mrb[129].mxu0 }
0x2807   : > { %v6217_v32 = vpop.f32.mrb[130].mxu0 }
0x2808   : > { %v6221_v36 = vadd.f32 %v6220_v28, %v10375_v42  ;;  %v8734_v27 = vpop.f32.mrb[131].mxu0 }
0x280a   : > { %6222 = vmax.xlane.f32.xlu1 %v6221_v36 }
0x281b   : > { %6236 = vrot.lane.b32.xlu1 %v10356_v15, %s9241_s25 }
0x281f   : > { %6240 = vrot.lane.b32.xlu1 %v10364_v40, %s9241_s25 }
0x2823   : > { %6242 = vrot.lane.b32.xlu1 %v10362_v8, %s9241_s25 }
0x2827   : > { %6244 = vrot.lane.b32.xlu1 %v10372_v57, %s9241_s25 }
0x282b   : > { %6299 = vrot.lane.b32.xlu1 %v10348_v29, %s9245_s4 }
0x282f   : > { %6303 = vrot.lane.b32.xlu1 %v10356_v15, %s9245_s4 }
0x2833   : > { %6307 = vrot.lane.b32.xlu1 %v10364_v40, %s9245_s4 }
0x2837   : > { %6311 = vrot.lane.b32.xlu1 %v10372_v57, %s9245_s4 }
0x283b   : > { %6297 = vrot.lane.b32.xlu1 %v11164_v2, %s9245_s4 }
0x283f   : > { %6394 = vrot.lane.b32.xlu1 %v10348_v29, %s9243_s8 }
0x2843   : > { %6398 = vrot.lane.b32.xlu1 %v10356_v15, %s9243_s8 }
0x2847   : > { %6404 = vrot.lane.b32.xlu1 %v10362_v8, %s9243_s8 }
0x2897   : > { %v6223_v61 = vpop.xlane.xlu1 %6222 }
0x2898   : > { %v6224_v17 = vsub.f32 %v6221_v36, %v6223_v61 }
0x289a   : > { %v6225_v37 = vmul.f32 1.442695, %v6224_v17 }
0x289b   : > { %v6237_v31 = vpop.permute.xlu1 %6236 }
0x289c   : > { %9116 = vpow2.f32 %v6225_v37  ;;  %8740 = vmatpush3.bf16.msra.mxu1 %v6237_v31 }
0x289d   : > { %8741 = vmatprep.subr.bf16.mxu1 %v9237_v13 }
0x289f   : > { %v6241_v35 = vpop.permute.xlu1 %6240 }
0x28a0   : > { %8742 = vmatpush3.bf16.msra.mxu1 %v6239_v33 }
0x28a1   : > { %8743 = vmatprep.subr.bf16.mxu1 %v9237_v13 }
0x28a3   : > { %v6243_v29 = vpop.permute.xlu1 %6242 }
0x28a4   : > { %8744 = vmatpush3.bf16.msra.mxu1 %v6241_v35 }
0x28a5   : > { %8745 = vmatprep.subr.bf16.mxu1 %v9237_v13 }
0x28a6   : > { %v9117_v15 = vpop.eup %9116 }
0x28a7   : > { %6227 = vadd.xlane.f32.xlu0 %v9117_v15  ;;  %v6245_v2 = vpop.permute.xlu1 %6244 }
0x28a8   : > { %8746 = vmatpush3.bf16.msra.mxu1 %v6243_v29 }
0x28a9   : > { %8747 = vmatprep.subr.bf16.mxu1 %v9237_v13 }
0x28ab   : > { %v6300_v26 = vpop.permute.xlu1 %6299 }
0x28ac   : > { %8748 = vmatpush3.bf16.msra.mxu1 %v6245_v2  ;;  %v6319_v7 = vsel %vm1150_vm3, %v6300_v26, 0 }
0x28ad   : > { %8749 = vmatprep.subr.bf16.mxu1 %v9237_v13 }
0x28af   : > { %v6304_v12 = vpop.permute.xlu1 %6303 }
0x28b0   : > { %v6325_v51 = vsel %vm1150_vm3, %v6304_v12, 0 }
0x28b3   : > { %v6308_v44 = vpop.permute.xlu1 %6307 }
0x28b4   : > { %v6331_v28 = vsel %vm1150_vm3, %v6308_v44, 0 }
0x28b7   : > { %v6312_v6 = vpop.permute.xlu1 %6311 }
0x28b8   : > { %v6337_v36 = vsel %vm1150_vm3, %v6312_v6, 0 }
0x28bb   : > { %v6298_v14 = vpop.permute.xlu1 %6297 }
0x28bd   : > { %6246 = vrot.lane.b32.xlu0 %v10370_v41, %s9241_s25  ;;  %s11655_s25 = scalar_lea.vmem %s11593_s11, %s9390_s28 }
0x28bf   : > { %v6395_v21 = vpop.permute.xlu1 %6394 }
0x28c0   : > { %8776 = vmatpush3.bf16.msra.mxu0 %v6395_v21 }
0x28c1   : > { %6301 = vrot.lane.b32.xlu0 %v10346_v24, %s9245_s4  ;;  %8777 = vmatprep.subr.bf16.mxu0 %v9237_v13 }
0x28c5   : > { %6305 = vrot.lane.b32.xlu0 %v10354_v11, %s9245_s4 }
0x28c9   : > { %6309 = vrot.lane.b32.xlu0 %v10362_v8, %s9245_s4 }
0x28cd   : > { %6313 = vrot.lane.b32.xlu0 %v10370_v41, %s9245_s4 }
0x2934   : > { %v6228_v5 = vpop.xlane.xlu0 %6227 }
0x2935   : > { %9118 = vrcp.f32 %v6228_v5  ;;  %v8981_v5 = vld [vmem:[%s9432_s26 + $0x8] sm:$0xff]  }
0x2938   : > { %v6247_v18 = vpop.permute.xlu0 %6246 }
0x2939   : > { %8750 = vmatpush3.bf16.msra.mxu1 %v6247_v18 }
0x293a   : > { %8755 = vmatprep.subr.bf16.mxu1 %v9237_v13 }
0x293c   : > { %v6302_v8 = vpop.permute.xlu0 %6301 }
0x293d   : > { %v6322_v50 = vsel %vm1150_vm3, %v6302_v8, 0 }
0x293f   : > { %v9119_v0 = vpop.eup %9118 }
0x2940   : > { %v6230_v56 = vmul.f32 %v9119_v0, %v9117_v15  ;;  %v6306_v47 = vpop.permute.xlu0 %6305 }
0x2941   : > { %v6328_v22 = vsel %vm1150_vm3, %v6306_v47, 0 }
0x2942   : > { %v6231_v43 = vpack.c.bf16 %v6230_v56, %v6230_v56  ;;  %v11360_v39 = vadd.f32 %v6230_v56, %v6134_v58 }
0x2944   : > { %8752 = vmatmul.mubr.bf16.vlgmr.msra.gmra.mrb[188].mxu1 %v6231_v43  ;;  %v6310_v1 = vpop.permute.xlu0 %6309 }
0x2945   : > { %8756 = vmatpush3.bf16.xpose.msra.mxu1 %v6319_v7  ;;  %8771 = vmatprep.mubr.msk.bf16.mxu1 %vm9238_vm2, %v9237_v13  ;;  %v6334_v32 = vsel %vm1150_vm3, %v6310_v1, 0 }
0x2946   : > { %8757 = vmatprep.subr.bf16.mxu1 %v9237_v13 }
0x2948   : > { %v6314_v27 = vpop.permute.xlu0 %6313 }
0x2949   : > { %v6340_v61 = vsel %vm1150_vm3, %v6314_v27, 0 }
0x294d   : > { %8758 = vmatpush3.bf16.xpose.msra.mxu1 %v6322_v50 }
0x294e   : > { %8759 = vmatprep.subr.bf16.mxu1 %v9237_v13 }
0x2955   : > { %8760 = vmatpush3.bf16.xpose.msra.mxu1 %v6325_v51 }
0x2956   : > { %8761 = vmatprep.subr.bf16.mxu1 %v9237_v13 }
0x295d   : > { %8762 = vmatpush3.bf16.xpose.msra.mxu1 %v6328_v22 }
0x295e   : > { %8763 = vmatprep.subr.bf16.mxu1 %v9237_v13 }
0x2965   : > { %8764 = vmatpush3.bf16.xpose.msra.mxu1 %v6331_v28 }
0x2966   : > { %8765 = vmatprep.subr.bf16.mxu1 %v9237_v13 }
0x296d   : > { %8766 = vmatpush3.bf16.xpose.msra.mxu1 %v6334_v32 }
0x296e   : > { %8767 = vmatprep.subr.bf16.mxu1 %v9237_v13 }
0x2975   : > { %8768 = vmatpush3.bf16.xpose.msra.mxu1 %v6337_v36 }
0x2976   : > { %8769 = vmatprep.subr.bf16.mxu1 %v9237_v13 }
0x297d   : > { %8770 = vmatpush3.bf16.xpose.msra.mxu1 %v6340_v61 }
0x2984   : > { %8772 = vmatmul.mubr.msk.bf16.vlgmr.msra.gmra.mrb[192].mxu1 %vm1150_vm3, %v6298_v14 }
0x2a17   : > { %v6290_v17 = vpop.f32.mrb[188].mxu1 }
0x2a18   : > { %v8915_v37 = vpack.i.bf16 %v6290_v17, %v10832_v52  ;;  %v8753_v31 = vpop.f32.mrb[189].mxu1 }
0x2a19   : > { %v6293_v33 = vpop.f32.mrb[190].mxu1 }
0x2a1a   : > { %v8754_v35 = vpop.f32.mrb[191].mxu1 }
0x2a57   : > { %v6376_v29 = vpop.f32.mrb[192].mxu1 }
0x2a58   : > { %v6382_v15 = vmul.f32 0.35355338, %v6376_v29  ;;  %v8773_v2 = vpop.f32.mrb[193].mxu1 }
0x2a59   : > { %v6379_v26 = vpop.f32.mrb[194].mxu1 }
0x2a5a   : > { %v6383_v12 = vadd.f32 %v6382_v15, %v10375_v42  ;;  %v8774_v44 = vpop.f32.mrb[195].mxu1 }
0x2a5c   : > { %6384 = vmax.xlane.f32.xlu0 %v6383_v12 }
0x2a72   : > { %6396 = vrot.lane.b32.xlu0 %v10346_v24, %s9243_s8 }
0x2a76   : > { %6400 = vrot.lane.b32.xlu0 %v10354_v11, %s9243_s8 }
0x2a7a   : > { %6402 = vrot.lane.b32.xlu0 %v10364_v40, %s9243_s8 }
0x2a7e   : > { %6406 = vrot.lane.b32.xlu0 %v10372_v57, %s9243_s8  ;;  %v6399_v57 = vpop.permute.xlu1 %6398 }
0x2a82   : > { %8911 = vrot.lane.b32.xlu0 %v8910_v19, %s9250_s14  ;;  %v6405_v30 = vpop.permute.xlu1 %6404  ;;  %v6479_v19 = vld [vmem:[#allocation5 + $0x18] sm:$0xff] }
0x2a86   : > { %8921 = vrot.lane.b32.xlu0 %v8920_v20, %s9250_s14 }
0x2a8a   : > { %8926 = vrot.lane.b32.xlu0 %v8925_v60, %s9251_s24 }
0x2ae9   : > { %v6385_v24 = vpop.xlane.xlu0 %6384 }
0x2aea   : > { %v6386_v11 = vsub.f32 %v6383_v12, %v6385_v24 }
0x2aec   : > { %v6387_v40 = vmul.f32 1.442695, %v6386_v11 }
0x2aed   : > { %v6397_v42 = vpop.permute.xlu0 %6396 }
0x2aee   : > { %9120 = vpow2.f32 %v6387_v40  ;;  %8778 = vmatpush3.bf16.msra.mxu0 %v6397_v42 }
0x2aef   : > { %8779 = vmatprep.subr.bf16.mxu0 %v9237_v13 }
0x2af1   : > { %v6401_v45 = vpop.permute.xlu0 %6400 }
0x2af2   : > { %8780 = vmatpush3.bf16.msra.mxu0 %v6399_v57 }
0x2af3   : > { %8781 = vmatprep.subr.bf16.mxu0 %v9237_v13 }
0x2af5   : > { %v6403_v52 = vpop.permute.xlu0 %6402 }
0x2af6   : > { %8782 = vmatpush3.bf16.msra.mxu0 %v6401_v45  ;;  %v7428_v45 = vld [vmem:[%s11655_s25] ss:$0 sm:$0xff] }
0x2af7   : > { %8783 = vmatprep.subr.bf16.mxu0 %v9237_v13 }
0x2af8   : > { %v9121_v54 = vpop.eup %9120 }
0x2af9   : > { %6389 = vadd.xlane.f32.xlu1 %v9121_v54  ;;  %v6407_v23 = vpop.permute.xlu0 %6406 }
0x2afa   : > { %8784 = vmatpush3.bf16.msra.mxu0 %v6403_v52 }
0x2afb   : > { %8785 = vmatprep.subr.bf16.mxu0 %v9237_v13 }
0x2afd   : > { %v8912_v43 = vpop.permute.xlu0 %8911 }
0x2afe   : > { %8786 = vmatpush3.bf16.msra.mxu0 %v6405_v30  ;;  %v8914_v8 = vunpack.i.h.bf16 %v8912_v43  ;;  %v8913_v50 = vunpack.i.l.bf16 %v8912_v43 }
0x2aff   : > { %8787 = vmatprep.subr.bf16.mxu0 %v9237_v13 }
0x2b00   : > { %v6471_v22 = vsel %vm1150_vm3, %v11244_v10, %v8914_v8  ;;  %v5134_v28 = vsel %vm1150_vm3, %v10694_v49, %v8913_v50 }
0x2b02   : > { %8788 = vmatpush3.bf16.msra.mxu0 %v6407_v23 }
0x2b03   : > { %8789 = vmatprep.subr.bf16.mxu0 %v9237_v13  ;;  %v8980_v13 = vld [vmem:[%s9432_s26] sm:$0xff]  }
0x2b0a   : > { %6408 = vrot.lane.b32.xlu1 %v10370_v41, %s9243_s8  ;;  %s11656_s8 = sld [smem:[#allocation24_spill]] }
0x2b0e   : > { %8916 = vrot.lane.b32.xlu1 %v8915_v37, %s9251_s24 }
0x2b10   : > { %s11657_s19 = scalar_lea.vmem %s11656_s8, %s9458_s18  ;;  %s11662_s18 = sld [smem:[#allocation9_spill]] }
0x2b16   : > { %p7445_p6 = scmp.ne.s32.totalorder %s11662_s18, 1 }
0x2b17   : > { %s11663_s10 = sld [smem:[#allocation26_spill]] (!%p7445_p6) }
0x2b86   : > { %v6390_v20 = vpop.xlane.xlu1 %6389 }
0x2b87   : > { %9122 = vrcp.f32 %v6390_v20 }
0x2b8a   : > { %v6409_v59 = vpop.permute.xlu1 %6408 }
0x2b8b   : > { %8790 = vmatpush3.bf16.msra.mxu0 %v6409_v59 }
0x2b8c   : > { %8795 = vmatprep.subr.bf16.mxu0 %v8980_v13 }
0x2b8e   : > { %v8917_v7 = vpop.permute.xlu1 %8916 }
0x2b8f   : > { %v8919_v51 = vunpack.i.h.bf16 %v8917_v7 }
0x2b91   : > { %v9123_v60 = vpop.eup %9122  ;;  %v6472_v17 = vsel %vm1605_vm5, %v6471_v22, %v8919_v51 }
0x2b92   : > { %v6392_v9 = vmul.f32 %v9123_v60, %v9121_v54 }
0x2b94   : > { %v6393_v6 = vpack.c.bf16 %v6392_v9, %v6392_v9  ;;  %v6458_v14 = vadd.f32 %v6392_v9, %v11360_v39  ;;  %v8922_v39 = vpop.permute.xlu0 %8921 }
0x2b95   : > { %v8924_v32 = vunpack.i.h.bf16 %v8922_v39  ;;  %v8923_v36 = vunpack.i.l.bf16 %v8922_v39 }
0x2b96   : > { %8792 = vmatmul.mubr.bf16.vlgmr.msra.gmra.mrb[132].mxu0 %v6393_v6  ;;  %v6480_v21 = vadd.f32 %v6479_v19, %v6458_v14 }
0x2b97   : > { %8796 = vmatpush3.bf16.msra.mxu0 %v8980_v13  ;;  %v5804_v49 = vsel %vm1150_vm3, %v10964_v4, %v8924_v32  ;;  %v4467_v29 = vsel %vm1150_vm3, %v10490_v63, %v8923_v36 }
0x2b98   : > { %6481 = vst [vmem:[#allocation5 + $0x18] sm:$0xff] %v6480_v21  ;;  %8797 = vmatprep.subr.bf16.mxu0 %v8981_v5  ;;  %v8927_v47 = vpop.permute.xlu0 %8926 }
0x2b99   : > { %v8929_v55 = vunpack.i.h.bf16 %v8927_v47 }
0x2b9b   : > { %8798 = vmatpush3.bf16.msra.mxu0 %v8981_v5  ;;  %v5805_v12 = vsel %vm1605_vm5, %v5804_v49, %v8929_v55  ;;  %v8984_v55 = vld [vmem:[%s9451_s20] sm:$0xff]  }
0x2b9c   : > { %8811 = vmatprep.subr.bf16.mxu0 %v8984_v55 }
0x2c69   : > { %v6452_v18 = vpop.f32.mrb[132].mxu0 }
0x2c6a   : > { %v8930_v41 = vpack.i.bf16 %v6452_v18, %v10896_v38  ;;  %v8793_v0 = vpop.f32.mrb[133].mxu0  ;;  %v8918_v38 = vunpack.i.l.bf16 %v8917_v7 }
0x2c6b   : > { %v6455_v58 = vpop.f32.mrb[134].mxu0 }
0x2c6c   : > { %8931 = vrot.lane.b32.xlu1 %v8930_v41, %s11654_s1  ;;  %v8794_v56 = vpop.f32.mrb[135].mxu0  ;;  %v5135_v61 = vsel %vm1605_vm5, %v5134_v28, %v8918_v38 }
0x2c70   : > { %8936 = vrot.lane.b32.xlu1 %v8935_v25, %s11654_s1  ;;  %v8928_v25 = vunpack.i.l.bf16 %v8927_v47 }
0x2c72   : > { %v4468_v26 = vsel %vm1605_vm5, %v4467_v29, %v8928_v25  ;;  %v8985_v25 = vld [vmem:[%s9451_s20 + $0x8] sm:$0xff]  }
0x2cde   : > { %v8932_v1 = vpop.permute.xlu1 %8931 }
0x2cdf   : > { %v8934_v27 = vunpack.i.h.bf16 %v8932_v1  ;;  %v8933_v48 = vunpack.i.l.bf16 %v8932_v1 }
0x2ce1   : > { %v5136_v37 = vsel %vm1607_vm6, %v5135_v61, %v8933_v48  ;;  %v6473_v31 = vsel %vm1607_vm6, %v6472_v17, %v8934_v27  ;;  %v8982_v27 = vld [vmem:[%s9441_s22] sm:$0xff]   ;;  %v8983_v48 = vld [vmem:[%s9441_s22 + $0x8] sm:$0xff]  }
0x2ce2   : > { %v5137_v33 = vpack.c.bf16 %v5136_v37, %v5136_v37  ;;  %v6474_v10 = vpack.c.bf16 %v6473_v31, %v6473_v31  ;;  %v8937_v35 = vpop.permute.xlu1 %8936  ;;  %8803 = vmatprep.subr.bf16.mxu1 %v8982_v27 }
0x2ce3   : > { %v8939_v15 = vunpack.i.h.bf16 %v8937_v35  ;;  %v8938_v2 = vunpack.i.l.bf16 %v8937_v35  ;;  %8804 = vmatpush3.bf16.msra.mxu1 %v8982_v27 }
0x2ce4   : > { %v5139_v44 = vrot.slane %v5137_v33, 4  ;;  %v6476_v24 = vrot.slane %v6474_v10, 4  ;;  %8805 = vmatprep.subr.bf16.mxu1 %v8983_v48 }
0x2ce5   : > { %v4469_v11 = vsel %vm1607_vm6, %v4468_v26, %v8938_v2  ;;  %v5806_v40 = vsel %vm1607_vm6, %v5805_v12, %v8939_v15  ;;  %v6566_v26 = vld [vmem:[%s11657_s19] sm:$0x3] }
0x2ce6   : > { %5141 = vst.msk [vmem:[#allocation2] sm:$0xf0] %vm2075_vm7, %v5139_v44  ;;  %6478 = vst.msk [vmem:[#allocation2 + $0x8] sm:$0xf0] %vm2075_vm7, %v6476_v24  ;;  %v4470_v4 = vpack.c.bf16 %v4469_v11, %v4469_v11  ;;  %v5807_v42 = vpack.c.bf16 %v5806_v40, %v5806_v40  ;;  %v6622_v44 = vrot.slane %v6566_v26, %v10087_v34 }
0x2ce7   : > { %8806 = vmatpush3.bf16.msra.mxu1 %v8983_v48 }
0x2ce8   : > { %4471 = vst.msk [vmem:[#allocation2] sm:$0xf] %vm1610_vm8, %v4470_v4  ;;  %5808 = vst.msk [vmem:[#allocation2 + $0x8] sm:$0xf] %vm1610_vm8, %v5807_v42 }
0x2cef   : > { %v6482_v63 = vld [vmem:[#allocation2] sm:$0xff]  ;;  %v6483_v57 = vld [vmem:[#allocation2 + $0x8] sm:$0xff] }
0x2cf0   : > { %8799 = vmatprep.mubr.msk.bf16.mxu0 %vm1090_vm1, %v6482_v63  ;;  %v6630_v63 = vrot.slane %v6566_v26, %v10095_v3 }
0x2cf1   : > { %8800 = vmatmul.mubr.msk.bf16.vlgmr.msra.gmra.mrb[136].mxu0 %vm1090_vm1, %v6483_v57 }
0x2cf2   : > { %8812 = vmatpush3.bf16.msra.mxu0 %v8984_v55 }
0x2cf3   : > { %8813 = vmatprep.subr.bf16.mxu0 %v8985_v25 }
0x2cf6   : > { %8814 = vmatpush3.bf16.msra.mxu0 %v8985_v25 }
0x2dc4   : > { %v8801_v54 = vpop.f32.mrb[136].mxu0 }
0x2dc5   : > { %v6547_v52 = vpop.f32.mrb[137].mxu0  ;;  %v6556_v30 = vadd.f32 %v8801_v54, %v7428_v45 }
0x2dc6   : > { %v6548_v23 = vadd.f32 %v7428_v45, %v6547_v52  ;;  %v8802_v20 = vpop.f32.mrb[138].mxu0 }
0x2dc7   : > { %v6550_v59 = vpop.f32.mrb[139].mxu0  ;;  %v6564_v19 = vadd.f32 %v6556_v30, %v10109_v16  ;;  %v6559_v6 = vadd.f32 %v8802_v20, %v7428_v45 }
0x2dc8   : > { %v6562_v60 = vadd.f32 %v6548_v23, %v10101_v62  ;;  %v6551_v9 = vadd.f32 %v7428_v45, %v6550_v59 }
0x2dc9   : > { %v6565_v5 = vadd.f32 %v6559_v6, %v10111_v53  ;;  %v6573_v18 = vsel %vm1090_vm1, %v6564_v19, 0.0 }
0x2dca   : > { %v6563_v14 = vadd.f32 %v6551_v9, %v10103_v46  ;;  %v6567_v21 = vsel %vm1090_vm1, %v6562_v60, 0.0 }
0x2dcb   : > { %6568 = vadd.xlane.f32.xlu0 %v6567_v21  ;;  %v6576_v41 = vsel %vm1090_vm1, %v6565_v5, 0.0  ;;  %v8986_v21 = vld [vmem:[%s9451_s20 + $0x10] sm:$0xff]  }
0x2dcc   : > { %v6570_v13 = vsel %vm1090_vm1, %v6563_v14, 0.0  ;;  %8815 = vmatprep.subr.bf16.mxu0 %v8986_v21 }
0x2dcd   : > { %6571 = vadd.xlane.f32.xlu1 %v6570_v13  ;;  %8816 = vmatpush3.bf16.msra.mxu0 %v8986_v21  ;;  %v8987_v13 = vld [vmem:[%s9451_s20 + $0x18] sm:$0xff]  }
0x2dce   : > { %8817 = vmatprep.subr.bf16.mxu0 %v8987_v13 }
0x2dcf   : > { %6574 = vadd.xlane.f32.xlu0 %v6573_v18 }
0x2dd1   : > { %8818 = vmatpush3.bf16.msra.mxu0 %v8987_v13 }
0x2dd3   : > { %6577 = vadd.xlane.f32.xlu0 %v6576_v41 }
0x2e58   : > { %v6569_v62 = vpop.xlane.xlu0 %6568 }
0x2e59   : > { %v6579_v0 = vmul.f32 0.03125, %v6569_v62 }
0x2e5a   : > { %v6572_v16 = vpop.xlane.xlu1 %6571 }
0x2e5b   : > { %v6583_v58 = vsub.f32 %v6562_v60, %v6579_v0  ;;  %v6580_v56 = vmul.f32 0.03125, %v6572_v16 }
0x2e5c   : > { %v6575_v46 = vpop.xlane.xlu0 %6574 }
0x2e5d   : > { %v6584_v43 = vsub.f32 %v6563_v14, %v6580_v56  ;;  %v6581_v39 = vmul.f32 0.03125, %v6575_v46  ;;  %v6587_v7 = vmul.f32 %v6583_v58, %v6583_v58 }
0x2e5f   : > { %v6585_v8 = vsub.f32 %v6564_v19, %v6581_v39  ;;  %v6591_v50 = vsel %vm1090_vm1, %v6587_v7, 0.0  ;;  %v6588_v53 = vmul.f32 %v6584_v43, %v6584_v43 }
0x2e60   : > { %6592 = vadd.xlane.f32.xlu0 %v6591_v50  ;;  %v6578_v51 = vpop.xlane.xlu0 %6577 }
0x2e61   : > { %v6582_v38 = vmul.f32 0.03125, %v6578_v51  ;;  %v6594_v47 = vsel %vm1090_vm1, %v6588_v53, 0.0  ;;  %v6589_v22 = vmul.f32 %v6585_v8, %v6585_v8  ;;  %v7438_v51 = vld [vmem:[%s11659_s6] ss:$0 sm:$0xff] }
0x2e62   : > { %6595 = vadd.xlane.f32.xlu1 %v6594_v47 }
0x2e63   : > { %v6586_v28 = vsub.f32 %v6565_v5, %v6582_v38  ;;  %v6597_v1 = vsel %vm1090_vm1, %v6589_v22, 0.0  ;;  %v7433_v5 = vld [vmem:[%s11658_s0] ss:$0 sm:$0xff] }
0x2e64   : > { %6598 = vadd.xlane.f32.xlu0 %v6597_v1 }
0x2e65   : > { %v6590_v32 = vmul.f32 %v6586_v28, %v6586_v28 }
0x2e67   : > { %v6600_v36 = vsel %vm1090_vm1, %v6590_v32, 0.0 }
0x2e68   : > { %6601 = vadd.xlane.f32.xlu1 %v6600_v36 }
0x2eed   : > { %v6593_v61 = vpop.xlane.xlu0 %6592 }
0x2eee   : > { %v6603_v17 = vmul.f32 0.03125, %v6593_v61 }
0x2eef   : > { %v6596_v37 = vpop.xlane.xlu1 %6595 }
0x2ef0   : > { %v6607_v31 = vadd.f32 1e-05, %v6603_v17  ;;  %v6604_v33 = vmul.f32 0.03125, %v6596_v37 }
0x2ef1   : > { %v6599_v10 = vpop.xlane.xlu0 %6598 }
0x2ef2   : > { %9124 = vrsqrt.f32 %v6607_v31  ;;  %v6608_v35 = vadd.f32 1e-05, %v6604_v33  ;;  %v6605_v49 = vmul.f32 0.03125, %v6599_v10 }
0x2ef4   : > { %9126 = vrsqrt.f32 %v6608_v35  ;;  %v6609_v29 = vadd.f32 1e-05, %v6605_v49 }
0x2ef5   : > { %v6602_v15 = vpop.xlane.xlu1 %6601 }
0x2ef6   : > { %9128 = vrsqrt.f32 %v6609_v29  ;;  %v6606_v2 = vmul.f32 0.03125, %v6602_v15 }
0x2ef8   : > { %v6610_v12 = vadd.f32 1e-05, %v6606_v2 }
0x2efa   : > { %9130 = vrsqrt.f32 %v6610_v12 }
0x2efc   : > { %v9125_v24 = vpop.eup %9124 }
0x2efd   : > { %v6615_v11 = vmul.f32 %v9125_v24, %v6583_v58 }
0x2efe   : > { %v9127_v40 = vpop.eup %9126 }
0x2eff   : > { %v6616_v4 = vmul.f32 %v9127_v40, %v6584_v43  ;;  %v6623_v42 = vmul.f32 %v6622_v44, %v6615_v11 }
0x2f00   : > { %v9129_v57 = vpop.eup %9128 }
0x2f01   : > { %v6617_v45 = vmul.f32 %v9129_v57, %v6585_v8  ;;  %v6624_v54 = vmul.f32 %v6622_v44, %v6616_v4  ;;  %v6631_v52 = vadd.f32 %v6630_v63, %v6623_v42 }
0x2f03   : > { %v6632_v30 = vadd.f32 %v6630_v63, %v6624_v54  ;;  %v6625_v20 = vmul.f32 %v6622_v44, %v6617_v45 }
0x2f04   : > { %v9131_v23 = vpop.eup %9130 }
0x2f05   : > { %v6618_v59 = vmul.f32 %v9131_v23, %v6586_v28  ;;  %v6635_v60 = vpack.c.bf16 %v6632_v30, %v6631_v52  ;;  %v6633_v19 = vadd.f32 %v6630_v63, %v6625_v20 }
0x2f07   : > { %v6626_v9 = vmul.f32 %v6622_v44, %v6618_v59  ;;  %8807 = vmatprep.mubr.msk.bf16.mxu1 %vm1090_vm1, %v6635_v60 }
0x2f09   : > { %v6634_v6 = vadd.f32 %v6630_v63, %v6626_v9 }
0x2f0b   : > { %v6636_v14 = vpack.c.bf16 %v6634_v6, %v6633_v19 }
0x2f0d   : > { %8808 = vmatmul.mubr.msk.bf16.vlgmr.msra.gmra.mrb[196].mxu1 %vm1090_vm1, %v6636_v14 }
0x2fe0   : > { %v8809_v18 = vpop.f32.mrb[196].mxu1 }
0x2fe1   : > { %v6709_v41 = vadd.f32 %v8809_v18, %v7433_v5  ;;  %v6700_v62 = vpop.f32.mrb[197].mxu1 }
0x2fe2   : > { %v6701_v0 = vadd.f32 %v7433_v5, %v6700_v62  ;;  %v8810_v16 = vpop.f32.mrb[198].mxu1 }
0x2fe3   : > { %v6712_v58 = vadd.f32 %v8810_v16, %v7433_v5  ;;  %v6703_v56 = vpop.f32.mrb[199].mxu1  ;;  %v6717_v43 = vmax.f32 %v6709_v41, 0.0  ;;  %v6820_v41 = vld [vmem:[%s11661_s12] sm:$0x3] }
0x2fe4   : > { %v6704_v46 = vadd.f32 %v7433_v5, %v6703_v56  ;;  %v6715_v7 = vmax.f32 %v6701_v0, 0.0  ;;  %v6876_v62 = vrot.slane %v6820_v41, %v10087_v34  ;;  %v6884_v16 = vrot.slane %v6820_v41, %v10095_v3  ;;  %v6909_v41 = vld [vmem:[%s11663_s10] sm:$0x3] (!%p7445_p6) }
0x2fe5   : > { %v6718_v39 = vmax.f32 %v6712_v58, 0.0 }
0x2fe6   : > { %v6716_v8 = vmax.f32 %v6704_v46, 0.0 }
0x2fe7   : > { %v6720_v50 = vpack.c.bf16 %v6718_v39, %v6717_v43 }
0x2fe8   : > { %v6719_v53 = vpack.c.bf16 %v6716_v8, %v6715_v7 }
0x2fea   : > { %8819 = vmatprep.mubr.msk.bf16.mxu0 %vm6760_vm10, %v6719_v53 }
0x2feb   : > { %8820 = vmatmul.mubr.msk.bf16.vlgmr.msra.gmra.mrb[140].mxu0 %vm6760_vm10, %v6720_v50 }
0x30be   : > { %v8821_v38 = vpop.f32.mrb[140].mxu0 }
0x30bf   : > { %v6801_v47 = vpop.f32.mrb[141].mxu0  ;;  %v6810_v22 = vadd.f32 %v8821_v38, %v7438_v51 }
0x30c0   : > { %v6802_v28 = vadd.f32 %v7438_v51, %v6801_v47  ;;  %v8822_v1 = vpop.f32.mrb[142].mxu0 }
0x30c1   : > { %v6804_v32 = vpop.f32.mrb[143].mxu0  ;;  %v6813_v27 = vadd.f32 %v8822_v1, %v7438_v51  ;;  %v6818_v55 = vadd.f32 %v6810_v22, %v6633_v19 }
0x30c2   : > { %v6816_v36 = vadd.f32 %v6802_v28, %v6631_v52  ;;  %v6805_v48 = vadd.f32 %v7438_v51, %v6804_v32 }
0x30c3   : > { %v6819_v17 = vadd.f32 %v6813_v27, %v6634_v6  ;;  %v6827_v31 = vsel %vm1090_vm1, %v6818_v55, 0.0 }
0x30c4   : > { %v6817_v25 = vadd.f32 %v6805_v48, %v6632_v30  ;;  %v6821_v61 = vsel %vm1090_vm1, %v6816_v36, 0.0 }
0x30c5   : > { %6822 = vadd.xlane.f32.xlu0 %v6821_v61  ;;  %v6830_v33 = vsel %vm1090_vm1, %v6819_v17, 0.0 }
0x30c6   : > { %v6824_v37 = vsel %vm1090_vm1, %v6817_v25, 0.0 }
0x30c7   : > { %6825 = vadd.xlane.f32.xlu1 %v6824_v37 }
0x30c9   : > { %6828 = vadd.xlane.f32.xlu0 %v6827_v31 }
0x30cb   : > { %6831 = vadd.xlane.f32.xlu1 %v6830_v33 }
0x3152   : > { %v6823_v10 = vpop.xlane.xlu0 %6822 }
0x3153   : > { %v6833_v35 = vmul.f32 0.03125, %v6823_v10 }
0x3154   : > { %v6826_v49 = vpop.xlane.xlu1 %6825 }
0x3155   : > { %v6837_v29 = vsub.f32 %v6816_v36, %v6833_v35  ;;  %v6834_v15 = vmul.f32 0.03125, %v6826_v49 }
0x3156   : > { %v6829_v2 = vpop.xlane.xlu0 %6828 }
0x3157   : > { %v6838_v26 = vsub.f32 %v6817_v25, %v6834_v15  ;;  %v6835_v12 = vmul.f32 0.03125, %v6829_v2  ;;  %v6841_v44 = vmul.f32 %v6837_v29, %v6837_v29 }
0x3158   : > { %v6832_v24 = vpop.xlane.xlu1 %6831 }
0x3159   : > { %v6839_v11 = vsub.f32 %v6818_v55, %v6835_v12  ;;  %v6836_v40 = vmul.f32 0.03125, %v6832_v24  ;;  %v6845_v4 = vsel %vm1090_vm1, %v6841_v44, 0.0  ;;  %v6842_v42 = vmul.f32 %v6838_v26, %v6838_v26 }
0x315a   : > { %6846 = vadd.xlane.f32.xlu0 %v6845_v4 }
0x315b   : > { %v6840_v63 = vsub.f32 %v6819_v17, %v6836_v40  ;;  %v6848_v57 = vsel %vm1090_vm1, %v6842_v42, 0.0  ;;  %v6843_v45 = vmul.f32 %v6839_v11, %v6839_v11  ;;  %v6897_v42 = vld [vmem:[#allocation5] sm:$0xff] (!%p7445_p6) }
0x315c   : > { %6849 = vadd.xlane.f32.xlu1 %v6848_v57  ;;  %v6899_v57 = vld [vmem:[#allocation5 + $0x10] sm:$0xff] (!%p7445_p6) }
0x315d   : > { %v6851_v54 = vsel %vm1090_vm1, %v6843_v45, 0.0  ;;  %v6844_v52 = vmul.f32 %v6840_v63, %v6840_v63  ;;  %v6900_v45 = vld [vmem:[#allocation5 + $0x18] sm:$0xff] (!%p7445_p6) }
0x315e   : > { %6852 = vadd.xlane.f32.xlu0 %v6851_v54  ;;  %v6901_v54 = vmul.f32 (!%p7445_p6), 0.125, %v6897_v42 }
0x315f   : > { %v6854_v30 = vsel %vm1090_vm1, %v6844_v52, 0.0 }
0x3160   : > { %6855 = vadd.xlane.f32.xlu1 %v6854_v30  ;;  %v6903_v30 = vmul.f32 (!%p7445_p6), 0.125, %v6899_v57  ;;  %6905 = vst [vmem:[#allocation5] sm:$0xff] (!%p7445_p6), %v6901_v54 }
0x3162   : > { %6907 = vst [vmem:[#allocation5 + $0x10] sm:$0xff] (!%p7445_p6), %v6903_v30 }
0x31e7   : > { %v6847_v23 = vpop.xlane.xlu0 %6846 }
0x31e8   : > { %v6857_v20 = vmul.f32 0.03125, %v6847_v23  ;;  %v6904_v23 = vmul.f32 (!%p7445_p6), 0.125, %v6900_v45 }
0x31e9   : > { %v6850_v59 = vpop.xlane.xlu1 %6849 }
0x31ea   : > { %v6861_v60 = vadd.f32 1e-05, %v6857_v20  ;;  %v6858_v9 = vmul.f32 0.03125, %v6850_v59  ;;  %6908 = vst [vmem:[#allocation5 + $0x18] sm:$0xff] (!%p7445_p6), %v6904_v23 }
0x31eb   : > { %v6853_v19 = vpop.xlane.xlu0 %6852 }
0x31ec   : > { %9132 = vrsqrt.f32 %v6861_v60  ;;  %v6862_v6 = vadd.f32 1e-05, %v6858_v9  ;;  %v6859_v14 = vmul.f32 0.03125, %v6853_v19 }
0x31ed   : > { %v6856_v21 = vpop.xlane.xlu1 %6855 }
0x31ee   : > { %9134 = vrsqrt.f32 %v6862_v6  ;;  %v6863_v13 = vadd.f32 1e-05, %v6859_v14  ;;  %v6860_v5 = vmul.f32 0.03125, %v6856_v21 }
0x31f0   : > { %9136 = vrsqrt.f32 %v6863_v13  ;;  %v6864_v18 = vadd.f32 1e-05, %v6860_v5 }
0x31f2   : > { %9138 = vrsqrt.f32 %v6864_v18 }
0x31f6   : > { %v9133_v0 = vpop.eup %9132 }
0x31f7   : > { %v6869_v58 = vmul.f32 %v9133_v0, %v6837_v29  ;;  %v6965_v0 = vrot.slane (!%p7445_p6), %v6909_v41, %v10087_v34 }
0x31f8   : > { %v9135_v56 = vpop.eup %9134 }
0x31f9   : > { %v6877_v46 = vmul.f32 %v6876_v62, %v6869_v58  ;;  %v6870_v43 = vmul.f32 %v9135_v56, %v6838_v26  ;;  %v6973_v56 = vrot.slane (!%p7445_p6), %v6909_v41, %v10095_v3 }
0x31fa   : > { %v9137_v39 = vpop.eup %9136 }
0x31fb   : > { %v6885_v7 = vadd.f32 %v6884_v16, %v6877_v46  ;;  %v6878_v8 = vmul.f32 %v6876_v62, %v6870_v43  ;;  %v6871_v50 = vmul.f32 %v9137_v39, %v6839_v11 }
0x31fc   : > { %v9139_v53 = vpop.eup %9138 }
0x31fd   : > { %6889 = vst.msk [vmem:[#allocation3] sm:$0xff] %vm1090_vm1, %v6885_v7  ;;  %v6886_v51 = vadd.f32 %v6884_v16, %v6878_v8  ;;  %v6879_v38 = vmul.f32 %v6876_v62, %v6871_v50  ;;  %v6872_v47 = vmul.f32 %v9139_v53, %v6840_v63  ;;  %6896 = sbr.rel (%p7445_p6) target bundleno = 13119 (0x333f), region = 108  ;;  %v6910_v32 = vsel (!%p7445_p6), %vm1090_vm1, %v6885_v7, 0.0  ;;  %v6898_v63 = vld [vmem:[#allocation5 + $0x8] sm:$0xff] (!%p7445_p6) }
0x31fe   : > { %6911 = vadd.xlane.f32.xlu0 (!%p7445_p6), %v6910_v32  ;;  %v6902_v52 = vmul.f32 (!%p7445_p6), 0.125, %v6898_v63 }
0x31ff   : > { %6890 = vst.msk [vmem:[#allocation3 + $0x8] sm:$0xff] %vm1090_vm1, %v6886_v51  ;;  %v6887_v22 = vadd.f32 %v6884_v16, %v6879_v38  ;;  %v6880_v28 = vmul.f32 %v6876_v62, %v6872_v47  ;;  %v6913_v27 = vsel (!%p7445_p6), %vm1090_vm1, %v6886_v51, 0.0 }
0x3200   : > { %6906 = vst [vmem:[#allocation5 + $0x8] sm:$0xff] (!%p7445_p6), %v6902_v52 }
0x3201   : > { %6891 = vst.msk [vmem:[#allocation3 + $0x10] sm:$0xff] %vm1090_vm1, %v6887_v22  ;;  %v6888_v1 = vadd.f32 %v6884_v16, %v6880_v28  ;;  %v6916_v36 = vsel (!%p7445_p6), %vm1090_vm1, %v6887_v22, 0.0 }
0x3202   : > { %6917 = vadd.xlane.f32.xlu1 (!%p7445_p6), %v6916_v36  ;;  %6914 = vadd.xlane.f32.xlu0 (!%p7445_p6), %v6913_v27 }
0x3203   : > { %6892 = vst.msk [vmem:[#allocation3 + $0x18] sm:$0xff] %vm1090_vm1, %v6888_v1  ;;  %v6919_v48 = vsel (!%p7445_p6), %vm1090_vm1, %v6888_v1, 0.0 }
0x3206   : > { %6920 = vadd.xlane.f32.xlu1 %v6919_v48 }
0x328b   : > { %v6912_v55 = vpop.xlane.xlu0 %6911 }
0x328c   : > { %v6922_v61 = vmul.f32 0.03125, %v6912_v55 }
0x328e   : > { %v6926_v37 = vsub.f32 %v6885_v7, %v6922_v61 }
0x328f   : > { %v6918_v25 = vpop.xlane.xlu1 %6917  ;;  %v6915_v33 = vpop.xlane.xlu0 %6914 }
0x3290   : > { %v6924_v17 = vmul.f32 0.03125, %v6918_v25  ;;  %v6923_v35 = vmul.f32 0.03125, %v6915_v33  ;;  %v6930_v29 = vmul.f32 %v6926_v37, %v6926_v37 }
0x3292   : > { %v6928_v31 = vsub.f32 %v6887_v22, %v6924_v17  ;;  %v6927_v2 = vsub.f32 %v6886_v51, %v6923_v35  ;;  %v6934_v12 = vsel %vm1090_vm1, %v6930_v29, 0.0 }
0x3293   : > { %v6921_v10 = vpop.xlane.xlu1 %6920  ;;  %6935 = vadd.xlane.f32.xlu0 %v6934_v12 }
0x3294   : > { %v6925_v49 = vmul.f32 0.03125, %v6921_v10  ;;  %v6932_v15 = vmul.f32 %v6928_v31, %v6928_v31  ;;  %v6931_v24 = vmul.f32 %v6927_v2, %v6927_v2 }
0x3296   : > { %v6929_v26 = vsub.f32 %v6888_v1, %v6925_v49  ;;  %v6940_v44 = vsel %vm1090_vm1, %v6932_v15, 0.0  ;;  %v6937_v40 = vsel %vm1090_vm1, %v6931_v24, 0.0 }
0x3297   : > { %6941 = vadd.xlane.f32.xlu0 %v6940_v44  ;;  %6938 = vadd.xlane.f32.xlu1 %v6937_v40 }
0x3298   : > { %v6933_v11 = vmul.f32 %v6929_v26, %v6929_v26 }
0x329a   : > { %v6943_v4 = vsel %vm1090_vm1, %v6933_v11, 0.0 }
0x329b   : > { %6944 = vadd.xlane.f32.xlu1 %v6943_v4 }
0x3320   : > { %v6936_v20 = vpop.xlane.xlu0 %6935 }
0x3321   : > { %v6946_v59 = vmul.f32 0.03125, %v6936_v20 }
0x3323   : > { %v6950_v60 = vadd.f32 1e-05, %v6946_v59 }
0x3324   : > { %v6939_v9 = vpop.xlane.xlu1 %6938  ;;  %v6942_v19 = vpop.xlane.xlu0 %6941 }
0x3325   : > { %9144 = vrsqrt.f32 %v6950_v60  ;;  %v6947_v6 = vmul.f32 0.03125, %v6939_v9  ;;  %v6948_v14 = vmul.f32 0.03125, %v6942_v19 }
0x3327   : > { %v6951_v21 = vadd.f32 1e-05, %v6947_v6  ;;  %v6952_v13 = vadd.f32 1e-05, %v6948_v14 }
0x3328   : > { %v6945_v5 = vpop.xlane.xlu1 %6944 }
0x3329   : > { %9146 = vrsqrt.f32 %v6951_v21  ;;  %v6949_v18 = vmul.f32 0.03125, %v6945_v5 }
0x332a   : > { %9148 = vrsqrt.f32 %v6952_v13 }
0x332b   : > { %v6953_v62 = vadd.f32 1e-05, %v6949_v18 }
0x332d   : > { %9150 = vrsqrt.f32 %v6953_v62 }
0x332f   : > { %v9145_v16 = vpop.eup %9144 }
0x3330   : > { %v6958_v58 = vmul.f32 %v9145_v16, %v6926_v37 }
0x3332   : > { %v6966_v46 = vmul.f32 %v6965_v0, %v6958_v58 }
0x3333   : > { %v9147_v43 = vpop.eup %9146 }
0x3334   : > { %v9149_v39 = vpop.eup %9148  ;;  %v6974_v7 = vadd.f32 %v6973_v56, %v6966_v46  ;;  %v6959_v8 = vmul.f32 %v9147_v43, %v6927_v2 }
0x3335   : > { %v6960_v50 = vmul.f32 %v9149_v39, %v6928_v31 }
0x3336   : > { %6978 = vst.msk [vmem:[#allocation3] sm:$0xff] %vm1090_vm1, %v6974_v7  ;;  %v6967_v53 = vmul.f32 %v6965_v0, %v6959_v8 }
0x3337   : > { %v9151_v51 = vpop.eup %9150  ;;  %v6968_v38 = vmul.f32 %v6965_v0, %v6960_v50 }
0x3338   : > { %v6975_v47 = vadd.f32 %v6973_v56, %v6967_v53  ;;  %v6961_v22 = vmul.f32 %v9151_v51, %v6929_v26 }
0x3339   : > { %v6976_v28 = vadd.f32 %v6973_v56, %v6968_v38 }
0x333a   : > { %6979 = vst.msk [vmem:[#allocation3 + $0x8] sm:$0xff] %vm1090_vm1, %v6975_v47  ;;  %v6969_v34 = vmul.f32 %v6965_v0, %v6961_v22 }
0x333b   : > { %6980 = vst.msk [vmem:[#allocation3 + $0x10] sm:$0xff] %vm1090_vm1, %v6976_v28 }
0x333c   : > { %v6977_v3 = vadd.f32 %v6973_v56, %v6969_v34 }
0x333e   : > { %6981 = vst.msk [vmem:[#allocation3 + $0x18] sm:$0xff] %vm1090_vm1, %v6977_v3 }
0x333f PF: > { %s11664_s1 = sld [smem:[#allocation11_spill]]  ;;  %s9254_s25 = smov [#allocation3]  }
0x3340   : > { %s6991_s22 = sshll.u32 %s9254_s25, 4  ;;  %s9255_s27 = smov [#allocation5]   ;;  %s6992_s22 = int_to_ptr.vmem [resolvable:$true] %s6991_s22 }
0x3341   : > { %s7007_s8 = sshll.u32 %s9255_s27, 4  ;;  %s9152_s19 = scalar_lea.vmem %s6992_s22, 512  ;;  %s7008_s8 = int_to_ptr.vmem [resolvable:$true] %s7007_s8 }
0x3342   : > { %p9153_p8 = scmp.ne.s32.totalorder %s6992_s22, %s9152_s19  ;;  %p9159_p11 = scmp.lt.s32.totalorder %s6992_s22, %s6992_s22 }
0x3343   : > { %p9160_p12 = scmp.lt.s32.totalorder %s9152_s19, %s9152_s19 }
0x3345   : > { %s11665_s26 = sadd.s32 4294967295, %s11664_s1   ;;  %p9161_p13 = por %p9160_p12, %p9159_p11 }
0x3346   : > { %p11523_p7 = scmp.eq.s32.totalorder %s11665_s26, 1 }
0x3348   : > { %p9154_p9 = pnand %p9153_p8, %p11523_p7 }
0x334a   : > { %p9155_p10 = pneg %p9154_p9 }
0x334c   : > { %p9162_p0 = pnand %p9161_p13, %p9155_p10 }
0x334e   : > { %9165 = shalt.err (!%p9162_p0)
}
0x334f   : > { %s11667_s0 = sld [smem:[#allocation27_spill]] }
0x3355   : > { %s9166_s20 = scalar_lea.hbm %s11667_s0, 512 }
0x3356   : > { %p9167_p1 = scmp.ne.s32.totalorder %s11667_s0, %s9166_s20  ;;  %p9172_p4 = scmp.lt.u32.totalorder %s9166_s20, %s11667_s0 }
0x3358   : > { %p9168_p2 = pnand %p9167_p1, %p11523_p7 }
0x335a   : > { %p9169_p3 = pneg %p9168_p2 }
0x335c   : > { %p9174_p5 = pnand %p9172_p4, %p9169_p3 }
0x335e   : > { %9177 = shalt.err (!%p9174_p5)
}
0x335f   : > { %s9256_s5 = smov 128   ;;  %s9178_s30 = scalar_lea.vmem %s7008_s8, 512 }
0x3360   : > { %8824 = dma.vmem_to_hbm [thread:$0]  (%p11523_p7), %s6992_s22, 512, %s11667_s0, [#allocation4], %s9256_s5, %s9256_s5, %s9250_s14  }
0x3361   : > { %p9179_p6 = scmp.ne.s32.totalorder %s7008_s8, %s9178_s30  ;;  %p9185_p10 = scmp.lt.s32.totalorder %s7008_s8, %s7008_s8 }
0x3362   : > { %p9186_p11 = scmp.lt.s32.totalorder %s9178_s30, %s9178_s30 }
0x3363   : > { %p9180_p8 = pnand %p9179_p6, %p11523_p7 }
0x3364   : > { %p9187_p12 = por %p9186_p11, %p9185_p10 }
0x3365   : > { %p9181_p9 = pneg %p9180_p8 }
0x3367   : > { %p9188_p13 = pnand %p9187_p12, %p9181_p9 }
0x3369   : > { %9191 = shalt.err (!%p9188_p13)
}
0x336a   : > { %s11668_s1 = sld [smem:[#allocation28_spill]] }
0x3370   : > { %s9192_s26 = scalar_lea.hbm %s11668_s1, 512 }
0x3371   : > { %p9193_p0 = scmp.ne.s32.totalorder %s11668_s1, %s9192_s26  ;;  %p9198_p3 = scmp.lt.u32.totalorder %s9192_s26, %s11668_s1 }
0x3373   : > { %p9194_p1 = pnand %p9193_p0, %p11523_p7 }
0x3375   : > { %p9195_p2 = pneg %p9194_p1 }
0x3377   : > { %p9200_p4 = pnand %p9198_p3, %p9195_p2 }
0x3379   : > { %9203 = shalt.err (!%p9200_p4)
}
0x337a   : > { %8826 = dma.vmem_to_hbm [thread:$0]  (%p11523_p7), %s7008_s8, 512, %s11668_s1, [#allocation6], %s9256_s5, %s9256_s5, %s9250_s14  }
0x337b   : > { %9217 = dma.done.wait (%p11523_p7), [#allocation4], 512  }
0x337c   : > { %9219 = vsyncadd (%p11523_p7), [#allocation4], 4294966784 }
0x337d   : > { %9221 = dma.done.wait (%p11523_p7), [#allocation6], 512  }
0x337e   : > { %9223 = vsyncadd (%p11523_p7), [#allocation6], 4294966784 }
0x337f PF: > { %s11669_s20 = sld [smem:[#allocation11_spill]]  ;;  %s11670_s2 = sld [smem:[#allocation10_spill]] }
0x3380   : > { %s11671_s25 = sld [smem:[#allocation12_spill]] }
0x3385   : > { %s34_s26 = sadd.s32 1, %s11669_s20  }
0x3386   : > { %p31_p5 = scmp.ge.s32.totalorder %s34_s26, 4  }
0x3388   :  { %33 = sbr.rel (!%p31_p5) target bundleno = 20 (0x14), region = 199 }
0x338f   :  { %7027 = vsyncpa [#allocation4], 1 }
0x3390   :  { %7029 = vsyncpa [#allocation4 + $0x1], 1 }
0x3391   :  { %7030 = vsyncpa [#allocation6], 1 }

</bundles_post_ra>
